<compile_context>
chip_gen: v7x
topology: tpu7x:2x2x1
jax: 0.10.0
libtpu: 0.0.40
codegen_flags: <defaults>
</compile_context>

<pallas_src>
import jax
import jax.numpy as jnp
from jax.experimental import pallas as pl
from jax.experimental.pallas import tpu as pltpu

IN_DIM = 2
HID = 10
OUT_DIM = 1
CHUNK = 512        # lane sub-chunk inside the kernel (multiple of 128)
TB_MAX = 2048      # max batch tile per grid step (multiple of CHUNK)
PACK_COLS = 72     # packed-parameter width (see pack_params)


def netf_kernel(xT_ref, wp_ref, out_ref):
    wp = wp_ref[...]                        # (10, PACK_COLS) packed params

    # ---- unpack once per grid step (static lane slices) ----
    w1aT = wp[:, 0:2]                       # (10, 2)
    w1bT = wp[:, 2:12]                      # (10, 10)
    w2aT = wp[:, 12:22]
    w2bT = wp[:, 22:32]
    w3aT = wp[:, 32:42]
    w3bT = wp[:, 42:52]
    wfc_row = wp[0:1, 52:62]                # (1, 10)   fc weights as a row
    b1a = wp[:, 62:63]
    b1b = wp[:, 63:64]
    b2a = wp[:, 64:65]
    b2b = wp[:, 65:66]
    b3a = wp[:, 66:67]
    b3b = wp[:, 67:68]
    bfc = wp[0:1, 68:69]                    # (1, 1)

    tb = xT_ref.shape[1]
    n_chunks = tb // CHUNK                  # static, <= TB_MAX // CHUNK = 4

    # Static (fully unrolled) chunk loop: slices are compile-time views, each
    # chunk's live range ends at its out_ref store, keeping vreg pressure low.
    for c in range(n_chunks):
        lo, hi = c * CHUNK, (c + 1) * CHUNK
        x = xT_ref[:, lo:hi]                # (2, CHUNK) batch on lanes
        x0 = x[0:1, :]
        x1 = x[1:2, :]

        # ---- Res(2, 10): first Linear has K=2 -> two broadcast VPU FMAs ----
        g = jnp.sin(w1aT[:, 0:1] * x0 + w1aT[:, 1:2] * x1 + b1a)
        s = jnp.sin(jnp.dot(w1bT, g, preferred_element_type=jnp.float32) + b1b)
        # skip = x @ eye(2,10) (x in feature rows 0/1) is NOT materialized;
        # its contribution is folded into the downstream pre-activations.

        # ---- Res(10, 10) #2: h1 = s + skip ----
        g = jnp.sin(jnp.dot(w2aT, s, preferred_element_type=jnp.float32)
                    + w2aT[:, 0:1] * x0 + w2aT[:, 1:2] * x1 + b2a)
        g = jnp.sin(jnp.dot(w2bT, g, preferred_element_type=jnp.float32) + b2b)
        s = s + g                           # s = g1 + g2   (h2 = s + skip)

        # ---- Res(10, 10) #3 ----
        g = jnp.sin(jnp.dot(w3aT, s, preferred_element_type=jnp.float32)
                    + w3aT[:, 0:1] * x0 + w3aT[:, 1:2] * x1 + b3a)
        g = jnp.sin(jnp.dot(w3bT, g, preferred_element_type=jnp.float32) + b3b)
        s = s + g                           # s = g1 + g2 + g3

        # ---- fc Linear(10, 1) on the MXU + folded skip + bias ----
        y = jnp.dot(wfc_row, s, preferred_element_type=jnp.float32)   # (1, CHUNK)
        y = y + wfc_row[0:1, 0:1] * x0 + wfc_row[0:1, 1:2] * x1 + bfc
        out_ref[:, lo:hi] = y               # lane-dense store


def _pick_tb(n):
    """Batch tile: multiple of CHUNK, <= TB_MAX, and >= 2 grid steps when
    possible so v7x's two TensorCores both get work."""
    if n <= CHUNK:
        return CHUNK
    tb = min(TB_MAX, int(pl.cdiv(n, 2 * CHUNK)) * CHUNK)
    return max(CHUNK, int(tb))


def netf_forward_t(xT, wpack):
    """Lane-dense entry point: xT (2, N) f32 -> (1, N) f32 (no transposes)."""
    N = xT.shape[1]
    tb = _pick_tb(N)
    n_pad = int(pl.cdiv(N, tb)) * tb
    if n_pad != N:
        xT = jnp.pad(xT, ((0, 0), (0, n_pad - N)))

    grid = (n_pad // tb,)
    out_t = pl.pallas_call(
        netf_kernel,
        out_shape=jax.ShapeDtypeStruct((OUT_DIM, n_pad), jnp.float32),
        grid_spec=pltpu.PrefetchScalarGridSpec(
            num_scalar_prefetch=0,
            grid=grid,
            in_specs=[
                pl.BlockSpec((IN_DIM, tb), lambda i: (0, i)),        # xT tile
                pl.BlockSpec((HID, PACK_COLS), lambda i: (0, 0)),    # packed W/b
            ],
            out_specs=pl.BlockSpec((OUT_DIM, tb), lambda i: (0, i)),
        ),
        compiler_params=pltpu.CompilerParams(
            dimension_semantics=("parallel",)),
        cost_estimate=pl.CostEstimate(
            flops=1500 * n_pad,
            transcendentals=6 * HID * n_pad,
            bytes_accessed=4 * (IN_DIM + OUT_DIM) * n_pad + 4 * HID * PACK_COLS),
    )(xT, wpack)

    return out_t[:, :N]


def netf_forward(x, wpack):
    """Module interface: x (N, 2) -> (N, 1).

    The transpose here is layout plumbing only; producers that already hold
    (2, N) data should call netf_forward_t directly and skip it.
    """
    return netf_forward_t(x.astype(jnp.float32).T, wpack).T


def init_params(key):
    """Deterministic init mimicking torch.nn.Linear (uniform +-1/sqrt(fan_in)).

    Weights stored as (in, out); biases as (out,).  Reference computes
    x @ W + b  ==  torch's x @ W_t.T + b.
    """
    def linear(k, fan_in, fan_out):
        kw, kb = jax.random.split(k)
        bound = 1.0 / jnp.sqrt(fan_in)
        w = jax.random.uniform(kw, (fan_in, fan_out), jnp.float32,
                               minval=-bound, maxval=bound)
        b = jax.random.uniform(kb, (fan_out,), jnp.float32,
                               minval=-bound, maxval=bound)
        return w, b

    ks = jax.random.split(key, 7)
    w1a, b1a = linear(ks[0], IN_DIM, HID)
    w1b, b1b = linear(ks[1], HID, HID)
    w2a, b2a = linear(ks[2], HID, HID)
    w2b, b2b = linear(ks[3], HID, HID)
    w3a, b3a = linear(ks[4], HID, HID)
    w3b, b3b = linear(ks[5], HID, HID)
    wfc, bfc = linear(ks[6], HID, OUT_DIM)
    return (w1a, b1a, w1b, b1b,
            w2a, b2a, w2b, b2b,
            w3a, b3a, w3b, b3b,
            wfc, bfc)


def pack_params(params):
    """Pack all weights/biases into one (HID, PACK_COLS) f32 array.

    Columns: [W1a^T(0:2) | W1b^T(2:12) | W2a^T(12:22) | W2b^T(22:32) |
              W3a^T(32:42) | W3b^T(42:52) | wfc^T row in sublane 0 (52:62) |
              b1a b1b b2a b2b b3a b3b (62:68) | bfc at [0,68] | pad]
    """
    (w1a, b1a, w1b, b1b,
     w2a, b2a, w2b, b2b,
     w3a, b3a, w3b, b3b,
     wfc, bfc) = params

    wp = jnp.zeros((HID, PACK_COLS), jnp.float32)
    wp = wp.at[:, 0:2].set(w1a.T)
    wp = wp.at[:, 2:12].set(w1b.T)
    wp = wp.at[:, 12:22].set(w2a.T)
    wp = wp.at[:, 22:32].set(w2b.T)
    wp = wp.at[:, 32:42].set(w3a.T)
    wp = wp.at[:, 42:52].set(w3b.T)
    wp = wp.at[0, 52:62].set(wfc.reshape(HID))      # fc weights as a lane row
    wp = wp.at[:, 62].set(b1a)
    wp = wp.at[:, 63].set(b1b)
    wp = wp.at[:, 64].set(b2a)
    wp = wp.at[:, 65].set(b2b)
    wp = wp.at[:, 66].set(b3a)
    wp = wp.at[:, 67].set(b3b)
    wp = wp.at[0, 68].set(bfc.reshape(()))
    return wp.astype(jnp.float32)


def netf_reference(x, params):
    """Plain-JAX reference of the exact PyTorch semantics."""
    (w1a, b1a, w1b, b1b,
     w2a, b2a, w2b, b2b,
     w3a, b3a, w3b, b3b,
     wfc, bfc) = params

    def res(h, wa, ba, wb, bb, in_dim, out_dim):
        g = jnp.sin(h @ wa + ba)
        g = jnp.sin(g @ wb + bb)
        return g + h @ jnp.eye(in_dim, out_dim, dtype=jnp.float32)

    h = res(x, w1a, b1a, w1b, b1b, IN_DIM, HID)
    h = res(h, w2a, b2a, w2b, b2b, HID, HID)
    h = res(h, w3a, b3a, w3b, b3b, HID, HID)
    return h @ wfc + bfc


if __name__ == "__main__":
    key = jax.random.PRNGKey(0)
    kx, kp = jax.random.split(key)

    params = init_params(kp)
    wpack = pack_params(params)

    # Main case: N=1024 -> tb=512, grid=2 (both v7x TensorCores get work).
    N = 1024
    x = jax.random.normal(kx, (N, IN_DIM), dtype=jnp.float32)
    out = jax.block_until_ready(netf_forward(x, wpack))
    ref = netf_reference(x, params)
    assert out.shape == (N, OUT_DIM)
    assert jnp.allclose(out, ref, atol=2e-5, rtol=1e-4), "mismatch vs reference"

    # Transposed entry point (no wrapper transpose) matches too.
    outT = jax.block_until_ready(netf_forward_t(jnp.asarray(x.T), wpack))
    assert jnp.allclose(outT.T, ref, atol=2e-5, rtol=1e-4), "transposed-entry mismatch"

    # Ragged small batch: exercises the pad-and-slice path (grid=1, 1 chunk).
    out2 = jax.block_until_ready(netf_forward(x[:37], wpack))
    assert jnp.allclose(out2, ref[:37], atol=2e-5, rtol=1e-4), "ragged mismatch"

    # Larger ragged batch: tb=1536 -> 3 inner lane-chunks per grid step, grid=2.
    N3 = 2500
    x3 = jax.random.normal(jax.random.PRNGKey(1), (N3, IN_DIM), dtype=jnp.float32)
    out3 = jax.block_until_ready(netf_forward(x3, wpack))
    ref3 = netf_reference(x3, params)
    assert jnp.allclose(out3, ref3, atol=2e-5, rtol=1e-4), "multi-chunk mismatch"

    print("KERNEL_OK")
</pallas_src>

<mosaic_0001>
module attributes {stable_mosaic.version = 11 : i64} {
  func.func @netf_kernel(%arg0: i32, %arg1: memref<2x512xf32, #tpu.memory_space<vmem>>, %arg2: memref<10x72xf32, #tpu.memory_space<vmem>>, %arg3: memref<1x512xf32, #tpu.memory_space<vmem>>) attributes {dimension_semantics = [#tpu.dimension_semantics<parallel>], iteration_bounds = array<i64: 2>, scalar_prefetch = 0 : i64, scratch_operands = 0 : i64, tpu.core_type = #tpu.core_type<tc>, window_params = [{transform_indices = @transform_0, window_bounds = array<i64: 2, 512>}, {pipeline_mode = #tpu.pipeline_mode<synchronous>, transform_indices = @transform_1, window_bounds = array<i64: 10, 72>}, {transform_indices = @transform_2, window_bounds = array<i64: 1, 512>}]} {
    %c0 = arith.constant 0 : index
    %c0_0 = arith.constant 0 : index
    %0 = vector.load %arg2[%c0, %c0_0] : memref<10x72xf32, #tpu.memory_space<vmem>>, vector<10x72xf32>
    %1 = vector.extract_strided_slice %0 {offsets = [0, 0], sizes = [10, 2], strides = [1, 1]} : vector<10x72xf32> to vector<10x2xf32>
    %2 = vector.extract_strided_slice %0 {offsets = [0, 2], sizes = [10, 10], strides = [1, 1]} : vector<10x72xf32> to vector<10x10xf32>
    %3 = vector.extract_strided_slice %0 {offsets = [0, 12], sizes = [10, 10], strides = [1, 1]} : vector<10x72xf32> to vector<10x10xf32>
    %4 = vector.extract_strided_slice %0 {offsets = [0, 22], sizes = [10, 10], strides = [1, 1]} : vector<10x72xf32> to vector<10x10xf32>
    %5 = vector.extract_strided_slice %0 {offsets = [0, 32], sizes = [10, 10], strides = [1, 1]} : vector<10x72xf32> to vector<10x10xf32>
    %6 = vector.extract_strided_slice %0 {offsets = [0, 42], sizes = [10, 10], strides = [1, 1]} : vector<10x72xf32> to vector<10x10xf32>
    %7 = vector.extract_strided_slice %0 {offsets = [0, 52], sizes = [1, 10], strides = [1, 1]} : vector<10x72xf32> to vector<1x10xf32>
    %8 = vector.extract_strided_slice %0 {offsets = [0, 62], sizes = [10, 1], strides = [1, 1]} : vector<10x72xf32> to vector<10x1xf32>
    %9 = vector.extract_strided_slice %0 {offsets = [0, 63], sizes = [10, 1], strides = [1, 1]} : vector<10x72xf32> to vector<10x1xf32>
    %10 = vector.extract_strided_slice %0 {offsets = [0, 64], sizes = [10, 1], strides = [1, 1]} : vector<10x72xf32> to vector<10x1xf32>
    %11 = vector.extract_strided_slice %0 {offsets = [0, 65], sizes = [10, 1], strides = [1, 1]} : vector<10x72xf32> to vector<10x1xf32>
    %12 = vector.extract_strided_slice %0 {offsets = [0, 66], sizes = [10, 1], strides = [1, 1]} : vector<10x72xf32> to vector<10x1xf32>
    %13 = vector.extract_strided_slice %0 {offsets = [0, 67], sizes = [10, 1], strides = [1, 1]} : vector<10x72xf32> to vector<10x1xf32>
    %14 = vector.extract_strided_slice %0 {offsets = [0, 68], sizes = [1, 1], strides = [1, 1]} : vector<10x72xf32> to vector<1x1xf32>
    %c0_1 = arith.constant 0 : index
    %c0_2 = arith.constant 0 : index
    %15 = vector.load %arg1[%c0_1, %c0_2] : memref<2x512xf32, #tpu.memory_space<vmem>>, vector<2x512xf32>
    %16 = vector.extract_strided_slice %15 {offsets = [0, 0], sizes = [1, 512], strides = [1, 1]} : vector<2x512xf32> to vector<1x512xf32>
    %17 = vector.extract_strided_slice %15 {offsets = [1, 0], sizes = [1, 512], strides = [1, 1]} : vector<2x512xf32> to vector<1x512xf32>
    %18 = vector.extract_strided_slice %1 {offsets = [0, 0], sizes = [10, 1], strides = [1, 1]} : vector<10x2xf32> to vector<10x1xf32>
    %19 = vector.broadcast %18 : vector<10x1xf32> to vector<10x512xf32>
    %20 = vector.broadcast %16 : vector<1x512xf32> to vector<10x512xf32>
    %21 = arith.mulf %19, %20 : vector<10x512xf32>
    %22 = vector.extract_strided_slice %1 {offsets = [0, 1], sizes = [10, 1], strides = [1, 1]} : vector<10x2xf32> to vector<10x1xf32>
    %23 = vector.broadcast %22 : vector<10x1xf32> to vector<10x512xf32>
    %24 = vector.broadcast %17 : vector<1x512xf32> to vector<10x512xf32>
    %25 = arith.mulf %23, %24 : vector<10x512xf32>
    %26 = arith.addf %21, %25 : vector<10x512xf32>
    %27 = vector.broadcast %8 : vector<10x1xf32> to vector<10x512xf32>
    %28 = arith.addf %26, %27 : vector<10x512xf32>
    %29 = math.sin %28 : vector<10x512xf32>
    %cst = arith.constant dense<0.000000e+00> : vector<10x512xf32>
    %30 = tpu.matmul %2, %29, %cst {dimension_numbers = #tpu.dot_dimension_numbers<[1], [0], [0], [1], [0, 0, 1, 1], [], []>} : vector<10x10xf32>, vector<10x512xf32>, vector<10x512xf32> -> vector<10x512xf32>
    %31 = vector.broadcast %9 : vector<10x1xf32> to vector<10x512xf32>
    %32 = arith.addf %30, %31 : vector<10x512xf32>
    %33 = math.sin %32 : vector<10x512xf32>
    %cst_3 = arith.constant dense<0.000000e+00> : vector<10x512xf32>
    %34 = tpu.matmul %3, %33, %cst_3 {dimension_numbers = #tpu.dot_dimension_numbers<[1], [0], [0], [1], [0, 0, 1, 1], [], []>} : vector<10x10xf32>, vector<10x512xf32>, vector<10x512xf32> -> vector<10x512xf32>
    %35 = vector.extract_strided_slice %3 {offsets = [0, 0], sizes = [10, 1], strides = [1, 1]} : vector<10x10xf32> to vector<10x1xf32>
    %36 = vector.broadcast %35 : vector<10x1xf32> to vector<10x512xf32>
    %37 = vector.broadcast %16 : vector<1x512xf32> to vector<10x512xf32>
    %38 = arith.mulf %36, %37 : vector<10x512xf32>
    %39 = arith.addf %34, %38 : vector<10x512xf32>
    %40 = vector.extract_strided_slice %3 {offsets = [0, 1], sizes = [10, 1], strides = [1, 1]} : vector<10x10xf32> to vector<10x1xf32>
    %41 = vector.broadcast %40 : vector<10x1xf32> to vector<10x512xf32>
    %42 = vector.broadcast %17 : vector<1x512xf32> to vector<10x512xf32>
    %43 = arith.mulf %41, %42 : vector<10x512xf32>
    %44 = arith.addf %39, %43 : vector<10x512xf32>
    %45 = vector.broadcast %10 : vector<10x1xf32> to vector<10x512xf32>
    %46 = arith.addf %44, %45 : vector<10x512xf32>
    %47 = math.sin %46 : vector<10x512xf32>
    %cst_4 = arith.constant dense<0.000000e+00> : vector<10x512xf32>
    %48 = tpu.matmul %4, %47, %cst_4 {dimension_numbers = #tpu.dot_dimension_numbers<[1], [0], [0], [1], [0, 0, 1, 1], [], []>} : vector<10x10xf32>, vector<10x512xf32>, vector<10x512xf32> -> vector<10x512xf32>
    %49 = vector.broadcast %11 : vector<10x1xf32> to vector<10x512xf32>
    %50 = arith.addf %48, %49 : vector<10x512xf32>
    %51 = math.sin %50 : vector<10x512xf32>
    %52 = arith.addf %33, %51 : vector<10x512xf32>
    %cst_5 = arith.constant dense<0.000000e+00> : vector<10x512xf32>
    %53 = tpu.matmul %5, %52, %cst_5 {dimension_numbers = #tpu.dot_dimension_numbers<[1], [0], [0], [1], [0, 0, 1, 1], [], []>} : vector<10x10xf32>, vector<10x512xf32>, vector<10x512xf32> -> vector<10x512xf32>
    %54 = vector.extract_strided_slice %5 {offsets = [0, 0], sizes = [10, 1], strides = [1, 1]} : vector<10x10xf32> to vector<10x1xf32>
    %55 = vector.broadcast %54 : vector<10x1xf32> to vector<10x512xf32>
    %56 = vector.broadcast %16 : vector<1x512xf32> to vector<10x512xf32>
    %57 = arith.mulf %55, %56 : vector<10x512xf32>
    %58 = arith.addf %53, %57 : vector<10x512xf32>
    %59 = vector.extract_strided_slice %5 {offsets = [0, 1], sizes = [10, 1], strides = [1, 1]} : vector<10x10xf32> to vector<10x1xf32>
    %60 = vector.broadcast %59 : vector<10x1xf32> to vector<10x512xf32>
    %61 = vector.broadcast %17 : vector<1x512xf32> to vector<10x512xf32>
    %62 = arith.mulf %60, %61 : vector<10x512xf32>
    %63 = arith.addf %58, %62 : vector<10x512xf32>
    %64 = vector.broadcast %12 : vector<10x1xf32> to vector<10x512xf32>
    %65 = arith.addf %63, %64 : vector<10x512xf32>
    %66 = math.sin %65 : vector<10x512xf32>
    %cst_6 = arith.constant dense<0.000000e+00> : vector<10x512xf32>
    %67 = tpu.matmul %6, %66, %cst_6 {dimension_numbers = #tpu.dot_dimension_numbers<[1], [0], [0], [1], [0, 0, 1, 1], [], []>} : vector<10x10xf32>, vector<10x512xf32>, vector<10x512xf32> -> vector<10x512xf32>
    %68 = vector.broadcast %13 : vector<10x1xf32> to vector<10x512xf32>
    %69 = arith.addf %67, %68 : vector<10x512xf32>
    %70 = math.sin %69 : vector<10x512xf32>
    %71 = arith.addf %52, %70 : vector<10x512xf32>
    %cst_7 = arith.constant dense<0.000000e+00> : vector<1x512xf32>
    %72 = tpu.matmul %7, %71, %cst_7 {dimension_numbers = #tpu.dot_dimension_numbers<[1], [0], [0], [1], [0, 0, 1, 1], [], []>} : vector<1x10xf32>, vector<10x512xf32>, vector<1x512xf32> -> vector<1x512xf32>
    %73 = vector.extract_strided_slice %7 {offsets = [0, 0], sizes = [1, 1], strides = [1, 1]} : vector<1x10xf32> to vector<1x1xf32>
    %74 = vector.broadcast %73 : vector<1x1xf32> to vector<1x512xf32>
    %75 = arith.mulf %74, %16 : vector<1x512xf32>
    %76 = arith.addf %72, %75 : vector<1x512xf32>
    %77 = vector.extract_strided_slice %7 {offsets = [0, 1], sizes = [1, 1], strides = [1, 1]} : vector<1x10xf32> to vector<1x1xf32>
    %78 = vector.broadcast %77 : vector<1x1xf32> to vector<1x512xf32>
    %79 = arith.mulf %78, %17 : vector<1x512xf32>
    %80 = arith.addf %76, %79 : vector<1x512xf32>
    %81 = vector.broadcast %14 : vector<1x1xf32> to vector<1x512xf32>
    %82 = arith.addf %80, %81 : vector<1x512xf32>
    %c0_8 = arith.constant 0 : index
    %c0_9 = arith.constant 0 : index
    %83 = vector.load %arg3[%c0_8, %c0_9] : memref<1x512xf32, #tpu.memory_space<vmem>>, vector<1x512xf32>
    tpu.vector_store %arg3[%c0_8, %c0_9], %82 {strides = array<i32>} : memref<1x512xf32, #tpu.memory_space<vmem>>, vector<1x512xf32>,
    return
  }
  func.func @transform_0(%arg0: i32) -> (i32, i32) {
    %c0_i32 = arith.constant 0 : i32
    %c0_i32_0 = arith.constant 0 : i32
    return %c0_i32, %arg0 : i32, i32
  }
  func.func @transform_1(%arg0: i32) -> (i32, i32) {
    %c0_i32 = arith.constant 0 : i32
    %c0_i32_0 = arith.constant 0 : i32
    %c0_i32_1 = arith.constant 0 : i32
    return %c0_i32, %c0_i32_0 : i32, i32
  }
  func.func @transform_2(%arg0: i32) -> (i32, i32) {
    %c0_i32 = arith.constant 0 : i32
    %c0_i32_0 = arith.constant 0 : i32
    return %c0_i32, %arg0 : i32, i32
  }
}

</mosaic_0001>

<bundles_post_ra>
// kernel: tpu_custom_call.1
= control target key start
LH: loop header
LB: loop body
LE: loop exit
PB: predicated region body
PF: predicated region fallthrough
CT: control target
= control target key end

     0   :  { %7 = vsyncpa [#allocation3], 0  ;;  %s12731_s0 = inlined_call_operand.hbm [shape: f32[2,1024], index: 0, kind: input, shape index: {}]   ;;  %s12732_s1 = inlined_call_operand.hbm [shape: f32[10,72], index: 1, kind: input, shape index: {}]   ;;  %s12733_s2 = inlined_call_operand.hbm [shape: f32[1,1024], index: 2, kind: output, shape index: {}]  }
   0x1   :  { %9 = vsyncpa [#allocation3 + $0x1], 0 }
   0x2   :  { %10 = vsyncpa [#allocation6], 0 }
   0x3   :  { %11 = vsyncpa [#allocation4], 0 }
   0x4   :  { %13 = vsyncpa [#allocation4 + $0x1], 0  ;;  %s7658_s9 = smov 0   ;;  %s7660_s10 = smov 0  }
   0x5   :  { %s7662_s11 = smov 0   ;;  %s7664_s12 = smov 0  }
   0x6 LB: > { %s7679_s13 = sadd.s32 4294967295, %s7606_s12   ;;  %s6642_s14 = sadd.s32 4294967294, %s7606_s12   ;;  %s7606_s12 = sphi %s7664_s12, %s13127_s12   ;;  %s7602_s11 = sphi %s7662_s11, %s13126_s11   ;;  %s7598_s10 = sphi %s7660_s10, %s13125_s10   ;;  %s7594_s9 = sphi %s7658_s9, %s13124_s9  }
   0x7   : > { %p39_p0 = scmp.ne.s32.totalorder %s7598_s10, %s7594_s9  ;;  %p12734_p1 = scmp.eq.s32.totalorder %s7679_s13, 0 }
   0x8   : > { %p90_p3 = scmp.eq.s32.totalorder %s6642_s14, 1  ;;  %p6643_p5 = scmp.ge.s32.totalorder %s7606_s12, 1 }
   0x9   : > { %p7688_p4 = por %p12734_p1, %p39_p0  ;;  %p97_p7 = scmp.lt.s32.totalorder %s7606_s12, 3 }
   0xa   : > { %p7693_p6 = por %p90_p3, %p39_p0  ;;  %s7608_s18 = smov [#allocation5]  }
   0xb   : > { %s12860_s15 = scalar_select %p7688_p4, 1, 0 }
   0xc   : > { %s12861_s16 = scalar_select %p7693_p6, 1, 0 }
   0xd   : > { %p7698_p8 = pnand %p6643_p5, %p97_p7  ;;  %s109_s19 = sshll.u32 %s7608_s18, 4  ;;  %s7702_s19 = int_to_ptr.vmem [resolvable:$true] %s109_s19 }
   0xe   : > { %s7714_s21 = sadd.s32 1, %s7606_s12   ;;  %s26_s22 = sadd.s32 1, %s7602_s11 }
   0xf   : > { %s12862_s17 = scalar_select %p7698_p8, 1, 0 }
  0x10   : > { %p7170_p9 = pneg %p7698_p8  ;;  %s23_s23 = ssub.s32 %s7606_s12, %s7714_s21 }
  0x11   : > { %s7478_s26 = scalar_lea.hbm %s12732_s1, 256 }
  0x12   : > { %p7709_p11 = pnand %p7170_p9, %p12734_p1  ;;  %p7479_p12 = scmp.ne.s32.totalorder %s12732_s1, %s7478_s26 }
  0x13   : > { %p7485_p5 = scmp.lt.u32.totalorder %s7478_s26, %s12732_s1 }
  0x14   : > { %p7480_p13 = pneg %p7709_p11 }
  0x16   : > { %p7481_p0 = pnand %p7480_p13, %p7479_p12 }
  0x18   : > { %p7482_p3 = pneg %p7481_p0 }
  0x1a   : > { %p7487_p7 = pnand %p7485_p5, %p7482_p3 }
  0x1c   : > { %7490 = shalt.err (!%p7487_p7)
}
  0x1d   : > { %s7491_s3 = scalar_lea.vmem %s7702_s19, 256  ;;  %p7499_p2 = scmp.lt.s32.totalorder %s7702_s19, %s7702_s19 }
  0x1e   : > { %p7492_p9 = scmp.ne.s32.totalorder %s7702_s19, %s7491_s3  ;;  %p7500_p6 = scmp.lt.s32.totalorder %s7491_s3, %s7491_s3 }
  0x20   : > { %p7494_p10 = pnand %p7492_p9, %p7480_p13  ;;  %p7501_p4 = por %p7500_p6, %p7499_p2 }
  0x22   : > { %p7495_p1 = pneg %p7494_p10 }
  0x24   : > { %p7502_p8 = pnand %p7501_p4, %p7495_p1 }
  0x26   : > { %7505 = shalt.err (!%p7502_p8)
}
  0x27   : > { %s7609_s4 = smov 128   ;;  %s7610_s5 = smov 8  }
  0x28   : > { %7173 = dma.hbm_to_vmem [thread:$0]  (!%p7709_p11), %s12732_s1, 256, %s7702_s19, [#allocation6], %s7609_s4, %s7609_s4, %s7610_s5  }
  0x29   : > { %p24_p2 = scmp.eq.s32.totalorder %s23_s23, 0  ;;  %p33_p1 = scmp.ne.s32.totalorder %s7602_s11, %s7598_s10 }
  0x2a   : > { %p34_p4 = scmp.eq.s32.totalorder %s7606_s12, 0  ;;  %p7183_p6 = scmp.lt.s32.totalorder %s7606_s12, 2 }
  0x2b   : > { %s7745_s8 = scalar_select %p24_p2, %s7602_s11, %s26_s22  }
  0x2c   : > { %p35_p8 = por %p34_p4, %p33_p1  ;;  %p12864_p10 = scmp.eq.s32.totalorder %s7679_s13, 1 }
  0x2d   : > { %s123_s18 = sand.u32 1, %s7602_s11   ;;  %s6896_s24 = sshll.u32 %s7606_s12, 7 }
  0x2e   : > { %p7749_p12 = por %p12864_p10, %p33_p1  ;;  %s6646_s25 = sshll.u32 %s123_s18, 3 }
  0x2f   : > { %s7758_s27 = scalar_lea.hbm %s12731_s0, %s6896_s24  ;;  %s127_s19 = scalar_lea.vmem [#allocation2], %s6646_s25 }
  0x30   : > { %s135_s22 = sshll.u32 %s127_s19, 4  ;;  %p7760_p11 = pnand %p7183_p6, %p35_p8  ;;  %s7764_s22 = int_to_ptr.vmem [resolvable:$true] %s135_s22 }
  0x31   : > { %s124_s28 = scalar_lea.sflag [#allocation3], %s123_s18  ;;  %s7506_s29 = scalar_lea.hbm %s7758_s27, 128 }
  0x32   : > { %p7507_p13 = scmp.ne.s32.totalorder %s7758_s27, %s7506_s29  ;;  %p7508_p0 = pneg %p7760_p11 }
  0x33   : > { %s7511_s4 = scalar_lea.hbm %s12731_s0, 256  ;;  %p7512_p7 = scmp.lt.u32.totalorder %s7758_s27, %s12731_s0 }
  0x34   : > { %p7509_p3 = pnand %p7508_p0, %p7507_p13  ;;  %p7513_p9 = scmp.lt.u32.totalorder %s7511_s4, %s7506_s29 }
  0x35   : > { %p7515_p1 = scmp.lt.u32.totalorder %s7506_s29, %s7758_s27 }
  0x36   : > { %p7510_p5 = pneg %p7509_p3  ;;  %p7514_p2 = por %p7513_p9, %p7512_p7 }
  0x38   : > { %p7516_p4 = por %p7515_p1, %p7514_p2 }
  0x3a   : > { %p7517_p6 = pnand %p7516_p4, %p7510_p5 }
  0x3c   : > { %7520 = shalt.err (!%p7517_p6)
}
  0x3d   : > { %s7521_s7 = scalar_lea.vmem %s7764_s22, 128  ;;  %s7611_s18 = smov [#allocation2]  }
  0x3e   : > { %p7522_p8 = scmp.ne.s32.totalorder %s7764_s22, %s7521_s7  ;;  %s7526_s24 = sshll.u32 %s7611_s18, 4  ;;  %s7527_s24 = int_to_ptr.vmem [resolvable:$false] %s7526_s24 }
  0x3f   : > { %s7528_s25 = scalar_lea.vmem %s7527_s24, 256  ;;  %p7529_p3 = scmp.lt.s32.totalorder %s7764_s22, %s7527_s24 }
  0x40   : > { %p7524_p10 = pnand %p7522_p8, %p7508_p0  ;;  %p7530_p7 = scmp.lt.s32.totalorder %s7528_s25, %s7521_s7 }
  0x42   : > { %p7525_p13 = pneg %p7524_p10  ;;  %p7531_p9 = por %p7530_p7, %p7529_p3 }
  0x44   : > { %p7532_p2 = pnand %p7531_p9, %p7525_p13 }
  0x46   : > { %7535 = shalt.err (!%p7532_p2)
}
  0x47   : > { %7177 = dma.hbm_to_vmem [thread:$0]  (!%p7760_p11), %s7758_s27, 128, %s7764_s22, %s124_s28  }
  0x48   : > { %p12867_p5 = scmp.ne.s32.totalorder %s12862_s17, 0 }
  0x4a   : > { %144 = sbr.rel (%p12867_p5) target bundleno = 2762 (0xaca), region = 28 }
  0x51   : > { %s7794_s20 = sand.u32 1, %s7598_s10   ;;  %p12868_p0 = scmp.ne.s32.totalorder %s12860_s15, 0 }
  0x52   : > { %s6650_s26 = sshll.u32 %s7794_s20, 3  ;;  %s147_s19 = scalar_lea.sflag [#allocation3], %s7794_s20 }
  0x53   : > { %s150_s29 = scalar_lea.vmem [#allocation2], %s6650_s26 }
  0x54   : > { %7581 = dma.done.wait (%p12868_p0), %s147_s19, 128  }
  0x55   : > { %7583 = vsyncadd (%p12868_p0), %s147_s19, 4294967168  ;;  %p12869_p1 = scmp.eq.s32.totalorder %s7679_s13, 0 }
  0x57   : > { %7585 = dma.done.wait (%p12869_p1), [#allocation6], 256   ;;  %p12870_p11 = pmov %p12869_p1 }
  0x58   : > { %v12737_v0 = vlaneseq  ;;  %v7612_v1 = vmov 1   ;;  %v7613_v2 = vmov 0   ;;  %v177_v6 = vld [vmem:[#allocation5] sm:$0xff]  ;;  %v179_v7 = vld [vmem:[%s150_s29] sm:$0xff]  ;;  %v178_v9 = vld [vmem:[#allocation5 + $0x8] sm:$0x3] }
  0x59   : > { %7587 = vsyncadd (%p12870_p11), [#allocation6], 4294967040  ;;  %7252 = vset.pattern.permute.xlu1 %v7612_v1  ;;  %7251 = vset.pattern.permute.xlu0 %v7613_v2  ;;  %v7614_v11 = vmov 62   ;;  %s7615_s15 = smov 126   ;;  %s7625_s17 = smov 116  }
  0x5a   : > { %v7807_v3 = vshrl.u32 %v12737_v0, 7  ;;  %236 = vperm.xlu1 %7252, %v177_v6   ;;  %182 = vperm.xlu0 %7251, %v177_v6   ;;  %s7629_s27 = smov 106   ;;  %s7631_s22 = smov 96  }
  0x5b   : > { %s7635_s23 = smov 86   ;;  %s7637_s28 = smov 76  }
  0x5c   : > { %12871 = vst [vmem:[#allocation11_spill] sm:$0xff] %v7807_v3  ;;  %v245_v4 = vsub.s32 1, %v7807_v3  ;;  %v193_v5 = vsub.s32 0, %v7807_v3  ;;  %v253_v12 = vsub.s32 5, %v7807_v3  ;;  %v201_v13 = vsub.s32 4, %v7807_v3  ;;  %s6652_s30 = sshll.u32 %s7794_s20, 2 }
  0x5d   : > { %v249_v14 = vsub.s32 3, %v7807_v3  ;;  %v197_v15 = vsub.s32 2, %v7807_v3  ;;  %v257_v18 = vsub.s32 7, %v7807_v3  ;;  %v205_v19 = vsub.s32 6, %v7807_v3  ;;  %s6897_s3 = sshll.u32 %s7679_s13, 6  ;;  %s174_s4 = scalar_lea.vmem [#allocation7], %s6652_s30 }
  0x5e   : > { %v7811_v8 = vrot.slane %v179_v7, %v245_v4  ;;  %v7813_v10 = vrot.slane %v179_v7, %v193_v5  ;;  %240 = vperm.xlu1 %7252, %v178_v9   ;;  %187 = vperm.xlu0 %7251, %v178_v9   ;;  %v7819_v16 = vrot.slane %v179_v7, %v253_v12  ;;  %v12896_v3 = vmov 2102212464   ;;  %s6562_s5 = sshll.u32 %s174_s4, 4  ;;  %s12687_s18 = scalar_lea.hbm %s12733_s2, %s6897_s3  ;;  %s12689_s5 = int_to_ptr.vmem [resolvable:$true] %s6562_s5 }
  0x5f   : > { %v7821_v17 = vrot.slane %v179_v7, %v201_v13  ;;  %v7825_v20 = vrot.slane %v179_v7, %v249_v14  ;;  %v7827_v21 = vrot.slane %v179_v7, %v197_v15  ;;  %v7841_v26 = vrot.slane %v179_v7, %v257_v18  ;;  %s6548_s24 = scalar_lea.sflag [#allocation4], %s7794_s20  ;;  %s7536_s25 = scalar_lea.vmem %s12689_s5, 64 }
  0x60   : > { %12872 = vst [vmem:[#allocation12_spill] sm:$0xff] %v7811_v8  ;;  %12873 = vst [vmem:[#allocation13_spill] sm:$0xff] %v7813_v10  ;;  %v7830_v22 = vrot.slane %v7811_v8, %v245_v4  ;;  %v7833_v23 = vrot.slane %v7819_v16, %v245_v4  ;;  %v7836_v24 = vrot.slane %v7813_v10, %v193_v5  ;;  %p7537_p4 = scmp.ne.s32.totalorder %s12689_s5, %s7536_s25  ;;  %s7642_s13 = smov [#allocation7]  }
  0x61   : > { %12874 = vst [vmem:[#allocation14_spill] sm:$0xff] %v7819_v16  ;;  %12875 = vst [vmem:[#allocation15_spill] sm:$0xff] %v7821_v17  ;;  %v7839_v25 = vrot.slane %v7821_v17, %v193_v5  ;;  %v7843_v27 = vrot.slane %v179_v7, %v205_v19  ;;  %v7846_v28 = vrot.slane %v7825_v20, %v245_v4  ;;  %s7540_s26 = sshll.u32 %s7642_s13, 4  ;;  %s7541_s26 = int_to_ptr.vmem [resolvable:$false] %s7540_s26 }
  0x62   : > { %7254 = vset.pattern.permute.xlu1 %v7614_v11  ;;  %7253 = vset.pattern.permute.xlu0 %v7614_v11  ;;  %12876 = vst [vmem:[#allocation16_spill] sm:$0xff] %v7825_v20  ;;  %12877 = vst [vmem:[#allocation17_spill] sm:$0xff] %v7827_v21  ;;  %v7849_v30 = vrot.slane %v7827_v21, %v193_v5  ;;  %v7856_v36 = vrot.slane %v7841_v26, %v245_v4  ;;  %v12898_v21 = vmov 1326507024   ;;  %p7538_p6 = pnand %p7537_p4, %p7749_p12  ;;  %s7542_s19 = scalar_lea.vmem %s7541_s26, 128 }
  0x63   : > { %300 = vperm.xlu1 %7254, %v178_v9   ;;  %296 = vperm.xlu0 %7253, %v177_v6   ;;  %12878 = vst [vmem:[#allocation18_spill] sm:$0xff] %v7830_v22  ;;  %12879 = vst [vmem:[#allocation19_spill] sm:$0xff] %v7833_v23  ;;  %v7859_v37 = vrot.slane %v7843_v27, %v193_v5  ;;  %p7543_p10 = scmp.lt.s32.totalorder %s12689_s5, %s7541_s26  ;;  %p7544_p13 = scmp.lt.s32.totalorder %s7542_s19, %s7536_s25 }
  0x64   : > { %12880 = vst [vmem:[#allocation20_spill] sm:$0xff] %v7836_v24  ;;  %12881 = vst [vmem:[#allocation21_spill] sm:$0xff] %v7839_v25  ;;  %p7539_p8 = pneg %p7538_p6 }
  0x65   : > { %12882 = vst [vmem:[#allocation22_spill] sm:$0xff] %v7841_v26  ;;  %12883 = vst [vmem:[#allocation23_spill] sm:$0xff] %v7843_v27  ;;  %v12897_v26 = vmov 683565275   ;;  %p7545_p3 = por %p7544_p13, %p7543_p10 }
  0x66   : > { %12884 = vst [vmem:[#allocation24_spill] sm:$0xff] %v7846_v28  ;;  %12885 = vst [vmem:[#allocation25_spill] sm:$0xff] %v7849_v30 }
  0x67   : > { %1151 = vrot.lane.b32.xlu1 %v177_v6, %s7615_s15  ;;  %1153 = vrot.lane.b32.xlu0 %v178_v9, %s7615_s15  ;;  %12886 = vst [vmem:[#allocation26_spill] sm:$0xff] %v7856_v36  ;;  %12887 = vst [vmem:[#allocation27_spill] sm:$0xff] %v7859_v37  ;;  %p7546_p7 = pnand %p7545_p3, %p7539_p8 }
  0xd9   : > { %v237_v29 = vpop.permute.xlu1 %236  ;;  %v183_v31 = vpop.permute.xlu0 %182 }
  0xda   : > { %v279_v32 = vmul.f32 %v7830_v22, %v237_v29  ;;  %v281_v33 = vmul.f32 %v7833_v23, %v237_v29  ;;  %v227_v34 = vmul.f32 %v7836_v24, %v183_v31  ;;  %v229_v35 = vmul.f32 %v7839_v25, %v183_v31 }
  0xdb   : > { %v280_v38 = vmul.f32 %v7846_v28, %v237_v29  ;;  %v228_v39 = vmul.f32 %v7849_v30, %v183_v31  ;;  %v282_v63 = vmul.f32 %v7856_v36, %v237_v29  ;;  %v230_v1 = vmul.f32 %v7859_v37, %v183_v31 }
  0xdc   : > { %v287_v42 = vadd.f32 %v279_v32, %v227_v34  ;;  %v289_v43 = vadd.f32 %v281_v33, %v229_v35 }
  0xdd   : > { %v241_v40 = vpop.permute.xlu1 %240  ;;  %v188_v41 = vpop.permute.xlu0 %187  ;;  %v288_v57 = vadd.f32 %v280_v38, %v228_v39  ;;  %v290_v18 = vadd.f32 %v282_v63, %v230_v1 }
  0xde   : > { %v283_v44 = vmul.f32 %v7830_v22, %v241_v40  ;;  %v284_v45 = vmul.f32 %v7846_v28, %v241_v40  ;;  %v285_v46 = vmul.f32 %v7833_v23, %v241_v40  ;;  %v286_v47 = vmul.f32 %v7856_v36, %v241_v40 }
  0xdf   : > { %v231_v48 = vmul.f32 %v7836_v24, %v188_v41  ;;  %v232_v49 = vmul.f32 %v7849_v30, %v188_v41  ;;  %v233_v50 = vmul.f32 %v7839_v25, %v188_v41  ;;  %v234_v51 = vmul.f32 %v7859_v37, %v188_v41 }
  0xe1   : > { %v291_v52 = vadd.f32 %v283_v44, %v231_v48  ;;  %v292_v53 = vadd.f32 %v284_v45, %v232_v49  ;;  %v293_v54 = vadd.f32 %v285_v46, %v233_v50  ;;  %v294_v55 = vadd.f32 %v286_v47, %v234_v51 }
  0xe2   : > { %v301_v56 = vpop.permute.xlu1 %300  ;;  %v297_v58 = vpop.permute.xlu0 %296 }
  0xe3   : > { %v7871_v59 = vadd.f32 %v301_v56, %v291_v52  ;;  %v7873_v60 = vadd.f32 %v301_v56, %v292_v53  ;;  %v7875_v61 = vadd.f32 %v301_v56, %v293_v54  ;;  %v7877_v62 = vadd.f32 %v301_v56, %v294_v55 }
  0xe4   : > { %v7881_v2 = vadd.f32 %v297_v58, %v287_v42  ;;  %v7883_v4 = vadd.f32 %v297_v58, %v288_v57  ;;  %v7891_v32 = vadd.f32 %v297_v58, %v289_v43  ;;  %v7893_v33 = vadd.f32 %v297_v58, %v290_v18 }
  0xe5   : > { %12888 = vst [vmem:[#allocation28_spill] sm:$0xff] %v7875_v61  ;;  %v730_v5 = vand.u32 2139095040, %v7871_v59  ;;  %v834_v6 = vand.u32 2139095040, %v7873_v60  ;;  %v938_v7 = vand.u32 2139095040, %v7875_v61  ;;  %v1042_v14 = vand.u32 2139095040, %v7877_v62 }
  0xe6   : > { %v314_v9 = vand.u32 2139095040, %v7881_v2  ;;  %v418_v11 = vand.u32 2139095040, %v7883_v4  ;;  %12889 = vst [vmem:[#allocation29_spill] sm:$0xff] %v7891_v32  ;;  %v522_v42 = vand.u32 2139095040, %v7891_v32  ;;  %v626_v44 = vand.u32 2139095040, %v7893_v33 }
  0xe7   : > { %v731_v12 = vshrl.u32 %v730_v5, 23  ;;  %v835_v13 = vshrl.u32 %v834_v6, 23  ;;  %v939_v15 = vshrl.u32 %v938_v7, 23  ;;  %v1043_v35 = vshrl.u32 %v1042_v14, 23 }
  0xe8   : > { %v315_v19 = vshrl.u32 %v314_v9, 23  ;;  %v419_v29 = vshrl.u32 %v418_v11, 23  ;;  %v523_v43 = vshrl.u32 %v522_v42, 23  ;;  %v627_v50 = vshrl.u32 %v626_v44, 23 }
  0xe9   : > { %v6669_v31 = vadd.s32 4294967169, %v731_v12  ;;  %v6673_v34 = vadd.s32 4294967169, %v835_v13  ;;  %v6677_v38 = vadd.s32 4294967169, %v939_v15  ;;  %v6681_v46 = vadd.s32 4294967169, %v1043_v35 }
  0xea   : > { %v6653_v39 = vadd.s32 4294967169, %v315_v19  ;;  %v6657_v40 = vadd.s32 4294967169, %v419_v29  ;;  %v6661_v55 = vadd.s32 4294967169, %v523_v43  ;;  %v6665_v56 = vadd.s32 4294967169, %v627_v50 }
  0xeb   : > { %v737_v41 = vadd.s32 1, %v6669_v31  ;;  %v841_v45 = vadd.s32 1, %v6673_v34  ;;  %v945_v47 = vadd.s32 1, %v6677_v38  ;;  %v1049_v51 = vadd.s32 1, %v6681_v46 }
  0xec   : > { %v321_v48 = vadd.s32 1, %v6653_v39  ;;  %v425_v49 = vadd.s32 1, %v6657_v40  ;;  %v529_v12 = vadd.s32 1, %v6661_v55  ;;  %v7911_v13 = vadd.s32 1, %v6665_v56 }
  0xed   : > { %vm738_vm0 = vcmp.gt.s32.totalorder %v737_v41, 0  ;;  %vm842_vm1 = vcmp.gt.s32.totalorder %v841_v45, 0  ;;  %vm946_vm2 = vcmp.gt.s32.totalorder %v945_v47, 0  ;;  %vm1050_vm5 = vcmp.gt.s32.totalorder %v1049_v51, 0 }
  0xee   : > { %v739_v52 = vsel %vm738_vm0, %v737_v41, 0  ;;  %vm322_vm3 = vcmp.gt.s32.totalorder %v321_v48, 0  ;;  %vm426_vm4 = vcmp.gt.s32.totalorder %v425_v49, 0  ;;  %v843_v58 = vsel %vm842_vm1, %v841_v45, 0 }
  0xef   : > { %v427_v53 = vsel %vm426_vm4, %v425_v49, 0  ;;  %v7897_v54 = vsel %vm322_vm3, %v321_v48, 0  ;;  %v7899_v57 = vand.u32 31, %v739_v52  ;;  %v947_v63 = vsel %vm946_vm2, %v945_v47, 0 }
  0xf0   : > { %v429_v1 = vand.u32 31, %v427_v53  ;;  %v7902_v5 = vand.u32 31, %v7897_v54  ;;  %v7904_v6 = vand.u32 31, %v843_v58  ;;  %v7906_v7 = vand.u32 31, %v947_v63 }
  0xf1   : > { %12890 = vst [vmem:[#allocation30_spill] sm:$0xff] %v7899_v57  ;;  %v1051_v9 = vsel %vm1050_vm5, %v1049_v51, 0  ;;  %v7909_v11 = vsub.s32 32, %v7899_v57  ;;  %v7913_v14 = vshrl.u32 %v739_v52, 5  ;;  %v7915_v15 = vshrl.u32 %v843_v58, 5 }
  0xf2   : > { %12891 = vst [vmem:[#allocation31_spill] sm:$0xff] %v7906_v7  ;;  %v430_v18 = vsub.s32 32, %v429_v1  ;;  %v12742_v19 = vand.u32 2147483647, %v7883_v4  ;;  %v7918_v29 = vshrl.u32 %v947_v63, 5  ;;  %v7920_v31 = vshrl.u32 %v1051_v9, 5 }
  0xf3   : > { %v7922_v34 = vand.u32 31, %v1051_v9  ;;  %v7925_v35 = vsub.s32 32, %v7902_v5  ;;  %v12740_v38 = vmov 2102212464   ;;  %v12769_v40 = vmov 920167782  }
  0xf4   : > { %12892 = vst [vmem:[#allocation32_spill] sm:$0xff] %v7918_v29  ;;  %v7929_v39 = vshll.u32 %v12740_v38, %v7899_v57  ;;  %v7933_v41 = vshll.u32 %v12769_v40, %v7899_v57  ;;  %v7936_v42 = vsub.s32 32, %v7904_v6  ;;  %v7939_v44 = vsub.s32 32, %v7906_v7 }
  0xf5   : > { %v7943_v45 = vshrl.u32 %v12769_v40, %v7909_v11  ;;  %v7947_v46 = vshll.u32 %v12740_v38, %v7906_v7  ;;  %v7951_v47 = vshll.u32 %v12769_v40, %v7906_v7  ;;  %vm530_vm6 = vcmp.gt.s32.totalorder %v529_v12, 0 }
  0xf6   : > { %12893 = vst [vmem:[#allocation33_spill] sm:$0xff] %v7939_v44  ;;  %v12738_v48 = vmov 1326507024   ;;  %v422_v43 = vand.u32 8388607, %v12742_v19  ;;  %v7963_v56 = vshrl.u32 %v12769_v40, %v7925_v35  ;;  %v428_v58 = vshrl.u32 %v427_v53, 5 }
  0xf7   : > { %12894 = vst [vmem:[#allocation34_spill] sm:$0xff] %v7947_v46  ;;  %12895 = vst [vmem:[#allocation35_spill] sm:$0xff] %v7951_v47  ;;  %v7955_v49 = vshrl.u32 %v12738_v48, %v7909_v11  ;;  %v12744_v50 = vmov 683565275   ;;  %v12752_v52 = vmov 2475754826   ;;  %v431_v16 = vshrl.u32 %v12897_v26, %v430_v18 }
  0xf8   : > { %v432_v51 = vshll.u32 %v12744_v50, %v429_v1  ;;  %v433_v55 = vshrl.u32 %v12752_v52, %v430_v18  ;;  %v435_v63 = vshll.u32 %v12752_v52, %v429_v1  ;;  %v12756_v9 = vmov 2131351028  }
  0xf9   : > { %v436_v0 = vshrl.u32 %v12756_v9, %v430_v18  ;;  %v7967_v48 = vsel %vm530_vm6, %v529_v12, 0  ;;  %v438_v19 = vshll.u32 %v12756_v9, %v429_v1  ;;  %v439_v50 = vshrl.u32 %v12896_v3, %v430_v18 }
  0xfa   : > { %v434_v38 = vor.u32 %v433_v55, %v432_v51  ;;  %v441_v17 = vshll.u32 %v12896_v3, %v429_v1  ;;  %v442_v20 = vshrl.u32 %v12769_v40, %v430_v18  ;;  %v423_v53 = vor.u32 8388608, %v422_v43 }
  0xfb   : > { %v437_v27 = vor.u32 %v436_v0, %v435_v63  ;;  %v440_v8 = vor.u32 %v439_v50, %v438_v19  ;;  %v444_v52 = vshll.u32 %v12769_v40, %v429_v1  ;;  %v445_v10 = vshrl.u32 %v12898_v21, %v430_v18 }
  0xfc   : > { %v443_v12 = vor.u32 %v442_v20, %v441_v17  ;;  %vm447_vm7 = vcmp.lt.s32.totalorder %v428_v58, 1  ;;  %vm449_vm8 = vcmp.lt.s32.totalorder %v428_v58, 3  ;;  %vm450_vm9 = vcmp.lt.s32.totalorder %v428_v58, 4 }
  0xfd   : > { %v446_v51 = vor.u32 %v445_v10, %v444_v52  ;;  %v451_v55 = vsel %vm447_vm7, %v431_v16, %v434_v38  ;;  %v452_v9 = vsel %vm450_vm9, %v440_v8, 2102212464  ;;  %v455_v36 = vsel %vm447_vm7, %v434_v38, %v437_v27 }
  0xfe   : > { %vm634_vm10 = vcmp.gt.s32.totalorder %v7911_v13, 0  ;;  %v453_v0 = vsel %vm449_vm8, %v437_v27, %v452_v9  ;;  %v456_v63 = vsel %vm450_vm9, %v443_v12, 920167782  ;;  %v459_v37 = vsel %vm447_vm7, %v437_v27, %v440_v8 }
  0xff   : > { %vm448_vm11 = vcmp.lt.s32.totalorder %v428_v58, 2  ;;  %v457_v19 = vsel %vm449_vm8, %v440_v8, %v456_v63  ;;  %v460_v1 = vsel %vm450_vm9, %v446_v51, 1326507024  ;;  %v463_v43 = vshll.u32 %v423_v53, 8 }
 0x100   : > { %v454_v18 = vsel %vm448_vm11, %v451_v55, %v453_v0  ;;  %v458_v17 = vsel %vm448_vm11, %v455_v36, %v457_v19  ;;  %v461_v20 = vsel %vm449_vm8, %v443_v12, %v460_v1  ;;  %v12762_v10 = vand.u32 2147483647, %v7873_v60 }
 0x101   : > { %v7983_v16 = vshrl.u32 %v12898_v21, %v7925_v35  ;;  %v462_v38 = vsel %vm448_vm11, %v459_v37, %v461_v20  ;;  %v7985_v50 = vmul.u32.u64.low %v463_v43, %v458_v17  ;;  %v7986_v52 = vmul.u32.u64.high %v463_v43, %v458_v17, %v7985_v50 }
 0x102   : > { %v7990_v27 = vand.u32 31, %v7967_v48  ;;  %v7992_v8 = vmul.u32.u64.low %v463_v43, %v462_v38  ;;  %v7993_v9 = vmul.u32.u64.high %v463_v43, %v462_v38, %v7992_v8  ;;  %v838_v36 = vand.u32 8388607, %v12762_v10 }
 0x103   : > { %v8000_v58 = vsel %vm634_vm10, %v7911_v13, 0  ;;  %v470_v53 = vmul.u32 %v463_v43, %v454_v18  ;;  %v848_v37 = vshll.u32 %v12897_v26, %v7904_v6  ;;  %v12899_v12 = vmov 2475754826  }
 0x104   : > { %v849_v51 = vshrl.u32 %v12899_v12, %v7936_v42  ;;  %v851_v55 = vshll.u32 %v12899_v12, %v7904_v6  ;;  %v12900_v0 = vmov 2131351028   ;;  %v855_v13 = vshrl.u32 %v12896_v3, %v7936_v42 }
 0x105   : > { %v852_v63 = vshrl.u32 %v12900_v0, %v7936_v42  ;;  %v854_v19 = vshll.u32 %v12900_v0, %v7904_v6  ;;  %v473_v1 = vadd.s32 1, %v7986_v52  ;;  %v857_v18 = vshll.u32 %v12896_v3, %v7904_v6 }
 0x106   : > { %v850_v43 = vor.u32 %v849_v51, %v848_v37  ;;  %v858_v17 = vshrl.u32 %v12769_v40, %v7936_v42  ;;  %vm472_vm12 = vc.u32 %v7993_v9, %v7985_v50  ;;  %v839_v20 = vor.u32 8388608, %v838_v36 }
 0x107   : > { %v853_v38 = vor.u32 %v852_v63, %v851_v55  ;;  %v856_v8 = vor.u32 %v855_v13, %v854_v19  ;;  %v474_v10 = vsel %vm472_vm12, %v473_v1, %v7986_v52  ;;  %v860_v25 = vshll.u32 %v12769_v40, %v7904_v6 }
 0x108   : > { %v859_v23 = vor.u32 %v858_v17, %v857_v18  ;;  %v861_v37 = vshrl.u32 %v12898_v21, %v7936_v42  ;;  %v475_v51 = vadd.s32 %v474_v10, %v470_v53  ;;  %v847_v28 = vshrl.u32 %v12897_v26, %v7936_v42 }
 0x109   : > { %vm863_vm13 = vcmp.lt.s32.totalorder %v7915_v15, 1  ;;  %vm864_vm14 = vcmp.lt.s32.totalorder %v7915_v15, 2  ;;  %vm865_vm15 = vcmp.lt.s32.totalorder %v7915_v15, 3  ;;  %vm866_vm0 = vcmp.lt.s32.totalorder %v7915_v15, 4 }
 0x10a   : > { %v862_v36 = vor.u32 %v861_v37, %v860_v25  ;;  %v871_v52 = vsel %vm863_vm13, %v850_v43, %v853_v38  ;;  %v476_v55 = vadd.s32 536870912, %v475_v51  ;;  %v868_v63 = vsel %vm866_vm0, %v856_v8, 2102212464 }
 0x10b   : > { %v872_v6 = vsel %vm866_vm0, %v859_v23, 920167782  ;;  %v875_v19 = vsel %vm863_vm13, %v853_v38, %v856_v8  ;;  %v867_v13 = vsel %vm863_vm13, %v847_v28, %v850_v43  ;;  %v879_v53 = vshll.u32 %v839_v20, 8 }
 0x10c   : > { %v873_v1 = vsel %vm865_vm15, %v856_v8, %v872_v6  ;;  %v876_v10 = vsel %vm866_vm0, %v862_v36, 1326507024  ;;  %v8032_v18 = vshrl.u32 %v476_v55, 30  ;;  %v869_v42 = vsel %vm865_vm15, %v853_v38, %v868_v63 }
 0x10d   : > { %v874_v17 = vsel %vm864_vm14, %v871_v52, %v873_v1  ;;  %v877_v25 = vsel %vm865_vm15, %v859_v23, %v876_v10  ;;  %v637_v37 = vand.u32 31, %v8000_v58  ;;  %v337_v28 = vshll.u32 %v12896_v3, %v7902_v5 }
 0x10e   : > { %v878_v40 = vsel %vm864_vm14, %v875_v19, %v877_v25  ;;  %v8039_v22 = vmul.u32.u64.low %v879_v53, %v874_v17  ;;  %v8040_v30 = vmul.u32.u64.high %v879_v53, %v874_v17, %v8039_v22  ;;  %v478_v43 = vshll.u32 %v8032_v18, 30 }
 0x10f   : > { %v8046_v20 = vmul.u32.u64.low %v879_v53, %v878_v40  ;;  %v8047_v38 = vmul.u32.u64.high %v879_v53, %v878_v40, %v8046_v20  ;;  %v8050_v8 = vsub.s32 32, %v7922_v34  ;;  %v8053_v23 = vshrl.u32 %v7897_v54, 5 }
 0x110   : > { %v12901_v36 = vmov 920167782   ;;  %v870_v55 = vsel %vm864_vm14, %v867_v13, %v869_v42  ;;  %v8065_v40 = vshrl.u32 %v12898_v21, %v7939_v44  ;;  %v8068_v6 = vor.u32 %v7963_v56, %v337_v28 }
 0x111   : > { %v340_v52 = vshll.u32 %v12901_v36, %v7902_v5  ;;  %v8061_v63 = vshrl.u32 %v12901_v36, %v7939_v44  ;;  %v8070_v19 = vsub.s32 %v475_v51, %v478_v43  ;;  %v8074_v1 = vsub.s32 32, %v7990_v27 }
 0x112   : > { %12903 = vst [vmem:[#allocation37_spill] sm:$0xff] %v8065_v40  ;;  %v638_v15 = vsub.s32 32, %v637_v37  ;;  %v889_v13 = vadd.s32 1, %v8040_v30  ;;  %v8079_v10 = vor.u32 %v7943_v45, %v7929_v39  ;;  %v886_v17 = vmul.u32 %v879_v53, %v870_v55 }
 0x113   : > { %12902 = vst [vmem:[#allocation36_spill] sm:$0xff] %v8061_v63  ;;  %v342_v54 = vor.u32 %v7983_v16, %v340_v52  ;;  %12904 = vst [vmem:[#allocation38_spill] sm:$0xff] %v8074_v1  ;;  %v481_v42 = vsub.s32 0, %v8070_v19  ;;  %vm888_vm1 = vc.u32 %v8047_v38, %v8039_v22  ;;  %vm346_vm2 = vcmp.lt.s32.totalorder %v8053_v23, 4 }
 0x114   : > { %v8088_v16 = vshrl.u32 %v8000_v58, 5  ;;  %v890_v51 = vsel %vm888_vm1, %v889_v13, %v8040_v30  ;;  %v8094_v39 = vsel %vm346_vm2, %v8068_v6, 920167782  ;;  %v12788_v25 = vand.u32 2147483647, %v7893_v33 }
 0x115   : > { %v6658_v45 = vmin.u32 %v481_v42, %v8070_v19  ;;  %v891_v53 = vadd.s32 %v890_v51, %v886_v17  ;;  %v8100_v28 = vsel %vm346_vm2, %v342_v54, 1326507024  ;;  %v8104_v58 = vshrl.u32 %v12901_v36, %v8074_v1 }
 0x116   : > { %v8108_v30 = vshrl.u32 %v12898_v21, %v8074_v1  ;;  %v650_v43 = vshrl.u32 %v12901_v36, %v638_v15  ;;  %v471_v20 = vadd.s32 %v7985_v50, %v7993_v9  ;;  %v501_v55 = vsub.s32 4, %v8032_v18 }
 0x117   : > { %v483_v52 = vclz %v6658_v45  ;;  %v641_v13 = vshrl.u32 %v12899_v12, %v638_v15  ;;  %v892_v54 = vadd.s32 536870912, %v891_v53  ;;  %v644_v42 = vshrl.u32 %v12900_v0, %v638_v15 }
 0x118   : > { %v647_v17 = vshrl.u32 %v12896_v3, %v638_v15  ;;  %v649_v51 = vshll.u32 %v12896_v3, %v637_v37  ;;  %v630_v24 = vand.u32 8388607, %v12788_v25  ;;  %v640_v44 = vshll.u32 %v12897_v26, %v637_v37 }
 0x119   : > { %v6659_v56 = vadd.s32 4294967294, %v483_v52  ;;  %v653_v50 = vshrl.u32 %v12898_v21, %v638_v15  ;;  %v893_v9 = vshrl.u32 %v892_v54, 30  ;;  %v643_v45 = vshll.u32 %v12899_v12, %v637_v37 }
 0x11a   : > { %v646_v7 = vshll.u32 %v12900_v0, %v637_v37  ;;  %v651_v61 = vor.u32 %v650_v43, %v649_v51  ;;  %vm417_vm3 = vcmp.lt.s32.totalorder %v7883_v4, 0  ;;  %v639_v29 = vshrl.u32 %v12897_v26, %v638_v15 }
 0x11b   : > { %vm6660_vm4 = vcmp.lt.s32.totalorder %v6659_v56, 0  ;;  %v642_v1 = vor.u32 %v641_v13, %v640_v44  ;;  %v652_v52 = vshll.u32 %v12901_v36, %v637_v37  ;;  %v894_v25 = vshll.u32 %v893_v9, 30 }
 0x11c   : > { %v486_v32 = vsel %vm6660_vm4, 0, %v6659_v56  ;;  %v645_v40 = vor.u32 %v644_v42, %v643_v45  ;;  %v648_v47 = vor.u32 %v647_v17, %v646_v7  ;;  %vm658_vm5 = vcmp.lt.s32.totalorder %v8088_v16, 4 }
 0x11d   : > { %v487_v63 = vsub.s32 32, %v486_v32  ;;  %v491_v46 = vsub.s32 4294967266, %v486_v32  ;;  %v654_v54 = vor.u32 %v653_v50, %v652_v52  ;;  %v8128_v57 = vsub.s32 %v891_v53, %v894_v25 }
 0x11e   : > { %v631_v43 = vor.u32 8388608, %v630_v24  ;;  %vm655_vm6 = vcmp.lt.s32.totalorder %v8088_v16, 1  ;;  %v664_v15 = vsel %vm658_vm5, %v651_v61, 920167782  ;;  %v488_v44 = vshll.u32 %v8070_v19, %v486_v32 }
 0x11f   : > { %v489_v37 = vshrl.u32 %v471_v20, %v487_v63  ;;  %v492_v56 = vadd.s32 127, %v491_v46  ;;  %vm657_vm7 = vcmp.lt.s32.totalorder %v8088_v16, 3  ;;  %v897_v7 = vsub.s32 0, %v8128_v57 }
 0x120   : > { %v663_v13 = vsel %vm655_vm6, %v642_v1, %v645_v40  ;;  %v665_v53 = vsel %vm657_vm7, %v648_v47, %v664_v15  ;;  %v667_v24 = vsel %vm655_vm6, %v645_v40, %v648_v47  ;;  %v660_v32 = vsel %vm658_vm5, %v648_v47, 2102212464 }
 0x121   : > { %v490_v25 = vor.u32 %v489_v37, %v488_v44  ;;  %v493_v42 = vshll.u32 %v492_v56, 23  ;;  %v668_v46 = vsel %vm658_vm5, %v654_v54, 1326507024  ;;  %v6674_v63 = vmin.u32 %v897_v7, %v8128_v57 }
 0x122   : > { %v917_v19 = vsub.s32 4, %v893_v9  ;;  %vm656_vm8 = vcmp.lt.s32.totalorder %v8088_v16, 2  ;;  %v669_v20 = vsel %vm657_vm7, %v651_v61, %v668_v46  ;;  %v671_v45 = vshll.u32 %v631_v43, 8 }
 0x123   : > { %v494_v17 = vor.u32 4788187, %v493_v42  ;;  %v666_v51 = vsel %vm656_vm8, %v663_v13, %v665_v53  ;;  %v670_v50 = vsel %vm656_vm8, %v667_v24, %v669_v20  ;;  %v502_v47 = vsel %vm417_vm3, %v501_v55, %v8032_v18 }
 0x124   : > { %v899_v52 = vclz %v6674_v63  ;;  %v659_v54 = vsel %vm655_vm6, %v639_v29, %v642_v1  ;;  %v661_v15 = vsel %vm657_vm7, %v645_v40, %v660_v32  ;;  %v497_v44 = vcvt.s32.f32 %v490_v25 }
 0x125   : > { %v495_v61 = vand.u32 2147483647, %v494_v17  ;;  %v8161_v37 = vmul.u32.u64.low %v671_v45, %v670_v50  ;;  %v8162_v56 = vmul.u32.u64.high %v671_v45, %v670_v50, %v8161_v37  ;;  %vm833_vm9 = vcmp.lt.s32.totalorder %v7873_v60, 0 }
 0x126   : > { %v6675_v7 = vadd.s32 4294967294, %v899_v52  ;;  %v8165_v43 = vmul.u32.u64.low %v671_v45, %v666_v51  ;;  %v8166_v13 = vmul.u32.u64.high %v671_v45, %v666_v51, %v8165_v43  ;;  %v12905_v18 = vand.u32 2147483647, %v7883_v4 }
 0x127   : > { %v498_v29 = vmul.f32 %v497_v44, %v495_v61  ;;  %v12908_v40 = vand.u32 2147483647, %v7873_v60  ;;  %v918_v53 = vsel %vm833_vm9, %v917_v19, %v893_v9  ;;  %v887_v25 = vadd.s32 %v8039_v22, %v8047_v38 }
 0x128   : > { %vm8171_vm10 = vcmp.le.f32.partialorder %v12905_v18, 0.7853982  ;;  %vm6676_vm12 = vcmp.lt.s32.totalorder %v6675_v7, 0  ;;  %v662_v42 = vsel %vm656_vm8, %v659_v54, %v661_v15  ;;  %vm680_vm13 = vc.u32 %v8162_v56, %v8165_v43 }
 0x129   : > { %vm8177_vm11 = vcmp.le.f32.partialorder %v12908_v40, 0.7853982  ;;  %v504_v24 = vsel %vm8171_vm10, 0, %v502_v47  ;;  %v499_v32 = vxor.u32 2147483648, %v498_v29  ;;  %v902_v46 = vsel %vm6676_vm12, 0, %v6675_v7 }
 0x12a   : > { %v1039_v63 = vand.u32 2147483647, %v7877_v62  ;;  %v903_v20 = vsub.s32 32, %v902_v46  ;;  %v907_v17 = vsub.s32 4294967266, %v902_v46  ;;  %v920_v9 = vsel %vm8177_vm11, 0, %v918_v53 }
 0x12b   : > { %v681_v19 = vadd.s32 1, %v8166_v13  ;;  %v500_v22 = vsel %vm417_vm3, %v499_v32, %v498_v29  ;;  %v508_v38 = vadd.s32 3, %v504_v24  ;;  %v904_v16 = vshll.u32 %v8128_v57, %v902_v46 }
 0x12c   : > { %v678_v51 = vmul.u32 %v671_v45, %v662_v42  ;;  %v503_v50 = vsel %vm8171_vm10, %v7883_v4, %v500_v22  ;;  %v905_v47 = vshrl.u32 %v887_v25, %v903_v20  ;;  %v908_v52 = vadd.s32 127, %v907_v17 }
 0x12d   : > { %v682_v54 = vsel %vm680_vm13, %v681_v19, %v8166_v13  ;;  %7275 = vcosq.f32 %v503_v50  ;;  %v924_v15 = vadd.s32 3, %v920_v9  ;;  %v1046_v44 = vand.u32 8388607, %v1039_v63 }
 0x12e   : > { %v683_v61 = vadd.s32 %v682_v54, %v678_v51  ;;  %7277 = vsinq.f32 %v503_v50  ;;  %v906_v37 = vor.u32 %v905_v47, %v904_v16  ;;  %v909_v7 = vshll.u32 %v908_v52, 23 }
 0x12f   : > { %v1063_v57 = vshrl.u32 %v12896_v3, %v8050_v8  ;;  %v1060_v18 = vshrl.u32 %v12900_v0, %v8050_v8  ;;  %v1065_v55 = vshll.u32 %v12896_v3, %v7922_v34  ;;  %v1066_v13 = vshrl.u32 %v12901_v36, %v8050_v8 }
 0x130   : > { %v684_v45 = vadd.s32 536870912, %v683_v61  ;;  %v910_v29 = vor.u32 4788187, %v909_v7  ;;  %v1057_v40 = vshrl.u32 %v12899_v12, %v8050_v8  ;;  %v1062_v53 = vshll.u32 %v12900_v0, %v7922_v34 }
 0x131   : > { %v1069_v24 = vshrl.u32 %v12898_v21, %v8050_v8  ;;  %v1059_v42 = vshll.u32 %v12899_v12, %v7922_v34  ;;  %v1067_v32 = vor.u32 %v1066_v13, %v1065_v55  ;;  %v1068_v46 = vshll.u32 %v12901_v36, %v7922_v34 }
 0x132   : > { %v8218_v25 = vshrl.u32 %v684_v45, 30  ;;  %v911_v20 = vand.u32 2147483647, %v910_v29  ;;  %v913_v17 = vcvt.s32.f32 %v906_v37  ;;  %v1056_v9 = vshll.u32 %v12897_v26, %v7922_v34 }
 0x133   : > { %v1064_v19 = vor.u32 %v1063_v57, %v1062_v53  ;;  %v8226_v22 = vand.u32 3, %v508_v38  ;;  %v1061_v51 = vor.u32 %v1060_v18, %v1059_v42  ;;  %v1070_v50 = vor.u32 %v1069_v24, %v1068_v46 }
 0x134   : > { %v686_v16 = vshll.u32 %v8218_v25, 30  ;;  %v914_v47 = vmul.f32 %v913_v17, %v911_v20  ;;  %v8229_v52 = vand.u32 3, %v924_v15  ;;  %v1058_v54 = vor.u32 %v1057_v40, %v1056_v9 }
 0x135   : > { %vm1074_vm14 = vcmp.lt.s32.totalorder %v7920_v31, 4  ;;  %v1047_v45 = vor.u32 8388608, %v1046_v44  ;;  %v1055_v37 = vshrl.u32 %v12897_v26, %v8050_v8  ;;  %vm1071_vm15 = vcmp.lt.s32.totalorder %v7920_v31, 1 }
 0x136   : > { %v8232_v7 = vsub.s32 %v683_v61, %v686_v16  ;;  %v1080_v34 = vsel %vm1074_vm14, %v1067_v32, 920167782  ;;  %v915_v57 = vxor.u32 2147483648, %v914_v47  ;;  %vm1072_vm0 = vcmp.lt.s32.totalorder %v7920_v31, 2 }
 0x137   : > { %v1076_v38 = vsel %vm1074_vm14, %v1064_v19, 2102212464  ;;  %v7276_v18 = vpop.eup %7275  ;;  %vm625_vm1 = vcmp.lt.s32.totalorder %v7893_v33, 0  ;;  %vm1073_vm3 = vcmp.lt.s32.totalorder %v7920_v31, 3  ;;  %v1083_v61 = vsel %vm1071_vm15, %v1061_v51, %v1064_v19 }
 0x138   : > { %v689_v15 = vsub.s32 0, %v8232_v7  ;;  %v1084_v44 = vsel %vm1074_vm14, %v1070_v50, 1326507024  ;;  %v7278_v55 = vpop.eup %7277  ;;  %v916_v8 = vsel %vm833_vm9, %v915_v57, %v914_v47  ;;  %v1079_v13 = vsel %vm1071_vm15, %v1058_v54, %v1061_v51 }
 0x139   : > { %v1081_v29 = vsel %vm1073_vm3, %v1064_v19, %v1080_v34  ;;  %v1085_v40 = vsel %vm1073_vm3, %v1067_v32, %v1084_v44  ;;  %v919_v53 = vsel %vm8177_vm11, %v7873_v60, %v916_v8  ;;  %v1075_v42 = vsel %vm1071_vm15, %v1055_v37, %v1058_v54 }
 0x13a   : > { %v6666_v24 = vmin.u32 %v689_v15, %v8232_v7  ;;  %v1077_v46 = vsel %vm1073_vm3, %v1061_v51, %v1076_v38  ;;  %v512_v20 = vxor.u32 2147483648, %v7278_v55  ;;  %v515_v17 = vxor.u32 2147483648, %v7276_v18 }
 0x13b   : > { %7279 = vcosq.f32 %v919_v53  ;;  %v1086_v9 = vsel %vm1072_vm0, %v1083_v61, %v1085_v40  ;;  %v1082_v32 = vsel %vm1072_vm0, %v1079_v13, %v1081_v29  ;;  %v1087_v19 = vshll.u32 %v1047_v45, 8 }
 0x13c   : > { %7281 = vsinq.f32 %v919_v53  ;;  %v691_v16 = vclz %v6666_v24  ;;  %vm511_vm4 = vcmp.eq.s32.totalorder %v8226_v22, 0  ;;  %vm514_vm5 = vcmp.eq.s32.totalorder %v8226_v22, 2 }
 0x13d   : > { %v709_v1 = vsub.s32 4, %v8218_v25  ;;  %v1078_v51 = vsel %vm1072_vm0, %v1075_v42, %v1077_v46  ;;  %v8262_v47 = vmul.u32.u64.low %v1087_v19, %v1086_v9  ;;  %v8263_v54 = vmul.u32.u64.high %v1087_v19, %v1086_v9, %v8262_v47 }
 0x13e   : > { %v6667_v50 = vadd.s32 4294967294, %v691_v16  ;;  %v311_v37 = vand.u32 2147483647, %v7881_v2  ;;  %vm507_vm6 = vweird.f32 %v7883_v4  ;;  %v513_v34 = vsel %vm511_vm4, %v7276_v18, %v512_v20 }
 0x13f   : > { %v516_v57 = vsel %vm514_vm5, %v515_v17, %v7278_v55  ;;  %v8267_v45 = vmul.u32.u64.low %v1087_v19, %v1082_v32  ;;  %v8268_v38 = vmul.u32.u64.high %v1087_v19, %v1082_v32, %v8267_v45  ;;  %vm510_vm7 = vcmp.lt.s32.totalorder %v8226_v22, 2 }
 0x140   : > { %vm927_vm8 = vcmp.eq.s32.totalorder %v8229_v52, 0  ;;  %vm930_vm9 = vcmp.eq.s32.totalorder %v8229_v52, 2  ;;  %vm1160_vm10 = vcmask 1041408   ;;  %vm6668_vm11 = vcmp.lt.s32.totalorder %v6667_v50, 0 }
 0x141   : > { %vm926_vm12 = vcmp.lt.s32.totalorder %v8229_v52, 2  ;;  %v679_v31 = vadd.s32 %v8165_v43, %v8162_v56  ;;  %v694_v15 = vsel %vm6668_vm11, 0, %v6667_v50  ;;  %v8280_v18 = vsel %vm625_vm1, %v709_v1, %v8218_v25 }
 0x142   : > { %v1094_v61 = vmul.u32 %v1087_v19, %v1078_v51  ;;  %v517_v44 = vsel %vm510_vm7, %v513_v34, %v516_v57  ;;  %vm923_vm13 = vweird.f32 %v7873_v60  ;;  %v695_v22 = vsub.s32 32, %v694_v15 }
 0x143   : > { %v699_v55 = vsub.s32 4294967266, %v694_v15  ;;  %v318_v8 = vand.u32 8388607, %v311_v37  ;;  %vm1096_vm14 = vc.u32 %v8263_v54, %v8267_v45  ;;  %v1097_v56 = vadd.s32 1, %v8268_v38 }
 0x144   : > { %v329_v43 = vshrl.u32 %v12899_v12, %v7925_v35  ;;  %v332_v25 = vshrl.u32 %v12900_v0, %v7925_v35  ;;  %v696_v13 = vshll.u32 %v8232_v7, %v694_v15  ;;  %v697_v29 = vshrl.u32 %v679_v31, %v695_v22 }
 0x145   : > { %v700_v40 = vadd.s32 127, %v699_v55  ;;  %v328_v53 = vshll.u32 %v12897_v26, %v7902_v5  ;;  %v7280_v24 = vpop.eup %7279  ;;  %v1098_v42 = vsel %vm1096_vm14, %v1097_v56, %v8268_v38  ;;  %v331_v46 = vshll.u32 %v12899_v12, %v7902_v5 }
 0x146   : > { %v334_v20 = vshll.u32 %v12900_v0, %v7902_v5  ;;  %v335_v17 = vshrl.u32 %v12896_v3, %v7925_v35  ;;  %v7282_v9 = vpop.eup %7281  ;;  %v931_v16 = vxor.u32 2147483648, %v7280_v24  ;;  %v698_v7 = vor.u32 %v697_v29, %v696_v13 }
 0x147   : > { %v701_v32 = vshll.u32 %v700_v40, 23  ;;  %v1099_v19 = vadd.s32 %v1098_v42, %v1094_v61  ;;  %vm762_vm15 = vcmp.lt.s32.totalorder %v7913_v14, 4  ;;  %v928_v1 = vxor.u32 2147483648, %v7282_v9 }
 0x148   : > { %v330_v51 = vor.u32 %v329_v43, %v328_v53  ;;  %v333_v50 = vor.u32 %v332_v25, %v331_v46  ;;  %v336_v47 = vor.u32 %v335_v17, %v334_v20  ;;  %v518_v34 = vsel %vm507_vm6, nan, %v517_v44 }
 0x149   : > { %v932_v5 = vsel %vm930_vm9, %v931_v16, %v7282_v9  ;;  %v702_v57 = vor.u32 4788187, %v701_v32  ;;  %v1100_v38 = vadd.s32 536870912, %v1099_v19  ;;  %v929_v31 = vsel %vm927_vm8, %v7280_v24, %v928_v1 }
 0x14a   : > { %v319_v15 = vor.u32 8388608, %v318_v8  ;;  %vm343_vm0 = vcmp.lt.s32.totalorder %v8053_v23, 1  ;;  %vm345_vm3 = vcmp.lt.s32.totalorder %v8053_v23, 3  ;;  %v933_v61 = vsel %vm926_vm12, %v929_v31, %v932_v5 }
 0x14b   : > { %v703_v22 = vand.u32 2147483647, %v702_v57  ;;  %v705_v55 = vcvt.s32.f32 %v698_v7  ;;  %v8313_v4 = vshrl.u32 %v1100_v38, 30  ;;  %v934_v44 = vsel %vm923_vm13, nan, %v933_v61 }
 0x14c   : > { %vm7622_vm4 = vmmov 1   ;;  %v351_v8 = vsel %vm343_vm0, %v330_v51, %v333_v50  ;;  %v353_v52 = vsel %vm345_vm3, %v336_v47, %v8094_v39  ;;  %v355_v43 = vsel %vm343_vm0, %v333_v50, %v336_v47 }
 0x14d   : > { %vm8318_vm5 = vmpackc.low %vm1160_vm10, %vm7622_vm4  ;;  %v6898_v25 = vpack.c.bf16 %v934_v44, %v518_v34  ;;  %v706_v13 = vmul.f32 %v705_v55, %v703_v22  ;;  %v1102_v60 = vshll.u32 %v8313_v4, 30  ;;  %v348_v29 = vsel %vm346_vm2, %v336_v47, 2102212464 }
 0x14e   : > { %v327_v40 = vshrl.u32 %v12897_v26, %v7925_v35  ;;  %vm344_vm6 = vcmp.lt.s32.totalorder %v8053_v23, 2  ;;  %v357_v39 = vsel %vm345_vm3, %v8068_v6, %v8100_v28  ;;  %v359_v53 = vshll.u32 %v319_v15, 8 }
 0x14f   : > { %6900 = vmatprep.subr.msk.bf16.mxu0 %vm8318_vm5, %v6898_v25  ;;  %v707_v24 = vxor.u32 2147483648, %v706_v13  ;;  %v8341_v42 = vsub.s32 %v1099_v19, %v1102_v60  ;;  %v354_v46 = vsel %vm344_vm6, %v351_v8, %v353_v52  ;;  %v358_v35 = vsel %vm344_vm6, %v355_v43, %v357_v39  ;;  %v12917_v43 = vld [vmem:[#allocation30_spill] sm:$0xff] }
 0x150   : > { %v347_v20 = vsel %vm343_vm0, %v327_v40, %v330_v51  ;;  %v349_v17 = vsel %vm345_vm3, %v333_v50, %v348_v29  ;;  %v8351_v6 = vmul.u32.u64.low %v359_v53, %v358_v35  ;;  %v8352_v28 = vmul.u32.u64.high %v359_v53, %v358_v35, %v8351_v6 }
 0x151   : > { %v768_v9 = vsel %vm762_vm15, %v8079_v10, 920167782  ;;  %v545_v16 = vshll.u32 %v12896_v3, %v7990_v27  ;;  %v12913_v7 = vand.u32 2147483647, %v7893_v33  ;;  %v1105_v19 = vsub.s32 0, %v8341_v42 }
 0x152   : > { %v8368_v1 = vshll.u32 %v12901_v36, %v7990_v27  ;;  %v8373_v50 = vmul.u32.u64.low %v359_v53, %v354_v46  ;;  %v8374_v47 = vmul.u32.u64.high %v359_v53, %v354_v46, %v8373_v50  ;;  %v708_v34 = vsel %vm625_vm1, %v707_v24, %v706_v13 }
 0x153   : > { %vm8361_vm2 = vcmp.le.f32.partialorder %v12913_v7, 0.7853982  ;;  %v6682_v5 = vmin.u32 %v1105_v19, %v8341_v42  ;;  %v350_v57 = vsel %vm344_vm6, %v347_v20, %v349_v17  ;;  %v727_v38 = vand.u32 2147483647, %v7871_v59 }
 0x154   : > { %v712_v51 = vsel %vm8361_vm2, 0, %v8280_v18  ;;  %v12916_v31 = vor.u32 %v7955_v49, %v7933_v41  ;;  %v8389_v15 = vshrl.u32 %v7967_v48, 5  ;;  %v8392_v61 = vor.u32 %v8104_v58, %v545_v16 }
 0x155   : > { %v550_v22 = vor.u32 %v8108_v30, %v8368_v1  ;;  %v716_v55 = vadd.s32 3, %v712_v51  ;;  %vm1041_vm1 = vcmp.lt.s32.totalorder %v7877_v62, 0  ;;  %v1095_v23 = vadd.s32 %v8267_v45, %v8263_v54 }
 0x156   : > { %v772_v18 = vsel %vm762_vm15, %v12916_v31, 1326507024  ;;  %v1107_v44 = vclz %v6682_v5  ;;  %vm368_vm7 = vc.u32 %v8352_v28, %v8373_v50  ;;  %v711_v41 = vsel %vm8361_vm2, %v7893_v33, %v708_v34 }
 0x157   : > { %v366_v48 = vmul.u32 %v359_v53, %v350_v57  ;;  %v369_v49 = vadd.s32 1, %v8374_v47  ;;  %v745_v58 = vshrl.u32 %v12899_v12, %v7909_v11  ;;  %v734_v52 = vand.u32 8388607, %v727_v38 }
 0x158   : > { %v6683_v8 = vadd.s32 4294967294, %v1107_v44  ;;  %v747_v54 = vshll.u32 %v12899_v12, %v12917_v43  ;;  %v748_v45 = vshrl.u32 %v12900_v0, %v7909_v11  ;;  %vm8415_vm8 = vcmp.le.f32.partialorder %v1039_v63, 0.7853982 }
 0x159   : > { %v370_v13 = vsel %vm368_vm7, %v369_v49, %v8374_v47  ;;  %v744_v60 = vshll.u32 %v12897_v26, %v12917_v43  ;;  %v750_v29 = vshll.u32 %v12900_v0, %v12917_v43  ;;  %v751_v40 = vshrl.u32 %v12896_v3, %v7909_v11 }
 0x15a   : > { %7283 = vcosq.f32 %v711_v41  ;;  %vm6684_vm9 = vcmp.lt.s32.totalorder %v6683_v8, 0  ;;  %v371_v39 = vadd.s32 %v370_v13, %v366_v48  ;;  %v749_v53 = vor.u32 %v748_v45, %v747_v54 }
 0x15b   : > { %v1110_v24 = vsel %vm6684_vm9, 0, %v6683_v8  ;;  %v1125_v63 = vsub.s32 4, %v8313_v4  ;;  %v746_v46 = vor.u32 %v745_v58, %v744_v60  ;;  %v752_v35 = vor.u32 %v751_v40, %v750_v29  ;;  %v12920_v40 = vld [vmem:[#allocation34_spill] sm:$0xff] }
 0x15c   : > { %7285 = vsinq.f32 %v711_v41  ;;  %v1111_v20 = vsub.s32 32, %v1110_v24  ;;  %v1115_v17 = vsub.s32 4294967266, %v1110_v24  ;;  %v372_v6 = vadd.s32 536870912, %v371_v39 }
 0x15d   : > { %v1112_v16 = vshll.u32 %v8341_v42, %v1110_v24  ;;  %v735_v7 = vor.u32 8388608, %v734_v52  ;;  %vm759_vm10 = vcmp.lt.s32.totalorder %v7913_v14, 1  ;;  %vm761_vm11 = vcmp.lt.s32.totalorder %v7913_v14, 3 }
 0x15e   : > { %v1113_v32 = vshrl.u32 %v1095_v23, %v1111_v20  ;;  %v1116_v19 = vadd.s32 127, %v1115_v17  ;;  %v8430_v51 = vshrl.u32 %v372_v6, 30  ;;  %v771_v47 = vsel %vm759_vm10, %v749_v53, %v752_v35  ;;  %v12922_v20 = vld [vmem:[#allocation35_spill] sm:$0xff]  ;;  %v12923_v17 = vld [vmem:[#allocation37_spill] sm:$0xff] }
 0x15f   : > { %v1126_v34 = vsel %vm1041_vm1, %v1125_v63, %v8313_v4  ;;  %v767_v5 = vsel %vm759_vm10, %v746_v46, %v749_v53  ;;  %v769_v42 = vsel %vm761_vm11, %v752_v35, %v768_v9  ;;  %v773_v57 = vsel %vm761_vm11, %v8079_v10, %v772_v18 }
 0x160   : > { %v1114_v31 = vor.u32 %v1113_v32, %v1112_v16  ;;  %v1117_v23 = vshll.u32 %v1116_v19, 23  ;;  %v374_v44 = vshll.u32 %v8430_v51, 30  ;;  %vm760_vm12 = vcmp.lt.s32.totalorder %v7913_v14, 2 }
 0x161   : > { %v743_v41 = vshrl.u32 %v12897_v26, %v7909_v11  ;;  %v764_v4 = vsel %vm762_vm15, %v752_v35, 2102212464  ;;  %v774_v48 = vsel %vm760_vm12, %v771_v47, %v773_v57  ;;  %v775_v9 = vshll.u32 %v735_v7, 8 }
 0x162   : > { %v1118_v49 = vor.u32 4788187, %v1117_v23  ;;  %v1128_v10 = vsel %vm8415_vm8, 0, %v1126_v34  ;;  %v8454_v18 = vsub.s32 %v371_v39, %v374_v44  ;;  %v770_v58 = vsel %vm760_vm12, %v767_v5, %v769_v42  ;;  %v12921_v39 = vld [vmem:[#allocation36_spill] sm:$0xff] }
 0x163   : > { %v8458_v8 = vand.u32 3, %v716_v55  ;;  %v763_v11 = vsel %vm759_vm10, %v743_v41, %v746_v46  ;;  %v8462_v52 = vmul.u32.u64.low %v775_v9, %v774_v48  ;;  %v8463_v43 = vmul.u32.u64.high %v775_v9, %v774_v48, %v8462_v52 }
 0x164   : > { %v7284_v54 = vpop.eup %7283  ;;  %v1119_v45 = vand.u32 2147483647, %v1118_v49  ;;  %v1121_v13 = vcvt.s32.f32 %v1114_v31  ;;  %v377_v60 = vsub.s32 0, %v8454_v18  ;;  %v765_v29 = vsel %vm761_vm11, %v749_v53, %v764_v4  ;;  %v12924_v31 = vld [vmem:[#allocation29_spill] sm:$0xff] }
 0x165   : > { %v8470_v24 = vor.u32 %v12921_v39, %v12920_v40  ;;  %v1132_v55 = vadd.s32 3, %v1128_v10  ;;  %v8472_v63 = vmul.u32.u64.low %v775_v9, %v770_v58  ;;  %v8473_v35 = vmul.u32.u64.high %v775_v9, %v770_v58, %v8472_v63 }
 0x166   : > { %v7286_v46 = vpop.eup %7285  ;;  %v966_v6 = vor.u32 %v12923_v17, %v12922_v20  ;;  %vm554_vm13 = vcmp.lt.s32.totalorder %v8389_v15, 4  ;;  %v1122_v16 = vmul.f32 %v1121_v13, %v1119_v45  ;;  %v6654_v7 = vmin.u32 %v377_v60, %v8454_v18 }
 0x167   : > { %v8483_v53 = vsel %vm554_vm13, %v8392_v61, 920167782  ;;  %v564_v32 = vsel %vm554_vm13, %v550_v22, 1326507024  ;;  %v723_v19 = vxor.u32 2147483648, %v7284_v54  ;;  %v766_v47 = vsel %vm760_vm12, %v763_v11, %v765_v29 }
 0x168   : > { %vm719_vm14 = vcmp.eq.s32.totalorder %v8458_v8, 0  ;;  %v1123_v34 = vxor.u32 2147483648, %v1122_v16  ;;  %v379_v5 = vclz %v6654_v7  ;;  %vm784_vm15 = vc.u32 %v8463_v43, %v8472_v63 }
 0x169   : > { %vm722_vm0 = vcmp.eq.s32.totalorder %v8458_v8, 2  ;;  %v8496_v42 = vand.u32 3, %v1132_v55  ;;  %v367_v30 = vadd.s32 %v8373_v50, %v8352_v28  ;;  %v785_v1 = vadd.s32 1, %v8473_v35  ;;  %v12925_v50 = vld [vmem:[#allocation38_spill] sm:$0xff] }
 0x16a   : > { %v1124_v14 = vsel %vm1041_vm1, %v1123_v34, %v1122_v16  ;;  %v6655_v22 = vadd.s32 4294967294, %v379_v5  ;;  %v782_v57 = vmul.u32 %v775_v9, %v766_v47  ;;  %v519_v23 = vand.u32 2147483647, %v12924_v31 }
 0x16b   : > { %v720_v44 = vxor.u32 2147483648, %v7286_v46  ;;  %v724_v41 = vsel %vm722_vm0, %v723_v19, %v7286_v46  ;;  %v1127_v4 = vsel %vm8415_vm8, %v7877_v62, %v1124_v14  ;;  %v786_v48 = vsel %vm784_vm15, %v785_v1, %v8473_v35 }
 0x16c   : > { %vm718_vm3 = vcmp.lt.s32.totalorder %v8458_v8, 2  ;;  %7287 = vcosq.f32 %v1127_v4  ;;  %vm6656_vm4 = vcmp.lt.s32.totalorder %v6655_v22, 0  ;;  %v787_v28 = vadd.s32 %v786_v48, %v782_v57  ;;  %v12926_v57 = vld [vmem:[#allocation32_spill] sm:$0xff] }
 0x16d   : > { %v537_v49 = vshrl.u32 %v12899_v12, %v12925_v50  ;;  %7289 = vsinq.f32 %v1127_v4  ;;  %v382_v9 = vsel %vm6656_vm4, 0, %v6655_v22  ;;  %v539_v10 = vshll.u32 %v12899_v12, %v7990_v27 }
 0x16e   : > { %v540_v58 = vshrl.u32 %v12900_v0, %v12925_v50  ;;  %v383_v25 = vsub.s32 32, %v382_v9  ;;  %v387_v11 = vsub.s32 4294967266, %v382_v9  ;;  %v788_v52 = vadd.s32 536870912, %v787_v28 }
 0x16f   : > { %v526_v45 = vand.u32 8388607, %v519_v23  ;;  %v536_v13 = vshll.u32 %v12897_v26, %v7990_v27  ;;  %v542_v29 = vshll.u32 %v12900_v0, %v7990_v27  ;;  %v543_v40 = vshrl.u32 %v12896_v3, %v12925_v50 }
 0x170   : > { %v541_v60 = vor.u32 %v540_v58, %v539_v10  ;;  %vm715_vm6 = vweird.f32 %v7893_v33  ;;  %v384_v39 = vshll.u32 %v8454_v18, %v382_v9  ;;  %v385_v55 = vshrl.u32 %v367_v30, %v383_v25 }
 0x171   : > { %v388_v35 = vadd.s32 127, %v387_v11  ;;  %v8525_v46 = vshrl.u32 %v788_v52, 30  ;;  %v721_v16 = vsel %vm719_vm14, %v7284_v54, %v720_v44  ;;  %vm1135_vm2 = vcmp.eq.s32.totalorder %v8496_v42, 0 }
 0x172   : > { %v538_v7 = vor.u32 %v537_v49, %v536_v13  ;;  %v544_v19 = vor.u32 %v543_v40, %v542_v29  ;;  %vm551_vm1 = vcmp.lt.s32.totalorder %v8389_v15, 1  ;;  %vm1134_vm7 = vcmp.lt.s32.totalorder %v8496_v42, 2 }
 0x173   : > { %v386_v27 = vor.u32 %v385_v55, %v384_v39  ;;  %v389_v47 = vshll.u32 %v388_v35, 23  ;;  %v790_v34 = vshll.u32 %v8525_v46, 30  ;;  %vm553_vm8 = vcmp.lt.s32.totalorder %v8389_v15, 3 }
 0x174   : > { %vm1131_vm9 = vweird.f32 %v7877_v62  ;;  %v527_v18 = vor.u32 8388608, %v526_v45  ;;  %v535_v54 = vshrl.u32 %v12897_v26, %v12925_v50  ;;  %v563_v5 = vsel %vm551_vm1, %v541_v60, %v544_v19 }
 0x175   : > { %v565_v30 = vsel %vm553_vm8, %v8392_v61, %v564_v32  ;;  %vm1138_vm10 = vcmp.eq.s32.totalorder %v8496_v42, 2  ;;  %v390_v1 = vor.u32 4788187, %v389_v47  ;;  %v397_v14 = vsub.s32 4, %v8430_v51 }
 0x176   : > { %v8544_v22 = vsub.s32 %v787_v28, %v790_v34  ;;  %vm970_vm11 = vcmp.lt.s32.totalorder %v12926_v57, 4  ;;  %v725_v44 = vsel %vm718_vm3, %v721_v16, %v724_v41  ;;  %vm552_vm12 = vcmp.lt.s32.totalorder %v8389_v15, 2  ;;  %v7288_v32 = vpop.eup %7287  ;;  %v12929_v34 = vld [vmem:[#allocation28_spill] sm:$0xff] }
 0x177   : > { %v555_v4 = vsel %vm551_vm1, %v535_v54, %v538_v7  ;;  %v556_v61 = vsel %vm554_vm13, %v544_v19, 2102212464  ;;  %v391_v48 = vand.u32 2147483647, %v390_v1  ;;  %v393_v50 = vcvt.s32.f32 %v386_v27  ;;  %v7290_v9 = vpop.eup %7289 }
 0x178   : > { %v793_v49 = vsub.s32 0, %v8544_v22  ;;  %v566_v28 = vsel %vm552_vm12, %v563_v5, %v565_v30  ;;  %v1139_v10 = vxor.u32 2147483648, %v7288_v32  ;;  %v559_v8 = vsel %vm551_vm1, %v538_v7, %v541_v60 }
 0x179   : > { %v561_v41 = vsel %vm553_vm8, %v544_v19, %v8483_v53  ;;  %v567_v58 = vshll.u32 %v527_v18, 8  ;;  %v1136_v25 = vxor.u32 2147483648, %v7290_v9  ;;  %v394_v11 = vmul.f32 %v393_v50, %v391_v48  ;;  %v12931_v48 = vld [vmem:[#allocation33_spill] sm:$0xff] }
 0x17a   : > { %v6670_v52 = vmin.u32 %v793_v49, %v8544_v22  ;;  %v557_v45 = vsel %vm553_vm8, %v541_v60, %v556_v61  ;;  %v726_v13 = vsel %vm715_vm6, nan, %v725_v44  ;;  %v1140_v29 = vsel %vm1138_vm10, %v1139_v10, %v7290_v9 }
 0x17b   : > { %v8569_v40 = vmul.u32.u64.low %v567_v58, %v566_v28  ;;  %v8570_v39 = vmul.u32.u64.high %v567_v58, %v566_v28, %v8569_v40  ;;  %v1137_v53 = vsel %vm1135_vm2, %v7288_v32, %v1136_v25  ;;  %v395_v55 = vxor.u32 2147483648, %v394_v11 }
 0x17c   : > { %v795_v35 = vclz %v6670_v52  ;;  %v562_v16 = vsel %vm552_vm12, %v559_v8, %v561_v41  ;;  %v1141_v60 = vsel %vm1134_vm7, %v1137_v53, %v1140_v29  ;;  %vm8580_vm13 = vcmp.le.f32.partialorder %v311_v37, 0.7853982 }
 0x17d   : > { %vm313_vm14 = vcmp.lt.s32.totalorder %v7881_v2, 0  ;;  %v558_v7 = vsel %vm552_vm12, %v555_v4, %v557_v45  ;;  %v1142_v19 = vsel %vm1131_vm9, nan, %v1141_v60  ;;  %v935_v18 = vand.u32 2147483647, %v12929_v34 }
 0x17e   : > { %v396_v27 = vsel %vm313_vm14, %v395_v55, %v394_v11  ;;  %v6671_v47 = vadd.s32 4294967294, %v795_v35  ;;  %v6904_v42 = vpack.c.bf16 %v1142_v19, %v726_v13  ;;  %v976_v15 = vsel %vm970_vm11, %v8470_v24, 920167782 }
 0x17f   : > { %v399_v37 = vsel %vm8580_vm13, %v7881_v2, %v396_v27  ;;  %v8593_v54 = vmul.u32.u64.low %v567_v58, %v562_v16  ;;  %v8594_v5 = vmul.u32.u64.high %v567_v58, %v562_v16, %v8593_v54  ;;  %v980_v62 = vsel %vm970_vm11, %v966_v6, 1326507024  ;;  %v12930_v6 = vld [vmem:[#allocation31_spill] sm:$0xff] }
 0x180   : > { %v398_v30 = vsel %vm313_vm14, %v397_v14, %v8430_v51  ;;  %vm6672_vm15 = vcmp.lt.s32.totalorder %v6671_v47, 0  ;;  %6906 = vmatprep.subr.msk.bf16.mxu1 %vm8318_vm5, %v6904_v42  ;;  %7291 = vcosq.f32 %v399_v37  ;;  %v783_v1 = vadd.s32 %v8472_v63, %v8463_v43 }
 0x181   : > { %v798_v44 = vsel %vm6672_vm15, 0, %v6671_v47  ;;  %v574_v4 = vmul.u32 %v567_v58, %v558_v7  ;;  %vm576_vm0 = vc.u32 %v8570_v39, %v8593_v54  ;;  %v942_v20 = vand.u32 8388607, %v935_v18 }
 0x182   : > { %v799_v61 = vsub.s32 32, %v798_v44  ;;  %v803_v32 = vsub.s32 4294967266, %v798_v44  ;;  %v800_v51 = vshll.u32 %v8544_v22, %v798_v44  ;;  %v577_v17 = vadd.s32 1, %v8594_v5 }
 0x183   : > { %v952_v14 = vshll.u32 %v12897_v26, %v12930_v6  ;;  %v953_v43 = vshrl.u32 %v12899_v12, %v12931_v48  ;;  %v955_v49 = vshll.u32 %v12899_v12, %v12930_v6  ;;  %v956_v28 = vshrl.u32 %v12900_v0, %v12931_v48 }
 0x184   : > { %v801_v63 = vshrl.u32 %v783_v1, %v799_v61  ;;  %v804_v50 = vadd.s32 127, %v803_v32  ;;  %v578_v9 = vsel %vm576_vm0, %v577_v17, %v8594_v5  ;;  %v958_v22 = vshll.u32 %v12900_v0, %v12930_v6 }
 0x185   : > { %v954_v10 = vor.u32 %v953_v43, %v952_v14  ;;  %v959_v8 = vshrl.u32 %v12896_v3, %v12931_v48  ;;  %v579_v25 = vadd.s32 %v578_v9, %v574_v4  ;;  %v957_v11 = vor.u32 %v956_v28, %v955_v49 }
 0x186   : > { %v802_v41 = vor.u32 %v801_v63, %v800_v51  ;;  %v805_v58 = vshll.u32 %v804_v50, 23  ;;  %7293 = vsinq.f32 %v399_v37  ;;  %v813_v52 = vsub.s32 4, %v8525_v46 }
 0x187   : > { %v943_v45 = vor.u32 8388608, %v942_v20  ;;  %v960_v13 = vor.u32 %v959_v8, %v958_v22  ;;  %v580_v40 = vadd.s32 536870912, %v579_v25  ;;  %vm967_vm3 = vcmp.lt.s32.totalorder %v12926_v57, 1 }
 0x188   : > { %v806_v29 = vor.u32 4788187, %v805_v58  ;;  %vm969_vm4 = vcmp.lt.s32.totalorder %v12926_v57, 3  ;;  %v975_v53 = vsel %vm967_vm3, %v954_v10, %v957_v11  ;;  %v809_v7 = vcvt.s32.f32 %v802_v41 }
 0x189   : > { %v977_v55 = vsel %vm969_vm4, %v960_v13, %v976_v15  ;;  %v979_v35 = vsel %vm967_vm3, %v957_v11, %v960_v13  ;;  %v981_v16 = vsel %vm969_vm4, %v8470_v24, %v980_v62  ;;  %v8641_v19 = vshrl.u32 %v580_v40, 30 }
 0x18a   : > { %v807_v60 = vand.u32 2147483647, %v806_v29  ;;  %vm968_vm6 = vcmp.lt.s32.totalorder %v12926_v57, 2  ;;  %v7292_v27 = vpop.eup %7291  ;;  %vm729_vm2 = vcmp.lt.s32.totalorder %v7871_v59, 0  ;;  %v972_v47 = vsel %vm970_vm11, %v960_v13, 2102212464 }
 0x18b   : > { %v982_v42 = vsel %vm968_vm6, %v979_v35, %v981_v16  ;;  %v983_v37 = vshll.u32 %v943_v45, 8  ;;  %v582_v15 = vshll.u32 %v8641_v19, 30  ;;  %v951_v24 = vshrl.u32 %v12897_v26, %v12931_v48 }
 0x18c   : > { %v810_v5 = vmul.f32 %v809_v7, %v807_v60  ;;  %v978_v62 = vsel %vm968_vm6, %v975_v53, %v977_v55  ;;  %v400_v1 = vsel %vm8580_vm13, 0, %v398_v30  ;;  %v814_v44 = vsel %vm729_vm2, %v813_v52, %v8525_v46  ;;  %v7468_v52 = vld [vmem:[#allocation5 + $0x8] sm:$0x3] }
 0x18d   : > { %v8659_v4 = vmul.u32.u64.low %v983_v37, %v982_v42  ;;  %v8660_v61 = vmul.u32.u64.high %v983_v37, %v982_v42, %v8659_v4  ;;  %v8662_v20 = vsub.s32 %v579_v25, %v582_v15  ;;  %v971_v51 = vsel %vm967_vm3, %v951_v24, %v954_v10 }
 0x18e   : > { %v811_v32 = vxor.u32 2147483648, %v810_v5  ;;  %v973_v17 = vsel %vm969_vm4, %v957_v11, %v972_v47  ;;  %v8668_v6 = vmul.u32.u64.low %v983_v37, %v978_v62  ;;  %v8669_v14 = vmul.u32.u64.high %v983_v37, %v978_v62, %v8668_v6  ;;  %v7467_v11 = vld [vmem:[#allocation5] sm:$0xff] }
 0x18f   : > { %v404_v33 = vadd.s32 3, %v400_v1  ;;  %vm8674_vm1 = vcmp.le.f32.partialorder %v727_v38, 0.7853982  ;;  %v585_v48 = vsub.s32 0, %v8662_v20  ;;  %v974_v49 = vsel %vm968_vm6, %v971_v51, %v973_v17 }
 0x190   : > { %v812_v30 = vsel %vm729_vm2, %v811_v32, %v810_v5  ;;  %v7294_v43 = vpop.eup %7293  ;;  %v816_v50 = vsel %vm8674_vm1, 0, %v814_v44  ;;  %vm992_vm7 = vc.u32 %v8660_v61, %v8668_v6  ;;  %v993_v28 = vadd.s32 1, %v8669_v14 }
 0x191   : > { %v815_v63 = vsel %vm8674_vm1, %v7871_v59, %v812_v30  ;;  %v6662_v38 = vmin.u32 %v585_v48, %v8662_v20  ;;  %v12793_v9 = vmov 0.0   ;;  %v405_v10 = vand.u32 3, %v404_v33 }
 0x192   : > { %7295 = vcosq.f32 %v815_v63  ;;  %1237 = vmatprep.mubr.f32.mxu0 %v12793_v9  ;;  %1314 = vmatprep.mubr.f32.mxu1 %v12793_v9  ;;  %v990_v8 = vmul.u32 %v983_v37, %v974_v49  ;;  %v7624_v41 = vmov 63   ;;  %v411_v57 = vxor.u32 2147483648, %v7292_v27 }
 0x193   : > { %7297 = vsinq.f32 %v815_v63  ;;  %v587_v22 = vclz %v6662_v38  ;;  %7255 = vset.pattern.permute.xlu1 %v7624_v41  ;;  %7256 = vset.pattern.permute.xlu0 %v7624_v41  ;;  %v820_v58 = vadd.s32 3, %v816_v50  ;;  %v994_v25 = vsel %vm992_vm7, %v993_v28, %v8669_v14 }
 0x194   : > { %1144 = vperm.xlu1 %7255, %v7467_v11   ;;  %1148 = vperm.xlu0 %7256, %v7468_v52   ;;  %v408_v45 = vxor.u32 2147483648, %v7294_v43  ;;  %v995_v29 = vadd.s32 %v994_v25, %v990_v8  ;;  %vm407_vm8 = vcmp.eq.s32.totalorder %v405_v10, 0  ;;  %vm410_vm9 = vcmp.eq.s32.totalorder %v405_v10, 2 }
 0x195   : > { %v6663_v13 = vadd.s32 4294967294, %v587_v22  ;;  %v412_v53 = vsel %vm410_vm9, %v411_v57, %v7294_v43  ;;  %v821_v55 = vand.u32 3, %v820_v58  ;;  %v575_v35 = vadd.s32 %v8593_v54, %v8570_v39  ;;  %v8711_v22 = vpop.permute.xlu0 %1153 }
 0x196   : > { %v996_v40 = vadd.s32 536870912, %v995_v29  ;;  %v409_v60 = vsel %vm407_vm8, %v7292_v27, %v408_v45  ;;  %vm406_vm11 = vcmp.lt.s32.totalorder %v405_v10, 2  ;;  %vm403_vm13 = vweird.f32 %v7881_v2  ;;  %v8705_v2 = vpop.permute.xlu1 %1151 }
 0x197   : > { %vm6664_vm10 = vcmp.lt.s32.totalorder %v6663_v13, 0  ;;  %v413_v44 = vsel %vm406_vm11, %v409_v60, %v412_v53  ;;  %vm826_vm12 = vcmp.eq.s32.totalorder %v821_v55, 2  ;;  %vm822_vm14 = vcmp.lt.s32.totalorder %v821_v55, 2 }
 0x198   : > { %v590_v16 = vsel %vm6664_vm10, 0, %v6663_v13  ;;  %2175 = vrot.lane.b32.xlu1 %v7467_v11, %s7625_s17  ;;  %v8697_v42 = vshrl.u32 %v996_v40, 30  ;;  %vm823_vm15 = vcmp.eq.s32.totalorder %v821_v55, 0  ;;  %v414_v17 = vsel %vm403_vm13, nan, %v413_v44 }
 0x199   : > { %v591_v7 = vsub.s32 32, %v590_v16  ;;  %v595_v47 = vsub.s32 4294967266, %v590_v16  ;;  %v592_v5 = vshll.u32 %v8662_v20, %v590_v16  ;;  %vm819_vm0 = vweird.f32 %v7871_v59 }
 0x19a   : > { %v998_v62 = vshll.u32 %v8697_v42, 30  ;;  %vm1155_vm3 = vcmask 80896   ;;  %vm521_vm6 = vcmp.lt.s32.totalorder %v12924_v31, 0  ;;  %v991_v41 = vadd.s32 %v8668_v6, %v8660_v61 }
 0x19b   : > { %v593_v15 = vshrl.u32 %v575_v35, %v591_v7  ;;  %v596_v24 = vadd.s32 127, %v595_v47  ;;  %vm8719_vm2 = vcmp.le.f32.partialorder %v519_v23, 0.7853982  ;;  %v1021_v16 = vsub.s32 4, %v8697_v42 }
 0x19c   : > { %v7296_v37 = vpop.eup %7295  ;;  %2177 = vrot.lane.b32.xlu1 %v7468_v52, %s7625_s17  ;;  %v999_v32 = vsub.s32 %v995_v29, %v998_v62  ;;  %v605_v29 = vsub.s32 4, %v8641_v19  ;;  %vm937_vm1 = vcmp.lt.s32.totalorder %v12929_v34, 0  ;;  %vm936_vm7 = vcmp.le.f32.partialorder %v935_v18, 0.7853982 }
 0x19d   : > { %v7298_v1 = vpop.eup %7297  ;;  %v827_v39 = vxor.u32 2147483648, %v7296_v37  ;;  %v594_v4 = vor.u32 %v593_v15, %v592_v5  ;;  %v597_v27 = vshll.u32 %v596_v24, 23 }
 0x19e   : > { %v824_v54 = vxor.u32 2147483648, %v7298_v1  ;;  %v1001_v33 = vsub.s32 0, %v999_v32  ;;  %v606_v55 = vsel %vm521_vm6, %v605_v29, %v8641_v19 }
 0x19f   : > { %v828_v51 = vsel %vm826_vm12, %v827_v39, %v7298_v1  ;;  %v598_v14 = vor.u32 4788187, %v597_v27  ;;  %v601_v43 = vcvt.s32.f32 %v594_v4  ;;  %v608_v60 = vsel %vm8719_vm2, 0, %v606_v55 }
 0x1a0   : > { %v825_v20 = vsel %vm823_vm15, %v7296_v37, %v824_v54  ;;  %v6678_v63 = vmin.u32 %v1001_v33, %v999_v32  ;;  %v1022_v37 = vsel %vm937_vm1, %v1021_v16, %v8697_v42  ;;  %v612_v5 = vadd.s32 3, %v608_v60 }
 0x1a1   : > { %v829_v46 = vsel %vm822_vm14, %v825_v20, %v828_v51  ;;  %v599_v48 = vand.u32 2147483647, %v598_v14  ;;  %v1024_v62 = vsel %vm936_vm7, 0, %v1022_v37  ;;  %vm611_vm12 = vweird.f32 %v12924_v31 }
 0x1a2   : > { %v830_v30 = vsel %vm819_vm0, nan, %v829_v46  ;;  %v1003_v38 = vclz %v6678_v63  ;;  %v613_v1 = vand.u32 3, %v612_v5  ;;  %v1028_v54 = vadd.s32 3, %v1024_v62 }
 0x1a3   : > { %v6901_v50 = vpack.c.bf16 %v830_v30, %v414_v17  ;;  %v602_v49 = vmul.f32 %v601_v43, %v599_v48  ;;  %vm1027_vm15 = vweird.f32 %v12929_v34 }
 0x1a4   : > { %v6679_v10 = vadd.s32 4294967294, %v1003_v38  ;;  %vm615_vm8 = vcmp.eq.s32.totalorder %v613_v1, 0  ;;  %vm618_vm9 = vcmp.eq.s32.totalorder %v613_v1, 2  ;;  %v1029_v18 = vand.u32 3, %v1028_v54 }
 0x1a5   : > { %6903 = vmatpush1.bf16.msk.msra.mxu0 %vm8318_vm5, %v6901_v50  ;;  %v603_v28 = vxor.u32 2147483648, %v602_v49  ;;  %vm614_vm10 = vcmp.lt.s32.totalorder %v613_v1, 2 }
 0x1a6   : > { %vm6680_vm4 = vcmp.lt.s32.totalorder %v6679_v10, 0  ;;  %vm1034_vm11 = vcmp.eq.s32.totalorder %v1029_v18, 2  ;;  %vm1031_vm13 = vcmp.eq.s32.totalorder %v1029_v18, 0  ;;  %vm1030_vm14 = vcmp.lt.s32.totalorder %v1029_v18, 2 }
 0x1a7   : > { %v1006_v59 = vsel %vm6680_vm4, 0, %v6679_v10  ;;  %v604_v8 = vsel %vm521_vm6, %v603_v28, %v602_v49 }
 0x1a8   : > { %6687 = vmatmul.mubr.msk.f32.vlgmr.msra.gmra.mrb[0].mxu0 %vm1155_vm3, %v8705_v2  ;;  %v1007_v57 = vsub.s32 32, %v1006_v59  ;;  %v1011_v58 = vsub.s32 4294967266, %v1006_v59  ;;  %v1008_v11 = vshll.u32 %v999_v32, %v1006_v59  ;;  %v607_v13 = vsel %vm8719_vm2, %v12924_v31, %v604_v8 }
 0x1a9   : > { %1243 = vmatprep.mubr.f32.mxu0 %v12793_v9  ;;  %7299 = vcosq.f32 %v607_v13 }
 0x1aa   : > { %v1009_v52 = vshrl.u32 %v991_v41, %v1007_v57  ;;  %v1012_v45 = vadd.s32 127, %v1011_v58  ;;  %7301 = vsinq.f32 %v607_v13 }
 0x1ac   : > { %6688 = vmatmul.mubr.msk.f32.gmra.mrb[2].mxu0 %vm1155_vm3, %v8711_v22  ;;  %v1010_v61 = vor.u32 %v1009_v52, %v1008_v11  ;;  %v1013_v6 = vshll.u32 %v1012_v45, 23 }
 0x1ad   : > { %2259 = vmatprep.mubr.f32.mxu0 %v12793_v9 }
 0x1ae   : > { %v1014_v23 = vor.u32 4788187, %v1013_v6  ;;  %v1017_v53 = vcvt.s32.f32 %v1010_v61 }
 0x1b0   : > { %v1015_v40 = vand.u32 2147483647, %v1014_v23 }
 0x1b2   : > { %v1018_v35 = vmul.f32 %v1017_v53, %v1015_v40 }
 0x1b3   : > { %v7300_v24 = vpop.eup %7299 }
 0x1b4   : > { %v1019_v7 = vxor.u32 2147483648, %v1018_v35  ;;  %v7302_v19 = vpop.eup %7301  ;;  %v619_v39 = vxor.u32 2147483648, %v7300_v24 }
 0x1b5   : > { %v616_v44 = vxor.u32 2147483648, %v7302_v19 }
 0x1b6   : > { %v1020_v47 = vsel %vm937_vm1, %v1019_v7, %v1018_v35  ;;  %v620_v27 = vsel %vm618_vm9, %v619_v39, %v7302_v19 }
 0x1b7   : > { %v1023_v15 = vsel %vm936_vm7, %v12929_v34, %v1020_v47  ;;  %v617_v4 = vsel %vm615_vm8, %v7300_v24, %v616_v44 }
 0x1b8   : > { %7303 = vcosq.f32 %v1023_v15  ;;  %v621_v51 = vsel %vm614_vm10, %v617_v4, %v620_v27 }
 0x1b9   : > { %7305 = vsinq.f32 %v1023_v15  ;;  %v622_v33 = vsel %vm611_vm12, nan, %v621_v51 }
 0x1c2   : > { %v7304_v32 = vpop.eup %7303 }
 0x1c3   : > { %v7306_v42 = vpop.eup %7305  ;;  %v1035_v17 = vxor.u32 2147483648, %v7304_v32 }
 0x1c4   : > { %v1032_v20 = vxor.u32 2147483648, %v7306_v42 }
 0x1c5   : > { %v1036_v14 = vsel %vm1034_vm11, %v1035_v17, %v7306_v42 }
 0x1c6   : > { %v1033_v46 = vsel %vm1031_vm13, %v7304_v32, %v1032_v20 }
 0x1c7   : > { %v1037_v30 = vsel %vm1030_vm14, %v1033_v46, %v1036_v14 }
 0x1c8   : > { %v1038_v48 = vsel %vm1027_vm15, nan, %v1037_v30 }
 0x1c9   : > { %v6907_v43 = vpack.c.bf16 %v1038_v48, %v622_v33 }
 0x1cb   : > { %6909 = vmatpush1.bf16.msk.msra.mxu1 %vm8318_vm5, %v6907_v43 }
 0x1ce   : > { %6691 = vmatmul.mubr.msk.f32.vlgmr.msra.gmra.mrb[0].mxu1 %vm1155_vm3, %v8705_v2 }
 0x1cf   : > { %1320 = vmatprep.mubr.f32.mxu1 %v12793_v9 }
 0x1d2   : > { %6692 = vmatmul.mubr.msk.f32.gmra.mrb[2].mxu1 %vm1155_vm3, %v8711_v22 }
 0x1d3   : > { %2336 = vmatprep.mubr.f32.mxu1 %v12793_v9 }
 0x213   : > { %v8751_v31 = vpop.permute.xlu1 %1144  ;;  %v8767_v25 = vpop.permute.xlu0 %1148 }
 0x27b   : > { %v1239_v63 = vpop.f32.mrb[0].mxu0 }
 0x27c   : > { %v8754_v34 = vadd.f32 %v1239_v63, %v8751_v31  ;;  %v1241_v50 = vpop.f32.mrb[1].mxu0 }
 0x27d   : > { %v8757_v49 = vadd.f32 %v1241_v50, %v8751_v31 }
 0x27e   : > { %v1327_v38 = vand.u32 2147483647, %v8754_v34  ;;  %v1330_v2 = vand.u32 2139095040, %v8754_v34 }
 0x27f   : > { %v1434_v28 = vand.u32 2139095040, %v8757_v49  ;;  %v1245_v10 = vpop.f32.mrb[2].mxu0  ;;  %v1431_v41 = vand.u32 2147483647, %v8757_v49 }
 0x280   : > { %v1331_v59 = vshrl.u32 %v1330_v2, 23  ;;  %v8762_v22 = vpop.f32.mrb[3].mxu0  ;;  %v1334_v8 = vand.u32 8388607, %v1327_v38  ;;  %v8774_v6 = vadd.f32 %v1245_v10, %v8767_v25 }
 0x281   : > { %v1435_v57 = vshrl.u32 %v1434_v28, 23  ;;  %v8771_v13 = vand.u32 8388607, %v1431_v41 }
 0x282   : > { %v6693_v58 = vadd.s32 4294967169, %v1331_v59  ;;  %v1335_v45 = vor.u32 8388608, %v1334_v8  ;;  %v1746_v16 = vand.u32 2139095040, %v8774_v6 }
 0x283   : > { %v6697_v11 = vadd.s32 4294967169, %v1435_v57  ;;  %v1439_v35 = vor.u32 8388608, %v8771_v13 }
 0x284   : > { %v1337_v52 = vadd.s32 1, %v6693_v58  ;;  %v8776_v55 = vshll.u32 %v1335_v45, 8 }
 0x285   : > { %v1441_v61 = vadd.s32 1, %v6697_v11 }
 0x286   : > { %vm1338_vm0 = vcmp.gt.s32.totalorder %v1337_v52, 0 }
 0x287   : > { %v1339_v29 = vsel %vm1338_vm0, %v1337_v52, 0  ;;  %vm1442_vm4 = vcmp.gt.s32.totalorder %v1441_v61, 0 }
 0x288   : > { %v1340_v23 = vshrl.u32 %v1339_v29, 5  ;;  %v1341_v40 = vand.u32 31, %v1339_v29  ;;  %v1443_v53 = vsel %vm1442_vm4, %v1441_v61, 0  ;;  %vm1329_vm4 = vcmp.lt.s32.totalorder %v8754_v34, 0 }
 0x289   : > { %v8781_v47 = vshrl.u32 %v1443_v53, 5  ;;  %v1445_v37 = vand.u32 31, %v1443_v53 }
 0x28a   : > { %v1342_v60 = vsub.s32 32, %v1341_v40  ;;  %v1344_v7 = vshll.u32 %v12897_v26, %v1341_v40  ;;  %v1347_v5 = vshll.u32 %v12899_v12, %v1341_v40  ;;  %v1350_v15 = vshll.u32 %v12900_v0, %v1341_v40 }
 0x28b   : > { %v1353_v24 = vshll.u32 %v12896_v3, %v1341_v40  ;;  %v1356_v19 = vshll.u32 %v12901_v36, %v1341_v40  ;;  %vm1359_vm6 = vcmp.lt.s32.totalorder %v1340_v23, 1  ;;  %vm1360_vm2 = vcmp.lt.s32.totalorder %v1340_v23, 2 }
 0x28c   : > { %v1345_v62 = vshrl.u32 %v12899_v12, %v1342_v60  ;;  %v1348_v1 = vshrl.u32 %v12900_v0, %v1342_v60  ;;  %v1351_v44 = vshrl.u32 %v12896_v3, %v1342_v60  ;;  %v1343_v39 = vshrl.u32 %v12897_v26, %v1342_v60 }
 0x28d   : > { %v1354_v54 = vshrl.u32 %v12901_v36, %v1342_v60  ;;  %v1357_v4 = vshrl.u32 %v12898_v21, %v1342_v60  ;;  %v1446_v42 = vsub.s32 32, %v1445_v37  ;;  %vm1361_vm1 = vcmp.lt.s32.totalorder %v1340_v23, 3 }
 0x28e   : > { %v1346_v27 = vor.u32 %v1345_v62, %v1344_v7  ;;  %v1349_v18 = vor.u32 %v1348_v1, %v1347_v5  ;;  %v1352_v32 = vor.u32 %v1351_v44, %v1350_v15  ;;  %vm1362_vm7 = vcmp.lt.s32.totalorder %v1340_v23, 4 }
 0x28f   : > { %v1355_v51 = vor.u32 %v1354_v54, %v1353_v24  ;;  %v1358_v17 = vor.u32 %v1357_v4, %v1356_v19  ;;  %v1448_v63 = vshll.u32 %v12897_v26, %v1445_v37  ;;  %v1449_v28 = vshrl.u32 %v12899_v12, %v1446_v42 }
 0x290   : > { %v1363_v20 = vsel %vm1359_vm6, %v1343_v39, %v1346_v27  ;;  %v1364_v14 = vsel %vm1362_vm7, %v1352_v32, 2102212464  ;;  %v1367_v33 = vsel %vm1359_vm6, %v1346_v27, %v1349_v18  ;;  %v1371_v46 = vsel %vm1359_vm6, %v1349_v18, %v1352_v32 }
 0x291   : > { %v1365_v30 = vsel %vm1361_vm1, %v1349_v18, %v1364_v14  ;;  %v1368_v48 = vsel %vm1362_vm7, %v1355_v51, 920167782  ;;  %v1372_v43 = vsel %vm1362_vm7, %v1358_v17, 1326507024  ;;  %v1451_v10 = vshll.u32 %v12899_v12, %v1445_v37 }
 0x292   : > { %v1369_v50 = vsel %vm1361_vm1, %v1352_v32, %v1368_v48  ;;  %v1373_v2 = vsel %vm1361_vm1, %v1355_v51, %v1372_v43  ;;  %v1366_v59 = vsel %vm1360_vm2, %v1363_v20, %v1365_v30  ;;  %v1452_v58 = vshrl.u32 %v12900_v0, %v1446_v42 }
 0x293   : > { %v1370_v8 = vsel %vm1360_vm2, %v1367_v33, %v1369_v50  ;;  %v1374_v57 = vsel %vm1360_vm2, %v1371_v46, %v1373_v2  ;;  %v1450_v61 = vor.u32 %v1449_v28, %v1448_v63  ;;  %v1454_v40 = vshll.u32 %v12900_v0, %v1445_v37 }
 0x294   : > { %v8804_v11 = vmul.u32.u64.low %v8776_v55, %v1374_v57  ;;  %v8805_v52 = vmul.u32.u64.high %v8776_v55, %v1374_v57, %v8804_v11  ;;  %v8808_v45 = vmul.u32.u64.low %v8776_v55, %v1370_v8  ;;  %v8809_v13 = vmul.u32.u64.high %v8776_v55, %v1370_v8, %v8808_v45 }
 0x295   : > { %v1453_v29 = vor.u32 %v1452_v58, %v1451_v10  ;;  %v1455_v53 = vshrl.u32 %v12896_v3, %v1446_v42  ;;  %v1457_v23 = vshll.u32 %v12896_v3, %v1445_v37  ;;  %v1458_v60 = vshrl.u32 %v12901_v36, %v1446_v42 }
 0x296   : > { %v1461_v7 = vshrl.u32 %v12898_v21, %v1446_v42  ;;  %v1479_v5 = vshll.u32 %v1439_v35, 8  ;;  %v1382_v15 = vmul.u32 %v8776_v55, %v1366_v59  ;;  %v1447_v24 = vshrl.u32 %v12897_v26, %v1446_v42 }
 0x297   : > { %v1456_v19 = vor.u32 %v1455_v53, %v1454_v40  ;;  %v1460_v62 = vshll.u32 %v12901_v36, %v1445_v37  ;;  %vm1384_vm8 = vc.u32 %v8805_v52, %v8808_v45  ;;  %v1385_v1 = vadd.s32 1, %v8809_v13 }
 0x298   : > { %v1459_v44 = vor.u32 %v1458_v60, %v1457_v23  ;;  %vm1463_vm9 = vcmp.lt.s32.totalorder %v8781_v47, 1  ;;  %vm1465_vm10 = vcmp.lt.s32.totalorder %v8781_v47, 3  ;;  %vm1466_vm11 = vcmp.lt.s32.totalorder %v8781_v47, 4 }
 0x299   : > { %v1462_v39 = vor.u32 %v1461_v7, %v1460_v62  ;;  %v1471_v35 = vsel %vm1463_vm9, %v1450_v61, %v1453_v29  ;;  %v1386_v55 = vsel %vm1384_vm8, %v1385_v1, %v8809_v13  ;;  %v1468_v54 = vsel %vm1466_vm11, %v1456_v19, 2102212464 }
 0x29a   : > { %v1472_v4 = vsel %vm1466_vm11, %v1459_v44, 920167782  ;;  %v1475_v27 = vsel %vm1463_vm9, %v1453_v29, %v1456_v19  ;;  %v1387_v37 = vadd.s32 %v1386_v55, %v1382_v15  ;;  %vm1464_vm12 = vcmp.lt.s32.totalorder %v8781_v47, 2 }
 0x29b   : > { %v1473_v18 = vsel %vm1465_vm10, %v1456_v19, %v1472_v4  ;;  %v1476_v32 = vsel %vm1466_vm11, %v1462_v39, 1326507024  ;;  %v1467_v42 = vsel %vm1463_vm9, %v1447_v24, %v1450_v61  ;;  %v1469_v51 = vsel %vm1465_vm10, %v1453_v29, %v1468_v54 }
 0x29c   : > { %v1474_v17 = vsel %vm1464_vm12, %v1471_v35, %v1473_v18  ;;  %v1477_v20 = vsel %vm1465_vm10, %v1459_v44, %v1476_v32  ;;  %v1388_v14 = vadd.s32 536870912, %v1387_v37  ;;  %v1470_v50 = vsel %vm1464_vm12, %v1467_v42, %v1469_v51 }
 0x29d   : > { %v1478_v33 = vsel %vm1464_vm12, %v1475_v27, %v1477_v20  ;;  %v8828_v46 = vmul.u32.u64.low %v1479_v5, %v1474_v17  ;;  %v8829_v30 = vmul.u32.u64.high %v1479_v5, %v1474_v17, %v8828_v46  ;;  %v1747_v28 = vshrl.u32 %v1746_v16, 23 }
 0x29e   : > { %v8832_v48 = vmul.u32.u64.low %v1479_v5, %v1478_v33  ;;  %v8833_v43 = vmul.u32.u64.high %v1479_v5, %v1478_v33, %v8832_v48  ;;  %v8835_v63 = vshrl.u32 %v1388_v14, 30  ;;  %v1486_v10 = vmul.u32 %v1479_v5, %v1470_v50 }
 0x29f   : > { %v1489_v2 = vadd.s32 1, %v8829_v30  ;;  %v6709_v40 = vadd.s32 4294967169, %v1747_v28  ;;  %v12798_v54 = vand.u32 2147483647, %v8774_v6  ;;  %v1383_v18 = vadd.s32 %v8808_v45, %v8805_v52 }
 0x2a0   : > { %v1390_v47 = vshll.u32 %v8835_v63, 30  ;;  %vm1488_vm13 = vc.u32 %v8833_v43, %v8828_v46  ;;  %vm8886_vm6 = vcmp.le.f32.partialorder %v1327_v38, 0.7853982 }
 0x2a1   : > { %v1316_v8 = vpop.f32.mrb[0].mxu1  ;;  %v1490_v57 = vsel %vm1488_vm13, %v1489_v2, %v8829_v30  ;;  %v1753_v62 = vadd.s32 1, %v6709_v40  ;;  %v8870_v14 = vand.u32 8388607, %v12798_v54 }
 0x2a2   : > { %v1391_v59 = vsub.s32 %v1387_v37, %v1390_v47  ;;  %v8845_v58 = vadd.f32 %v1316_v8, %v8751_v31  ;;  %v8847_v11 = vadd.s32 %v1490_v57, %v1486_v10  ;;  %v1318_v13 = vpop.f32.mrb[1].mxu1 }
 0x2a3   : > { %v8850_v29 = vadd.f32 %v1318_v13, %v8751_v31  ;;  %vm1754_vm15 = vcmp.gt.s32.totalorder %v1753_v62, 0 }
 0x2a4   : > { %v1393_v61 = vsub.s32 0, %v1391_v59  ;;  %v1535_v16 = vand.u32 2147483647, %v8845_v58  ;;  %v1538_v53 = vand.u32 2139095040, %v8845_v58  ;;  %v1492_v5 = vadd.s32 536870912, %v8847_v11 }
 0x2a5   : > { %v8854_v60 = vpop.f32.mrb[2].mxu1  ;;  %v1642_v19 = vand.u32 2139095040, %v8850_v29  ;;  %v8872_v33 = vsel %vm1754_vm15, %v1753_v62, 0 }
 0x2a6   : > { %v6694_v23 = vmin.u32 %v1393_v61, %v1391_v59  ;;  %v1539_v7 = vshrl.u32 %v1538_v53, 23  ;;  %v1542_v24 = vand.u32 8388607, %v1535_v16  ;;  %v8860_v31 = vpop.f32.mrb[3].mxu1  ;;  %v8862_v55 = vshrl.u32 %v1492_v5, 30 }
 0x2a7   : > { %v1643_v39 = vshrl.u32 %v1642_v19, 23 }
 0x2a8   : > { %v1395_v15 = vclz %v6694_v23  ;;  %v6701_v1 = vadd.s32 4294967169, %v1539_v7  ;;  %v1543_v4 = vor.u32 8388608, %v1542_v24  ;;  %v1494_v20 = vshll.u32 %v8862_v55, 30 }
 0x2a9   : > { %v6705_v37 = vadd.s32 4294967169, %v1643_v39 }
 0x2aa   : > { %v6695_v44 = vadd.s32 4294967294, %v1395_v15  ;;  %v1545_v35 = vadd.s32 1, %v6701_v1  ;;  %v8874_v47 = vshll.u32 %v1543_v4, 8 }
 0x2ab   : > { %v1649_v45 = vadd.s32 1, %v6705_v37 }
 0x2ac   : > { %vm6696_vm14 = vcmp.lt.s32.totalorder %v6695_v44, 0  ;;  %vm1546_vm0 = vcmp.gt.s32.totalorder %v1545_v35, 0 }
 0x2ad   : > { %v1398_v27 = vsel %vm6696_vm14, 0, %v6695_v44  ;;  %v1547_v51 = vsel %vm1546_vm0, %v1545_v35, 0  ;;  %vm1650_vm9 = vcmp.gt.s32.totalorder %v1649_v45, 0 }
 0x2ae   : > { %v1399_v32 = vsub.s32 32, %v1398_v27  ;;  %v1403_v42 = vsub.s32 4294967266, %v1398_v27  ;;  %v1549_v17 = vand.u32 31, %v1547_v51  ;;  %v1400_v30 = vshll.u32 %v1391_v59, %v1398_v27 }
 0x2af   : > { %v1548_v2 = vshrl.u32 %v1547_v51, 5 }
 0x2b0   : > { %v1401_v48 = vshrl.u32 %v1383_v18, %v1399_v32  ;;  %v1404_v50 = vadd.s32 127, %v1403_v42  ;;  %v1550_v28 = vsub.s32 32, %v1549_v17  ;;  %v1552_v52 = vshll.u32 %v12897_v26, %v1549_v17 }
 0x2b1   : > { %v1555_v57 = vshll.u32 %v12899_v12, %v1549_v17  ;;  %v1558_v13 = vshll.u32 %v12900_v0, %v1549_v17  ;;  %v1561_v53 = vshll.u32 %v12896_v3, %v1549_v17  ;;  %v1564_v15 = vshll.u32 %v12901_v36, %v1549_v17 }
 0x2b2   : > { %v1402_v10 = vor.u32 %v1401_v48, %v1400_v30  ;;  %v1405_v8 = vshll.u32 %v1404_v50, 23  ;;  %v1553_v61 = vshrl.u32 %v12899_v12, %v1550_v28  ;;  %v1556_v59 = vshrl.u32 %v12900_v0, %v1550_v28 }
 0x2b3   : > { %v1559_v40 = vshrl.u32 %v12896_v3, %v1550_v28  ;;  %v1562_v5 = vshrl.u32 %v12901_v36, %v1550_v28  ;;  %v1565_v24 = vshrl.u32 %v12898_v21, %v1550_v28  ;;  %vm1567_vm2 = vcmp.lt.s32.totalorder %v1548_v2, 1 }
 0x2b4   : > { %v1406_v7 = vor.u32 4788187, %v1405_v8  ;;  %v1409_v19 = vcvt.s32.f32 %v1402_v10  ;;  %v1554_v62 = vor.u32 %v1553_v61, %v1552_v52  ;;  %v1557_v1 = vor.u32 %v1556_v59, %v1555_v57 }
 0x2b5   : > { %v1560_v44 = vor.u32 %v1559_v40, %v1558_v13  ;;  %v1563_v35 = vor.u32 %v1562_v5, %v1561_v53  ;;  %v1566_v4 = vor.u32 %v1565_v24, %v1564_v15  ;;  %v1551_v38 = vshrl.u32 %v12897_v26, %v1550_v28 }
 0x2b6   : > { %v1407_v39 = vand.u32 2147483647, %v1406_v7  ;;  %vm1569_vm1 = vcmp.lt.s32.totalorder %v1548_v2, 3  ;;  %vm1570_vm7 = vcmp.lt.s32.totalorder %v1548_v2, 4  ;;  %v1575_v27 = vsel %vm1567_vm2, %v1554_v62, %v1557_v1 }
 0x2b7   : > { %v1572_v18 = vsel %vm1570_vm7, %v1560_v44, 2102212464  ;;  %v1576_v32 = vsel %vm1570_vm7, %v1563_v35, 920167782  ;;  %v1579_v42 = vsel %vm1567_vm2, %v1557_v1, %v1560_v44  ;;  %vm1568_vm8 = vcmp.lt.s32.totalorder %v1548_v2, 2 }
 0x2b8   : > { %v1410_v37 = vmul.f32 %v1409_v19, %v1407_v39  ;;  %v1571_v51 = vsel %vm1567_vm2, %v1551_v38, %v1554_v62  ;;  %v1577_v17 = vsel %vm1569_vm1, %v1560_v44, %v1576_v32  ;;  %v1580_v30 = vsel %vm1570_vm7, %v1566_v4, 1326507024 }
 0x2b9   : > { %v1573_v50 = vsel %vm1569_vm1, %v1557_v1, %v1572_v18  ;;  %v1578_v52 = vsel %vm1568_vm8, %v1575_v27, %v1577_v17  ;;  %v1581_v10 = vsel %vm1569_vm1, %v1563_v35, %v1580_v30  ;;  %v8900_v28 = vand.u32 31, %v8872_v33 }
 0x2ba   : > { %v1411_v48 = vxor.u32 2147483648, %v1410_v37  ;;  %v1582_v8 = vsel %vm1568_vm8, %v1579_v42, %v1581_v10  ;;  %v8895_v57 = vmul.u32.u64.low %v8874_v47, %v1578_v52  ;;  %v8896_v13 = vmul.u32.u64.high %v8874_v47, %v1578_v52, %v8895_v57 }
 0x2bb   : > { %v8905_v2 = vmul.u32.u64.low %v8874_v47, %v1582_v8  ;;  %v8906_v59 = vmul.u32.u64.high %v8874_v47, %v1582_v8, %v8905_v2  ;;  %v12795_v40 = vand.u32 2147483647, %v8850_v29  ;;  %v1574_v7 = vsel %vm1568_vm8, %v1571_v51, %v1573_v50 }
 0x2bc   : > { %v1412_v61 = vsel %vm1329_vm4, %v1411_v48, %v1410_v37  ;;  %v8915_v5 = vsub.s32 %v8847_v11, %v1494_v20  ;;  %v1651_v15 = vsel %vm1650_vm9, %v1649_v45, 0  ;;  %v1751_v24 = vor.u32 8388608, %v8870_v14 }
 0x2bd   : > { %v8912_v53 = vsel %vm8886_vm6, %v8754_v34, %v1412_v61  ;;  %v8920_v19 = vadd.f32 %v8762_v22, %v8767_v25  ;;  %v1593_v62 = vadd.s32 1, %v8896_v13  ;;  %v1653_v1 = vand.u32 31, %v1651_v15 }
 0x2be   : > { %v8924_v44 = vsub.s32 32, %v8900_v28  ;;  %v1590_v39 = vmul.u32 %v8874_v47, %v1574_v7  ;;  %vm1592_vm10 = vc.u32 %v8906_v59, %v8895_v57  ;;  %v1646_v11 = vand.u32 8388607, %v12795_v40 }
 0x2bf   : > { %v1594_v20 = vsel %vm1592_vm10, %v1593_v62, %v8896_v13  ;;  %v1497_v14 = vsub.s32 0, %v8915_v5  ;;  %v1654_v22 = vsub.s32 32, %v1653_v1  ;;  %v8933_v35 = vshll.u32 %v1751_v24, 8 }
 0x2c0   : > { %v1595_v45 = vadd.s32 %v1594_v20, %v1590_v39  ;;  %v1850_v4 = vand.u32 2139095040, %v8920_v19  ;;  %v8937_v38 = vshrl.u32 %v8872_v33, 5  ;;  %v1760_v47 = vshll.u32 %v12897_v26, %v8900_v28 }
 0x2c1   : > { %v1761_v27 = vshrl.u32 %v12899_v12, %v8924_v44  ;;  %v1764_v37 = vshrl.u32 %v12900_v0, %v8924_v44  ;;  %v1647_v32 = vor.u32 8388608, %v1646_v11  ;;  %v1657_v42 = vshrl.u32 %v12899_v12, %v1654_v22 }
 0x2c2   : > { %v1596_v18 = vadd.s32 536870912, %v1595_v45  ;;  %v1660_v51 = vshrl.u32 %v12900_v0, %v1654_v22  ;;  %v6698_v17 = vmin.u32 %v1497_v14, %v8915_v5  ;;  %v1652_v30 = vshrl.u32 %v1651_v15, 5 }
 0x2c3   : > { %v1662_v33 = vshll.u32 %v12900_v0, %v1653_v1  ;;  %v1663_v48 = vshrl.u32 %v12896_v3, %v1654_v22  ;;  %v1656_v52 = vshll.u32 %v12897_v26, %v1653_v1  ;;  %v1659_v10 = vshll.u32 %v12899_v12, %v1653_v1 }
 0x2c4   : > { %v8950_v50 = vshrl.u32 %v1596_v18, 30  ;;  %v1666_v8 = vshrl.u32 %v12901_v36, %v1654_v22  ;;  %v1665_v61 = vshll.u32 %v12896_v3, %v1653_v1  ;;  %v1668_v2 = vshll.u32 %v12901_v36, %v1653_v1 }
 0x2c5   : > { %v1664_v13 = vor.u32 %v1663_v48, %v1662_v33  ;;  %v1669_v7 = vshrl.u32 %v12898_v21, %v1654_v22  ;;  %v1658_v24 = vor.u32 %v1657_v42, %v1656_v52  ;;  %v1661_v62 = vor.u32 %v1660_v51, %v1659_v10 }
 0x2c6   : > { %v1598_v15 = vshll.u32 %v8950_v50, 30  ;;  %v1763_v39 = vshll.u32 %v12899_v12, %v8900_v28  ;;  %v1667_v11 = vor.u32 %v1666_v8, %v1665_v61  ;;  %v8963_v14 = vadd.f32 %v8854_v60, %v8767_v25 }
 0x2c7   : > { %v1670_v20 = vor.u32 %v1669_v7, %v1668_v2  ;;  %v1759_v18 = vshrl.u32 %v12897_v26, %v8924_v44  ;;  %vm1674_vm11 = vcmp.lt.s32.totalorder %v1652_v30, 4  ;;  %v8969_v1 = vshll.u32 %v1647_v32, 8 }
 0x2c8   : > { %v8967_v33 = vsub.s32 %v1595_v45, %v1598_v15  ;;  %v1762_v48 = vor.u32 %v1761_v27, %v1760_v47  ;;  %v1499_v42 = vclz %v6698_v17  ;;  %vm1671_vm12 = vcmp.lt.s32.totalorder %v1652_v30, 1 }
 0x2c9   : > { %v1676_v51 = vsel %vm1674_vm11, %v1664_v13, 2102212464  ;;  %v1765_v52 = vor.u32 %v1764_v37, %v1763_v39  ;;  %v1655_v8 = vshrl.u32 %v12897_v26, %v1654_v22  ;;  %vm1672_vm13 = vcmp.lt.s32.totalorder %v1652_v30, 2 }
 0x2ca   : > { %v1601_v10 = vsub.s32 0, %v8967_v33  ;;  %v1679_v60 = vsel %vm1671_vm12, %v1658_v24, %v1661_v62  ;;  %vm1673_vm14 = vcmp.lt.s32.totalorder %v1652_v30, 3  ;;  %v1680_v61 = vsel %vm1674_vm11, %v1667_v11, 920167782 }
 0x2cb   : > { %v1683_v2 = vsel %vm1671_vm12, %v1661_v62, %v1664_v13  ;;  %v1684_v7 = vsel %vm1674_vm11, %v1670_v20, 1326507024  ;;  %v1675_v15 = vsel %vm1671_vm12, %v1655_v8, %v1658_v24  ;;  %v1677_v32 = vsel %vm1673_vm14, %v1661_v62, %v1676_v51 }
 0x2cc   : > { %v6702_v45 = vmin.u32 %v1601_v10, %v8967_v33  ;;  %v1681_v9 = vsel %vm1673_vm14, %v1664_v13, %v1680_v61  ;;  %v1685_v27 = vsel %vm1673_vm14, %v1667_v11, %v1684_v7  ;;  %v1767_v37 = vshrl.u32 %v12896_v3, %v8924_v44 }
 0x2cd   : > { %v1682_v47 = vsel %vm1672_vm13, %v1679_v60, %v1681_v9  ;;  %v1770_v22 = vshrl.u32 %v12901_v36, %v8924_v44  ;;  %v6699_v39 = vadd.s32 4294967294, %v1499_v42  ;;  %v1686_v40 = vsel %vm1672_vm13, %v1683_v2, %v1685_v27 }
 0x2ce   : > { %v1603_v17 = vclz %v6702_v45  ;;  %v1766_v20 = vshll.u32 %v12900_v0, %v8900_v28  ;;  %v1678_v24 = vsel %vm1672_vm13, %v1675_v15, %v1677_v32  ;;  %v1769_v9 = vshll.u32 %v12896_v3, %v8900_v28 }
 0x2cf   : > { %v8984_v13 = vmul.u32.u64.low %v8969_v1, %v1686_v40  ;;  %v8985_v62 = vmul.u32.u64.high %v8969_v1, %v1686_v40, %v8984_v13  ;;  %v1591_v11 = vadd.s32 %v8895_v57, %v8906_v59  ;;  %v1772_v30 = vshll.u32 %v12901_v36, %v8900_v28 }
 0x2d0   : > { %v6703_v51 = vadd.s32 4294967294, %v1603_v17  ;;  %v8992_v42 = vmul.u32.u64.low %v8969_v1, %v1682_v47  ;;  %v8993_v10 = vmul.u32.u64.high %v8969_v1, %v1682_v47, %v8992_v42  ;;  %v1768_v8 = vor.u32 %v1767_v37, %v1766_v20 }
 0x2d1   : > { %v1771_v60 = vor.u32 %v1770_v22, %v1769_v9  ;;  %v1773_v40 = vshrl.u32 %v12898_v21, %v8924_v44  ;;  %v1694_v61 = vmul.u32 %v8969_v1, %v1678_v24  ;;  %vm1775_vm0 = vcmp.lt.s32.totalorder %v8937_v38, 1 }
 0x2d2   : > { %vm6704_vm15 = vcmp.lt.s32.totalorder %v6703_v51, 0  ;;  %vm1776_vm2 = vcmp.lt.s32.totalorder %v8937_v38, 2  ;;  %vm1696_vm1 = vc.u32 %v8985_v62, %v8992_v42  ;;  %vm1777_vm7 = vcmp.lt.s32.totalorder %v8937_v38, 3 }
 0x2d3   : > { %v1606_v57 = vsel %vm6704_vm15, 0, %v6703_v51  ;;  %v1774_v59 = vor.u32 %v1773_v40, %v1772_v30  ;;  %v1697_v28 = vadd.s32 1, %v8993_v10  ;;  %vm1778_vm8 = vcmp.lt.s32.totalorder %v8937_v38, 4 }
 0x2d4   : > { %v1607_v2 = vsub.s32 32, %v1606_v57  ;;  %v1611_v7 = vsub.s32 4294967266, %v1606_v57  ;;  %v1608_v44 = vshll.u32 %v8967_v33, %v1606_v57  ;;  %v1780_v1 = vsel %vm1778_vm8, %v1768_v8, 2102212464 }
 0x2d5   : > { %v1783_v45 = vsel %vm1775_vm0, %v1762_v48, %v1765_v52  ;;  %v1784_v15 = vsel %vm1778_vm8, %v1771_v60, 920167782  ;;  %v1698_v27 = vsel %vm1696_vm1, %v1697_v28, %v8993_v10  ;;  %v1787_v37 = vsel %vm1775_vm0, %v1765_v52, %v1768_v8 }
 0x2d6   : > { %v1609_v32 = vshrl.u32 %v1591_v11, %v1607_v2  ;;  %v1612_v47 = vadd.s32 127, %v1611_v7  ;;  %v1779_v22 = vsel %vm1775_vm0, %v1759_v18, %v1762_v48  ;;  %v1781_v17 = vsel %vm1777_vm7, %v1765_v52, %v1780_v1 }
 0x2d7   : > { %v1785_v33 = vsel %vm1777_vm7, %v1768_v8, %v1784_v15  ;;  %v1788_v20 = vsel %vm1778_vm8, %v1774_v59, 1326507024  ;;  %v1699_v51 = vadd.s32 %v1698_v27, %v1694_v61  ;;  %vm6700_vm9 = vcmp.lt.s32.totalorder %v6699_v39, 0 }
 0x2d8   : > { %v1610_v24 = vor.u32 %v1609_v32, %v1608_v44  ;;  %v1613_v13 = vshll.u32 %v1612_v47, 23  ;;  %v1786_v9 = vsel %vm1776_vm2, %v1783_v45, %v1785_v33  ;;  %v1789_v11 = vsel %vm1777_vm7, %v1771_v60, %v1788_v20 }
 0x2d9   : > { %v1790_v10 = vsel %vm1776_vm2, %v1787_v37, %v1789_v11  ;;  %v9027_v18 = vmul.u32.u64.low %v8933_v35, %v1786_v9  ;;  %v9028_v48 = vmul.u32.u64.high %v8933_v35, %v1786_v9, %v9027_v18  ;;  %v1782_v40 = vsel %vm1776_vm2, %v1779_v22, %v1781_v17 }
 0x2da   : > { %v1614_v52 = vor.u32 4788187, %v1613_v13  ;;  %v9032_v8 = vmul.u32.u64.low %v8933_v35, %v1790_v10  ;;  %v9033_v30 = vmul.u32.u64.high %v8933_v35, %v1790_v10, %v9032_v8  ;;  %v1617_v60 = vcvt.s32.f32 %v1610_v24 }
 0x2db   : > { %v1954_v61 = vand.u32 2139095040, %v8963_v14  ;;  %v1851_v59 = vshrl.u32 %v1850_v4, 23  ;;  %v1502_v2 = vsel %vm6700_vm9, 0, %v6699_v39  ;;  %v1700_v7 = vadd.s32 536870912, %v1699_v51 }
 0x2dc   : > { %v1615_v57 = vand.u32 2147483647, %v1614_v52  ;;  %v1801_v28 = vadd.s32 1, %v9028_v48  ;;  %v1798_v1 = vmul.u32 %v8933_v35, %v1782_v40  ;;  %vm1800_vm10 = vc.u32 %v9033_v30, %v9027_v18 }
 0x2dd   : > { %v1955_v45 = vshrl.u32 %v1954_v61, 23  ;;  %v12797_v15 = vand.u32 2147483647, %v8920_v19  ;;  %v6713_v37 = vadd.s32 4294967169, %v1851_v59  ;;  %vm9048_vm11 = vcmp.le.f32.partialorder %v1535_v16, 0.7853982 }
 0x2de   : > { %v1618_v44 = vmul.f32 %v1617_v60, %v1615_v57  ;;  %v1802_v38 = vsel %vm1800_vm10, %v1801_v28, %v9028_v48  ;;  %vm1537_vm12 = vcmp.lt.s32.totalorder %v8845_v58, 0  ;;  %v1503_v35 = vsub.s32 32, %v1502_v2 }
 0x2df   : > { %v1803_v47 = vadd.s32 %v1802_v38, %v1798_v1  ;;  %v6717_v27 = vadd.s32 4294967169, %v1955_v45  ;;  %v1507_v39 = vsub.s32 4294967266, %v1502_v2  ;;  %v9055_v17 = vshrl.u32 %v1700_v7, 30 }
 0x2e0   : > { %v1619_v32 = vxor.u32 2147483648, %v1618_v44  ;;  %v1487_v16 = vadd.s32 %v8828_v46, %v8833_v43  ;;  %v1857_v9 = vadd.s32 1, %v6713_v37  ;;  %v9068_v48 = vand.u32 8388607, %v12797_v15 }
 0x2e1   : > { %v1804_v33 = vadd.s32 536870912, %v1803_v47  ;;  %v1961_v20 = vadd.s32 1, %v6717_v27  ;;  %v1508_v52 = vadd.s32 127, %v1507_v39  ;;  %v1702_v8 = vshll.u32 %v9055_v17, 30 }
 0x2e2   : > { %v1620_v22 = vsel %vm1537_vm12, %v1619_v32, %v1618_v44  ;;  %v1505_v11 = vshrl.u32 %v1487_v16, %v1503_v35  ;;  %v1504_v60 = vshll.u32 %v8915_v5, %v1502_v2  ;;  %v12796_v46 = vand.u32 2147483647, %v8963_v14 }
 0x2e3   : > { %v9060_v24 = vsel %vm9048_vm11, %v8845_v58, %v1620_v22  ;;  %v9064_v13 = vshrl.u32 %v1804_v33, 30  ;;  %vm1962_vm13 = vcmp.gt.s32.totalorder %v1961_v20, 0  ;;  %vm1858_vm14 = vcmp.gt.s32.totalorder %v1857_v9, 0 }
 0x2e4   : > { %v1963_v10 = vsel %vm1962_vm13, %v1961_v20, 0  ;;  %v1413_v59 = vsub.s32 4, %v8835_v63  ;;  %v1506_v7 = vor.u32 %v1505_v11, %v1504_v60  ;;  %v1855_v28 = vor.u32 8388608, %v9068_v48 }
 0x2e5   : > { %v1806_v40 = vshll.u32 %v9064_v13, 30  ;;  %v1965_v57 = vand.u32 31, %v1963_v10  ;;  %v1509_v44 = vshll.u32 %v1508_v52, 23  ;;  %v9078_v1 = vsub.s32 %v1699_v51, %v1702_v8 }
 0x2e6   : > { %v1958_v5 = vand.u32 8388607, %v12796_v46  ;;  %v1964_v39 = vshrl.u32 %v1963_v10, 5  ;;  %v1513_v54 = vcvt.s32.f32 %v1506_v7  ;;  %7307 = vcosq.f32 %v8912_v53 }
 0x2e7   : > { %v9074_v43 = vsub.s32 %v1803_v47, %v1806_v40  ;;  %v1966_v61 = vsub.s32 32, %v1965_v57  ;;  %v1968_v2 = vshll.u32 %v12897_v26, %v1965_v57  ;;  %v1859_v47 = vsel %vm1858_vm14, %v1857_v9, 0 }
 0x2e8   : > { %v1971_v37 = vshll.u32 %v12899_v12, %v1965_v57  ;;  %v1974_v35 = vshll.u32 %v12900_v0, %v1965_v57  ;;  %v1977_v33 = vshll.u32 %v12896_v3, %v1965_v57  ;;  %v1510_v9 = vor.u32 4788187, %v1509_v44 }
 0x2e9   : > { %v1809_v45 = vsub.s32 0, %v9074_v43  ;;  %v1969_v38 = vshrl.u32 %v12899_v12, %v1966_v61  ;;  %v1972_v32 = vshrl.u32 %v12900_v0, %v1966_v61  ;;  %v1975_v51 = vshrl.u32 %v12896_v3, %v1966_v61 }
 0x2ea   : > { %v1978_v20 = vshrl.u32 %v12901_v36, %v1966_v61  ;;  %v1981_v8 = vshrl.u32 %v12898_v21, %v1966_v61  ;;  %v1959_v40 = vor.u32 8388608, %v1958_v5  ;;  %v1705_v46 = vsub.s32 0, %v9078_v1 }
 0x2eb   : > { %v6710_v27 = vmin.u32 %v1809_v45, %v9074_v43  ;;  %v1970_v22 = vor.u32 %v1969_v38, %v1968_v2  ;;  %v1973_v11 = vor.u32 %v1972_v32, %v1971_v37  ;;  %v1976_v52 = vor.u32 %v1975_v51, %v1974_v35 }
 0x2ec   : > { %v1979_v60 = vor.u32 %v1978_v20, %v1977_v33  ;;  %v1980_v45 = vshll.u32 %v12901_v36, %v1965_v57  ;;  %v1967_v10 = vshrl.u32 %v12897_v26, %v1966_v61  ;;  %v1861_v38 = vand.u32 31, %v1859_v47 }
 0x2ed   : > { %v1811_v16 = vclz %v6710_v27  ;;  %vm1983_vm15 = vcmp.lt.s32.totalorder %v1964_v39, 1  ;;  %vm1985_vm0 = vcmp.lt.s32.totalorder %v1964_v39, 3  ;;  %vm1986_vm2 = vcmp.lt.s32.totalorder %v1964_v39, 4 }
 0x2ee   : > { %v1982_v2 = vor.u32 %v1981_v8, %v1980_v45  ;;  %v1988_v32 = vsel %vm1986_vm2, %v1976_v52, 2102212464  ;;  %v1991_v27 = vsel %vm1983_vm15, %v1970_v22, %v1973_v11  ;;  %v1992_v44 = vsel %vm1986_vm2, %v1979_v60, 920167782 }
 0x2ef   : > { %v6711_v15 = vadd.s32 4294967294, %v1811_v16  ;;  %v9102_v57 = vsel %vm1329_vm4, %v1413_v59, %v8835_v63  ;;  %v1511_v5 = vand.u32 2147483647, %v1510_v9  ;;  %v1993_v61 = vsel %vm1985_vm0, %v1976_v52, %v1992_v44 }
 0x2f0   : > { %v1999_v37 = vshll.u32 %v1959_v40, 8  ;;  %vm1984_vm7 = vcmp.lt.s32.totalorder %v1964_v39, 2  ;;  %v1987_v51 = vsel %vm1983_vm15, %v1967_v10, %v1970_v22  ;;  %v1862_v33 = vsub.s32 32, %v1861_v38 }
 0x2f1   : > { %vm6712_vm1 = vcmp.lt.s32.totalorder %v6711_v15, 0  ;;  %v1989_v20 = vsel %vm1985_vm0, %v1973_v11, %v1988_v32  ;;  %v1994_v16 = vsel %vm1984_vm7, %v1991_v27, %v1993_v61  ;;  %v1995_v8 = vsel %vm1983_vm15, %v1973_v11, %v1976_v52 }
 0x2f2   : > { %v9105_v35 = vsel %vm6712_vm1, 0, %v6711_v15  ;;  %v1996_v45 = vsel %vm1986_vm2, %v1982_v2, 1326507024  ;;  %v6706_v63 = vmin.u32 %v1705_v46, %v9078_v1  ;;  %v9113_v9 = vshrl.u32 %v1859_v47, 5 }
 0x2f3   : > { %v1997_v59 = vsel %vm1985_vm0, %v1979_v60, %v1996_v45  ;;  %v1819_v15 = vsub.s32 4294967266, %v9105_v35  ;;  %v9116_v44 = vmul.u32.u64.low %v1999_v37, %v1994_v16  ;;  %v9117_v22 = vmul.u32.u64.high %v1999_v37, %v1994_v16, %v9116_v44 }
 0x2f4   : > { %v1998_v40 = vsel %vm1984_vm7, %v1995_v8, %v1997_v59  ;;  %v1416_v11 = vsel %vm8886_vm6, 0, %v9102_v57  ;;  %v1990_v52 = vsel %vm1984_vm7, %v1987_v51, %v1989_v20  ;;  %v9126_v46 = vmul.f32 %v1513_v54, %v1511_v5 }
 0x2f5   : > { %v9123_v10 = vmul.u32.u64.low %v1999_v37, %v1998_v40  ;;  %v9124_v7 = vmul.u32.u64.high %v1999_v37, %v1998_v40, %v9123_v10  ;;  %v1799_v47 = vadd.s32 %v9027_v18, %v9033_v30  ;;  %v1865_v39 = vshrl.u32 %v12899_v12, %v1862_v33 }
 0x2f6   : > { %v1868_v60 = vshrl.u32 %v12900_v0, %v1862_v33  ;;  %v1707_v2 = vclz %v6706_v63  ;;  %v1864_v32 = vshll.u32 %v12897_v26, %v1861_v38  ;;  %v1867_v27 = vshll.u32 %v12899_v12, %v1861_v38 }
 0x2f7   : > { %vm1879_vm4 = vcmp.lt.s32.totalorder %v9113_v9, 1  ;;  %v1815_v61 = vsub.s32 32, %v9105_v35  ;;  %v1820_v51 = vadd.s32 127, %v1819_v15  ;;  %v2006_v20 = vmul.u32 %v1999_v37, %v1990_v52 }
 0x2f8   : > { %v2009_v54 = vadd.s32 1, %v9117_v22  ;;  %vm2008_vm8 = vc.u32 %v9124_v7, %v9116_v44  ;;  %v1866_v18 = vor.u32 %v1865_v39, %v1864_v32  ;;  %v1869_v30 = vor.u32 %v1868_v60, %v1867_v27 }
 0x2f9   : > { %v1870_v5 = vshll.u32 %v12900_v0, %v1861_v38  ;;  %v1871_v8 = vshrl.u32 %v12896_v3, %v1862_v33  ;;  %v1873_v45 = vshll.u32 %v12896_v3, %v1861_v38  ;;  %v1874_v63 = vshrl.u32 %v12901_v36, %v1862_v33 }
 0x2fa   : > { %v2010_v16 = vsel %vm2008_vm8, %v2009_v54, %v9117_v22  ;;  %v6707_v59 = vadd.s32 4294967294, %v1707_v2  ;;  %v1876_v37 = vshll.u32 %v12901_v36, %v1861_v38  ;;  %v1877_v40 = vshrl.u32 %v12898_v21, %v1862_v33 }
 0x2fb   : > { %v2011_v15 = vadd.s32 %v2010_v16, %v2006_v20  ;;  %v1816_v52 = vshll.u32 %v9074_v43, %v9105_v35  ;;  %v1821_v10 = vshll.u32 %v1820_v51, 23  ;;  %v1872_v39 = vor.u32 %v1871_v8, %v1870_v5 }
 0x2fc   : > { %v1875_v60 = vor.u32 %v1874_v63, %v1873_v45  ;;  %v1817_v32 = vshrl.u32 %v1799_v47, %v1815_v61  ;;  %v1878_v27 = vor.u32 %v1877_v40, %v1876_v37  ;;  %vm1882_vm9 = vcmp.lt.s32.totalorder %v9113_v9, 4 }
 0x2fd   : > { %v2012_v22 = vadd.s32 536870912, %v2011_v15  ;;  %v1863_v54 = vshrl.u32 %v12897_v26, %v1862_v33  ;;  %vm1881_vm10 = vcmp.lt.s32.totalorder %v9113_v9, 3  ;;  %v1887_v38 = vsel %vm1879_vm4, %v1866_v18, %v1869_v30 }
 0x2fe   : > { %v1888_v2 = vsel %vm1882_vm9, %v1875_v60, 920167782  ;;  %vm1880_vm13 = vcmp.lt.s32.totalorder %v9113_v9, 2  ;;  %v1884_v43 = vsel %vm1882_vm9, %v1872_v39, 2102212464  ;;  %v1891_v61 = vsel %vm1879_vm4, %v1869_v30, %v1872_v39 }
 0x2ff   : > { %v9155_v20 = vshrl.u32 %v2012_v22, 30  ;;  %v1889_v35 = vsel %vm1881_vm10, %v1872_v39, %v1888_v2  ;;  %v1822_v47 = vor.u32 4788187, %v1821_v10  ;;  %v1895_v51 = vshll.u32 %v1855_v28, 8 }
 0x300   : > { %v1890_v33 = vsel %vm1880_vm13, %v1887_v38, %v1889_v35  ;;  %v1818_v5 = vor.u32 %v1817_v32, %v1816_v52  ;;  %v1883_v8 = vsel %vm1879_vm4, %v1863_v54, %v1866_v18  ;;  %v1892_v45 = vsel %vm1882_vm9, %v1878_v27, 1326507024 }
 0x301   : > { %v2014_v16 = vshll.u32 %v9155_v20, 30  ;;  %v1885_v63 = vsel %vm1881_vm10, %v1869_v30, %v1884_v43  ;;  %v1893_v37 = vsel %vm1881_vm10, %v1875_v60, %v1892_v45  ;;  %v1515_v48 = vxor.u32 2147483648, %v9126_v46 }
 0x302   : > { %v9177_v40 = vmul.u32.u64.low %v1895_v51, %v1890_v33  ;;  %v9178_v10 = vmul.u32.u64.high %v1895_v51, %v1890_v33, %v9177_v40  ;;  %vm6708_vm14 = vcmp.lt.s32.totalorder %v6707_v59, 0  ;;  %v1894_v28 = vsel %vm1880_vm13, %v1891_v61, %v1893_v37 }
 0x303   : > { %v1823_v18 = vand.u32 2147483647, %v1822_v47  ;;  %v9184_v52 = vmul.u32.u64.low %v1895_v51, %v1894_v28  ;;  %v9185_v39 = vmul.u32.u64.high %v1895_v51, %v1894_v28, %v9184_v52  ;;  %v9189_v30 = vadd.f32 %v8860_v31, %v8767_v25 }
 0x304   : > { %v1420_v60 = vadd.s32 3, %v1416_v11  ;;  %vm1433_vm15 = vcmp.lt.s32.totalorder %v8757_v49, 0  ;;  %v9196_v32 = vsub.s32 %v2011_v15, %v2014_v16  ;;  %v1886_v22 = vsel %vm1880_vm13, %v1883_v8, %v1885_v63 }
 0x305   : > { %v1517_v27 = vsub.s32 4, %v8862_v55  ;;  %v1825_v54 = vcvt.s32.f32 %v1818_v5  ;;  %v1905_v38 = vadd.s32 1, %v9178_v10  ;;  %v2058_v25 = vand.u32 2139095040, %v9189_v30 }
 0x306   : > { %v1621_v31 = vsub.s32 4, %v8950_v50  ;;  %v1516_v23 = vsel %vm1433_vm15, %v1515_v48, %v9126_v46  ;;  %v1710_v57 = vsel %vm6708_vm14, 0, %v6707_v59  ;;  %v1902_v15 = vmul.u32 %v1895_v51, %v1886_v22 }
 0x307   : > { %v1826_v11 = vmul.f32 %v1825_v54, %v1823_v18  ;;  %vm1904_vm6 = vc.u32 %v9185_v39, %v9177_v40  ;;  %v2059_v9 = vshrl.u32 %v2058_v25, 23  ;;  %vm9212_vm0 = vcmp.le.f32.partialorder %v1431_v41, 0.7853982 }
 0x308   : > { %vm1745_vm2 = vcmp.lt.s32.totalorder %v8774_v6, 0  ;;  %v2017_v43 = vsub.s32 0, %v9196_v32  ;;  %v1906_v46 = vsel %vm1904_vm6, %v1905_v38, %v9178_v10  ;;  %v9219_v35 = vand.u32 3, %v1420_v60 }
 0x309   : > { %v1518_v59 = vsel %vm1433_vm15, %v1517_v27, %v8862_v55  ;;  %v12942_v47 = vand.u32 2147483647, %v8774_v6  ;;  %v1907_v41 = vadd.s32 %v1906_v46, %v1902_v15  ;;  %v6721_v61 = vadd.s32 4294967169, %v2059_v9 }
 0x30a   : > { %v1622_v51 = vsel %vm1537_vm12, %v1621_v31, %v8950_v50  ;;  %v9236_v5 = vsel %vm9212_vm0, %v8757_v49, %v1516_v23  ;;  %v1711_v16 = vsub.s32 32, %v1710_v57  ;;  %v1715_v8 = vsub.s32 4294967266, %v1710_v57 }
 0x30b   : > { %vm9226_vm1 = vcmp.le.f32.partialorder %v12942_v47, 0.7853982  ;;  %v1827_v55 = vxor.u32 2147483648, %v1826_v11  ;;  %v1908_v45 = vadd.s32 536870912, %v1907_v41  ;;  %v2065_v63 = vadd.s32 1, %v6721_v61 }
 0x30c   : > { %7309 = vsinq.f32 %v8912_v53  ;;  %v1520_v37 = vsel %vm9212_vm0, 0, %v1518_v59  ;;  %v1695_v50 = vadd.s32 %v8992_v42, %v8985_v62  ;;  %v6718_v10 = vmin.u32 %v2017_v43, %v9196_v32 }
 0x30d   : > { %v1624_v48 = vsel %vm9048_vm11, 0, %v1622_v51  ;;  %7311 = vcosq.f32 %v9236_v5  ;;  %v9248_v28 = vshrl.u32 %v1908_v45, 30  ;;  %vm2066_vm12 = vcmp.gt.s32.totalorder %v2065_v63, 0 }
 0x30e   : > { %v1713_v18 = vshrl.u32 %v1695_v50, %v1711_v16  ;;  %v9250_v52 = vadd.s32 127, %v1715_v8  ;;  %v1829_v53 = vsub.s32 4, %v9064_v13  ;;  %v2067_v60 = vsel %vm2066_vm12, %v2065_v63, 0 }
 0x30f   : > { %v1828_v22 = vsel %vm1745_vm2, %v1827_v55, %v1826_v11  ;;  %v1910_v62 = vshll.u32 %v9248_v28, 30  ;;  %v12799_v42 = vand.u32 2147483647, %v9189_v30  ;;  %v2069_v4 = vand.u32 31, %v2067_v60 }
 0x310   : > { %7313 = vcosq.f32 %v9060_v24  ;;  %v9258_v27 = vadd.s32 3, %v1520_v37  ;;  %v1712_v54 = vshll.u32 %v9078_v1, %v1710_v57  ;;  %v2019_v38 = vclz %v6718_v10 }
 0x311   : > { %7315 = vsinq.f32 %v9060_v24  ;;  %v9262_v25 = vadd.s32 3, %v1624_v48  ;;  %v9264_v31 = vsub.s32 %v1907_v41, %v1910_v62  ;;  %v2070_v23 = vsub.s32 32, %v2069_v4  ;;  %v9288_v41 = vpop.eup %7307 }
 0x312   : > { %v9266_v11 = vor.u32 %v1713_v18, %v1712_v54  ;;  %v1717_v15 = vshll.u32 %v9250_v52, 23  ;;  %v9272_v9 = vsel %vm1745_vm2, %v1829_v53, %v9064_v13  ;;  %v9277_v1 = vsel %vm9226_vm1, %v8774_v6, %v1828_v22 }
 0x313   : > { %v1903_v24 = vadd.s32 %v9177_v40, %v9185_v39  ;;  %v1913_v57 = vsub.s32 0, %v9264_v31  ;;  %v2062_v2 = vand.u32 8388607, %v12799_v42  ;;  %v2073_v43 = vshrl.u32 %v12899_v12, %v2070_v23 }
 0x314   : > { %v6719_v46 = vadd.s32 4294967294, %v2019_v38  ;;  %v2072_v59 = vshll.u32 %v12897_v26, %v2069_v4  ;;  %v2075_v13 = vshll.u32 %v12899_v12, %v2069_v4  ;;  %v2076_v47 = vshrl.u32 %v12900_v0, %v2070_v23 }
 0x315   : > { %v6714_v61 = vmin.u32 %v1913_v57, %v9264_v31  ;;  %v2068_v51 = vshrl.u32 %v2067_v60, 5  ;;  %v2078_v40 = vshll.u32 %v12900_v0, %v2069_v4  ;;  %v2079_v39 = vshrl.u32 %v12896_v3, %v2070_v23 }
 0x316   : > { %v9293_v16 = vpop.eup %7309  ;;  %v2074_v8 = vor.u32 %v2073_v43, %v2072_v59  ;;  %v2077_v55 = vor.u32 %v2076_v47, %v2075_v13  ;;  %v2081_v45 = vshll.u32 %v12896_v3, %v2069_v4  ;;  %v2082_v63 = vshrl.u32 %v12901_v36, %v2070_v23 }
 0x317   : > { %v9297_v37 = vpop.eup %7311  ;;  %v1915_v50 = vclz %v6714_v61  ;;  %v2063_v10 = vor.u32 8388608, %v2062_v2  ;;  %v2080_v48 = vor.u32 %v2079_v39, %v2078_v40  ;;  %v2085_v18 = vshrl.u32 %v12898_v21, %v2070_v23 }
 0x318   : > { %vm6720_vm11 = vcmp.lt.s32.totalorder %v6719_v46, 0  ;;  %v2071_v53 = vshrl.u32 %v12897_v26, %v2070_v23  ;;  %v2083_v60 = vor.u32 %v2082_v63, %v2081_v45  ;;  %v2084_v22 = vshll.u32 %v12901_v36, %v2069_v4 }
 0x319   : > { %v6715_v62 = vadd.s32 4294967294, %v1915_v50  ;;  %vm2087_vm7 = vcmp.lt.s32.totalorder %v2068_v51, 1  ;;  %vm2089_vm4 = vcmp.lt.s32.totalorder %v2068_v51, 3  ;;  %vm2090_vm8 = vcmp.lt.s32.totalorder %v2068_v51, 4 }
 0x31a   : > { %v9302_v54 = vpop.eup %7313  ;;  %v2086_v38 = vor.u32 %v2085_v18, %v2084_v22  ;;  %v2092_v57 = vsel %vm2090_vm8, %v2080_v48, 2102212464  ;;  %v2095_v2 = vsel %vm2087_vm7, %v2074_v8, %v2077_v55  ;;  %v2096_v43 = vsel %vm2090_vm8, %v2083_v60, 920167782 }
 0x31b   : > { %v9307_v59 = vpop.eup %7315  ;;  %v9309_v13 = vsel %vm6720_vm11, 0, %v6719_v46  ;;  %vm6716_vm9 = vcmp.lt.s32.totalorder %v6715_v62, 0  ;;  %vm2088_vm10 = vcmp.lt.s32.totalorder %v2068_v51, 2  ;;  %v2097_v4 = vsel %vm2089_vm4, %v2080_v48, %v2096_v43 }
 0x31c   : > { %v1918_v23 = vsel %vm6716_vm9, 0, %v6715_v62  ;;  %v2091_v47 = vsel %vm2087_vm7, %v2071_v53, %v2074_v8  ;;  %v2098_v61 = vsel %vm2088_vm10, %v2095_v2, %v2097_v4  ;;  %v2103_v40 = vshll.u32 %v2063_v10, 8 }
 0x31d   : > { %v1919_v39 = vsub.s32 32, %v1918_v23  ;;  %v1923_v45 = vsub.s32 4294967266, %v1918_v23  ;;  %v2093_v63 = vsel %vm2089_vm4, %v2077_v55, %v2092_v57  ;;  %v2099_v50 = vsel %vm2087_vm7, %v2077_v55, %v2080_v48 }
 0x31e   : > { %v2027_v18 = vsub.s32 4294967266, %v9309_v13  ;;  %v2100_v46 = vsel %vm2090_vm8, %v2086_v38, 1326507024  ;;  %v9318_v22 = vmul.u32.u64.low %v2103_v40, %v2098_v61  ;;  %v9319_v42 = vmul.u32.u64.high %v2103_v40, %v2098_v61, %v9318_v22 }
 0x31f   : > { %v1920_v62 = vshll.u32 %v9264_v31, %v1918_v23  ;;  %v1921_v8 = vshrl.u32 %v1903_v24, %v1919_v39  ;;  %v1924_v53 = vadd.s32 127, %v1923_v45  ;;  %v2101_v10 = vsel %vm2089_vm4, %v2083_v60, %v2100_v46 }
 0x320   : > { %v9325_v2 = vand.u32 3, %v9262_v25  ;;  %7317 = vsinq.f32 %v9236_v5  ;;  %vm1849_vm13 = vcmp.lt.s32.totalorder %v8920_v19, 0  ;;  %v2094_v55 = vsel %vm2088_vm10, %v2091_v47, %v2093_v63 }
 0x321   : > { %v2102_v48 = vsel %vm2088_vm10, %v2099_v50, %v2101_v10  ;;  %vm1419_vm14 = vweird.f32 %v8754_v34  ;;  %v1922_v38 = vor.u32 %v1921_v8, %v1920_v62  ;;  %v1925_v57 = vshll.u32 %v1924_v53, 23 }
 0x322   : > { %v9332_v31 = vmul.u32.u64.low %v2103_v40, %v2102_v48  ;;  %v9333_v24 = vmul.u32.u64.high %v2103_v40, %v2102_v48, %v9332_v31  ;;  %v1718_v60 = vor.u32 4788187, %v1717_v15  ;;  %v1832_v5 = vsel %vm9226_vm1, 0, %v9272_v9 }
 0x323   : > { %7319 = vcosq.f32 %v9277_v1  ;;  %v2113_v25 = vadd.s32 1, %v9319_v42  ;;  %v1721_v51 = vcvt.s32.f32 %v9266_v11  ;;  %v2028_v43 = vadd.s32 127, %v2027_v18 }
 0x324   : > { %7321 = vsinq.f32 %v9277_v1  ;;  %v12945_v4 = vand.u32 2147483647, %v8920_v19  ;;  %v1926_v52 = vor.u32 4788187, %v1925_v57  ;;  %v2023_v15 = vsub.s32 32, %v9309_v13 }
 0x325   : > { %v1933_v33 = vsub.s32 4, %v9248_v28  ;;  %v2110_v9 = vmul.u32 %v2103_v40, %v2094_v55  ;;  %v1424_v47 = vxor.u32 2147483648, %v9293_v16  ;;  %v1929_v39 = vcvt.s32.f32 %v1922_v38 }
 0x326   : > { %vm9346_vm15 = vcmp.le.f32.partialorder %v12945_v4, 0.7853982  ;;  %v1927_v61 = vand.u32 2147483647, %v1926_v52  ;;  %vm2112_vm6 = vc.u32 %v9333_v24, %v9318_v22  ;;  %vm1423_vm0 = vcmp.eq.s32.totalorder %v9219_v35, 0 }
 0x327   : > { %v2007_v11 = vadd.s32 %v9116_v44, %v9124_v7  ;;  %v2114_v1 = vsel %vm2112_vm6, %v2113_v25, %v9319_v42  ;;  %v1425_v45 = vsel %vm1423_vm0, %v9288_v41, %v1424_v47  ;;  %v1427_v63 = vxor.u32 2147483648, %v9288_v41 }
 0x328   : > { %vm1627_vm2 = vweird.f32 %v8845_v58  ;;  %v2029_v40 = vshll.u32 %v2028_v43, 23  ;;  %v1930_v50 = vmul.f32 %v1929_v39, %v1927_v61  ;;  %v2115_v18 = vadd.s32 %v2114_v1, %v2110_v9 }
 0x329   : > { %vm1426_vm1 = vcmp.eq.s32.totalorder %v9219_v35, 2  ;;  %v1719_v46 = vand.u32 2147483647, %v1718_v60  ;;  %v2025_v62 = vshrl.u32 %v2007_v11, %v2023_v15  ;;  %vm1422_vm12 = vcmp.lt.s32.totalorder %v9219_v35, 2 }
 0x32a   : > { %v1428_v8 = vsel %vm1426_vm1, %v1427_v63, %v9293_v16  ;;  %v1931_v44 = vxor.u32 2147483648, %v1930_v50  ;;  %v1934_v7 = vsel %vm1849_vm13, %v1933_v33, %v9248_v28  ;;  %v2116_v42 = vadd.s32 536870912, %v2115_v18  ;;  %v7318_v53 = vpop.eup %7317 }
 0x32b   : > { %v1429_v41 = vsel %vm1422_vm12, %v1425_v45, %v1428_v8  ;;  %v2024_v10 = vshll.u32 %v9196_v32, %v9309_v13  ;;  %v1632_v48 = vxor.u32 2147483648, %v9307_v59  ;;  %v1635_v35 = vxor.u32 2147483648, %v9302_v54 }
 0x32c   : > { %v9372_v55 = vsel %vm1419_vm14, nan, %v1429_v41  ;;  %v2030_v16 = vor.u32 4788187, %v2029_v40  ;;  %v1932_v38 = vsel %vm1849_vm13, %v1931_v44, %v1930_v50  ;;  %v9378_v57 = vshrl.u32 %v2116_v42, 30 }
 0x32d   : > { %12948 = vst [vmem:[#allocation30_spill] sm:$0xff] %v9372_v55  ;;  %vm1631_vm11 = vcmp.eq.s32.totalorder %v9325_v2, 0  ;;  %v7320_v28 = vpop.eup %7319  ;;  %v2026_v31 = vor.u32 %v2025_v62, %v2024_v10  ;;  %v1935_v34 = vsel %vm9346_vm15, %v8920_v19, %v1932_v38  ;;  %v1936_v32 = vsel %vm9346_vm15, 0, %v1934_v7 }
 0x32e   : > { %v1633_v13 = vsel %vm1631_vm11, %v9302_v54, %v1632_v48  ;;  %v7322_v60 = vpop.eup %7321  ;;  %7323 = vcosq.f32 %v1935_v34  ;;  %v2118_v25 = vshll.u32 %v9378_v57, 30  ;;  %v1836_v43 = vadd.s32 3, %v1832_v5 }
 0x32f   : > { %vm1634_vm7 = vcmp.eq.s32.totalorder %v9325_v2, 2  ;;  %v1722_v4 = vmul.f32 %v1721_v51, %v1719_v46  ;;  %7325 = vsinq.f32 %v1935_v34  ;;  %vm1630_vm4 = vcmp.lt.s32.totalorder %v9325_v2, 2  ;;  %v7470_v46 = vld [vmem:[#allocation5] sm:$0xff] }
 0x330   : > { %v1636_v52 = vsel %vm1634_vm7, %v1635_v35, %v9307_v59  ;;  %v2031_v15 = vand.u32 2147483647, %v2030_v16  ;;  %v9391_v33 = vsub.s32 %v2115_v18, %v2118_v25  ;;  %v1525_v23 = vand.u32 3, %v9258_v27  ;;  %v9405_v18 = vld [vmem:[#allocation5 + $0x8] sm:$0x3] }
 0x331   : > { %v1637_v9 = vsel %vm1630_vm4, %v1633_v13, %v1636_v52  ;;  %v1940_v54 = vadd.s32 3, %v1936_v32  ;;  %v1528_v47 = vxor.u32 2147483648, %v7318_v53  ;;  %v1531_v61 = vxor.u32 2147483648, %v9297_v37 }
 0x332   : > { %v9397_v5 = vsel %vm1627_vm2, nan, %v1637_v9  ;;  %v2033_v51 = vcvt.s32.f32 %v2026_v31  ;;  %v2121_v39 = vsub.s32 0, %v9391_v33  ;;  %v1837_v2 = vand.u32 3, %v1836_v43 }
 0x333   : > { %12949 = vst [vmem:[#allocation34_spill] sm:$0xff] %v9397_v5  ;;  %v1723_v11 = vxor.u32 2147483648, %v1722_v4  ;;  %v1840_v59 = vxor.u32 2147483648, %v7322_v60  ;;  %v1843_v1 = vxor.u32 2147483648, %v7320_v28  ;;  %vm1523_vm8 = vweird.f32 %v8757_v49 }
 0x334   : > { %v2034_v45 = vmul.f32 %v2033_v51, %v2031_v15  ;;  %v6722_v63 = vmin.u32 %v2121_v39, %v9391_v33  ;;  %vm1527_vm9 = vcmp.eq.s32.totalorder %v1525_v23, 0  ;;  %vm1530_vm10 = vcmp.eq.s32.totalorder %v1525_v23, 2 }
 0x335   : > { %v7626_v27 = vmov 12   ;;  %vm1641_vm13 = vcmp.lt.s32.totalorder %v8850_v29, 0  ;;  %v1529_v58 = vsel %vm1527_vm9, %v9297_v37, %v1528_v47  ;;  %v1532_v40 = vsel %vm1530_vm10, %v1531_v61, %v7318_v53 }
 0x336   : > { %7258 = vset.pattern.permute.xlu1 %v7626_v27  ;;  %7257 = vset.pattern.permute.xlu0 %v7626_v27  ;;  %vm1939_vm14 = vweird.f32 %v8920_v19  ;;  %v1941_v50 = vand.u32 3, %v1940_v54  ;;  %v12950_v62 = vand.u32 2147483647, %v8850_v29  ;;  %v2123_v44 = vclz %v6722_v63 }
 0x337   : > { %2164 = vperm.xlu1 %7258, %v9405_v18   ;;  %2160 = vperm.xlu0 %7257, %v7470_v46   ;;  %vm1839_vm6 = vcmp.eq.s32.totalorder %v1837_v2, 0  ;;  %vm1842_vm0 = vcmp.eq.s32.totalorder %v1837_v2, 2  ;;  %vm1953_vm2 = vcmp.lt.s32.totalorder %v8963_v14, 0  ;;  %vm1526_vm1 = vcmp.lt.s32.totalorder %v1525_v23, 2 }
 0x338   : > { %vm9410_vm15 = vcmp.le.f32.partialorder %v12950_v62, 0.7853982  ;;  %v1841_v37 = vsel %vm1839_vm6, %v7320_v28, %v1840_v59  ;;  %v1844_v7 = vsel %vm1842_vm0, %v1843_v1, %v7322_v60  ;;  %v7324_v42 = vpop.eup %7323  ;;  %v1724_v41 = vsel %vm1641_vm13, %v1723_v11, %v1722_v4  ;;  %v9452_v11 = vpop.permute.xlu1 %2175 }
 0x339   : > { %v2035_v53 = vxor.u32 2147483648, %v2034_v45  ;;  %v6723_v10 = vadd.s32 4294967294, %v2123_v44  ;;  %v1533_v48 = vsel %vm1526_vm1, %v1529_v58, %v1532_v40  ;;  %v7326_v35 = vpop.eup %7325  ;;  %vm1942_vm12 = vcmp.lt.s32.totalorder %v1941_v50, 2 }
 0x33a   : > { %vm1943_vm11 = vcmp.eq.s32.totalorder %v1941_v50, 0  ;;  %v1947_v16 = vxor.u32 2147483648, %v7324_v42  ;;  %vm1838_vm7 = vcmp.lt.s32.totalorder %v1837_v2, 2  ;;  %v7627_v38 = vmov 13  }
 0x33b   : > { %7259 = vset.pattern.permute.xlu1 %v7627_v38  ;;  %7260 = vset.pattern.permute.xlu0 %v7627_v38  ;;  %vm6724_vm4 = vcmp.lt.s32.totalorder %v6723_v10, 0  ;;  %v1944_v31 = vxor.u32 2147483648, %v7326_v35  ;;  %vm1946_vm9 = vcmp.eq.s32.totalorder %v1941_v50, 2  ;;  %v1845_v28 = vsel %vm1838_vm7, %v1841_v37, %v1844_v7 }
 0x33c   : > { %2350 = vperm.xlu1 %7259, %v7470_v46   ;;  %2354 = vperm.xlu0 %7260, %v9405_v18   ;;  %v2111_v34 = vadd.s32 %v9318_v22, %v9333_v24  ;;  %v2126_v32 = vsel %vm6724_vm4, 0, %v6723_v10  ;;  %v1948_v13 = vsel %vm1946_vm9, %v1947_v16, %v7326_v35  ;;  %vm1835_vm10 = vweird.f32 %v8774_v6 }
 0x33d   : > { %v2127_v60 = vsub.s32 32, %v2126_v32  ;;  %v2131_v25 = vsub.s32 4294967266, %v2126_v32  ;;  %v1945_v43 = vsel %vm1943_vm11, %v7324_v42, %v1944_v31  ;;  %v2036_v4 = vsel %vm1953_vm2, %v2035_v53, %v2034_v45 }
 0x33e   : > { %v9426_v52 = vsel %vm1523_vm8, nan, %v1533_v48  ;;  %v1949_v15 = vsel %vm1942_vm12, %v1945_v43, %v1948_v13  ;;  %v9429_v23 = vsel %vm1835_vm10, nan, %v1845_v28  ;;  %v2128_v22 = vshll.u32 %v9391_v33, %v2126_v32 }
 0x33f   : > { %12953 = vst [vmem:[#allocation36_spill] sm:$0xff] %v9426_v52  ;;  %12954 = vst [vmem:[#allocation35_spill] sm:$0xff] %v9429_v23  ;;  %v2129_v24 = vshrl.u32 %v2111_v34, %v2127_v60  ;;  %v2132_v9 = vadd.s32 127, %v2131_v25  ;;  %v9434_v54 = vsel %vm1939_vm14, nan, %v1949_v15  ;;  %v7628_v6 = vmov 64  }
 0x340   : > { %12955 = vst [vmem:[#allocation37_spill] sm:$0xff] %v9434_v54  ;;  %7261 = vset.pattern.permute.xlu1 %v7628_v6  ;;  %3229 = vrot.lane.b32.xlu0 %v7470_v46, %s7629_s27  ;;  %v1727_v49 = vsel %vm9410_vm15, %v8850_v29, %v1724_v41  ;;  %v12956_v47 = vand.u32 2147483647, %v8963_v14  ;;  %v6910_v33 = vpack.c.bf16 %v9434_v54, %v9426_v52  ;;  %v2037_v59 = vsub.s32 4, %v9155_v20 }
 0x341   : > { %2374 = vperm.xlu1 %7261, %v7470_v46   ;;  %v2130_v51 = vor.u32 %v2129_v24, %v2128_v22  ;;  %v2133_v39 = vshll.u32 %v2132_v9, 23  ;;  %v6913_v2 = vpack.c.bf16 %v9429_v23, %v9372_v55  ;;  %7327 = vcosq.f32 %v1727_v49  ;;  %v9467_v46 = vpop.permute.xlu1 %2177 }
 0x342   : > { %vm9441_vm8 = vcmp.le.f32.partialorder %v12956_v47, 0.7853982  ;;  %6912 = vmatprep.subr.msk.bf16.mxu0 %vm8318_vm5, %v6910_v33  ;;  %v1725_v45 = vsub.s32 4, %v9055_v17  ;;  %v2038_v58 = vsel %vm1953_vm2, %v2037_v59, %v9155_v20  ;;  %v2141_v50 = vsub.s32 4, %v9378_v57 }
 0x343   : > { %v2039_v19 = vsel %vm9441_vm8, %v8963_v14, %v2036_v4  ;;  %v2134_v1 = vor.u32 4788187, %v2133_v39  ;;  %6915 = vmatpush1.bf16.msk.msra.mxu0 %vm8318_vm5, %v6913_v2  ;;  %v2137_v27 = vcvt.s32.f32 %v2130_v51  ;;  %v12959_v62 = vmov 0.0  }
 0x344   : > { %7329 = vcosq.f32 %v2039_v19  ;;  %v1726_v44 = vsel %vm1641_vm13, %v1725_v45, %v9055_v17  ;;  %v2040_v7 = vsel %vm9441_vm8, 0, %v2038_v58  ;;  %vm2057_vm14 = vcmp.lt.s32.totalorder %v9189_v30, 0  ;;  %v12965_v58 = vld [vmem:[#allocation25_spill] sm:$0xff] }
 0x345   : > { %2378 = vperm.xlu1 %7261, %v9405_v18   ;;  %7331 = vsinq.f32 %v2039_v19  ;;  %v2135_v63 = vand.u32 2147483647, %v2134_v1  ;;  %v1728_v20 = vsel %vm9410_vm15, 0, %v1726_v44  ;;  %v12960_v42 = vand.u32 2147483647, %v9189_v30 }
 0x346   : > { %7333 = vsinq.f32 %v1727_v49  ;;  %6727 = vmatmul.mubr.msk.f32.vlgmr.msra.gmra.mrb[4].mxu0 %vm1155_vm3, %v9452_v11  ;;  %v2142_v17 = vsel %vm2057_vm14, %v2141_v50, %v9378_v57  ;;  %v2044_v10 = vadd.s32 3, %v2040_v7  ;;  %v1732_v35 = vadd.s32 3, %v1728_v20 }
 0x347   : > { %v2138_v40 = vmul.f32 %v2137_v27, %v2135_v63  ;;  %2265 = vmatprep.mubr.f32.mxu0 %v12959_v62  ;;  %vm2056_vm6 = vcmp.le.f32.partialorder %v12960_v42, 0.7853982  ;;  %vm2043_vm9 = vweird.f32 %v8963_v14  ;;  %vm1731_vm10 = vweird.f32 %v8850_v29 }
 0x348   : > { %v2144_v16 = vsel %vm2056_vm6, 0, %v2142_v17  ;;  %v2045_v28 = vand.u32 3, %v2044_v10  ;;  %v1733_v34 = vand.u32 3, %v1732_v35  ;;  %vm2147_vm8 = vweird.f32 %v9189_v30 }
 0x349   : > { %3231 = vrot.lane.b32.xlu1 %v9405_v18, %s7629_s27  ;;  %v2139_v37 = vxor.u32 2147483648, %v2138_v40  ;;  %v2148_v31 = vadd.s32 3, %v2144_v16 }
 0x34a   : > { %6728 = vmatmul.mubr.msk.f32.gmra.mrb[6].mxu0 %vm1155_vm3, %v9467_v46  ;;  %vm2047_vm13 = vcmp.eq.s32.totalorder %v2045_v28, 0  ;;  %vm2050_vm15 = vcmp.eq.s32.totalorder %v2045_v28, 2  ;;  %vm1735_vm0 = vcmp.eq.s32.totalorder %v1733_v34, 0  ;;  %vm1738_vm2 = vcmp.eq.s32.totalorder %v1733_v34, 2 }
 0x34b   : > { %v2140_v41 = vsel %vm2057_vm14, %v2139_v37, %v2138_v40  ;;  %3313 = vmatprep.mubr.f32.mxu0 %v12959_v62  ;;  %v7328_v53 = vpop.eup %7327  ;;  %v2149_v25 = vand.u32 3, %v2148_v31  ;;  %vm2046_vm1 = vcmp.lt.s32.totalorder %v2045_v28, 2  ;;  %vm1734_vm12 = vcmp.lt.s32.totalorder %v1733_v34, 2  ;;  %v12967_v37 = vld [vmem:[#allocation24_spill] sm:$0xff] }
 0x34c   : > { %v2143_v18 = vsel %vm2056_vm6, %v9189_v30, %v2140_v41  ;;  %v1739_v57 = vxor.u32 2147483648, %v7328_v53  ;;  %v12964_v30 = vld [vmem:[#allocation20_spill] sm:$0xff] }
 0x34d   : > { %7335 = vcosq.f32 %v2143_v18  ;;  %vm2154_vm11 = vcmp.eq.s32.totalorder %v2149_v25, 2  ;;  %vm2151_vm7 = vcmp.eq.s32.totalorder %v2149_v25, 0  ;;  %vm2150_vm4 = vcmp.lt.s32.totalorder %v2149_v25, 2 }
 0x34e   : > { %v7330_v48 = vpop.eup %7329  ;;  %7337 = vsinq.f32 %v2143_v18 }
 0x34f   : > { %v7332_v38 = vpop.eup %7331  ;;  %v2051_v13 = vxor.u32 2147483648, %v7330_v48 }
 0x350   : > { %v7334_v8 = vpop.eup %7333  ;;  %v2048_v32 = vxor.u32 2147483648, %v7332_v38 }
 0x351   : > { %v1736_v60 = vxor.u32 2147483648, %v7334_v8  ;;  %v2052_v4 = vsel %vm2050_vm15, %v2051_v13, %v7332_v38  ;;  %v1740_v24 = vsel %vm1738_vm2, %v1739_v57, %v7334_v8 }
 0x352   : > { %v2049_v43 = vsel %vm2047_vm13, %v7330_v48, %v2048_v32 }
 0x353   : > { %v1737_v22 = vsel %vm1735_vm0, %v7328_v53, %v1736_v60  ;;  %v2053_v47 = vsel %vm2046_vm1, %v2049_v43, %v2052_v4 }
 0x354   : > { %v1741_v61 = vsel %vm1734_vm12, %v1737_v22, %v1740_v24  ;;  %v9489_v39 = vsel %vm2043_vm9, nan, %v2053_v47  ;;  %v12968_v22 = vld [vmem:[#allocation21_spill] sm:$0xff] }
 0x355   : > { %12961 = vst [vmem:[#allocation29_spill] sm:$0xff] %v9489_v39  ;;  %v9491_v2 = vsel %vm1731_vm10, nan, %v1741_v61  ;;  %v6919_v45 = vpack.c.bf16 %v9489_v39, %v9397_v5 }
 0x356   : > { %12962 = vst [vmem:[#allocation38_spill] sm:$0xff] %v9491_v2 }
 0x357   : > { %v7336_v15 = vpop.eup %7335 }
 0x358   : > { %v7338_v9 = vpop.eup %7337  ;;  %v2155_v6 = vxor.u32 2147483648, %v7336_v15 }
 0x359   : > { %v2152_v49 = vxor.u32 2147483648, %v7338_v9 }
 0x35a   : > { %v2156_v33 = vsel %vm2154_vm11, %v2155_v6, %v7338_v9  ;;  %v12969_v9 = vld [vmem:[#allocation19_spill] sm:$0xff] }
 0x35b   : > { %v2153_v19 = vsel %vm2151_vm7, %v7336_v15, %v2152_v49 }
 0x35c   : > { %v2157_v51 = vsel %vm2150_vm4, %v2153_v19, %v2156_v33 }
 0x35d   : > { %v9493_v59 = vsel %vm2147_vm8, nan, %v2157_v51 }
 0x35e   : > { %12963 = vst [vmem:[#allocation32_spill] sm:$0xff] %v9493_v59  ;;  %v6916_v1 = vpack.c.bf16 %v9493_v59, %v9491_v2 }
 0x360   : > { %6918 = vmatprep.subr.msk.bf16.mxu1 %vm8318_vm5, %v6916_v1 }
 0x361   : > { %6921 = vmatpush1.bf16.msk.msra.mxu1 %vm8318_vm5, %v6919_v45 }
 0x364   : > { %6731 = vmatmul.mubr.msk.f32.vlgmr.msra.gmra.mrb[4].mxu1 %vm1155_vm3, %v9452_v11  ;;  %v12966_v11 = vld [vmem:[#allocation18_spill] sm:$0xff] }
 0x365   : > { %2342 = vmatprep.mubr.f32.mxu1 %v12959_v62 }
 0x368   : > { %6732 = vmatmul.mubr.msk.f32.gmra.mrb[6].mxu1 %vm1155_vm3, %v9467_v46 }
 0x369   : > { %3390 = vmatprep.mubr.f32.mxu1 %v12959_v62 }
 0x3b6   : > { %v9509_v29 = vpop.permute.xlu1 %2164  ;;  %v9511_v14 = vpop.permute.xlu0 %2160 }
 0x3b7   : > { %v2167_v63 = vmul.f32 %v9511_v14, %v12964_v30  ;;  %v2168_v40 = vmul.f32 %v9511_v14, %v12965_v58  ;;  %v2169_v24 = vmul.f32 %v9511_v14, %v12968_v22 }
 0x3bb   : > { %v9515_v27 = vpop.permute.xlu1 %2350 }
 0x3bc   : > { %v2357_v50 = vmul.f32 %v9515_v27, %v12966_v11  ;;  %v2358_v46 = vmul.f32 %v9515_v27, %v12967_v37  ;;  %v2359_v6 = vmul.f32 %v9515_v27, %v12969_v9 }
 0x3c0   : > { %v9523_v17 = vpop.permute.xlu1 %2374 }
 0x419   : > { %v2261_v44 = vpop.f32.mrb[4].mxu0 }
 0x41a   : > { %v2262_v7 = vadd.f32 %v2261_v44, %v2167_v63  ;;  %v2263_v20 = vpop.f32.mrb[5].mxu0 }
 0x41b   : > { %v2264_v42 = vadd.f32 %v2263_v20, %v2168_v40 }
 0x41c   : > { %v2365_v41 = vadd.f32 %v2357_v50, %v2262_v7 }
 0x41d   : > { %v2366_v18 = vadd.f32 %v2358_v46, %v2264_v42  ;;  %v9525_v53 = vpop.f32.mrb[6].mxu0 }
 0x41e   : > { %v9528_v10 = vadd.f32 %v9523_v17, %v2365_v41  ;;  %v9530_v48 = vpop.f32.mrb[7].mxu0 }
 0x41f   : > { %v9533_v35 = vadd.f32 %v9523_v17, %v2366_v18 }
 0x420   : > { %v12801_v16 = vand.u32 2147483647, %v9528_v10  ;;  %v2392_v38 = vand.u32 2139095040, %v9528_v10 }
 0x421   : > { %v2496_v8 = vand.u32 2139095040, %v9533_v35  ;;  %v12800_v33 = vand.u32 2147483647, %v9533_v35 }
 0x422   : > { %v2393_v31 = vshrl.u32 %v2392_v38, 23  ;;  %v2396_v32 = vand.u32 8388607, %v12801_v16 }
 0x423   : > { %v2497_v28 = vshrl.u32 %v2496_v8, 23 }
 0x424   : > { %v6733_v34 = vadd.s32 4294967169, %v2393_v31  ;;  %v2397_v25 = vor.u32 8388608, %v2396_v32 }
 0x425   : > { %v6737_v13 = vadd.s32 4294967169, %v2497_v28 }
 0x426   : > { %v2399_v60 = vadd.s32 1, %v6733_v34  ;;  %v9544_v61 = vshll.u32 %v2397_v25, 8 }
 0x427   : > { %v2503_v57 = vadd.s32 1, %v6737_v13 }
 0x428   : > { %vm2400_vm14 = vcmp.gt.s32.totalorder %v2399_v60, 0 }
 0x429   : > { %v2401_v43 = vsel %vm2400_vm14, %v2399_v60, 0  ;;  %vm2504_vm6 = vcmp.gt.s32.totalorder %v2503_v57, 0 }
 0x42a   : > { %v2403_v4 = vand.u32 31, %v2401_v43  ;;  %v2505_v15 = vsel %vm2504_vm6, %v2503_v57, 0  ;;  %v2402_v49 = vshrl.u32 %v2401_v43, 5 }
 0x42b   : > { %v2507_v19 = vand.u32 31, %v2505_v15 }
 0x42c   : > { %v2404_v47 = vsub.s32 32, %v2403_v4  ;;  %v2406_v51 = vshll.u32 %v12897_v26, %v2403_v4  ;;  %v2409_v1 = vshll.u32 %v12899_v12, %v2403_v4  ;;  %v2412_v45 = vshll.u32 %v12900_v0, %v2403_v4 }
 0x42d   : > { %v2415_v63 = vshll.u32 %v12896_v3, %v2403_v4  ;;  %v2418_v46 = vshll.u32 %v12901_v36, %v2403_v4  ;;  %vm2421_vm13 = vcmp.lt.s32.totalorder %v2402_v49, 1  ;;  %vm2422_vm15 = vcmp.lt.s32.totalorder %v2402_v49, 2 }
 0x42e   : > { %v2407_v40 = vshrl.u32 %v12899_v12, %v2404_v47  ;;  %v2410_v50 = vshrl.u32 %v12900_v0, %v2404_v47  ;;  %v2413_v44 = vshrl.u32 %v12896_v3, %v2404_v47  ;;  %v2416_v7 = vshrl.u32 %v12901_v36, %v2404_v47 }
 0x42f   : > { %v2419_v20 = vshrl.u32 %v12898_v21, %v2404_v47  ;;  %v9557_v38 = vsub.s32 32, %v2507_v19  ;;  %v2405_v8 = vshrl.u32 %v12897_v26, %v2404_v47  ;;  %vm2424_vm0 = vcmp.lt.s32.totalorder %v2402_v49, 4 }
 0x430   : > { %v2408_v42 = vor.u32 %v2407_v40, %v2406_v51  ;;  %v2411_v41 = vor.u32 %v2410_v50, %v2409_v1  ;;  %v2414_v18 = vor.u32 %v2413_v44, %v2412_v45  ;;  %v2417_v31 = vor.u32 %v2416_v7, %v2415_v63 }
 0x431   : > { %v2420_v28 = vor.u32 %v2419_v20, %v2418_v46  ;;  %vm2423_vm2 = vcmp.lt.s32.totalorder %v2402_v49, 3  ;;  %v2510_v43 = vshll.u32 %v12897_v26, %v2507_v19  ;;  %v2511_v45 = vshrl.u32 %v12899_v12, %v9557_v38 }
 0x432   : > { %v2426_v34 = vsel %vm2424_vm0, %v2414_v18, 2102212464  ;;  %v2429_v32 = vsel %vm2421_vm13, %v2408_v42, %v2411_v41  ;;  %v2433_v13 = vsel %vm2421_vm13, %v2411_v41, %v2414_v18  ;;  %v2425_v60 = vsel %vm2421_vm13, %v2405_v8, %v2408_v42 }
 0x433   : > { %v2430_v57 = vsel %vm2424_vm0, %v2417_v31, 920167782  ;;  %v2434_v25 = vsel %vm2424_vm0, %v2420_v28, 1326507024  ;;  %v2427_v4 = vsel %vm2423_vm2, %v2411_v41, %v2426_v34  ;;  %v2513_v40 = vshll.u32 %v12899_v12, %v2507_v19 }
 0x434   : > { %v2431_v51 = vsel %vm2423_vm2, %v2414_v18, %v2430_v57  ;;  %v2435_v1 = vsel %vm2423_vm2, %v2417_v31, %v2434_v25  ;;  %v2514_v50 = vshrl.u32 %v12900_v0, %v9557_v38  ;;  %v2428_v41 = vsel %vm2422_vm15, %v2425_v60, %v2427_v4 }
 0x435   : > { %v2432_v47 = vsel %vm2422_vm15, %v2429_v32, %v2431_v51  ;;  %v2436_v63 = vsel %vm2422_vm15, %v2433_v13, %v2435_v1  ;;  %v2500_v18 = vand.u32 8388607, %v12800_v33  ;;  %v9580_v8 = vshrl.u32 %v2505_v15, 5 }
 0x436   : > { %v9569_v44 = vmul.u32.u64.low %v9544_v61, %v2436_v63  ;;  %v9570_v46 = vmul.u32.u64.high %v9544_v61, %v2436_v63, %v9569_v44  ;;  %v9573_v7 = vmul.u32.u64.low %v9544_v61, %v2432_v47  ;;  %v9574_v20 = vmul.u32.u64.high %v9544_v61, %v2432_v47, %v9573_v7 }
 0x437   : > { %v2338_v42 = vpop.f32.mrb[4].mxu1  ;;  %v2517_v31 = vshrl.u32 %v12896_v3, %v9557_v38  ;;  %v2512_v34 = vor.u32 %v2511_v45, %v2510_v43  ;;  %v2515_v32 = vor.u32 %v2514_v50, %v2513_v40  ;;  %v2520_v13 = vshrl.u32 %v12901_v36, %v9557_v38 }
 0x438   : > { %v2339_v28 = vadd.f32 %v2338_v42, %v2169_v24  ;;  %v9586_v57 = vpop.f32.mrb[5].mxu1  ;;  %v2516_v25 = vshll.u32 %v12900_v0, %v2507_v19  ;;  %v2519_v49 = vshll.u32 %v12896_v3, %v2507_v19  ;;  %v2522_v60 = vshll.u32 %v12901_v36, %v2507_v19 }
 0x439   : > { %v2523_v15 = vshrl.u32 %v12898_v21, %v9557_v38  ;;  %vm2446_vm1 = vc.u32 %v9570_v46, %v9573_v7  ;;  %v2447_v24 = vadd.s32 1, %v9574_v20  ;;  %v2444_v43 = vmul.u32 %v9544_v61, %v2428_v41 }
 0x43a   : > { %v2367_v4 = vadd.f32 %v2359_v6, %v2339_v28  ;;  %v2518_v51 = vor.u32 %v2517_v31, %v2516_v25  ;;  %v2521_v1 = vor.u32 %v2520_v13, %v2519_v49  ;;  %vm2525_vm12 = vcmp.lt.s32.totalorder %v9580_v8, 1 }
 0x43b   : > { %v2524_v45 = vor.u32 %v2523_v15, %v2522_v60  ;;  %v9597_v47 = vpop.f32.mrb[6].mxu1  ;;  %v2448_v19 = vsel %vm2446_vm1, %v2447_v24, %v9574_v20  ;;  %vm2528_vm11 = vcmp.lt.s32.totalorder %v9580_v8, 4  ;;  %v2501_v50 = vor.u32 8388608, %v2500_v18  ;;  %v9614_v20 = vpop.permute.xlu0 %2354 }
 0x43c   : > { %v9600_v63 = vadd.f32 %v9523_v17, %v2367_v4  ;;  %v9605_v6 = vpop.f32.mrb[7].mxu1  ;;  %v2449_v40 = vadd.s32 %v2448_v19, %v2444_v43  ;;  %v2533_v61 = vsel %vm2525_vm12, %v2512_v34, %v2515_v32  ;;  %v2534_v44 = vsel %vm2528_vm11, %v2521_v1, 920167782 }
 0x43d   : > { %vm2526_vm7 = vcmp.lt.s32.totalorder %v9580_v8, 2  ;;  %vm2527_vm4 = vcmp.lt.s32.totalorder %v9580_v8, 3  ;;  %v2537_v18 = vsel %vm2525_vm12, %v2515_v32, %v2518_v51  ;;  %v2538_v28 = vsel %vm2528_vm11, %v2524_v45, 1326507024 }
 0x43e   : > { %v2600_v42 = vand.u32 2139095040, %v9600_v63  ;;  %v2450_v41 = vadd.s32 536870912, %v2449_v40  ;;  %v2535_v31 = vsel %vm2527_vm4, %v2518_v51, %v2534_v44  ;;  %v2171_v49 = vmul.f32 %v9509_v29, %v12964_v30 }
 0x43f   : > { %v2536_v25 = vsel %vm2526_vm7, %v2533_v61, %v2535_v31  ;;  %v2539_v60 = vsel %vm2527_vm4, %v2521_v1, %v2538_v28  ;;  %v2541_v15 = vshll.u32 %v2501_v50, 8  ;;  %v2361_v4 = vmul.f32 %v9614_v20, %v12966_v11 }
 0x440   : > { %v2601_v13 = vshrl.u32 %v2600_v42, 23  ;;  %v9630_v24 = vshrl.u32 %v2450_v41, 30  ;;  %v2540_v45 = vsel %vm2526_vm7, %v2537_v18, %v2539_v60  ;;  %v2268_v19 = vadd.f32 %v9525_v53, %v2171_v49  ;;  %v12970_v18 = vld [vmem:[#allocation27_spill] sm:$0xff] }
 0x441   : > { %v9635_v44 = vmul.u32.u64.low %v2541_v15, %v2540_v45  ;;  %v9636_v61 = vmul.u32.u64.high %v2541_v15, %v2540_v45, %v9635_v44  ;;  %v9638_v42 = vmul.u32.u64.low %v2541_v15, %v2536_v25  ;;  %v9639_v31 = vmul.u32.u64.high %v2541_v15, %v2536_v25, %v9638_v42  ;;  %v12971_v45 = vld [vmem:[#allocation26_spill] sm:$0xff] }
 0x442   : > { %v6741_v43 = vadd.s32 4294967169, %v2601_v13  ;;  %v2530_v50 = vsel %vm2528_vm11, %v2518_v51, 2102212464  ;;  %v2509_v41 = vshrl.u32 %v12897_v26, %v9557_v38  ;;  %v2452_v28 = vshll.u32 %v9630_v24, 30  ;;  %v9656_v44 = vpop.permute.xlu1 %2378 }
 0x443   : > { %v2170_v53 = vmul.f32 %v9511_v14, %v12970_v18  ;;  %v2369_v13 = vadd.f32 %v2361_v4, %v2268_v19  ;;  %v12802_v49 = vand.u32 2147483647, %v9600_v63  ;;  %v2360_v38 = vmul.f32 %v9515_v27, %v12971_v45 }
 0x444   : > { %v2607_v1 = vadd.s32 1, %v6741_v43  ;;  %v2529_v25 = vsel %vm2525_vm12, %v2509_v41, %v2512_v34  ;;  %v2531_v43 = vsel %vm2527_vm4, %v2515_v32, %v2530_v50  ;;  %v9658_v33 = vsub.s32 %v2449_v40, %v2452_v28 }
 0x445   : > { %v2532_v14 = vsel %vm2526_vm7, %v2529_v25, %v2531_v43  ;;  %v9665_v4 = vadd.f32 %v9656_v44, %v2369_v13  ;;  %v2604_v34 = vand.u32 8388607, %v12802_v49  ;;  %vm2550_vm10 = vc.u32 %v9636_v61, %v9638_v42 }
 0x446   : > { %vm2608_vm9 = vcmp.gt.s32.totalorder %v2607_v1, 0  ;;  %v2551_v27 = vadd.s32 1, %v9639_v31  ;;  %v2341_v32 = vadd.f32 %v9586_v57, %v2170_v53  ;;  %v2455_v53 = vsub.s32 0, %v9658_v33 }
 0x447   : > { %v2609_v60 = vsel %vm2608_vm9, %v2607_v1, 0  ;;  %v2548_v39 = vmul.u32 %v2541_v15, %v2532_v14  ;;  %v2808_v55 = vand.u32 2139095040, %v9665_v4  ;;  %v2605_v15 = vor.u32 8388608, %v2604_v34 }
 0x448   : > { %v2611_v51 = vand.u32 31, %v2609_v60  ;;  %v9673_v40 = vshrl.u32 %v2609_v60, 5  ;;  %v2552_v11 = vsel %vm2550_vm10, %v2551_v27, %v9639_v31  ;;  %v2368_v30 = vadd.f32 %v2360_v38, %v2341_v32 }
 0x449   : > { %v6734_v54 = vmin.u32 %v2455_v53, %v9658_v33 }
 0x44a   : > { %v9660_v16 = vsub.s32 32, %v2611_v51  ;;  %v2623_v50 = vshll.u32 %v12896_v3, %v2611_v51  ;;  %v2626_v28 = vshll.u32 %v12901_v36, %v2611_v51  ;;  %v2614_v13 = vshll.u32 %v12897_v26, %v2611_v51 }
 0x44b   : > { %v2617_v60 = vshll.u32 %v12899_v12, %v2611_v51  ;;  %v2620_v25 = vshll.u32 %v12900_v0, %v2611_v51  ;;  %vm2632_vm8 = vcmp.lt.s32.totalorder %v9673_v40, 4  ;;  %vm2629_vm14 = vcmp.lt.s32.totalorder %v9673_v40, 1 }
 0x44c   : > { %v2615_v19 = vshrl.u32 %v12899_v12, %v9660_v16  ;;  %v2618_v8 = vshrl.u32 %v12900_v0, %v9660_v16  ;;  %v2621_v1 = vshrl.u32 %v12896_v3, %v9660_v16  ;;  %v2624_v41 = vshrl.u32 %v12901_v36, %v9660_v16 }
 0x44d   : > { %v2627_v57 = vshrl.u32 %v12898_v21, %v9660_v16  ;;  %vm2631_vm6 = vcmp.lt.s32.totalorder %v9673_v40, 3  ;;  %v9705_v31 = vadd.f32 %v9523_v17, %v2368_v30  ;;  %vm2630_vm13 = vcmp.lt.s32.totalorder %v9673_v40, 2 }
 0x44e   : > { %v2625_v43 = vor.u32 %v2624_v41, %v2623_v50  ;;  %v2616_v5 = vor.u32 %v2615_v19, %v2614_v13  ;;  %v2619_v59 = vor.u32 %v2618_v8, %v2617_v60  ;;  %v2622_v2 = vor.u32 %v2621_v1, %v2620_v25 }
 0x44f   : > { %v2628_v49 = vor.u32 %v2627_v57, %v2626_v28  ;;  %v2553_v41 = vadd.s32 %v2552_v11, %v2548_v39  ;;  %v2809_v11 = vshrl.u32 %v2808_v55, 23  ;;  %v2172_v30 = vmul.f32 %v9509_v29, %v12965_v58 }
 0x450   : > { %v2638_v51 = vsel %vm2632_vm8, %v2625_v43, 920167782  ;;  %v2637_v38 = vsel %vm2629_vm14, %v2616_v5, %v2619_v59  ;;  %v2641_v27 = vsel %vm2629_vm14, %v2619_v59, %v2622_v2  ;;  %v2704_v34 = vand.u32 2139095040, %v9705_v31 }
 0x451   : > { %v2642_v50 = vsel %vm2632_vm8, %v2628_v49, 1326507024  ;;  %v2639_v14 = vsel %vm2631_vm6, %v2622_v2, %v2638_v51  ;;  %v2457_v49 = vclz %v6734_v54  ;;  %v2554_v32 = vadd.s32 536870912, %v2553_v41 }
 0x452   : > { %v2643_v39 = vsel %vm2631_vm6, %v2625_v43, %v2642_v50  ;;  %v2640_v17 = vsel %vm2630_vm13, %v2637_v38, %v2639_v14  ;;  %v2362_v19 = vmul.f32 %v9614_v20, %v12967_v37  ;;  %v2645_v1 = vshll.u32 %v2605_v15, 8 }
 0x453   : > { %v2644_v8 = vsel %vm2630_vm13, %v2641_v27, %v2643_v39  ;;  %v12812_v55 = vand.u32 2147483647, %v9665_v4  ;;  %v2270_v54 = vadd.f32 %v9530_v48, %v2172_v30  ;;  %v2705_v28 = vshrl.u32 %v2704_v34, 23 }
 0x454   : > { %v6749_v57 = vadd.s32 4294967169, %v2809_v11  ;;  %v6735_v53 = vadd.s32 4294967294, %v2457_v49  ;;  %v9727_v13 = vmul.u32.u64.low %v2645_v1, %v2640_v17  ;;  %v9728_v60 = vmul.u32.u64.high %v2645_v1, %v2640_v17, %v9727_v13 }
 0x455   : > { %v9731_v25 = vshrl.u32 %v2554_v32, 30  ;;  %v9733_v43 = vmul.u32.u64.low %v2645_v1, %v2644_v8  ;;  %v9734_v51 = vmul.u32.u64.high %v2645_v1, %v2644_v8, %v9733_v43  ;;  %v6745_v50 = vadd.s32 4294967169, %v2705_v28 }
 0x456   : > { %v2634_v15 = vsel %vm2632_vm8, %v2622_v2, 2102212464  ;;  %v2812_v38 = vand.u32 8388607, %v12812_v55  ;;  %v2370_v48 = vadd.f32 %v2362_v19, %v2270_v54  ;;  %v2613_v14 = vshrl.u32 %v12897_v26, %v9660_v16 }
 0x457   : > { %v2711_v27 = vadd.s32 1, %v6745_v50  ;;  %v2815_v39 = vadd.s32 1, %v6749_v57  ;;  %vm6736_vm15 = vcmp.lt.s32.totalorder %v6735_v53, 0  ;;  %v2556_v11 = vshll.u32 %v9731_v25, 30 }
 0x458   : > { %v2633_v49 = vsel %vm2629_vm14, %v2613_v14, %v2616_v5  ;;  %v2635_v32 = vsel %vm2631_vm6, %v2619_v59, %v2634_v15  ;;  %v2173_v2 = vmul.f32 %v9509_v29, %v12968_v22  ;;  %v2363_v17 = vmul.f32 %v9614_v20, %v12969_v9 }
 0x459   : > { %vm2712_vm0 = vcmp.gt.s32.totalorder %v2711_v27, 0  ;;  %v2813_v16 = vor.u32 8388608, %v2812_v38  ;;  %v9752_v34 = vadd.f32 %v9656_v44, %v2370_v48  ;;  %v9754_v19 = vsel %vm6736_vm15, 0, %v6735_v53 }
 0x45a   : > { %v2713_v30 = vsel %vm2712_vm0, %v2711_v27, 0  ;;  %v2345_v5 = vadd.f32 %v9597_v47, %v2173_v2  ;;  %vm2816_vm2 = vcmp.gt.s32.totalorder %v2815_v39, 0  ;;  %v2636_v59 = vsel %vm2630_vm13, %v2633_v49, %v2635_v32 }
 0x45b   : > { %v2715_v8 = vand.u32 31, %v2713_v30  ;;  %v2655_v54 = vadd.s32 1, %v9728_v60  ;;  %v9760_v28 = vsub.s32 %v2553_v41, %v2556_v11  ;;  %v12811_v57 = vand.u32 2147483647, %v9705_v31 }
 0x45c   : > { %vm2654_vm1 = vc.u32 %v9734_v51, %v9727_v13  ;;  %v9767_v53 = vshll.u32 %v2813_v16, 8  ;;  %v2465_v47 = vsub.s32 4294967266, %v9754_v19  ;;  %v2652_v15 = vmul.u32 %v2645_v1, %v2636_v59 }
 0x45d   : > { %v9765_v43 = vsub.s32 32, %v2715_v8  ;;  %v2371_v40 = vadd.f32 %v2363_v17, %v2345_v5  ;;  %v2817_v38 = vsel %vm2816_vm2, %v2815_v39, 0  ;;  %v2656_v48 = vsel %vm2654_vm1, %v2655_v54, %v9728_v60 }
 0x45e   : > { %v2559_v41 = vsub.s32 0, %v9760_v28  ;;  %v2708_v14 = vand.u32 8388607, %v12811_v57  ;;  %v2718_v27 = vshll.u32 %v12897_v26, %v2715_v8  ;;  %v2721_v49 = vshll.u32 %v12899_v12, %v2715_v8 }
 0x45f   : > { %v2719_v11 = vshrl.u32 %v12899_v12, %v9765_v43  ;;  %v2722_v32 = vshrl.u32 %v12900_v0, %v9765_v43  ;;  %v2725_v1 = vshrl.u32 %v12896_v3, %v9765_v43  ;;  %v9783_v39 = vshrl.u32 %v2713_v30, 5 }
 0x460   : > { %v2724_v60 = vshll.u32 %v12900_v0, %v2715_v8  ;;  %v2727_v2 = vshll.u32 %v12896_v3, %v2715_v8  ;;  %v2728_v17 = vshrl.u32 %v12901_v36, %v9765_v43  ;;  %v9789_v16 = vadd.s32 %v2656_v48, %v2652_v15 }
 0x461   : > { %v9791_v5 = vor.u32 %v2719_v11, %v2718_v27  ;;  %v9793_v59 = vor.u32 %v2722_v32, %v2721_v49  ;;  %v2819_v54 = vand.u32 31, %v2817_v38  ;;  %v2730_v50 = vshll.u32 %v12901_v36, %v2715_v8 }
 0x462   : > { %v2726_v57 = vor.u32 %v2725_v1, %v2724_v60  ;;  %v2729_v55 = vor.u32 %v2728_v17, %v2727_v2  ;;  %v2731_v30 = vshrl.u32 %v12898_v21, %v9765_v43  ;;  %v2445_v9 = vadd.s32 %v9573_v7, %v9570_v46 }
 0x463   : > { %v2461_v22 = vsub.s32 32, %v9754_v19  ;;  %v6738_v15 = vmin.u32 %v2559_v41, %v9760_v28  ;;  %v9803_v48 = vadd.f32 %v9656_v44, %v2371_v40  ;;  %v2466_v27 = vadd.s32 127, %v2465_v47 }
 0x464   : > { %v2709_v11 = vor.u32 8388608, %v2708_v14  ;;  %v2732_v49 = vor.u32 %v2731_v30, %v2730_v50  ;;  %vm2733_vm12 = vcmp.lt.s32.totalorder %v9783_v39, 1  ;;  %v2658_v8 = vadd.s32 536870912, %v9789_v16 }
 0x465   : > { %vm2736_vm11 = vcmp.lt.s32.totalorder %v9783_v39, 4  ;;  %v2741_v46 = vsel %vm2733_vm12, %v9791_v5, %v9793_v59  ;;  %v2820_v7 = vsub.s32 32, %v2819_v54  ;;  %v2462_v41 = vshll.u32 %v9658_v33, %v9754_v19 }
 0x466   : > { %vm2735_vm7 = vcmp.lt.s32.totalorder %v9783_v39, 3  ;;  %v2742_v50 = vsel %vm2736_vm11, %v2729_v55, 920167782  ;;  %v2745_v47 = vsel %vm2733_vm12, %v9793_v59, %v2726_v57  ;;  %v2561_v40 = vclz %v6738_v15 }
 0x467   : > { %vm2734_vm4 = vcmp.lt.s32.totalorder %v9783_v39, 2  ;;  %v2743_v14 = vsel %vm2735_vm7, %v2726_v57, %v2742_v50  ;;  %v2746_v32 = vsel %vm2736_vm11, %v2732_v49, 1326507024  ;;  %v2463_v1 = vshrl.u32 %v2445_v9, %v2461_v22 }
 0x468   : > { %v2467_v33 = vshll.u32 %v2466_v27, 23  ;;  %v2744_v19 = vsel %vm2734_vm4, %v2741_v46, %v2743_v14  ;;  %v2747_v60 = vsel %vm2735_vm7, %v2729_v55, %v2746_v32  ;;  %v9829_v2 = vshrl.u32 %v2658_v8, 30 }
 0x469   : > { %v2748_v17 = vsel %vm2734_vm4, %v2745_v47, %v2747_v60  ;;  %v9833_v30 = vshll.u32 %v2709_v11, 8  ;;  %v2823_v15 = vshrl.u32 %v12899_v12, %v2820_v7  ;;  %v2818_v50 = vshrl.u32 %v2817_v38, 5 }
 0x46a   : > { %12972 = vst [vmem:[#allocation28_spill] sm:$0xff] %v9829_v2  ;;  %v2822_v49 = vshll.u32 %v12897_v26, %v2819_v54  ;;  %v2825_v22 = vshll.u32 %v12899_v12, %v2819_v54  ;;  %v2826_v9 = vshrl.u32 %v12900_v0, %v2820_v7  ;;  %v6739_v27 = vadd.s32 4294967294, %v2561_v40 }
 0x46b   : > { %v9840_v46 = vmul.u32.u64.low %v9833_v30, %v2744_v19  ;;  %v9841_v55 = vmul.u32.u64.high %v9833_v30, %v2744_v19, %v9840_v46  ;;  %v2828_v8 = vshll.u32 %v12900_v0, %v2819_v54  ;;  %v2829_v38 = vshrl.u32 %v12896_v3, %v2820_v7 }
 0x46c   : > { %v9846_v11 = vmul.u32.u64.low %v9833_v30, %v2748_v17  ;;  %v9847_v47 = vmul.u32.u64.high %v9833_v30, %v2748_v17, %v9846_v11  ;;  %v2832_v14 = vshrl.u32 %v12901_v36, %v2820_v7  ;;  %v2464_v32 = vor.u32 %v2463_v1, %v2462_v41 }
 0x46d   : > { %v2468_v60 = vor.u32 4788187, %v2467_v33  ;;  %v2660_v37 = vshll.u32 %v9829_v2, 30  ;;  %v2824_v40 = vor.u32 %v2823_v15, %v2822_v49  ;;  %v2738_v19 = vsel %vm2736_vm11, %v2726_v57, 2102212464 }
 0x46e   : > { %v2827_v58 = vor.u32 %v2826_v9, %v2825_v22  ;;  %v2830_v23 = vor.u32 %v2829_v38, %v2828_v8  ;;  %v2831_v52 = vshll.u32 %v12896_v3, %v2819_v54  ;;  %vm6740_vm9 = vcmp.lt.s32.totalorder %v6739_v27, 0 }
 0x46f   : > { %v2717_v17 = vshrl.u32 %v12897_v26, %v9765_v43  ;;  %vm2837_vm10 = vcmp.lt.s32.totalorder %v2818_v50, 1  ;;  %vm2838_vm8 = vcmp.lt.s32.totalorder %v2818_v50, 2  ;;  %v2821_v11 = vshrl.u32 %v12897_v26, %v2820_v7 }
 0x470   : > { %v2833_v41 = vor.u32 %v2832_v14, %v2831_v52  ;;  %v2834_v1 = vshll.u32 %v12901_v36, %v2819_v54  ;;  %v2835_v33 = vshrl.u32 %v12898_v21, %v2820_v7  ;;  %v9861_v15 = vsub.s32 %v9789_v16, %v2660_v37 }
 0x471   : > { %v2737_v57 = vsel %vm2733_vm12, %v2717_v17, %v9791_v5  ;;  %v2739_v43 = vsel %vm2735_vm7, %v9793_v59, %v2738_v19  ;;  %vm2840_vm14 = vcmp.lt.s32.totalorder %v2818_v50, 4  ;;  %v9869_v49 = vsel %vm6740_vm9, 0, %v6739_v27 }
 0x472   : > { %v2836_v22 = vor.u32 %v2835_v33, %v2834_v1  ;;  %v2842_v52 = vsel %vm2840_vm14, %v2830_v23, 2102212464  ;;  %v2845_v54 = vsel %vm2837_vm10, %v2824_v40, %v2827_v58  ;;  %v2759_v7 = vadd.s32 1, %v9841_v55 }
 0x473   : > { %vm2839_vm6 = vcmp.lt.s32.totalorder %v2818_v50, 3  ;;  %v2846_v37 = vsel %vm2840_vm14, %v2833_v41, 920167782  ;;  %v2849_v16 = vsel %vm2837_vm10, %v2827_v58, %v2830_v23  ;;  %v2740_v5 = vsel %vm2734_vm4, %v2737_v57, %v2739_v43 }
 0x474   : > { %vm2758_vm13 = vc.u32 %v9847_v47, %v9840_v46  ;;  %v2847_v59 = vsel %vm2839_vm6, %v2830_v23, %v2846_v37  ;;  %v2850_v9 = vsel %vm2840_vm14, %v2836_v22, 1326507024  ;;  %v2841_v27 = vsel %vm2837_vm10, %v2821_v11, %v2824_v40 }
 0x475   : > { %v2843_v8 = vsel %vm2839_vm6, %v2827_v58, %v2842_v52  ;;  %v2848_v38 = vsel %vm2838_vm8, %v2845_v54, %v2847_v59  ;;  %v2851_v14 = vsel %vm2839_vm6, %v2833_v41, %v2850_v9  ;;  %v2663_v19 = vsub.s32 0, %v9861_v15 }
 0x476   : > { %v2852_v17 = vsel %vm2838_vm8, %v2849_v16, %v2851_v14  ;;  %v9883_v1 = vmul.u32.u64.low %v9767_v53, %v2848_v38  ;;  %v9884_v33 = vmul.u32.u64.high %v9767_v53, %v2848_v38, %v9883_v1  ;;  %v2760_v39 = vsel %vm2758_vm13, %v2759_v7, %v9841_v55 }
 0x477   : > { %v9889_v23 = vmul.u32.u64.low %v9767_v53, %v2852_v17  ;;  %v9890_v57 = vmul.u32.u64.high %v9767_v53, %v2852_v17, %v9889_v23  ;;  %v12973_v58 = vand.u32 2139095040, %v9752_v34  ;;  %v2469_v11 = vand.u32 2147483647, %v2468_v60 }
 0x478   : > { %v2756_v41 = vmul.u32 %v9833_v30, %v2740_v5  ;;  %v2844_v43 = vsel %vm2838_vm8, %v2841_v27, %v2843_v8  ;;  %v3016_v22 = vand.u32 2139095040, %v9803_v48  ;;  %v2471_v52 = vcvt.s32.f32 %v2464_v32 }
 0x479   : > { %v2913_v40 = vshrl.u32 %v12973_v58, 23  ;;  %v2569_v54 = vsub.s32 4294967266, %v9869_v49  ;;  %v6742_v37 = vmin.u32 %v2663_v19, %v9861_v15  ;;  %v2863_v7 = vadd.s32 1, %v9884_v33 }
 0x47a   : > { %v9899_v55 = vadd.s32 %v2760_v39, %v2756_v41  ;;  %v3017_v16 = vshrl.u32 %v3016_v22, 23  ;;  %v2860_v59 = vmul.u32 %v9767_v53, %v2844_v43  ;;  %vm2862_vm15 = vc.u32 %v9890_v57, %v9883_v1 }
 0x47b   : > { %v2472_v30 = vmul.f32 %v2471_v52, %v2469_v11  ;;  %v2864_v50 = vsel %vm2862_vm15, %v2863_v7, %v9884_v33  ;;  %v6753_v5 = vadd.s32 4294967169, %v2913_v40  ;;  %v2565_v32 = vsub.s32 32, %v9869_v49 }
 0x47c   : > { %v6757_v60 = vadd.s32 4294967169, %v3017_v16  ;;  %v2570_v9 = vadd.s32 127, %v2569_v54  ;;  %v2865_v27 = vadd.s32 %v2864_v50, %v2860_v59  ;;  %v2665_v8 = vclz %v6742_v37 }
 0x47d   : > { %v2762_v38 = vadd.s32 536870912, %v9899_v55  ;;  %v2549_v19 = vadd.s32 %v9638_v42, %v9636_v61  ;;  %v9912_v17 = vmul.f32 %v9509_v29, %v12970_v18  ;;  %v2473_v39 = vxor.u32 2147483648, %v2472_v30 }
 0x47e   : > { %v3023_v14 = vadd.s32 1, %v6757_v60  ;;  %v2866_v53 = vadd.s32 536870912, %v2865_v27  ;;  %v12820_v33 = vand.u32 2147483647, %v9752_v34  ;;  %v2919_v23 = vadd.s32 1, %v6753_v5 }
 0x47f   : > { %v2567_v58 = vshrl.u32 %v2549_v19, %v2565_v32  ;;  %v2571_v40 = vshll.u32 %v2570_v9, 23  ;;  %v6743_v43 = vadd.s32 4294967294, %v2665_v8  ;;  %v9917_v22 = vshrl.u32 %v2762_v38, 30 }
 0x480   : > { %vm3024_vm0 = vcmp.gt.s32.totalorder %v3023_v14, 0  ;;  %v9915_v11 = vshrl.u32 %v2866_v53, 30  ;;  %v12819_v61 = vand.u32 2147483647, %v9803_v48  ;;  %vm2391_vm2 = vcmp.lt.s32.totalorder %v9528_v10, 0 }
 0x481   : > { %v3025_v41 = vsel %vm3024_vm0, %v3023_v14, 0  ;;  %v2566_v29 = vshll.u32 %v9760_v28, %v9869_v49  ;;  %v9926_v54 = vmul.f32 %v9614_v20, %v12971_v45  ;;  %v9931_v16 = vand.u32 8388607, %v12820_v33 }
 0x482   : > { %v3027_v42 = vand.u32 31, %v3025_v41  ;;  %v2868_v52 = vshll.u32 %v9915_v11, 30  ;;  %vm2920_vm1 = vcmp.gt.s32.totalorder %v2919_v23, 0  ;;  %v9935_v59 = vsel %vm2391_vm2, %v2473_v39, %v2472_v30 }
 0x483   : > { %v9939_v28 = vadd.s32 %v9727_v13, %v9734_v51  ;;  %v2568_v49 = vor.u32 %v2567_v58, %v2566_v29  ;;  %vm6744_vm12 = vcmp.lt.s32.totalorder %v6743_v43, 0  ;;  %v2572_v20 = vor.u32 4788187, %v2571_v40 }
 0x484   : > { %v3028_v7 = vsub.s32 32, %v3027_v42  ;;  %v9941_v50 = vsub.s32 %v2865_v27, %v2868_v52  ;;  %v2764_v60 = vshll.u32 %v9917_v22, 30  ;;  %v3020_v5 = vand.u32 8388607, %v12819_v61 }
 0x485   : > { %v2921_v8 = vsel %vm2920_vm1, %v2919_v23, 0  ;;  %v3026_v38 = vshrl.u32 %v3025_v41, 5  ;;  %v3030_v13 = vshll.u32 %v12897_v26, %v3027_v42  ;;  %v3033_v51 = vshll.u32 %v12899_v12, %v3027_v42 }
 0x486   : > { %v2871_v32 = vsub.s32 0, %v9941_v50  ;;  %v3031_v9 = vshrl.u32 %v12899_v12, %v3028_v7  ;;  %v3034_v30 = vshrl.u32 %v12900_v0, %v3028_v7  ;;  %v3037_v27 = vshrl.u32 %v12896_v3, %v3028_v7 }
 0x487   : > { %v3036_v19 = vshll.u32 %v12900_v0, %v3027_v42  ;;  %v3039_v53 = vshll.u32 %v12896_v3, %v3027_v42  ;;  %v3040_v39 = vshrl.u32 %v12901_v36, %v3028_v7  ;;  %v2575_v58 = vcvt.s32.f32 %v2568_v49 }
 0x488   : > { %v6750_v14 = vmin.u32 %v2871_v32, %v9941_v50  ;;  %v3021_v40 = vor.u32 8388608, %v3020_v5  ;;  %v3032_v29 = vor.u32 %v3031_v9, %v3030_v13  ;;  %v3035_v52 = vor.u32 %v3034_v30, %v3033_v51 }
 0x489   : > { %v3038_v23 = vor.u32 %v3037_v27, %v3036_v19  ;;  %v3041_v41 = vor.u32 %v3040_v39, %v3039_v53  ;;  %v3042_v61 = vshll.u32 %v12901_v36, %v3027_v42  ;;  %v3043_v33 = vshrl.u32 %v12898_v21, %v3028_v7 }
 0x48a   : > { %v9959_v37 = vsel %vm6744_vm12, 0, %v6743_v43  ;;  %v2573_v32 = vand.u32 2147483647, %v2572_v20  ;;  %v2873_v45 = vclz %v6750_v14  ;;  %v2923_v18 = vand.u32 31, %v2921_v8 }
 0x48b   : > { %v9962_v62 = vsub.s32 %v9899_v55, %v2764_v60  ;;  %v3044_v2 = vor.u32 %v3043_v33, %v3042_v61  ;;  %vm3045_vm11 = vcmp.lt.s32.totalorder %v3026_v38, 1  ;;  %vm3048_vm7 = vcmp.lt.s32.totalorder %v3026_v38, 4 }
 0x48c   : > { %vm3047_vm4 = vcmp.lt.s32.totalorder %v3026_v38, 3  ;;  %v3053_v49 = vsel %vm3045_vm11, %v3032_v29, %v3035_v52  ;;  %v3054_v5 = vsel %vm3048_vm7, %v3041_v41, 920167782  ;;  %v3061_v42 = vshll.u32 %v3021_v40, 8 }
 0x48d   : > { %v3029_v9 = vshrl.u32 %v12897_v26, %v3028_v7  ;;  %vm3046_vm9 = vcmp.lt.s32.totalorder %v3026_v38, 2  ;;  %v3050_v43 = vsel %vm3048_vm7, %v3038_v23, 2102212464  ;;  %v3055_v20 = vsel %vm3047_vm4, %v3038_v23, %v3054_v5 }
 0x48e   : > { %v6751_v30 = vadd.s32 4294967294, %v2873_v45  ;;  %v3056_v55 = vsel %vm3046_vm9, %v3053_v49, %v3055_v20  ;;  %v3057_v33 = vsel %vm3045_vm11, %v3035_v52, %v3038_v23  ;;  %v2924_v61 = vsub.s32 32, %v2923_v18 }
 0x48f   : > { %v2673_v60 = vsub.s32 4294967266, %v9959_v37  ;;  %v2767_v13 = vsub.s32 0, %v9962_v62  ;;  %v3049_v51 = vsel %vm3045_vm11, %v3029_v9, %v3032_v29  ;;  %v3058_v27 = vsel %vm3048_vm7, %v3044_v2, 1326507024 }
 0x490   : > { %v3051_v7 = vsel %vm3047_vm4, %v3035_v52, %v3050_v43  ;;  %v3059_v14 = vsel %vm3047_vm4, %v3041_v41, %v3058_v27  ;;  %v9977_v19 = vmul.u32.u64.low %v3061_v42, %v3056_v55  ;;  %v9978_v53 = vmul.u32.u64.high %v3061_v42, %v3056_v55, %v9977_v19 }
 0x491   : > { %v2669_v45 = vsub.s32 32, %v9959_v37  ;;  %v9982_v39 = vmul.f32 %v2575_v58, %v2573_v32  ;;  %v3060_v40 = vsel %vm3046_vm9, %v3057_v33, %v3059_v14  ;;  %v2347_v23 = vadd.f32 %v9605_v6, %v9912_v17 }
 0x492   : > { %vm6752_vm10 = vcmp.lt.s32.totalorder %v6751_v30, 0  ;;  %v9987_v29 = vmul.u32.u64.low %v3061_v42, %v3060_v40  ;;  %v9988_v2 = vmul.u32.u64.high %v3061_v42, %v3060_v40, %v9987_v29  ;;  %v2927_v52 = vshrl.u32 %v12899_v12, %v2924_v61 }
 0x493   : > { %v2674_v41 = vadd.s32 127, %v2673_v60  ;;  %v3052_v49 = vsel %vm3046_vm9, %v3049_v51, %v3051_v7  ;;  %v2917_v5 = vor.u32 8388608, %v9931_v16  ;;  %v2930_v9 = vshrl.u32 %v12900_v0, %v2924_v61 }
 0x494   : > { %v6746_v58 = vmin.u32 %v2767_v13, %v9962_v62  ;;  %v3071_v32 = vadd.s32 1, %v9978_v53  ;;  %v2926_v43 = vshll.u32 %v12897_v26, %v2923_v18  ;;  %v2933_v6 = vshrl.u32 %v12896_v3, %v2924_v61 }
 0x495   : > { %v9998_v17 = vsel %vm6752_vm10, 0, %v6751_v30  ;;  %v2922_v20 = vshrl.u32 %v2921_v8, 5  ;;  %v2929_v55 = vshll.u32 %v12899_v12, %v2923_v18  ;;  %v2372_v38 = vadd.f32 %v9926_v54, %v2347_v23 }
 0x496   : > { %v3068_v33 = vmul.u32 %v3061_v42, %v3052_v49  ;;  %vm3070_vm8 = vc.u32 %v9988_v2, %v9977_v19  ;;  %v2928_v16 = vor.u32 %v2927_v52, %v2926_v43  ;;  %v2932_v60 = vshll.u32 %v12900_v0, %v2923_v18 }
 0x497   : > { %v3072_v13 = vsel %vm3070_vm8, %v3071_v32, %v9978_v53  ;;  %v2931_v51 = vor.u32 %v2930_v9, %v2929_v55  ;;  %v2935_v27 = vshll.u32 %v12896_v3, %v2923_v18  ;;  %v2936_v30 = vshrl.u32 %v12901_v36, %v2924_v61 }
 0x498   : > { %v3073_v7 = vadd.s32 %v3072_v13, %v3068_v33  ;;  %v2934_v8 = vor.u32 %v2933_v6, %v2932_v60  ;;  %v2938_v14 = vshll.u32 %v12901_v36, %v2923_v18  ;;  %v2939_v54 = vshrl.u32 %v12898_v21, %v2924_v61 }
 0x499   : > { %v2769_v42 = vclz %v6746_v58  ;;  %v2881_v40 = vsub.s32 4294967266, %v9998_v17  ;;  %v2925_v23 = vshrl.u32 %v12897_v26, %v2924_v61  ;;  %v2937_v29 = vor.u32 %v2936_v30, %v2935_v27 }
 0x49a   : > { %v3074_v52 = vadd.s32 536870912, %v3073_v7  ;;  %v2940_v49 = vor.u32 %v2939_v54, %v2938_v14  ;;  %vm2941_vm14 = vcmp.lt.s32.totalorder %v2922_v20, 1  ;;  %vm2944_vm6 = vcmp.lt.s32.totalorder %v2922_v20, 4 }
 0x49b   : > { %vm2942_vm13 = vcmp.lt.s32.totalorder %v2922_v20, 2  ;;  %vm2943_vm15 = vcmp.lt.s32.totalorder %v2922_v20, 3  ;;  %v2949_v53 = vsel %vm2941_vm14, %v2928_v16, %v2931_v51  ;;  %v2950_v9 = vsel %vm2944_vm6, %v2937_v29, 920167782 }
 0x49c   : > { %v12974_v32 = vand.u32 2147483647, %v9528_v10  ;;  %v10019_v58 = vshrl.u32 %v3074_v52, 30  ;;  %v2946_v43 = vsel %vm2944_vm6, %v2934_v8, 2102212464  ;;  %v2951_v61 = vsel %vm2943_vm15, %v2934_v8, %v2950_v9 }
 0x49d   : > { %v2953_v6 = vsel %vm2941_vm14, %v2931_v51, %v2934_v8  ;;  %v2675_v55 = vshll.u32 %v2674_v41, 23  ;;  %vm2495_vm1 = vcmp.lt.s32.totalorder %v9533_v35, 0  ;;  %v2952_v33 = vsel %vm2942_vm13, %v2949_v53, %v2951_v61 }
 0x49e   : > { %vm10015_vm0 = vcmp.le.f32.partialorder %v12974_v32, 0.7853982  ;;  %v2954_v60 = vsel %vm2944_vm6, %v2940_v49, 1326507024  ;;  %v2957_v13 = vshll.u32 %v2917_v5, 8  ;;  %v2671_v27 = vshrl.u32 %v9939_v28, %v2669_v45 }
 0x49f   : > { %v3076_v30 = vshll.u32 %v10019_v58, 30  ;;  %v2945_v14 = vsel %vm2941_vm14, %v2925_v23, %v2928_v16  ;;  %v2955_v54 = vsel %vm2943_vm15, %v2937_v29, %v2954_v60  ;;  %v2947_v52 = vsel %vm2943_vm15, %v2931_v51, %v2946_v43 }
 0x4a0   : > { %v2956_v9 = vsel %vm2942_vm13, %v2953_v6, %v2955_v54  ;;  %v10031_v8 = vmul.u32.u64.low %v2957_v13, %v2952_v33  ;;  %v10032_v41 = vmul.u32.u64.high %v2957_v13, %v2952_v33, %v10031_v8  ;;  %v12977_v53 = vand.u32 2147483647, %v9533_v35 }
 0x4a1   : > { %v6747_v28 = vadd.s32 4294967294, %v2769_v42  ;;  %v2882_v45 = vadd.s32 127, %v2881_v40  ;;  %v10041_v49 = vsub.s32 %v3073_v7, %v3076_v30  ;;  %v10044_v16 = vadd.f32 %v9656_v44, %v2372_v38 }
 0x4a2   : > { %vm10037_vm12 = vcmp.le.f32.partialorder %v12977_v53, 0.7853982  ;;  %v2670_v51 = vshll.u32 %v9861_v15, %v9959_v37  ;;  %v2676_v23 = vor.u32 4788187, %v2675_v55  ;;  %v2577_v43 = vxor.u32 2147483648, %v9982_v39 }
 0x4a3   : > { %v10048_v29 = vmul.u32.u64.low %v2957_v13, %v2956_v9  ;;  %v10049_v32 = vmul.u32.u64.high %v2957_v13, %v2956_v9, %v10048_v29  ;;  %v2877_v61 = vsub.s32 32, %v9998_v17  ;;  %v2948_v6 = vsel %vm2942_vm13, %v2945_v14, %v2947_v52 }
 0x4a4   : > { %v3120_v42 = vand.u32 2139095040, %v10044_v16  ;;  %v12980_v7 = vsub.s32 4, %v9630_v24  ;;  %v2672_v15 = vor.u32 %v2671_v27, %v2670_v51  ;;  %v3079_v37 = vsub.s32 0, %v10041_v49 }
 0x4a5   : > { %v2967_v38 = vadd.s32 1, %v10032_v41  ;;  %vm6748_vm11 = vcmp.lt.s32.totalorder %v6747_v28, 0  ;;  %v2861_v40 = vadd.s32 %v9883_v1, %v9890_v57  ;;  %v2883_v20 = vshll.u32 %v2882_v45, 23 }
 0x4a6   : > { %v10060_v44 = vsel %vm2391_vm2, %v12980_v7, %v9630_v24  ;;  %v3121_v55 = vshrl.u32 %v3120_v42, 23  ;;  %v2477_v33 = vsel %vm10015_vm0, %v9528_v10, %v9935_v59  ;;  %v2677_v60 = vand.u32 2147483647, %v2676_v23 }
 0x4a7   : > { %v2964_v30 = vmul.u32 %v2957_v13, %v2948_v6  ;;  %vm2966_vm2 = vc.u32 %v10049_v32, %v10031_v8  ;;  %v2578_v24 = vsel %vm2495_vm1, %v2577_v43, %v9982_v39  ;;  %v2879_v27 = vshrl.u32 %v2861_v40, %v2877_v61 }
 0x4a8   : > { %v2968_v14 = vsel %vm2966_vm2, %v2967_v38, %v10032_v41  ;;  %v6761_v1 = vadd.s32 4294967169, %v3121_v55  ;;  %v2679_v57 = vcvt.s32.f32 %v2672_v15  ;;  %v10076_v54 = vsel %vm6748_vm11, 0, %v6747_v28 }
 0x4a9   : > { %v6758_v52 = vmin.u32 %v3079_v37, %v10041_v49  ;;  %v2969_v9 = vadd.s32 %v2968_v14, %v2964_v30  ;;  %v2878_v59 = vshll.u32 %v9941_v50, %v9998_v17  ;;  %v2884_v13 = vor.u32 4788187, %v2883_v20 }
 0x4aa   : > { %v12826_v53 = vand.u32 2147483647, %v10044_v16  ;;  %v3127_v45 = vadd.s32 1, %v6761_v1  ;;  %7339 = vcosq.f32 %v2477_v33  ;;  %v10082_v51 = vmul.f32 %v2679_v57, %v2677_v60 }
 0x4ab   : > { %v2581_v39 = vsel %vm10037_vm12, %v9533_v35, %v2578_v24  ;;  %v2970_v41 = vadd.s32 536870912, %v2969_v9  ;;  %7341 = vsinq.f32 %v2477_v33  ;;  %v2880_v28 = vor.u32 %v2879_v27, %v2878_v59 }
 0x4ac   : > { %vm3128_vm7 = vcmp.gt.s32.totalorder %v3127_v45, 0  ;;  %v2579_v23 = vsub.s32 4, %v9731_v25  ;;  %v2777_v29 = vsub.s32 4294967266, %v10076_v54  ;;  %v3081_v50 = vclz %v6758_v52 }
 0x4ad   : > { %v10089_v17 = vshrl.u32 %v2970_v41, 30  ;;  %v3129_v43 = vsel %vm3128_vm7, %v3127_v45, 0  ;;  %7343 = vcosq.f32 %v2581_v39  ;;  %v2757_v61 = vadd.s32 %v9840_v46, %v9847_v47 }
 0x4ae   : > { %v2885_v6 = vand.u32 2147483647, %v2884_v13  ;;  %v3124_v42 = vand.u32 8388607, %v12826_v53  ;;  %7345 = vsinq.f32 %v2581_v39  ;;  %v3131_v37 = vand.u32 31, %v3129_v43 }
 0x4af   : > { %v2972_v15 = vshll.u32 %v10089_v17, 30  ;;  %v2773_v38 = vsub.s32 32, %v10076_v54  ;;  %v2887_v20 = vcvt.s32.f32 %v2880_v28  ;;  %v10103_v46 = vsel %vm2495_vm1, %v2579_v23, %v9731_v25 }
 0x4b0   : > { %v10105_v47 = vadd.s32 127, %v2777_v29  ;;  %v6759_v55 = vadd.s32 4294967294, %v3081_v50  ;;  %v3132_v60 = vsub.s32 32, %v3131_v37  ;;  %v3125_v24 = vor.u32 8388608, %v3124_v42 }
 0x4b1   : > { %v10107_v33 = vsub.s32 %v2969_v9, %v2972_v15  ;;  %v2888_v30 = vmul.f32 %v2887_v20, %v2885_v6  ;;  %v10109_v27 = vshrl.u32 %v3129_v43, 5  ;;  %v3134_v14 = vshll.u32 %v12897_v26, %v3131_v37 }
 0x4b2   : > { %v3135_v57 = vshrl.u32 %v12899_v12, %v3132_v60  ;;  %v3137_v52 = vshll.u32 %v12899_v12, %v3131_v37  ;;  %v3138_v25 = vshrl.u32 %v12900_v0, %v3132_v60  ;;  %v3140_v59 = vshll.u32 %v12900_v0, %v3131_v37 }
 0x4b3   : > { %v2975_v1 = vsub.s32 0, %v10107_v33  ;;  %v3141_v9 = vshrl.u32 %v12896_v3, %v3132_v60  ;;  %v3143_v13 = vshll.u32 %v12896_v3, %v3131_v37  ;;  %v3144_v45 = vshrl.u32 %v12901_v36, %v3132_v60 }
 0x4b4   : > { %v10120_v39 = vpop.eup %7339  ;;  %vm2807_vm4 = vcmp.lt.s32.totalorder %v9665_v4, 0  ;;  %vm6760_vm9 = vcmp.lt.s32.totalorder %v6759_v55, 0  ;;  %v3136_v28 = vor.u32 %v3135_v57, %v3134_v14  ;;  %v3139_v23 = vor.u32 %v3138_v25, %v3137_v52 }
 0x4b5   : > { %v6754_v41 = vmin.u32 %v2975_v1, %v10107_v33  ;;  %v10124_v29 = vpop.eup %7341  ;;  %v3142_v50 = vor.u32 %v3141_v9, %v3140_v59  ;;  %v3145_v43 = vor.u32 %v3144_v45, %v3143_v13  ;;  %v3146_v6 = vshll.u32 %v12901_v36, %v3131_v37 }
 0x4b6   : > { %v3147_v42 = vshrl.u32 %v12898_v21, %v3132_v60  ;;  %v2775_v15 = vshrl.u32 %v2757_v61, %v2773_v38  ;;  %v2779_v20 = vshll.u32 %v10105_v47, 23  ;;  %v2889_v53 = vxor.u32 2147483648, %v2888_v30 }
 0x4b7   : > { %v2977_v7 = vclz %v6754_v41  ;;  %v10129_v40 = vpop.eup %7343  ;;  %v12981_v3 = vand.u32 2147483647, %v9665_v4  ;;  %v10137_v1 = vsel %vm6760_vm9, 0, %v6759_v55  ;;  %vm3149_vm8 = vcmp.lt.s32.totalorder %v10109_v27, 1 }
 0x4b8   : > { %v3148_v57 = vor.u32 %v3147_v42, %v3146_v6  ;;  %vm3152_vm14 = vcmp.lt.s32.totalorder %v10109_v27, 4  ;;  %v10141_v61 = vpop.eup %7345  ;;  %vm3151_vm6 = vcmp.lt.s32.totalorder %v10109_v27, 3  ;;  %v3157_v47 = vsel %vm3149_vm8, %v3136_v28, %v3139_v23 }
 0x4b9   : > { %vm10133_vm10 = vcmp.le.f32.partialorder %v12981_v3, 0.7853982  ;;  %v6755_v37 = vadd.s32 4294967294, %v2977_v7  ;;  %v3158_v38 = vsel %vm3152_vm14, %v3145_v43, 920167782  ;;  %v3161_v3 = vsel %vm3149_vm8, %v3139_v23, %v3142_v50 }
 0x4ba   : > { %v3159_v55 = vsel %vm3151_vm6, %v3142_v50, %v3158_v38  ;;  %v3162_v52 = vsel %vm3152_vm14, %v3148_v57, 1326507024  ;;  %v3165_v25 = vshll.u32 %v3125_v24, 8  ;;  %v3089_v7 = vsub.s32 4294967266, %v10137_v1 }
 0x4bb   : > { %vm6756_vm13 = vcmp.lt.s32.totalorder %v6755_v37, 0  ;;  %vm3150_vm15 = vcmp.lt.s32.totalorder %v10109_v27, 2  ;;  %v3163_v59 = vsel %vm3151_vm6, %v3145_v43, %v3162_v52  ;;  %v3133_v13 = vshrl.u32 %v12897_v26, %v3132_v60 }
 0x4bc   : > { %v2980_v9 = vsel %vm6756_vm13, 0, %v6755_v37  ;;  %v3154_v45 = vsel %vm3152_vm14, %v3142_v50, 2102212464  ;;  %v3164_v41 = vsel %vm3150_vm15, %v3161_v3, %v3163_v59  ;;  %v2965_v24 = vadd.s32 %v10031_v8, %v10049_v32 }
 0x4bd   : > { %v2981_v6 = vsub.s32 32, %v2980_v9  ;;  %v2985_v42 = vsub.s32 4294967266, %v2980_v9  ;;  %v3160_v57 = vsel %vm3150_vm15, %v3157_v47, %v3159_v55  ;;  %v2890_v43 = vsel %vm2807_vm4, %v2889_v53, %v2888_v30 }
 0x4be   : > { %v3153_v60 = vsel %vm3149_vm8, %v3133_v13, %v3136_v28  ;;  %v10171_v37 = vmul.u32.u64.low %v3165_v25, %v3164_v41  ;;  %v10172_v38 = vmul.u32.u64.high %v3165_v25, %v3164_v41, %v10171_v37  ;;  %vm2911_vm1 = vcmp.lt.s32.totalorder %v9752_v34, 0 }
 0x4bf   : > { %v2982_v50 = vshll.u32 %v10107_v33, %v2980_v9  ;;  %v2983_v3 = vshrl.u32 %v2965_v24, %v2981_v6  ;;  %v2986_v8 = vadd.s32 127, %v2985_v42  ;;  %v3155_v32 = vsel %vm3151_vm6, %v3139_v23, %v3154_v45 }
 0x4c0   : > { %v3090_v52 = vadd.s32 127, %v3089_v7  ;;  %v10178_v47 = vmul.u32.u64.low %v3165_v25, %v3160_v57  ;;  %v10179_v55 = vmul.u32.u64.high %v3165_v25, %v3160_v57, %v10178_v47  ;;  %v2582_v53 = vsel %vm10037_vm12, 0, %v10103_v46 }
 0x4c1   : > { %vm12828_vm11 = vcmp.lt.s32.totalorder %v9600_v63, 0  ;;  %v2891_v30 = vsub.s32 4, %v9915_v11  ;;  %v2893_v33 = vsel %vm10133_vm10, %v9665_v4, %v2890_v43  ;;  %v2984_v28 = vor.u32 %v2983_v3, %v2982_v50 }
 0x4c2   : > { %v2987_v59 = vshll.u32 %v2986_v8, 23  ;;  %v12984_v23 = vshll.u32 %v9962_v62, %v10076_v54  ;;  %v2780_v9 = vor.u32 4788187, %v2779_v20  ;;  %v3085_v13 = vsub.s32 32, %v10137_v1 }
 0x4c3   : > { %v12985_v5 = vand.u32 2147483647, %v9752_v34  ;;  %v3156_v45 = vsel %vm3150_vm15, %v3153_v60, %v3155_v32  ;;  %v3069_v41 = vadd.s32 %v9977_v19, %v9988_v2  ;;  %vm3174_vm2 = vc.u32 %v10172_v38, %v10178_v47 }
 0x4c4   : > { %v2776_v7 = vor.u32 %v2775_v15, %v12984_v23  ;;  %v2988_v24 = vor.u32 4788187, %v2987_v59  ;;  %v2586_v62 = vadd.s32 3, %v2582_v53  ;;  %7347 = vcosq.f32 %v2893_v33 }
 0x4c5   : > { %vm10196_vm12 = vcmp.le.f32.partialorder %v12985_v5, 0.7853982  ;;  %v3091_v54 = vshll.u32 %v3090_v52, 23  ;;  %v3175_v15 = vadd.s32 1, %v10179_v55  ;;  %v2995_v20 = vsub.s32 4, %v10089_v17 }
 0x4c6   : > { %7349 = vsinq.f32 %v2893_v33  ;;  %v2989_v6 = vand.u32 2147483647, %v2988_v24  ;;  %v2991_v42 = vcvt.s32.f32 %v2984_v28  ;;  %v3172_v57 = vmul.u32 %v3165_v25, %v3156_v45 }
 0x4c7   : > { %v2781_v27 = vand.u32 2147483647, %v2780_v9  ;;  %v2892_v19 = vsel %vm2807_vm4, %v2891_v30, %v9915_v11  ;;  %v3087_v2 = vshrl.u32 %v3069_v41, %v3085_v13  ;;  %v3176_v43 = vsel %vm3174_vm2, %v3175_v15, %v10179_v55 }
 0x4c8   : > { %v2783_v60 = vcvt.s32.f32 %v2776_v7  ;;  %v2992_v37 = vmul.f32 %v2991_v42, %v2989_v6  ;;  %v3177_v50 = vadd.s32 %v3176_v43, %v3172_v57  ;;  %v2587_v3 = vand.u32 3, %v2586_v62 }
 0x4c9   : > { %v3086_v8 = vshll.u32 %v10041_v49, %v10137_v1  ;;  %v3092_v32 = vor.u32 4788187, %v3091_v54  ;;  %v2590_v52 = vxor.u32 2147483648, %v10141_v61  ;;  %v2996_v25 = vsel %vm2911_vm1, %v2995_v20, %v10089_v17 }
 0x4ca   : > { %v2478_v11 = vsel %vm10015_vm0, 0, %v10060_v44  ;;  %v2993_v53 = vxor.u32 2147483648, %v2992_v37  ;;  %v3178_v55 = vadd.s32 536870912, %v3177_v50  ;;  %v2593_v30 = vxor.u32 2147483648, %v10129_v40 }
 0x4cb   : > { %v12988_v33 = vxor.u32 2147483648, %v10082_v51  ;;  %v2784_v1 = vmul.f32 %v2783_v60, %v2781_v27  ;;  %v2894_v28 = vsel %vm10133_vm10, 0, %v2892_v19  ;;  %v3088_v59 = vor.u32 %v3087_v2, %v3086_v8 }
 0x4cc   : > { %v2994_v17 = vsel %vm2911_vm1, %v2993_v53, %v2992_v37  ;;  %v10231_v18 = vshrl.u32 %v3178_v55, 30  ;;  %vm2589_vm0 = vcmp.eq.s32.totalorder %v2587_v3, 0  ;;  %v2998_v44 = vsel %vm10196_vm12, 0, %v2996_v25 }
 0x4cd   : > { %v2682_v49 = vsel %vm12828_vm11, %v12988_v33, %v10082_v51  ;;  %v3093_v23 = vand.u32 2147483647, %v3092_v32  ;;  %v2997_v7 = vsel %vm10196_vm12, %v9752_v34, %v2994_v17  ;;  %v2591_v51 = vsel %vm2589_vm0, %v10129_v40, %v2590_v52 }
 0x4ce   : > { %vm2592_vm7 = vcmp.eq.s32.totalorder %v2587_v3, 2  ;;  %7351 = vcosq.f32 %v2997_v7  ;;  %v3180_v14 = vshll.u32 %v10231_v18, 30  ;;  %v2898_v13 = vadd.s32 3, %v2894_v28  ;;  %v7348_v5 = vpop.eup %7347 }
 0x4cf   : > { %v2594_v9 = vsel %vm2592_vm7, %v2593_v30, %v10141_v61  ;;  %v3095_v45 = vcvt.s32.f32 %v3088_v59  ;;  %7353 = vsinq.f32 %v2997_v7  ;;  %v3002_v41 = vadd.s32 3, %v2998_v44  ;;  %v7471_v7 = vld [vmem:[#allocation5] sm:$0xff] }
 0x4d0   : > { %v2482_v24 = vadd.s32 3, %v2478_v11  ;;  %v7350_v62 = vpop.eup %7349  ;;  %v2785_v54 = vxor.u32 2147483648, %v2784_v1  ;;  %v10241_v15 = vsub.s32 %v3177_v50, %v3180_v14  ;;  %v12989_v46 = vand.u32 2147483647, %v9600_v63 }
 0x4d1   : > { %vm2703_vm9 = vcmp.lt.s32.totalorder %v9705_v31, 0  ;;  %v3096_v20 = vmul.f32 %v3095_v45, %v3093_v23  ;;  %vm2588_vm10 = vcmp.lt.s32.totalorder %v2587_v3, 2  ;;  %v2899_v57 = vand.u32 3, %v2898_v13 }
 0x4d2   : > { %vm10245_vm4 = vcmp.le.f32.partialorder %v12989_v46, 0.7853982  ;;  %v3183_v6 = vsub.s32 0, %v10241_v15  ;;  %v2595_v42 = vsel %vm2588_vm10, %v2591_v51, %v2594_v9  ;;  %v3003_v27 = vand.u32 3, %v3002_v41 }
 0x4d3   : > { %v10253_v61 = vsel %vm10245_vm4, %v9600_v63, %v2682_v49  ;;  %v2483_v19 = vand.u32 3, %v2482_v24  ;;  %v2902_v2 = vxor.u32 2147483648, %v7350_v62  ;;  %v2905_v43 = vxor.u32 2147483648, %v7348_v5 }
 0x4d4   : > { %v2786_v60 = vsel %vm2703_vm9, %v2785_v54, %v2784_v1  ;;  %vm3015_vm8 = vcmp.lt.s32.totalorder %v9803_v48, 0  ;;  %v6762_v37 = vmin.u32 %v3183_v6, %v10241_v15  ;;  %vm2585_vm14 = vweird.f32 %v9533_v35 }
 0x4d5   : > { %v2486_v50 = vxor.u32 2147483648, %v10124_v29  ;;  %v3097_v3 = vxor.u32 2147483648, %v3096_v20  ;;  %v2596_v8 = vsel %vm2585_vm14, nan, %v2595_v42  ;;  %vm3001_vm6 = vweird.f32 %v9752_v34 }
 0x4d6   : > { %v2489_v32 = vxor.u32 2147483648, %v10120_v39  ;;  %v12992_v52 = vand.u32 2147483647, %v9705_v31  ;;  %v3173_v11 = vadd.s32 %v10178_v47, %v10172_v38  ;;  %v3185_v53 = vclz %v6762_v37 }
 0x4d7   : > { %vm2901_vm15 = vcmp.eq.s32.totalorder %v2899_v57, 0  ;;  %vm2904_vm1 = vcmp.eq.s32.totalorder %v2899_v57, 2  ;;  %vm3004_vm12 = vcmp.lt.s32.totalorder %v3003_v27, 2  ;;  %vm2485_vm2 = vcmp.eq.s32.totalorder %v2483_v19, 0 }
 0x4d8   : > { %vm10266_vm13 = vcmp.le.f32.partialorder %v12992_v52, 0.7853982  ;;  %v2903_v35 = vsel %vm2901_vm15, %v7348_v5, %v2902_v2  ;;  %v2906_v55 = vsel %vm2904_vm1, %v2905_v43, %v7350_v62  ;;  %v7352_v30 = vpop.eup %7351  ;;  %v6763_v33 = vadd.s32 4294967294, %v3185_v53  ;;  %v10301_v2 = vpop.permute.xlu0 %3229 }
 0x4d9   : > { %vm3005_vm0 = vcmp.eq.s32.totalorder %v3003_v27, 0  ;;  %v2487_v49 = vsel %vm2485_vm2, %v10120_v39, %v2486_v50  ;;  %vm2488_vm7 = vcmp.eq.s32.totalorder %v2483_v19, 2  ;;  %v7354_v1 = vpop.eup %7353  ;;  %v3009_v28 = vxor.u32 2147483648, %v7352_v30  ;;  %v7472_v39 = vld [vmem:[#allocation5 + $0x8] sm:$0x3] }
 0x4da   : > { %v2490_v59 = vsel %vm2488_vm7, %v2489_v32, %v10124_v29  ;;  %vm2900_vm10 = vcmp.lt.s32.totalorder %v2899_v57, 2  ;;  %vm6764_vm14 = vcmp.lt.s32.totalorder %v6763_v33, 0  ;;  %v3006_v38 = vxor.u32 2147483648, %v7354_v1 }
 0x4db   : > { %vm3008_vm11 = vcmp.eq.s32.totalorder %v3003_v27, 2  ;;  %v2907_v47 = vsel %vm2900_vm10, %v2903_v35, %v2906_v55  ;;  %v7630_v17 = vmov 65   ;;  %v3188_v44 = vsel %vm6764_vm14, 0, %v6763_v33 }
 0x4dc   : > { %7262 = vset.pattern.permute.xlu0 %v7630_v17  ;;  %7263 = vset.pattern.permute.xlu1 %v7630_v17  ;;  %v3010_v23 = vsel %vm3008_vm11, %v3009_v28, %v7354_v1  ;;  %vm2484_vm15 = vcmp.lt.s32.totalorder %v2483_v19, 2  ;;  %vm2897_vm1 = vweird.f32 %v9665_v4  ;;  %v3189_v51 = vsub.s32 32, %v3188_v44 }
 0x4dd   : > { %3222 = vperm.xlu0 %7262, %v7471_v7   ;;  %3226 = vperm.xlu1 %7263, %v7472_v39   ;;  %v3193_v14 = vsub.s32 4294967266, %v3188_v44  ;;  %v3007_v29 = vsel %vm3005_vm0, %v7352_v30, %v3006_v38  ;;  %v2491_v9 = vsel %vm2484_vm15, %v2487_v49, %v2490_v59  ;;  %v3098_v13 = vsel %vm3015_vm8, %v3097_v3, %v3096_v20 }
 0x4de   : > { %v3011_v5 = vsel %vm3004_vm12, %v3007_v29, %v3010_v23  ;;  %vm2481_vm2 = vweird.f32 %v9528_v10  ;;  %v2908_v45 = vsel %vm2897_vm1, nan, %v2907_v47  ;;  %v3190_v41 = vshll.u32 %v10241_v15, %v3188_v44 }
 0x4df   : > { %v3191_v4 = vshrl.u32 %v3173_v11, %v3189_v51  ;;  %v3194_v24 = vadd.s32 127, %v3193_v14  ;;  %v3012_v62 = vsel %vm3001_vm6, nan, %v3011_v5  ;;  %v2789_v54 = vsel %vm10266_vm13, %v9705_v31, %v2786_v60  ;;  %v12998_v60 = vld [vmem:[#allocation28_spill] sm:$0xff]  ;;  %v10312_v11 = vpop.permute.xlu1 %3231 }
 0x4e0   : > { %v12995_v46 = vand.u32 2147483647, %v9803_v48  ;;  %v6922_v6 = vpack.c.bf16 %v3012_v62, %v2596_v8  ;;  %v2492_v10 = vsel %vm2481_vm2, nan, %v2491_v9  ;;  %7355 = vcosq.f32 %v10253_v61 }
 0x4e1   : > { %4259 = vrot.lane.b32.xlu1 %v7471_v7, %s7631_s22  ;;  %4261 = vrot.lane.b32.xlu0 %v7472_v39, %s7631_s22  ;;  %v3192_v15 = vor.u32 %v3191_v4, %v3190_v41  ;;  %v3195_v42 = vshll.u32 %v3194_v24, 23  ;;  %v6925_v57 = vpack.c.bf16 %v2908_v45, %v2492_v10  ;;  %7357 = vcosq.f32 %v2789_v54 }
 0x4e2   : > { %vm10288_vm11 = vcmp.le.f32.partialorder %v12995_v46, 0.7853982  ;;  %6924 = vmatprep.subr.msk.bf16.mxu0 %vm8318_vm5, %v6922_v6  ;;  %v3099_v27 = vsub.s32 4, %v10019_v58  ;;  %v2787_v43 = vsub.s32 4, %v9917_v22  ;;  %v2683_v37 = vsub.s32 4, %v12998_v60 }
 0x4e3   : > { %v3101_v34 = vsel %vm10288_vm11, %v9803_v48, %v3098_v13  ;;  %v3196_v19 = vor.u32 4788187, %v3195_v42  ;;  %6927 = vmatpush1.bf16.msk.msra.mxu0 %vm8318_vm5, %v6925_v57  ;;  %v3199_v3 = vcvt.s32.f32 %v3192_v15  ;;  %v3203_v52 = vsub.s32 4, %v10231_v18 }
 0x4e4   : > { %7359 = vcosq.f32 %v3101_v34  ;;  %v3100_v8 = vsel %vm3015_vm8, %v3099_v27, %v10019_v58  ;;  %v12999_v53 = vmov 0.0   ;;  %v2788_v35 = vsel %vm2703_vm9, %v2787_v43, %v9917_v22 }
 0x4e5   : > { %7361 = vsinq.f32 %v3101_v34  ;;  %v3197_v50 = vand.u32 2147483647, %v3196_v19  ;;  %vm13000_vm6 = vcmp.lt.s32.totalorder %v9600_v63, 0  ;;  %v3102_v30 = vsel %vm10288_vm11, 0, %v3100_v8 }
 0x4e6   : > { %7363 = vsinq.f32 %v2789_v54  ;;  %6767 = vmatmul.mubr.msk.f32.vlgmr.msra.gmra.mrb[8].mxu0 %vm1155_vm3, %v10301_v2  ;;  %v2684_v55 = vsel %vm13000_vm6, %v2683_v37, %v12998_v60  ;;  %vm3119_vm8 = vcmp.lt.s32.totalorder %v10044_v16, 0  ;;  %v13001_v58 = vand.u32 2147483647, %v10044_v16 }
 0x4e7   : > { %7365 = vsinq.f32 %v10253_v61  ;;  %v3200_v32 = vmul.f32 %v3199_v3, %v3197_v50  ;;  %3319 = vmatprep.mubr.f32.mxu0 %v12999_v53  ;;  %v2790_v49 = vsel %vm10266_vm13, 0, %v2788_v35  ;;  %v3204_v1 = vsel %vm3119_vm8, %v3203_v52, %v10231_v18 }
 0x4e8   : > { %vm10328_vm12 = vcmp.le.f32.partialorder %v13001_v58, 0.7853982  ;;  %v2686_v59 = vsel %vm10245_vm4, 0, %v2684_v55  ;;  %v3106_v17 = vadd.s32 3, %v3102_v30  ;;  %v2794_v23 = vadd.s32 3, %v2790_v49 }
 0x4e9   : > { %v3201_v61 = vxor.u32 2147483648, %v3200_v32  ;;  %v3206_v25 = vsel %vm10328_vm12, 0, %v3204_v1  ;;  %v2690_v7 = vadd.s32 3, %v2686_v59 }
 0x4ea   : > { %6768 = vmatmul.mubr.msk.f32.gmra.mrb[10].mxu0 %vm1155_vm3, %v10312_v11  ;;  %v7356_v28 = vpop.eup %7355  ;;  %v3210_v14 = vadd.s32 3, %v3206_v25  ;;  %v3107_v40 = vand.u32 3, %v3106_v17  ;;  %v2795_v29 = vand.u32 3, %v2794_v23 }
 0x4eb   : > { %v3202_v22 = vsel %vm3119_vm8, %v3201_v61, %v3200_v32  ;;  %4343 = vmatprep.mubr.f32.mxu0 %v12999_v53  ;;  %v7358_v47 = vpop.eup %7357  ;;  %v2691_v41 = vand.u32 3, %v2690_v7  ;;  %v2697_v24 = vxor.u32 2147483648, %v7356_v28  ;;  %vm3105_vm8 = vweird.f32 %v9803_v48 }
 0x4ec   : > { %v3205_v38 = vsel %vm10328_vm12, %v10044_v16, %v3202_v22  ;;  %v2801_v45 = vxor.u32 2147483648, %v7358_v47  ;;  %v3211_v62 = vand.u32 3, %v3210_v14  ;;  %vm3109_vm4 = vcmp.eq.s32.totalorder %v3107_v40, 0 }
 0x4ed   : > { %7367 = vcosq.f32 %v3205_v38  ;;  %vm3112_vm9 = vcmp.eq.s32.totalorder %v3107_v40, 2  ;;  %vm2797_vm13 = vcmp.eq.s32.totalorder %v2795_v29, 0  ;;  %vm2800_vm0 = vcmp.eq.s32.totalorder %v2795_v29, 2 }
 0x4ee   : > { %v7360_v44 = vpop.eup %7359  ;;  %7369 = vsinq.f32 %v3205_v38  ;;  %vm2693_vm7 = vcmp.eq.s32.totalorder %v2691_v41, 0  ;;  %vm2696_vm10 = vcmp.eq.s32.totalorder %v2691_v41, 2  ;;  %vm3108_vm14 = vcmp.lt.s32.totalorder %v3107_v40, 2 }
 0x4ef   : > { %v7362_v18 = vpop.eup %7361  ;;  %v3113_v13 = vxor.u32 2147483648, %v7360_v44  ;;  %vm2796_vm15 = vcmp.lt.s32.totalorder %v2795_v29, 2  ;;  %vm3216_vm1 = vcmp.eq.s32.totalorder %v3211_v62, 2  ;;  %vm3213_vm2 = vcmp.eq.s32.totalorder %v3211_v62, 0 }
 0x4f0   : > { %v7364_v39 = vpop.eup %7363  ;;  %v3110_v9 = vxor.u32 2147483648, %v7362_v18  ;;  %vm2692_vm11 = vcmp.lt.s32.totalorder %v2691_v41, 2  ;;  %vm3212_vm6 = vcmp.lt.s32.totalorder %v3211_v62, 2  ;;  %vm2793_vm12 = vweird.f32 %v9705_v31 }
 0x4f1   : > { %v7366_v51 = vpop.eup %7365  ;;  %v2798_v5 = vxor.u32 2147483648, %v7364_v39  ;;  %v3114_v46 = vsel %vm3112_vm9, %v3113_v13, %v7362_v18  ;;  %v2802_v10 = vsel %vm2800_vm0, %v2801_v45, %v7364_v39  ;;  %vm2689_vm9 = vweird.f32 %v9600_v63 }
 0x4f2   : > { %v2694_v4 = vxor.u32 2147483648, %v7366_v51  ;;  %v3111_v54 = vsel %vm3109_vm4, %v7360_v44, %v3110_v9  ;;  %v2698_v57 = vsel %vm2696_vm10, %v2697_v24, %v7366_v51  ;;  %vm3209_vm4 = vweird.f32 %v10044_v16 }
 0x4f3   : > { %v2799_v6 = vsel %vm2797_vm13, %v7358_v47, %v2798_v5  ;;  %v3115_v19 = vsel %vm3108_vm14, %v3111_v54, %v3114_v46  ;;  %v13004_v5 = vmov 2102212464  }
 0x4f4   : > { %v2695_v42 = vsel %vm2693_vm7, %v7356_v28, %v2694_v4  ;;  %v2803_v43 = vsel %vm2796_vm15, %v2799_v6, %v2802_v10  ;;  %v3116_v8 = vsel %vm3105_vm8, nan, %v3115_v19 }
 0x4f5   : > { %v2699_v50 = vsel %vm2692_vm11, %v2695_v42, %v2698_v57  ;;  %v2804_v32 = vsel %vm2793_vm12, nan, %v2803_v43 }
 0x4f6   : > { %v2700_v55 = vsel %vm2689_vm9, nan, %v2699_v50 }
 0x4f7   : > { %v7368_v20 = vpop.eup %7367  ;;  %v6931_v61 = vpack.c.bf16 %v3116_v8, %v2700_v55 }
 0x4f8   : > { %v7370_v34 = vpop.eup %7369  ;;  %v3217_v15 = vxor.u32 2147483648, %v7368_v20 }
 0x4f9   : > { %v3214_v27 = vxor.u32 2147483648, %v7370_v34 }
 0x4fa   : > { %v3218_v60 = vsel %vm3216_vm1, %v3217_v15, %v7370_v34 }
 0x4fb   : > { %v3215_v37 = vsel %vm3213_vm2, %v7368_v20, %v3214_v27 }
 0x4fc   : > { %v3219_v3 = vsel %vm3212_vm6, %v3215_v37, %v3218_v60 }
 0x4fd   : > { %v3220_v52 = vsel %vm3209_vm4, nan, %v3219_v3 }
 0x4fe   : > { %v6928_v35 = vpack.c.bf16 %v3220_v52, %v2804_v32 }
 0x500   : > { %6930 = vmatprep.subr.msk.bf16.mxu1 %vm8318_vm5, %v6928_v35 }
 0x501   : > { %6933 = vmatpush1.bf16.msk.msra.mxu1 %vm8318_vm5, %v6931_v61 }
 0x504   : > { %6771 = vmatmul.mubr.msk.f32.vlgmr.msra.gmra.mrb[8].mxu1 %vm1155_vm3, %v10301_v2 }
 0x505   : > { %3396 = vmatprep.mubr.f32.mxu1 %v12999_v53 }
 0x508   : > { %6772 = vmatmul.mubr.msk.f32.gmra.mrb[10].mxu1 %vm1155_vm3, %v10312_v11 }
 0x509   : > { %4420 = vmatprep.mubr.f32.mxu1 %v12999_v53 }
 0x55c   : > { %v10357_v63 = vpop.permute.xlu0 %3222 }
 0x5b9   : > { %v3315_v31 = vpop.f32.mrb[8].mxu0 }
 0x5ba   : > { %v10360_v48 = vadd.f32 %v3315_v31, %v10357_v63  ;;  %v3317_v16 = vpop.f32.mrb[9].mxu0 }
 0x5bb   : > { %v10363_v30 = vadd.f32 %v3317_v16, %v10357_v63 }
 0x5bc   : > { %v3406_v58 = vand.u32 2139095040, %v10360_v48  ;;  %v3403_v47 = vand.u32 2147483647, %v10360_v48 }
 0x5bd   : > { %v3510_v2 = vand.u32 2139095040, %v10363_v30  ;;  %v10367_v33 = vpop.f32.mrb[10].mxu0  ;;  %v3507_v18 = vand.u32 2147483647, %v10363_v30 }
 0x5be   : > { %v3407_v22 = vshrl.u32 %v3406_v58, 23  ;;  %v10369_v11 = vpop.f32.mrb[11].mxu0  ;;  %v3410_v39 = vand.u32 8388607, %v3403_v47 }
 0x5bf   : > { %v3511_v49 = vshrl.u32 %v3510_v2, 23  ;;  %v3514_v43 = vand.u32 8388607, %v3507_v18 }
 0x5c0   : > { %v6773_v1 = vadd.s32 4294967169, %v3407_v22  ;;  %v3411_v10 = vor.u32 8388608, %v3410_v39 }
 0x5c1   : > { %v6777_v28 = vadd.s32 4294967169, %v3511_v49  ;;  %v3515_v39 = vor.u32 8388608, %v3514_v43 }
 0x5c2   : > { %v3413_v59 = vadd.s32 1, %v6773_v1  ;;  %v10417_v37 = vshll.u32 %v3411_v10, 8 }
 0x5c3   : > { %v3517_v38 = vadd.s32 1, %v6777_v28 }
 0x5c4   : > { %vm3414_vm13 = vcmp.gt.s32.totalorder %v3413_v59, 0 }
 0x5c5   : > { %v3415_v17 = vsel %vm3414_vm13, %v3413_v59, 0  ;;  %vm3518_vm0 = vcmp.gt.s32.totalorder %v3517_v38, 0 }
 0x5c6   : > { %v3417_v44 = vand.u32 31, %v3415_v17  ;;  %v3519_v23 = vsel %vm3518_vm0, %v3517_v38, 0  ;;  %v10377_v51 = vshrl.u32 %v3415_v17, 5 }
 0x5c7   : > { %v3521_v7 = vand.u32 31, %v3519_v23  ;;  %v10419_v50 = vshrl.u32 %v3519_v23, 5 }
 0x5c8   : > { %v10372_v25 = vsub.s32 32, %v3417_v44  ;;  %v3420_v14 = vshll.u32 %v12897_v26, %v3417_v44  ;;  %v3423_v40 = vshll.u32 %v12899_v12, %v3417_v44  ;;  %v3426_v13 = vshll.u32 %v12900_v0, %v3417_v44 }
 0x5c9   : > { %v3429_v41 = vshll.u32 %v13004_v5, %v3417_v44  ;;  %v3432_v24 = vshll.u32 %v12901_v36, %v3417_v44  ;;  %v10398_v6 = vsub.s32 32, %v3521_v7  ;;  %vm3438_vm7 = vcmp.lt.s32.totalorder %v10377_v51, 4 }
 0x5ca   : > { %v3421_v29 = vshrl.u32 %v12899_v12, %v10372_v25  ;;  %v3424_v9 = vshrl.u32 %v12900_v0, %v10372_v25  ;;  %v3427_v45 = vshrl.u32 %v13004_v5, %v10372_v25  ;;  %v3430_v4 = vshrl.u32 %v12901_v36, %v10372_v25 }
 0x5cb   : > { %v3433_v62 = vshrl.u32 %v12898_v21, %v10372_v25  ;;  %vm3435_vm10 = vcmp.lt.s32.totalorder %v10377_v51, 1  ;;  %vm3437_vm14 = vcmp.lt.s32.totalorder %v10377_v51, 3  ;;  %v3525_v60 = vshrl.u32 %v12899_v12, %v10398_v6 }
 0x5cc   : > { %v10394_v54 = vor.u32 %v3421_v29, %v3420_v14  ;;  %v10396_v46 = vor.u32 %v3424_v9, %v3423_v40  ;;  %v3428_v20 = vor.u32 %v3427_v45, %v3426_v13  ;;  %v3431_v34 = vor.u32 %v3430_v4, %v3429_v41 }
 0x5cd   : > { %v3434_v15 = vor.u32 %v3433_v62, %v3432_v24  ;;  %v3524_v3 = vshll.u32 %v12897_v26, %v3521_v7  ;;  %v3528_v8 = vshrl.u32 %v12900_v0, %v10398_v6  ;;  %vm3436_vm15 = vcmp.lt.s32.totalorder %v10377_v51, 2 }
 0x5ce   : > { %v3444_v42 = vsel %vm3438_vm7, %v3431_v34, 920167782  ;;  %v3443_v27 = vsel %vm3435_vm10, %v10394_v54, %v10396_v46  ;;  %v3447_v32 = vsel %vm3435_vm10, %v10396_v46, %v3428_v20  ;;  %v3527_v35 = vshll.u32 %v12899_v12, %v3521_v7 }
 0x5cf   : > { %v3448_v57 = vsel %vm3438_vm7, %v3434_v15, 1326507024  ;;  %v3445_v19 = vsel %vm3437_vm14, %v3428_v20, %v3444_v42  ;;  %v3526_v61 = vor.u32 %v3525_v60, %v3524_v3  ;;  %v3530_v31 = vshll.u32 %v12900_v0, %v3521_v7 }
 0x5d0   : > { %v3449_v52 = vsel %vm3437_vm14, %v3431_v34, %v3448_v57  ;;  %v3446_v55 = vsel %vm3436_vm15, %v3443_v27, %v3445_v19  ;;  %v3531_v16 = vshrl.u32 %v13004_v5, %v10398_v6  ;;  %v3529_v58 = vor.u32 %v3528_v8, %v3527_v35 }
 0x5d1   : > { %v3533_v2 = vshll.u32 %v13004_v5, %v3521_v7  ;;  %v3534_v22 = vshrl.u32 %v12901_v36, %v10398_v6  ;;  %v3537_v49 = vshrl.u32 %v12898_v21, %v10398_v6  ;;  %v3536_v28 = vshll.u32 %v12901_v36, %v3521_v7 }
 0x5d2   : > { %v3532_v1 = vor.u32 %v3531_v16, %v3530_v31  ;;  %v3450_v59 = vsel %vm3436_vm15, %v3447_v32, %v3449_v52  ;;  %v10445_v38 = vmul.u32.u64.low %v10417_v37, %v3446_v55  ;;  %v10446_v17 = vmul.u32.u64.high %v10417_v37, %v3446_v55, %v10445_v38 }
 0x5d3   : > { %v3535_v44 = vor.u32 %v3534_v22, %v3533_v2  ;;  %v3538_v14 = vor.u32 %v3537_v49, %v3536_v28  ;;  %vm3539_vm1 = vcmp.lt.s32.totalorder %v10419_v50, 1  ;;  %vm3542_vm2 = vcmp.lt.s32.totalorder %v10419_v50, 4 }
 0x5d4   : > { %vm3541_vm11 = vcmp.lt.s32.totalorder %v10419_v50, 3  ;;  %v3547_v7 = vsel %vm3539_vm1, %v3526_v61, %v3529_v58  ;;  %v10460_v13 = vmul.u32.u64.low %v10417_v37, %v3450_v59  ;;  %v10461_v45 = vmul.u32.u64.high %v10417_v37, %v3450_v59, %v10460_v13 }
 0x5d5   : > { %v3548_v29 = vsel %vm3542_vm2, %v3535_v44, 920167782  ;;  %vm3540_vm6 = vcmp.lt.s32.totalorder %v10419_v50, 2  ;;  %v3551_v24 = vsel %vm3539_vm1, %v3529_v58, %v3532_v1  ;;  %v3552_v10 = vsel %vm3542_vm2, %v3538_v14, 1326507024 }
 0x5d6   : > { %v3549_v41 = vsel %vm3541_vm11, %v3532_v1, %v3548_v29  ;;  %v3555_v34 = vshll.u32 %v3515_v39, 8  ;;  %v3440_v42 = vsel %vm3438_vm7, %v3428_v20, 2102212464  ;;  %v3553_v27 = vsel %vm3541_vm11, %v3535_v44, %v3552_v10 }
 0x5d7   : > { %v3392_v23 = vpop.f32.mrb[8].mxu1  ;;  %v3550_v62 = vsel %vm3540_vm6, %v3547_v7, %v3549_v41  ;;  %v3419_v43 = vshrl.u32 %v12897_v26, %v10372_v25  ;;  %v3554_v60 = vsel %vm3540_vm6, %v3551_v24, %v3553_v27  ;;  %v3544_v20 = vsel %vm3542_vm2, %v3532_v1, 2102212464 }
 0x5d8   : > { %v10452_v40 = vadd.f32 %v3392_v23, %v10357_v63  ;;  %v3394_v9 = vpop.f32.mrb[9].mxu1  ;;  %v10485_v3 = vmul.u32.u64.low %v3555_v34, %v3550_v62  ;;  %v10486_v8 = vmul.u32.u64.high %v3555_v34, %v3550_v62, %v10485_v3  ;;  %v3441_v25 = vsel %vm3437_vm14, %v10396_v46, %v3440_v42 }
 0x5d9   : > { %v10491_v52 = vmul.u32.u64.low %v3555_v34, %v3554_v60  ;;  %v10492_v35 = vmul.u32.u64.high %v3555_v34, %v3554_v60, %v10491_v52  ;;  %v3439_v55 = vsel %vm3435_vm10, %v3419_v43, %v10394_v54  ;;  %v3523_v31 = vshrl.u32 %v12897_v26, %v10398_v6  ;;  %v10512_v6 = vpop.permute.xlu1 %3226 }
 0x5da   : > { %v3614_v4 = vand.u32 2139095040, %v10452_v40  ;;  %v3461_v16 = vadd.s32 1, %v10446_v17  ;;  %vm3460_vm8 = vc.u32 %v10461_v45, %v10445_v38  ;;  %v3545_v49 = vsel %vm3541_vm11, %v3529_v58, %v3544_v20 }
 0x5db   : > { %v10473_v15 = vpop.f32.mrb[10].mxu1  ;;  %v3543_v22 = vsel %vm3539_vm1, %v3523_v31, %v3526_v61  ;;  %v3442_v54 = vsel %vm3436_vm15, %v3439_v55, %v3441_v25  ;;  %v3565_v1 = vadd.s32 1, %v10486_v8  ;;  %vm3564_vm4 = vc.u32 %v10492_v35, %v10485_v3 }
 0x5dc   : > { %v3615_v57 = vshrl.u32 %v3614_v4, 23  ;;  %v10479_v19 = vpop.f32.mrb[11].mxu1  ;;  %v3462_v28 = vsel %vm3460_vm8, %v3461_v16, %v10446_v17  ;;  %v3546_v44 = vsel %vm3540_vm6, %v3543_v22, %v3545_v49  ;;  %v3458_v61 = vmul.u32 %v10417_v37, %v3442_v54 }
 0x5dd   : > { %v10522_v51 = vadd.f32 %v10367_v33, %v10512_v6  ;;  %v12830_v39 = vand.u32 2147483647, %v10452_v40  ;;  %v3562_v14 = vmul.u32 %v3555_v34, %v3546_v44  ;;  %v3566_v17 = vsel %vm3564_vm4, %v3565_v1, %v10486_v8 }
 0x5de   : > { %v6781_v32 = vadd.s32 4294967169, %v3615_v57  ;;  %v3463_v23 = vadd.s32 %v3462_v28, %v3458_v61  ;;  %v10539_v34 = vadd.f32 %v3394_v9, %v10357_v63 }
 0x5df   : > { %v3618_v42 = vand.u32 8388607, %v12830_v39  ;;  %v3822_v52 = vand.u32 2139095040, %v10522_v51 }
 0x5e0   : > { %v3621_v2 = vadd.s32 1, %v6781_v32  ;;  %v3567_v32 = vadd.s32 %v3566_v17, %v3562_v14  ;;  %v3464_v20 = vadd.s32 536870912, %v3463_v23  ;;  %v3718_v9 = vand.u32 2139095040, %v10539_v34 }
 0x5e1   : > { %v3619_v25 = vor.u32 8388608, %v3618_v42 }
 0x5e2   : > { %vm3622_vm12 = vcmp.gt.s32.totalorder %v3621_v2, 0  ;;  %v10556_v22 = vshrl.u32 %v3464_v20, 30  ;;  %v3719_v1 = vshrl.u32 %v3718_v9, 23 }
 0x5e3   : > { %v3623_v46 = vsel %vm3622_vm12, %v3621_v2, 0  ;;  %v3568_v2 = vadd.s32 536870912, %v3567_v32  ;;  %v3659_v61 = vshll.u32 %v3619_v25, 8 }
 0x5e4   : > { %v3625_v59 = vand.u32 31, %v3623_v46  ;;  %v10526_v7 = vshrl.u32 %v3623_v46, 5  ;;  %v3823_v46 = vshrl.u32 %v3822_v52, 23  ;;  %v6785_v14 = vadd.s32 4294967169, %v3719_v1 }
 0x5e5   : > { %v3466_v17 = vshll.u32 %v10556_v22, 30 }
 0x5e6   : > { %v3626_v58 = vsub.s32 32, %v3625_v59  ;;  %v3637_v37 = vshll.u32 %v13004_v5, %v3625_v59  ;;  %v3640_v33 = vshll.u32 %v12901_v36, %v3625_v59  ;;  %v3628_v24 = vshll.u32 %v12897_v26, %v3625_v59 }
 0x5e7   : > { %v3631_v62 = vshll.u32 %v12899_v12, %v3625_v59  ;;  %v3634_v10 = vshll.u32 %v12900_v0, %v3625_v59  ;;  %vm3646_vm9 = vcmp.lt.s32.totalorder %v10526_v7, 4  ;;  %vm3643_vm13 = vcmp.lt.s32.totalorder %v10526_v7, 1 }
 0x5e8   : > { %v3629_v50 = vshrl.u32 %v12899_v12, %v3626_v58  ;;  %v3632_v29 = vshrl.u32 %v12900_v0, %v3626_v58  ;;  %v3635_v13 = vshrl.u32 %v13004_v5, %v3626_v58  ;;  %v3638_v41 = vshrl.u32 %v12901_v36, %v3626_v58 }
 0x5e9   : > { %v3641_v4 = vshrl.u32 %v12898_v21, %v3626_v58  ;;  %vm3645_vm0 = vcmp.lt.s32.totalorder %v10526_v7, 3  ;;  %vm3644_vm7 = vcmp.lt.s32.totalorder %v10526_v7, 2  ;;  %v10565_v59 = vshrl.u32 %v3568_v2, 30 }
 0x5ea   : > { %v3639_v57 = vor.u32 %v3638_v41, %v3637_v37  ;;  %v3630_v43 = vor.u32 %v3629_v50, %v3628_v24  ;;  %v3633_v60 = vor.u32 %v3632_v29, %v3631_v62  ;;  %v3636_v8 = vor.u32 %v3635_v13, %v3634_v10 }
 0x5eb   : > { %v3642_v27 = vor.u32 %v3641_v4, %v3640_v33  ;;  %v6789_v50 = vadd.s32 4294967169, %v3823_v46  ;;  %v3725_v37 = vadd.s32 1, %v6785_v14  ;;  %v3570_v4 = vshll.u32 %v10565_v59, 30 }
 0x5ec   : > { %v3652_v55 = vsel %vm3646_vm9, %v3639_v57, 920167782  ;;  %v3651_v31 = vsel %vm3643_vm13, %v3630_v43, %v3633_v60  ;;  %v3655_v49 = vsel %vm3643_vm13, %v3633_v60, %v3636_v8  ;;  %v3648_v24 = vsel %vm3646_vm9, %v3636_v8, 2102212464 }
 0x5ed   : > { %v3656_v63 = vsel %vm3646_vm9, %v3642_v27, 1326507024  ;;  %v3653_v16 = vsel %vm3645_vm0, %v3636_v8, %v3652_v55  ;;  %vm3726_vm10 = vcmp.gt.s32.totalorder %v3725_v37, 0  ;;  %v10580_v62 = vsub.s32 %v3463_v23, %v3466_v17 }
 0x5ee   : > { %v3657_v54 = vsel %vm3645_vm0, %v3639_v57, %v3656_v63  ;;  %v3654_v28 = vsel %vm3644_vm7, %v3651_v31, %v3653_v16  ;;  %v3627_v10 = vshrl.u32 %v12897_v26, %v3626_v58  ;;  %v3727_v42 = vsel %vm3726_vm10, %v3725_v37, 0 }
 0x5ef   : > { %v3658_v44 = vsel %vm3644_vm7, %v3655_v49, %v3657_v54  ;;  %v10570_v29 = vmul.u32.u64.low %v3659_v61, %v3654_v28  ;;  %v10571_v13 = vmul.u32.u64.high %v3659_v61, %v3654_v28, %v10570_v29  ;;  %v3829_v57 = vadd.s32 1, %v6789_v50 }
 0x5f0   : > { %v10574_v41 = vmul.u32.u64.low %v3659_v61, %v3658_v44  ;;  %v10575_v33 = vmul.u32.u64.high %v3659_v61, %v3658_v44, %v10574_v41  ;;  %v3729_v27 = vand.u32 31, %v3727_v42  ;;  %v3647_v20 = vsel %vm3643_vm13, %v3627_v10, %v3630_v43 }
 0x5f1   : > { %v3649_v52 = vsel %vm3645_vm0, %v3633_v60, %v3648_v24  ;;  %v10587_v55 = vsub.s32 %v3567_v32, %v3570_v4  ;;  %v12829_v63 = vand.u32 2147483647, %v10539_v34  ;;  %v3469_v8 = vsub.s32 0, %v10580_v62 }
 0x5f2   : > { %v3730_v9 = vsub.s32 32, %v3729_v27  ;;  %vm3830_vm14 = vcmp.gt.s32.totalorder %v3829_v57, 0  ;;  %v3650_v58 = vsel %vm3644_vm7, %v3647_v20, %v3649_v52  ;;  %v3669_v23 = vadd.s32 1, %v10571_v13 }
 0x5f3   : > { %vm3668_vm15 = vc.u32 %v10575_v33, %v10570_v29  ;;  %v3573_v43 = vsub.s32 0, %v10587_v55  ;;  %v3722_v25 = vand.u32 8388607, %v12829_v63  ;;  %v12831_v16 = vand.u32 2147483647, %v10522_v51 }
 0x5f4   : > { %v3733_v60 = vshrl.u32 %v12899_v12, %v3730_v9  ;;  %v3736_v32 = vshrl.u32 %v12900_v0, %v3730_v9  ;;  %v3742_v31 = vshrl.u32 %v12901_v36, %v3730_v9  ;;  %v3831_v7 = vsel %vm3830_vm14, %v3829_v57, 0 }
 0x5f5   : > { %v6774_v2 = vmin.u32 %v3469_v8, %v10580_v62  ;;  %v3732_v49 = vshll.u32 %v12897_v26, %v3729_v27  ;;  %v3735_v54 = vshll.u32 %v12899_v12, %v3729_v27  ;;  %v3739_v46 = vshrl.u32 %v13004_v5, %v3730_v9 }
 0x5f6   : > { %v3666_v1 = vmul.u32 %v3659_v61, %v3650_v58  ;;  %v3670_v28 = vsel %vm3668_vm15, %v3669_v23, %v10571_v13  ;;  %v3728_v44 = vshrl.u32 %v3727_v42, 5  ;;  %v3741_v14 = vshll.u32 %v13004_v5, %v3729_v27 }
 0x5f7   : > { %v6778_v17 = vmin.u32 %v3573_v43, %v10587_v55  ;;  %v3734_v50 = vor.u32 %v3733_v60, %v3732_v49  ;;  %v3737_v37 = vor.u32 %v3736_v32, %v3735_v54  ;;  %v3738_v41 = vshll.u32 %v12900_v0, %v3729_v27 }
 0x5f8   : > { %v3723_v4 = vor.u32 8388608, %v3722_v25  ;;  %v3743_v24 = vor.u32 %v3742_v31, %v3741_v14  ;;  %v3744_v10 = vshll.u32 %v12901_v36, %v3729_v27  ;;  %v3745_v57 = vshrl.u32 %v12898_v21, %v3730_v9 }
 0x5f9   : > { %v3671_v20 = vadd.s32 %v3670_v28, %v3666_v1  ;;  %v3740_v52 = vor.u32 %v3739_v46, %v3738_v41  ;;  %v3471_v61 = vclz %v6774_v2  ;;  %vm3747_vm1 = vcmp.lt.s32.totalorder %v3728_v44, 1 }
 0x5fa   : > { %v3746_v8 = vor.u32 %v3745_v57, %v3744_v10  ;;  %v3833_v13 = vand.u32 31, %v3831_v7  ;;  %v3575_v42 = vclz %v6778_v17  ;;  %vm3750_vm2 = vcmp.lt.s32.totalorder %v3728_v44, 4 }
 0x5fb   : > { %v3755_v58 = vsel %vm3747_vm1, %v3734_v50, %v3737_v37  ;;  %vm3749_vm11 = vcmp.lt.s32.totalorder %v3728_v44, 3  ;;  %v3756_v23 = vsel %vm3750_vm2, %v3743_v24, 920167782  ;;  %v10615_v43 = vshll.u32 %v3723_v4, 8 }
 0x5fc   : > { %v3826_v27 = vand.u32 8388607, %v12831_v16  ;;  %v3672_v60 = vadd.s32 536870912, %v3671_v20  ;;  %vm3748_vm6 = vcmp.lt.s32.totalorder %v3728_v44, 2  ;;  %v3757_v32 = vsel %vm3749_vm11, %v3740_v52, %v3756_v23 }
 0x5fd   : > { %v3759_v25 = vsel %vm3747_vm1, %v3737_v37, %v3740_v52  ;;  %v6775_v31 = vadd.s32 4294967294, %v3471_v61  ;;  %v3758_v2 = vsel %vm3748_vm6, %v3755_v58, %v3757_v32  ;;  %v3760_v49 = vsel %vm3750_vm2, %v3746_v8, 1326507024 }
 0x5fe   : > { %v3834_v54 = vsub.s32 32, %v3833_v13  ;;  %v6779_v46 = vadd.s32 4294967294, %v3575_v42  ;;  %v3761_v1 = vsel %vm3749_vm11, %v3743_v24, %v3760_v49  ;;  %v3752_v17 = vsel %vm3750_vm2, %v3740_v52, 2102212464 }
 0x5ff   : > { %v10625_v28 = vmul.u32.u64.low %v10615_v43, %v3758_v2  ;;  %v10626_v14 = vmul.u32.u64.high %v10615_v43, %v3758_v2, %v10625_v28  ;;  %v3762_v41 = vsel %vm3748_vm6, %v3759_v25, %v3761_v1  ;;  %v3827_v4 = vor.u32 8388608, %v3826_v27 }
 0x600   : > { %v10631_v10 = vshrl.u32 %v3672_v60, 30  ;;  %v3731_v57 = vshrl.u32 %v12897_v26, %v3730_v9  ;;  %vm6776_vm8 = vcmp.lt.s32.totalorder %v6775_v31, 0  ;;  %v3837_v24 = vshrl.u32 %v12899_v12, %v3834_v54 }
 0x601   : > { %v10635_v61 = vmul.u32.u64.low %v10615_v43, %v3762_v41  ;;  %v10636_v8 = vmul.u32.u64.high %v10615_v43, %v3762_v41, %v10635_v61  ;;  %vm6780_vm12 = vcmp.lt.s32.totalorder %v6779_v46, 0  ;;  %v3753_v58 = vsel %vm3749_vm11, %v3737_v37, %v3752_v17 }
 0x602   : > { %v3751_v42 = vsel %vm3747_vm1, %v3731_v57, %v3734_v50  ;;  %v3840_v52 = vshrl.u32 %v12900_v0, %v3834_v54  ;;  %v3836_v23 = vshll.u32 %v12897_v26, %v3833_v13  ;;  %v3843_v27 = vshrl.u32 %v13004_v5, %v3834_v54 }
 0x603   : > { %v10644_v60 = vshll.u32 %v3827_v4, 8  ;;  %v10648_v9 = vadd.f32 %v10369_v11, %v10512_v6  ;;  %v10650_v32 = vsel %vm6776_vm8, 0, %v6775_v31  ;;  %v3674_v25 = vshll.u32 %v10631_v10, 30 }
 0x604   : > { %v3832_v2 = vshrl.u32 %v3831_v7, 5  ;;  %v3839_v50 = vshll.u32 %v12899_v12, %v3833_v13  ;;  %v10654_v37 = vsel %vm6780_vm12, 0, %v6779_v46  ;;  %v3754_v49 = vsel %vm3748_vm6, %v3751_v42, %v3753_v58 }
 0x605   : > { %v3838_v1 = vor.u32 %v3837_v24, %v3836_v23  ;;  %v3842_v17 = vshll.u32 %v12900_v0, %v3833_v13  ;;  %vm3772_vm4 = vc.u32 %v10636_v8, %v10625_v28  ;;  %v3773_v11 = vadd.s32 1, %v10626_v14 }
 0x606   : > { %v3841_v41 = vor.u32 %v3840_v52, %v3839_v50  ;;  %v3845_v31 = vshll.u32 %v13004_v5, %v3833_v13  ;;  %v3846_v7 = vshrl.u32 %v12901_v36, %v3834_v54  ;;  %v3848_v57 = vshll.u32 %v12901_v36, %v3833_v13 }
 0x607   : > { %v3844_v4 = vor.u32 %v3843_v27, %v3842_v17  ;;  %v3849_v46 = vshrl.u32 %v12898_v21, %v3834_v54  ;;  %v3479_v44 = vsub.s32 4294967266, %v10650_v32  ;;  %v10666_v61 = vsub.s32 %v3671_v20, %v3674_v25 }
 0x608   : > { %v3835_v24 = vshrl.u32 %v12897_v26, %v3834_v54  ;;  %v10671_v42 = vadd.f32 %v10473_v15, %v10512_v6  ;;  %v3583_v58 = vsub.s32 4294967266, %v10654_v37  ;;  %v3847_v52 = vor.u32 %v3846_v7, %v3845_v31 }
 0x609   : > { %v3850_v23 = vor.u32 %v3849_v46, %v3848_v57  ;;  %vm3851_vm9 = vcmp.lt.s32.totalorder %v3832_v2, 1  ;;  %v3770_v27 = vmul.u32 %v10615_v43, %v3754_v49  ;;  %v3774_v13 = vsel %vm3772_vm4, %v3773_v11, %v10626_v14 }
 0x60a   : > { %vm3854_vm13 = vcmp.lt.s32.totalorder %v3832_v2, 4  ;;  %v3859_v20 = vsel %vm3851_vm9, %v3838_v1, %v3841_v41  ;;  %vm3853_vm0 = vcmp.lt.s32.totalorder %v3832_v2, 3  ;;  %v3863_v50 = vsel %vm3851_vm9, %v3841_v41, %v3844_v4 }
 0x60b   : > { %v3856_v54 = vsel %vm3854_vm13, %v3844_v4, 2102212464  ;;  %v3860_v25 = vsel %vm3854_vm13, %v3847_v52, 920167782  ;;  %v3677_v15 = vsub.s32 0, %v10666_v61  ;;  %vm3852_vm7 = vcmp.lt.s32.totalorder %v3832_v2, 2 }
 0x60c   : > { %v3861_v17 = vsel %vm3853_vm0, %v3844_v4, %v3860_v25  ;;  %v3864_v31 = vsel %vm3854_vm13, %v3850_v23, 1326507024  ;;  %v3775_v7 = vadd.s32 %v3774_v13, %v3770_v27  ;;  %v3855_v57 = vsel %vm3851_vm9, %v3835_v24, %v3838_v1 }
 0x60d   : > { %v3862_v43 = vsel %vm3852_vm7, %v3859_v20, %v3861_v17  ;;  %v3865_v49 = vsel %vm3853_vm0, %v3847_v52, %v3864_v31  ;;  %v3857_v46 = vsel %vm3853_vm0, %v3841_v41, %v3856_v54  ;;  %v3475_v39 = vsub.s32 32, %v10650_v32 }
 0x60e   : > { %v3866_v63 = vsel %vm3852_vm7, %v3863_v50, %v3865_v49  ;;  %v10683_v14 = vmul.u32.u64.low %v10644_v60, %v3862_v43  ;;  %v10684_v11 = vmul.u32.u64.high %v10644_v60, %v3862_v43, %v10683_v14  ;;  %v3459_v16 = vadd.s32 %v10445_v38, %v10461_v45 }
 0x60f   : > { %v3480_v4 = vadd.s32 127, %v3479_v44  ;;  %v10691_v23 = vmul.u32.u64.low %v10644_v60, %v3866_v63  ;;  %v10692_v1 = vmul.u32.u64.high %v10644_v60, %v3866_v63, %v10691_v23  ;;  %v6782_v24 = vmin.u32 %v3677_v15, %v10666_v61 }
 0x610   : > { %v3584_v41 = vadd.s32 127, %v3583_v58  ;;  %v3776_v52 = vadd.s32 536870912, %v3775_v7  ;;  %v3858_v27 = vsel %vm3852_vm7, %v3855_v57, %v3857_v46  ;;  %v3877_v13 = vadd.s32 1, %v10684_v11 }
 0x611   : > { %v4030_v20 = vand.u32 2139095040, %v10671_v42  ;;  %v3926_v54 = vand.u32 2139095040, %v10648_v9  ;;  %v3477_v25 = vshrl.u32 %v3459_v16, %v3475_v39  ;;  %v3563_v38 = vadd.s32 %v10485_v3, %v10492_v35 }
 0x612   : > { %v3579_v45 = vsub.s32 32, %v10654_v37  ;;  %v3481_v63 = vshll.u32 %v3480_v4, 23  ;;  %v3874_v44 = vmul.u32 %v10644_v60, %v3858_v27  ;;  %vm3876_vm10 = vc.u32 %v10692_v1, %v10683_v14 }
 0x613   : > { %v4031_v2 = vshrl.u32 %v4030_v20, 23  ;;  %v3679_v58 = vclz %v6782_v24  ;;  %v3585_v50 = vshll.u32 %v3584_v41, 23  ;;  %v10705_v15 = vshrl.u32 %v3776_v52, 30 }
 0x614   : > { %v3878_v17 = vsel %vm3876_vm10, %v3877_v13, %v10684_v11  ;;  %v3476_v39 = vshll.u32 %v10580_v62, %v10650_v32  ;;  %v3927_v35 = vshrl.u32 %v3926_v54, 23  ;;  %v3581_v31 = vshrl.u32 %v3563_v38, %v3579_v45 }
 0x615   : > { %v3879_v16 = vadd.s32 %v3878_v17, %v3874_v44  ;;  %v6797_v3 = vadd.s32 4294967169, %v4031_v2  ;;  %v3482_v43 = vor.u32 4788187, %v3481_v63  ;;  %v6783_v46 = vadd.s32 4294967294, %v3679_v58 }
 0x616   : > { %v3478_v57 = vor.u32 %v3477_v25, %v3476_v39  ;;  %v3580_v4 = vshll.u32 %v10587_v55, %v10654_v37  ;;  %v3586_v23 = vor.u32 4788187, %v3585_v50  ;;  %v3778_v24 = vshll.u32 %v10705_v15, 30 }
 0x617   : > { %v3880_v60 = vadd.s32 536870912, %v3879_v16  ;;  %v4037_v49 = vadd.s32 1, %v6797_v3  ;;  %v6793_v11 = vadd.s32 4294967169, %v3927_v35  ;;  %v3489_v62 = vsub.s32 4, %v10556_v22 }
 0x618   : > { %v3582_v32 = vor.u32 %v3581_v31, %v3580_v4  ;;  %vm3405_vm15 = vcmp.lt.s32.totalorder %v10360_v48, 0  ;;  %v3483_v27 = vand.u32 2147483647, %v3482_v43  ;;  %v3485_v54 = vcvt.s32.f32 %v3478_v57 }
 0x619   : > { %v10713_v41 = vshrl.u32 %v3880_v60, 30  ;;  %vm4038_vm14 = vcmp.gt.s32.totalorder %v4037_v49, 0  ;;  %vm6784_vm1 = vcmp.lt.s32.totalorder %v6783_v46, 0  ;;  %v3587_v55 = vand.u32 2147483647, %v3586_v23 }
 0x61a   : > { %v4039_v52 = vsel %vm4038_vm14, %v4037_v49, 0  ;;  %v10718_v37 = vsub.s32 %v3775_v7, %v3778_v24  ;;  %v12832_v38 = vand.u32 2147483647, %v10671_v42  ;;  %v3933_v63 = vadd.s32 1, %v6793_v11 }
 0x61b   : > { %v3882_v13 = vshll.u32 %v10713_v41, 30  ;;  %v4041_v20 = vand.u32 31, %v4039_v52  ;;  %v10726_v44 = vsel %vm3405_vm15, %v3489_v62, %v10556_v22  ;;  %v3589_v2 = vcvt.s32.f32 %v3582_v32 }
 0x61c   : > { %v12833_v50 = vand.u32 2147483647, %v10648_v9  ;;  %v10730_v17 = vmul.f32 %v3485_v54, %v3483_v27  ;;  %v10734_v7 = vadd.s32 %v10570_v29, %v10575_v33  ;;  %v10736_v39 = vsel %vm6784_vm1, 0, %v6783_v46 }
 0x61d   : > { %v10720_v25 = vsub.s32 %v3879_v16, %v3882_v13  ;;  %v4042_v45 = vsub.s32 32, %v4041_v20  ;;  %v10739_v3 = vmul.f32 %v3589_v2, %v3587_v55  ;;  %v3781_v22 = vsub.s32 0, %v10718_v37 }
 0x61e   : > { %v4034_v43 = vand.u32 8388607, %v12832_v38  ;;  %vm3934_vm2 = vcmp.gt.s32.totalorder %v3933_v63, 0  ;;  %v4044_v33 = vshll.u32 %v12897_v26, %v4041_v20  ;;  %v4047_v60 = vshll.u32 %v12899_v12, %v4041_v20 }
 0x61f   : > { %v3885_v16 = vsub.s32 0, %v10720_v25  ;;  %v4045_v35 = vshrl.u32 %v12899_v12, %v4042_v45  ;;  %v4048_v31 = vshrl.u32 %v12900_v0, %v4042_v45  ;;  %v4051_v29 = vshrl.u32 %v13004_v5, %v4042_v45 }
 0x620   : > { %v4053_v49 = vshll.u32 %v13004_v5, %v4041_v20  ;;  %v4054_v46 = vshrl.u32 %v12901_v36, %v4042_v45  ;;  %v4040_v24 = vshrl.u32 %v4039_v52, 5  ;;  %v4050_v11 = vshll.u32 %v12900_v0, %v4041_v20 }
 0x621   : > { %v6790_v57 = vmin.u32 %v3885_v16, %v10720_v25  ;;  %v4046_v62 = vor.u32 %v4045_v35, %v4044_v33  ;;  %v4049_v32 = vor.u32 %v4048_v31, %v4047_v60  ;;  %v3935_v13 = vsel %vm3934_vm2, %v3933_v63, 0 }
 0x622   : > { %v4055_v27 = vor.u32 %v4054_v46, %v4053_v49  ;;  %v10755_v54 = vmin.u32 %v3781_v22, %v10718_v37  ;;  %v4052_v2 = vor.u32 %v4051_v29, %v4050_v11  ;;  %v4057_v16 = vshrl.u32 %v12898_v21, %v4042_v45 }
 0x623   : > { %v3887_v23 = vclz %v6790_v57  ;;  %v3875_v38 = vadd.s32 %v10683_v14, %v10692_v1  ;;  %v4035_v58 = vor.u32 8388608, %v4034_v43  ;;  %v4056_v57 = vshll.u32 %v12901_v36, %v4041_v20 }
 0x624   : > { %v10763_v52 = vand.u32 8388607, %v12833_v50  ;;  %vm4059_vm6 = vcmp.lt.s32.totalorder %v4040_v24, 1  ;;  %vm4062_vm8 = vcmp.lt.s32.totalorder %v4040_v24, 4  ;;  %v3937_v63 = vand.u32 31, %v3935_v13 }
 0x625   : > { %v6791_v55 = vadd.s32 4294967294, %v3887_v23  ;;  %v4058_v35 = vor.u32 %v4057_v16, %v4056_v57  ;;  %v4067_v31 = vsel %vm4059_vm6, %v4046_v62, %v4049_v32  ;;  %v4068_v29 = vsel %vm4062_vm8, %v4055_v27, 920167782 }
 0x626   : > { %v4043_v1 = vshrl.u32 %v12897_v26, %v4042_v45  ;;  %vm4061_vm12 = vcmp.lt.s32.totalorder %v4040_v24, 3  ;;  %v4064_v20 = vsel %vm4062_vm8, %v4052_v2, 2102212464  ;;  %vm4060_vm4 = vcmp.lt.s32.totalorder %v4040_v24, 2 }
 0x627   : > { %vm6792_vm11 = vcmp.lt.s32.totalorder %v6791_v55, 0  ;;  %v4069_v43 = vsel %vm4061_vm12, %v4052_v2, %v4068_v29  ;;  %v4075_v33 = vshll.u32 %v4035_v58, 8  ;;  %v10772_v60 = vshrl.u32 %v3935_v13, 5 }
 0x628   : > { %v10765_v22 = vsel %vm6792_vm11, 0, %v6791_v55  ;;  %v3783_v49 = vclz %v10755_v54  ;;  %v4063_v46 = vsel %vm4059_vm6, %v4043_v1, %v4046_v62  ;;  %v4070_v23 = vsel %vm4060_vm4, %v4067_v31, %v4069_v43 }
 0x629   : > { %v3895_v14 = vsub.s32 4294967266, %v10765_v22  ;;  %v4071_v11 = vsel %vm4059_vm6, %v4049_v32, %v4052_v2  ;;  %v4065_v55 = vsel %vm4061_vm12, %v4049_v32, %v4064_v20  ;;  %v4072_v16 = vsel %vm4062_vm8, %v4058_v35, 1326507024 }
 0x62a   : > { %v10779_v45 = vmul.u32.u64.low %v4075_v33, %v4070_v23  ;;  %v10780_v57 = vmul.u32.u64.high %v4075_v33, %v4070_v23, %v10779_v45  ;;  %v4073_v29 = vsel %vm4061_vm12, %v4055_v27, %v4072_v16  ;;  %v3938_v58 = vsub.s32 32, %v3937_v63 }
 0x62b   : > { %v3896_v50 = vadd.s32 127, %v3895_v14  ;;  %v10785_v13 = vadd.f32 %v10479_v19, %v10512_v6  ;;  %v3891_v62 = vsub.s32 32, %v10765_v22  ;;  %v4074_v54 = vsel %vm4060_vm4, %v4071_v11, %v4073_v29 }
 0x62c   : > { %v3931_v2 = vor.u32 8388608, %v10763_v52  ;;  %vm3955_vm9 = vcmp.lt.s32.totalorder %v10772_v60, 1  ;;  %v4066_v32 = vsel %vm4060_vm4, %v4063_v46, %v4065_v55  ;;  %v3940_v27 = vshll.u32 %v12897_v26, %v3937_v63 }
 0x62d   : > { %v10792_v35 = vmul.u32.u64.low %v4075_v33, %v4074_v54  ;;  %v10793_v31 = vmul.u32.u64.high %v4075_v33, %v4074_v54, %v10792_v35  ;;  %v4085_v14 = vadd.s32 1, %v10780_v57  ;;  %v3941_v19 = vshrl.u32 %v12899_v12, %v3938_v58 }
 0x62e   : > { %v3943_v6 = vshll.u32 %v12899_v12, %v3937_v63  ;;  %v3944_v1 = vshrl.u32 %v12900_v0, %v3938_v58  ;;  %v3897_v20 = vshll.u32 %v3896_v50, 23  ;;  %v3946_v52 = vshll.u32 %v12900_v0, %v3937_v63 }
 0x62f   : > { %v3947_v43 = vshrl.u32 %v13004_v5, %v3938_v58  ;;  %v3950_v24 = vshrl.u32 %v12901_v36, %v3938_v58  ;;  %v3942_v46 = vor.u32 %v3941_v19, %v3940_v27  ;;  %v3949_v11 = vshll.u32 %v13004_v5, %v3937_v63 }
 0x630   : > { %v3945_v23 = vor.u32 %v3944_v1, %v3943_v6  ;;  %v3953_v55 = vshrl.u32 %v12898_v21, %v3938_v58  ;;  %vm3509_vm13 = vcmp.lt.s32.totalorder %v10363_v30, 0  ;;  %v4082_v16 = vmul.u32 %v4075_v33, %v4066_v32 }
 0x631   : > { %vm4084_vm0 = vc.u32 %v10793_v31, %v10779_v45  ;;  %v3948_v29 = vor.u32 %v3947_v43, %v3946_v52  ;;  %v3952_v50 = vshll.u32 %v12901_v36, %v3937_v63  ;;  %v3892_v54 = vshll.u32 %v10720_v25, %v10765_v22 }
 0x632   : > { %v3893_v35 = vshrl.u32 %v3875_v38, %v3891_v62  ;;  %v4086_v27 = vsel %vm4084_vm0, %v4085_v14, %v10780_v57  ;;  %v3951_v19 = vor.u32 %v3950_v24, %v3949_v11  ;;  %v3898_v6 = vor.u32 4788187, %v3897_v20 }
 0x633   : > { %v4087_v1 = vadd.s32 %v4086_v27, %v4082_v16  ;;  %v3954_v4 = vor.u32 %v3953_v55, %v3952_v50  ;;  %vm3958_vm7 = vcmp.lt.s32.totalorder %v10772_v60, 4  ;;  %v3939_v33 = vshrl.u32 %v12897_v26, %v3938_v58 }
 0x634   : > { %vm3957_vm10 = vcmp.lt.s32.totalorder %v10772_v60, 3  ;;  %v3963_v32 = vsel %vm3955_vm9, %v3942_v46, %v3945_v23  ;;  %v3964_v63 = vsel %vm3958_vm7, %v3951_v19, 920167782  ;;  %vm10821_vm14 = vcmp.le.f32.partialorder %v3403_v47, 0.7853982 }
 0x635   : > { %v4088_v38 = vadd.s32 536870912, %v4087_v1  ;;  %vm3956_vm1 = vcmp.lt.s32.totalorder %v10772_v60, 2  ;;  %v3960_v22 = vsel %vm3958_vm7, %v3948_v29, 2102212464  ;;  %v3965_v57 = vsel %vm3957_vm10, %v3948_v29, %v3964_v63 }
 0x636   : > { %v6787_v58 = vadd.s32 4294967294, %v3783_v49  ;;  %v3966_v62 = vsel %vm3956_vm1, %v3963_v32, %v3965_v57  ;;  %v3967_v14 = vsel %vm3955_vm9, %v3945_v23, %v3948_v29  ;;  %v3971_v47 = vshll.u32 %v3931_v2, 8 }
 0x637   : > { %vm10836_vm2 = vcmp.le.f32.partialorder %v3507_v18, 0.7853982  ;;  %v3894_v52 = vor.u32 %v3893_v35, %v3892_v54  ;;  %v10840_v43 = vshrl.u32 %v4088_v38, 30  ;;  %v3959_v24 = vsel %vm3955_vm9, %v3939_v33, %v3942_v46 }
 0x638   : > { %v3968_v49 = vsel %vm3958_vm7, %v3954_v4, 1326507024  ;;  %v3961_v11 = vsel %vm3957_vm10, %v3945_v23, %v3960_v22  ;;  %v10850_v55 = vmul.u32.u64.low %v3971_v47, %v3966_v62  ;;  %v10851_v18 = vmul.u32.u64.high %v3971_v47, %v3966_v62, %v10850_v55 }
 0x639   : > { %v3969_v2 = vsel %vm3957_vm10, %v3951_v19, %v3968_v49  ;;  %v13009_v16 = vsub.s32 4294967266, %v10736_v39  ;;  %v3899_v50 = vand.u32 2147483647, %v3898_v6  ;;  %v4090_v54 = vshll.u32 %v10840_v43, 30 }
 0x63a   : > { %v3970_v46 = vsel %vm3956_vm1, %v3967_v14, %v3969_v2  ;;  %v13010_v4 = vsub.s32 4, %v10565_v59  ;;  %v4134_v19 = vand.u32 2139095040, %v10785_v13  ;;  %v3683_v33 = vsub.s32 32, %v10736_v39 }
 0x63b   : > { %v3688_v29 = vadd.s32 127, %v13009_v16  ;;  %v10864_v35 = vmul.u32.u64.low %v3971_v47, %v3970_v46  ;;  %v10865_v27 = vmul.u32.u64.high %v3971_v47, %v3970_v46, %v10864_v35  ;;  %v3901_v32 = vcvt.s32.f32 %v3894_v52 }
 0x63c   : > { %v3594_v23 = vsel %vm3509_vm13, %v13010_v4, %v10565_v59  ;;  %v10869_v6 = vsub.s32 %v4087_v1, %v4090_v54  ;;  %v3962_v63 = vsel %vm3956_vm1, %v3959_v24, %v3961_v11  ;;  %v3487_v38 = vxor.u32 2147483648, %v10730_v17 }
 0x63d   : > { %vm6788_vm11 = vcmp.lt.s32.totalorder %v6787_v58, 0  ;;  %vm3821_vm6 = vcmp.lt.s32.totalorder %v10522_v51, 0  ;;  %v3981_v59 = vadd.s32 1, %v10851_v18  ;;  %v4135_v22 = vshrl.u32 %v4134_v19, 23 }
 0x63e   : > { %v3689_v57 = vshll.u32 %v3688_v29, 23  ;;  %v3591_v62 = vxor.u32 2147483648, %v10739_v3  ;;  %v3902_v14 = vmul.f32 %v3901_v32, %v3899_v50  ;;  %v4093_v49 = vsub.s32 0, %v10869_v6 }
 0x63f   : > { %v3492_v1 = vsel %vm10821_vm14, 0, %v10726_v44  ;;  %v3978_v60 = vmul.u32 %v3971_v47, %v3962_v63  ;;  %vm3980_vm8 = vc.u32 %v10865_v27, %v10850_v55  ;;  %v6801_v52 = vadd.s32 4294967169, %v4135_v22 }
 0x640   : > { %v3685_v24 = vshrl.u32 %v10734_v7, %v3683_v33  ;;  %v10884_v11 = vsel %vm6788_vm11, 0, %v6787_v58  ;;  %v6798_v2 = vmin.u32 %v4093_v49, %v10869_v6  ;;  %v3982_v16 = vsel %vm3980_vm8, %v3981_v59, %v10851_v18 }
 0x641   : > { %v3488_v29 = vsel %vm3405_vm15, %v3487_v38, %v10730_v17  ;;  %v3596_v44 = vsel %vm10836_vm2, 0, %v3594_v23  ;;  %v3983_v47 = vadd.s32 %v3982_v16, %v3978_v60  ;;  %v4141_v50 = vadd.s32 1, %v6801_v52 }
 0x642   : > { %v3684_v54 = vshll.u32 %v10666_v61, %v10736_v39  ;;  %v3690_v46 = vor.u32 4788187, %v3689_v57  ;;  %v3592_v7 = vsel %vm3509_vm13, %v3591_v62, %v10739_v3  ;;  %v3903_v58 = vxor.u32 2147483648, %v3902_v14 }
 0x643   : > { %v3791_v18 = vsub.s32 4294967266, %v10884_v11  ;;  %v4095_v4 = vclz %v6798_v2  ;;  %v3984_v35 = vadd.s32 536870912, %v3983_v47  ;;  %vm4142_vm12 = vcmp.gt.s32.totalorder %v4141_v50, 0 }
 0x644   : > { %v10902_v17 = vsel %vm10821_vm14, %v10360_v48, %v3488_v29  ;;  %v3686_v23 = vor.u32 %v3685_v24, %v3684_v54  ;;  %v3905_v19 = vsub.s32 4, %v10713_v41  ;;  %v4143_v61 = vsel %vm4142_vm12, %v4141_v50, 0 }
 0x645   : > { %v3595_v39 = vsel %vm10836_vm2, %v10363_v30, %v3592_v7  ;;  %v10908_v3 = vshrl.u32 %v3984_v35, 30  ;;  %v12834_v33 = vand.u32 2147483647, %v10785_v13  ;;  %v4145_v32 = vand.u32 31, %v4143_v61 }
 0x646   : > { %v10911_v63 = vadd.s32 3, %v3492_v1  ;;  %v3691_v38 = vand.u32 2147483647, %v3690_v46  ;;  %v13011_v25 = vand.u32 2147483647, %v10522_v51  ;;  %v3904_v22 = vsel %vm3821_vm6, %v3903_v58, %v3902_v14 }
 0x647   : > { %7371 = vcosq.f32 %v10902_v17  ;;  %v10922_v20 = vadd.s32 127, %v3791_v18  ;;  %v6799_v57 = vadd.s32 4294967294, %v4095_v4  ;;  %v3986_v62 = vshll.u32 %v10908_v3, 30 }
 0x648   : > { %vm10915_vm15 = vcmp.le.f32.partialorder %v13011_v25, 0.7853982  ;;  %v3693_v49 = vcvt.s32.f32 %v3686_v23  ;;  %7373 = vcosq.f32 %v3595_v39  ;;  %v10925_v1 = vadd.s32 3, %v3596_v44 }
 0x649   : > { %v10930_v60 = vsel %vm3821_vm6, %v3905_v19, %v10713_v41  ;;  %v3907_v14 = vsel %vm10915_vm15, %v10522_v51, %v3904_v22  ;;  %v10935_v52 = vsub.s32 %v3983_v47, %v3986_v62  ;;  %v4138_v24 = vand.u32 8388607, %v12834_v33 }
 0x64a   : > { %v4146_v2 = vsub.s32 32, %v4145_v32  ;;  %v10939_v16 = vmul.f32 %v3693_v49, %v3691_v38  ;;  %7375 = vsinq.f32 %v3595_v39  ;;  %v10943_v29 = vadd.s32 %v10625_v28, %v10636_v8 }
 0x64b   : > { %v3787_v41 = vsub.s32 32, %v10884_v11  ;;  %vm6800_vm4 = vcmp.lt.s32.totalorder %v6799_v57, 0  ;;  %v3989_v50 = vsub.s32 0, %v10935_v52  ;;  %7377 = vcosq.f32 %v3907_v14 }
 0x64c   : > { %v4149_v47 = vshrl.u32 %v12899_v12, %v4146_v2  ;;  %v4148_v46 = vshll.u32 %v12897_v26, %v4145_v32  ;;  %v4152_v7 = vshrl.u32 %v12900_v0, %v4146_v2  ;;  %v4139_v8 = vor.u32 8388608, %v4138_v24 }
 0x64d   : > { %v6794_v28 = vmin.u32 %v3989_v50, %v10935_v52  ;;  %v4151_v58 = vshll.u32 %v12899_v12, %v4145_v32  ;;  %v4155_v18 = vshrl.u32 %v13004_v5, %v4146_v2  ;;  %v10957_v4 = vsel %vm6800_vm4, 0, %v6799_v57 }
 0x64e   : > { %v10959_v35 = vshrl.u32 %v4143_v61, 5  ;;  %v4150_v23 = vor.u32 %v4149_v47, %v4148_v46  ;;  %v4154_v19 = vshll.u32 %v12900_v0, %v4145_v32  ;;  %v4157_v25 = vshll.u32 %v13004_v5, %v4145_v32 }
 0x64f   : > { %v3991_v39 = vclz %v6794_v28  ;;  %v4153_v38 = vor.u32 %v4152_v7, %v4151_v58  ;;  %v4158_v22 = vshrl.u32 %v12901_v36, %v4146_v2  ;;  %7379 = vsinq.f32 %v3907_v14 }
 0x650   : > { %v4156_v62 = vor.u32 %v4155_v18, %v4154_v19  ;;  %v4160_v49 = vshll.u32 %v12901_v36, %v4145_v32  ;;  %v4161_v24 = vshrl.u32 %v12898_v21, %v4146_v2  ;;  %v3979_v61 = vadd.s32 %v10850_v55, %v10865_v27 }
 0x651   : > { %v10966_v50 = vpop.eup %7371  ;;  %v6795_v57 = vadd.s32 4294967294, %v3991_v39  ;;  %v4159_v47 = vor.u32 %v4158_v22, %v4157_v25  ;;  %v10970_v46 = vshll.u32 %v4139_v8, 8  ;;  %v4103_v28 = vsub.s32 4294967266, %v10957_v4 }
 0x652   : > { %v10972_v7 = vpop.eup %7373  ;;  %v4162_v58 = vor.u32 %v4161_v24, %v4160_v49  ;;  %vm4163_vm9 = vcmp.lt.s32.totalorder %v10959_v35, 1  ;;  %vm4166_vm13 = vcmp.lt.s32.totalorder %v10959_v35, 4  ;;  %vm4165_vm7 = vcmp.lt.s32.totalorder %v10959_v35, 3 }
 0x653   : > { %vm6796_vm0 = vcmp.lt.s32.totalorder %v6795_v57, 0  ;;  %v4171_v32 = vsel %vm4163_vm9, %v4150_v23, %v4153_v38  ;;  %v4172_v55 = vsel %vm4166_vm13, %v4159_v47, 920167782  ;;  %vm3613_vm10 = vcmp.lt.s32.totalorder %v10452_v40, 0 }
 0x654   : > { %v10982_v27 = vpop.eup %7375  ;;  %v3994_v14 = vsel %vm6796_vm0, 0, %v6795_v57  ;;  %v4147_v8 = vshrl.u32 %v12897_v26, %v4146_v2  ;;  %vm4164_vm14 = vcmp.lt.s32.totalorder %v10959_v35, 2  ;;  %v4173_v18 = vsel %vm4165_vm7, %v4156_v62, %v4172_v55 }
 0x655   : > { %v3995_v19 = vsub.s32 32, %v3994_v14  ;;  %v3999_v39 = vsub.s32 4294967266, %v3994_v14  ;;  %v4168_v25 = vsel %vm4166_vm13, %v4156_v62, 2102212464  ;;  %v4174_v22 = vsel %vm4164_vm14, %v4171_v32, %v4173_v18  ;;  %v10993_v49 = vpop.eup %7377 }
 0x656   : > { %v4104_v24 = vadd.s32 127, %v4103_v28  ;;  %v4167_v57 = vsel %vm4163_vm9, %v4147_v8, %v4150_v23  ;;  %v4175_v2 = vsel %vm4163_vm9, %v4153_v38, %v4156_v62  ;;  %v4176_v55 = vsel %vm4166_vm13, %v4162_v58, 1326507024 }
 0x657   : > { %v3996_v33 = vshll.u32 %v10935_v52, %v3994_v14  ;;  %v3997_v54 = vshrl.u32 %v3979_v61, %v3995_v19  ;;  %v4000_v44 = vadd.s32 127, %v3999_v39  ;;  %v4177_v21 = vsel %vm4165_vm7, %v4159_v47, %v4176_v55 }
 0x658   : > { %v4169_v32 = vsel %vm4165_vm7, %v4153_v38, %v4168_v25  ;;  %v4178_v28 = vsel %vm4164_vm14, %v4175_v2, %v4177_v21  ;;  %v11009_v23 = vmul.u32.u64.low %v10970_v46, %v4174_v22  ;;  %v11010_v8 = vmul.u32.u64.high %v10970_v46, %v4174_v22, %v11009_v23 }
 0x659   : > { %v3695_v62 = vxor.u32 2147483648, %v10939_v16  ;;  %v3789_v52 = vshrl.u32 %v10943_v29, %v3787_v41  ;;  %vm3925_vm1 = vcmp.lt.s32.totalorder %v10648_v9, 0  ;;  %v3998_v61 = vor.u32 %v3997_v54, %v3996_v33  ;;  %v11016_v47 = vpop.eup %7379 }
 0x65a   : > { %v4001_v58 = vshll.u32 %v4000_v44, 23  ;;  %v3788_v38 = vshll.u32 %v10718_v37, %v10884_v11  ;;  %v4099_v21 = vsub.s32 32, %v10957_v4  ;;  %v13014_v19 = vshll.u32 %v10922_v20, 23 }
 0x65b   : > { %v11022_v14 = vmul.u32.u64.low %v10970_v46, %v4178_v28  ;;  %v11023_v18 = vmul.u32.u64.high %v10970_v46, %v4178_v28, %v11022_v14  ;;  %v13015_v29 = vsel %vm10915_vm15, 0, %v10930_v60  ;;  %v13016_v41 = vand.u32 2147483647, %v10648_v9 }
 0x65c   : > { %v3794_v39 = vor.u32 4788187, %v13014_v19  ;;  %v3912_v33 = vadd.s32 3, %v13015_v29  ;;  %v4002_v37 = vor.u32 4788187, %v4001_v58  ;;  %v4170_v11 = vsel %vm4164_vm14, %v4167_v57, %v4169_v32 }
 0x65d   : > { %vm11033_vm2 = vcmp.le.f32.partialorder %v13016_v41, 0.7853982  ;;  %7381 = vsinq.f32 %v10902_v17  ;;  %v4083_v20 = vadd.s32 %v10779_v45, %v10793_v31  ;;  %v4105_v54 = vshll.u32 %v4104_v24, 23 }
 0x65e   : > { %v4189_v59 = vadd.s32 1, %v11010_v8  ;;  %v3696_v60 = vsel %vm3613_vm10, %v3695_v62, %v10939_v16  ;;  %v3790_v25 = vor.u32 %v3789_v52, %v3788_v38  ;;  %v4003_v22 = vand.u32 2147483647, %v4002_v37 }
 0x65f   : > { %v4005_v2 = vcvt.s32.f32 %v3998_v61  ;;  %v4101_v55 = vshrl.u32 %v4083_v20, %v4099_v21  ;;  %v4009_v28 = vsub.s32 4, %v10908_v3  ;;  %v4186_v35 = vmul.u32 %v10970_v46, %v4170_v11 }
 0x660   : > { %vm4188_vm11 = vc.u32 %v11023_v18, %v11009_v23  ;;  %v3795_v17 = vand.u32 2147483647, %v3794_v39  ;;  %v3913_v45 = vand.u32 3, %v3912_v33  ;;  %v13019_v57 = vand.u32 2147483647, %v10452_v40 }
 0x661   : > { %v4006_v31 = vmul.f32 %v4005_v2, %v4003_v22  ;;  %v4190_v24 = vsel %vm4188_vm11, %v4189_v59, %v11010_v8  ;;  %v4100_v32 = vshll.u32 %v10869_v6, %v10957_v4  ;;  %v4106_v62 = vor.u32 4788187, %v4105_v54 }
 0x662   : > { %vm11053_vm6 = vcmp.le.f32.partialorder %v13019_v57, 0.7853982  ;;  %v4191_v52 = vadd.s32 %v4190_v24, %v4186_v35  ;;  %v11060_v46 = vand.u32 3, %v10911_v63  ;;  %v3601_v61 = vand.u32 3, %v10925_v1 }
 0x663   : > { %v3797_v58 = vcvt.s32.f32 %v3790_v25  ;;  %v4007_v38 = vxor.u32 2147483648, %v4006_v31  ;;  %v11066_v8 = vsel %vm11053_vm6, %v10452_v40, %v3696_v60  ;;  %vm3717_vm8 = vcmp.lt.s32.totalorder %v10539_v34, 0 }
 0x664   : > { %v4102_v21 = vor.u32 %v4101_v55, %v4100_v32  ;;  %v4010_v6 = vsel %vm3925_vm1, %v4009_v28, %v10908_v3  ;;  %v4192_v4 = vadd.s32 536870912, %v4191_v52  ;;  %vm3915_vm12 = vcmp.eq.s32.totalorder %v3913_v45, 0 }
 0x665   : > { %v3798_v14 = vmul.f32 %v3797_v58, %v3795_v17  ;;  %v4008_v63 = vsel %vm3925_vm1, %v4007_v38, %v4006_v31  ;;  %v3604_v1 = vxor.u32 2147483648, %v10982_v27  ;;  %v4107_v19 = vand.u32 2147483647, %v4106_v62  ;;  %v11110_v58 = vld [vmem:[#allocation5 + $0x8] sm:$0x3] }
 0x666   : > { %v4011_v39 = vsel %vm11033_vm2, %v10648_v9, %v4008_v63  ;;  %v11078_v29 = vshrl.u32 %v4192_v4, 30  ;;  %v3607_v33 = vxor.u32 2147483648, %v10972_v7  ;;  %v3916_v41 = vxor.u32 2147483648, %v11016_v47 }
 0x667   : > { %v3919_v3 = vxor.u32 2147483648, %v10993_v49  ;;  %v4012_v37 = vsel %vm11033_vm2, 0, %v4010_v6  ;;  %7383 = vcosq.f32 %v4011_v39  ;;  %v7382_v11 = vpop.eup %7381  ;;  %v13022_v20 = vand.u32 2147483647, %v10539_v34 }
 0x668   : > { %v4109_v59 = vcvt.s32.f32 %v4102_v21  ;;  %7385 = vsinq.f32 %v4011_v39  ;;  %v4194_v60 = vshll.u32 %v11078_v29, 30  ;;  %vm3603_vm4 = vcmp.eq.s32.totalorder %v3601_v61, 0 }
 0x669   : > { %vm11087_vm15 = vcmp.le.f32.partialorder %v13022_v20, 0.7853982  ;;  %v3799_v25 = vxor.u32 2147483648, %v3798_v14  ;;  %vm3911_vm9 = vweird.f32 %v10522_v51  ;;  %vm3918_vm13 = vcmp.eq.s32.totalorder %v3913_v45, 2 }
 0x66a   : > { %v3605_v44 = vsel %vm3603_vm4, %v10972_v7, %v3604_v1  ;;  %vm3606_vm0 = vcmp.eq.s32.totalorder %v3601_v61, 2  ;;  %v4110_v22 = vmul.f32 %v4109_v59, %v4107_v19  ;;  %v4016_v2 = vadd.s32 3, %v4012_v37 }
 0x66b   : > { %v11094_v55 = vsub.s32 %v4191_v52, %v4194_v60  ;;  %v3608_v28 = vsel %vm3606_vm0, %v3607_v33, %v10982_v27  ;;  %7387 = vcosq.f32 %v11066_v8  ;;  %v3917_v35 = vsel %vm3915_vm12, %v10993_v49, %v3916_v41 }
 0x66c   : > { %v3920_v17 = vsel %vm3918_vm13, %v3919_v3, %v11016_v47  ;;  %vm3602_vm7 = vcmp.lt.s32.totalorder %v3601_v61, 2  ;;  %v3500_v24 = vxor.u32 2147483648, %v7382_v11  ;;  %v3503_v7 = vxor.u32 2147483648, %v10966_v50  ;;  %v11107_v61 = vld [vmem:[#allocation5] sm:$0xff] }
 0x66d   : > { %v4197_v31 = vsub.s32 0, %v11094_v55  ;;  %v3800_v57 = vsel %vm3717_vm8, %v3799_v25, %v3798_v14  ;;  %vm3914_vm14 = vcmp.lt.s32.totalorder %v3913_v45, 2  ;;  %vm4029_vm1 = vcmp.lt.s32.totalorder %v10671_v42, 0 }
 0x66e   : > { %v3609_v27 = vsel %vm3602_vm7, %v3605_v44, %v3608_v28  ;;  %v7632_v32 = vmov 32   ;;  %v3921_v62 = vsel %vm3914_vm14, %v3917_v35, %v3920_v17  ;;  %v4111_v49 = vxor.u32 2147483648, %v4110_v22  ;;  %v13028_v17 = vld [vmem:[#allocation36_spill] sm:$0xff] }
 0x66f   : > { %7264 = vset.pattern.permute.xlu1 %v7632_v32  ;;  %7265 = vset.pattern.permute.xlu0 %v7632_v32  ;;  %v4017_v52 = vand.u32 3, %v4016_v2  ;;  %v6802_v47 = vmin.u32 %v4197_v31, %v11094_v55  ;;  %vm3499_vm2 = vcmp.eq.s32.totalorder %v11060_v46, 0  ;;  %vm3502_vm11 = vcmp.eq.s32.totalorder %v11060_v46, 2  ;;  %v13034_v32 = vld [vmem:[#allocation30_spill] sm:$0xff] }
 0x670   : > { %4244 = vperm.xlu1 %7264, %v11107_v61   ;;  %4248 = vperm.xlu0 %7265, %v11110_v58   ;;  %vm3599_vm12 = vweird.f32 %v10363_v30  ;;  %v3501_v38 = vsel %vm3499_vm2, %v10966_v50, %v3500_v24  ;;  %v3504_v21 = vsel %vm3502_vm11, %v3503_v7, %v7382_v11  ;;  %v3803_v4 = vsel %vm11087_vm15, %v10539_v34, %v3800_v57  ;;  %v13030_v24 = vld [vmem:[#allocation35_spill] sm:$0xff]  ;;  %v13032_v57 = vld [vmem:[#allocation37_spill] sm:$0xff] }
 0x671   : > { %v4199_v45 = vclz %v6802_v47  ;;  %v7384_v6 = vpop.eup %7383  ;;  %v13025_v14 = vand.u32 2147483647, %v10671_v42  ;;  %v3610_v1 = vsel %vm3599_vm12, nan, %v3609_v27  ;;  %vm4015_vm13 = vweird.f32 %v10648_v9 }
 0x672   : > { %v7386_v19 = vpop.eup %7385  ;;  %v3922_v30 = vsel %vm3911_vm9, nan, %v3921_v62  ;;  %v4023_v39 = vxor.u32 2147483648, %v7384_v6  ;;  %vm3498_vm0 = vcmp.lt.s32.totalorder %v11060_v46, 2  ;;  %v7633_v33 = vmov 33  }
 0x673   : > { %vm11122_vm4 = vcmp.le.f32.partialorder %v13025_v14, 0.7853982  ;;  %v6803_v50 = vadd.s32 4294967294, %v4199_v45  ;;  %v7634_v41 = vmov 66   ;;  %v4112_v3 = vsel %vm4029_vm1, %v4111_v49, %v4110_v22  ;;  %v11175_v14 = vpop.permute.xlu1 %4259 }
 0x674   : > { %7266 = vset.pattern.permute.xlu1 %v7633_v33  ;;  %7267 = vset.pattern.permute.xlu0 %v7634_v41  ;;  %v4020_v37 = vxor.u32 2147483648, %v7386_v19  ;;  %vm4022_vm7 = vcmp.eq.s32.totalorder %v4017_v52, 2  ;;  %v3505_v11 = vsel %vm3498_vm0, %v3501_v38, %v3504_v21  ;;  %vm4018_vm9 = vcmp.lt.s32.totalorder %v4017_v52, 2 }
 0x675   : > { %4434 = vperm.xlu1 %7266, %v11107_v61   ;;  %4458 = vperm.xlu0 %7267, %v11107_v61   ;;  %vm6804_vm14 = vcmp.lt.s32.totalorder %v6803_v50, 0  ;;  %vm4019_vm2 = vcmp.eq.s32.totalorder %v4017_v52, 0  ;;  %v4024_v51 = vsel %vm4022_vm7, %v4023_v39, %v7386_v19  ;;  %v11134_v20 = vpop.eup %7387  ;;  %v4187_v46 = vadd.s32 %v11009_v23, %v11023_v18 }
 0x676   : > { %v4202_v59 = vsel %vm6804_vm14, 0, %v6803_v50  ;;  %v4021_v60 = vsel %vm4019_vm2, %v7384_v6, %v4020_v37  ;;  %vm3495_vm11 = vweird.f32 %v10360_v48  ;;  %v4115_v28 = vsel %vm11122_vm4, %v10671_v42, %v4112_v3 }
 0x677   : > { %v4203_v25 = vsub.s32 32, %v4202_v59  ;;  %v4207_v44 = vsub.s32 4294967266, %v4202_v59  ;;  %v4025_v22 = vsel %vm4018_vm9, %v4021_v60, %v4024_v51  ;;  %v3506_v2 = vsel %vm3495_vm11, nan, %v3505_v11 }
 0x678   : > { %v4026_v35 = vsel %vm4015_vm13, nan, %v4025_v22  ;;  %v11145_v31 = vadd.f32 %v3610_v1, %v13028_v17  ;;  %v11148_v23 = vadd.f32 %v3922_v30, %v13030_v24  ;;  %v4204_v48 = vshll.u32 %v11094_v55, %v4202_v59 }
 0x679   : > { %4438 = vperm.xlu1 %7266, %v11110_v58   ;;  %5315 = vrot.lane.b32.xlu0 %v11110_v58, %s7635_s23  ;;  %v4205_v18 = vshrl.u32 %v4187_v46, %v4203_v25  ;;  %v4208_v7 = vadd.s32 127, %v4207_v44  ;;  %v11155_v27 = vadd.f32 %v4026_v35, %v13032_v57  ;;  %v3801_v9 = vsub.s32 4, %v10705_v15 }
 0x67a   : > { %13029 = vst [vmem:[#allocation31_spill] sm:$0xff] %v11145_v31  ;;  %13031 = vst [vmem:[#allocation33_spill] sm:$0xff] %v11148_v23  ;;  %7389 = vsinq.f32 %v3803_v4  ;;  %v11159_v62 = vadd.f32 %v3506_v2, %v13034_v32  ;;  %v4113_v49 = vsub.s32 4, %v10840_v43  ;;  %v3697_v38 = vsub.s32 4, %v10631_v10 }
 0x67b   : > { %13033 = vst [vmem:[#allocation28_spill] sm:$0xff] %v11155_v27  ;;  %v4206_v52 = vor.u32 %v4205_v18, %v4204_v48  ;;  %v4209_v47 = vshll.u32 %v4208_v7, 23  ;;  %v6934_v45 = vpack.c.bf16 %v11155_v27, %v11145_v31  ;;  %7391 = vcosq.f32 %v4115_v28 }
 0x67c   : > { %13035 = vst [vmem:[#allocation36_spill] sm:$0xff] %v11159_v62  ;;  %v6937_v55 = vpack.c.bf16 %v11148_v23, %v11159_v62  ;;  %7393 = vsinq.f32 %v4115_v28  ;;  %v3802_v6 = vsel %vm3717_vm8, %v3801_v9, %v10705_v15  ;;  %v4114_v1 = vsel %vm4029_vm1, %v4113_v49, %v10840_v43 }
 0x67d   : > { %7268 = vset.pattern.permute.xlu1 %v7634_v41  ;;  %v4210_v21 = vor.u32 4788187, %v4209_v47  ;;  %6936 = vmatprep.subr.msk.bf16.mxu0 %vm8318_vm5, %v6934_v45  ;;  %7395 = vcosq.f32 %v3803_v4  ;;  %v4213_v30 = vcvt.s32.f32 %v4206_v52  ;;  %v3804_v15 = vsel %vm11087_vm15, 0, %v3802_v6 }
 0x67e   : > { %4462 = vperm.xlu1 %7268, %v11110_v58   ;;  %6939 = vmatpush1.bf16.msk.msra.mxu0 %vm8318_vm5, %v6937_v55  ;;  %7397 = vsinq.f32 %v11066_v8  ;;  %v3698_v58 = vsel %vm3613_vm10, %v3697_v38, %v10631_v10  ;;  %v4217_v50 = vsub.s32 4, %v11078_v29  ;;  %v4116_v43 = vsel %vm11122_vm4, 0, %v4114_v1  ;;  %v11194_v8 = vpop.permute.xlu0 %4261 }
 0x67f   : > { %v4211_v19 = vand.u32 2147483647, %v4210_v21  ;;  %v3700_v54 = vsel %vm11053_vm6, 0, %v3698_v58  ;;  %v3808_v33 = vadd.s32 3, %v3804_v15  ;;  %vm4133_vm10 = vcmp.lt.s32.totalorder %v10785_v13, 0 }
 0x680   : > { %v4120_v41 = vadd.s32 3, %v4116_v43  ;;  %v13036_v3 = vand.u32 2147483647, %v10785_v13  ;;  %v4218_v37 = vsel %vm4133_vm10, %v4217_v50, %v11078_v29  ;;  %v3704_v46 = vadd.s32 3, %v3700_v54 }
 0x681   : > { %v4214_v4 = vmul.f32 %v4213_v30, %v4211_v19  ;;  %6807 = vmatmul.mubr.msk.f32.vlgmr.msra.gmra.mrb[12].mxu0 %vm1155_vm3, %v11175_v14  ;;  %v3809_v29 = vand.u32 3, %v3808_v33  ;;  %v3711_v18 = vxor.u32 2147483648, %v11134_v20  ;;  %vm4119_vm9 = vweird.f32 %v10671_v42  ;;  %v13043_v33 = vld [vmem:[#allocation32_spill] sm:$0xff] }
 0x682   : > { %5313 = vrot.lane.b32.xlu1 %v11107_v61, %s7635_s23  ;;  %4349 = vmatprep.mubr.f32.mxu0 %v12999_v53  ;;  %vm11201_vm8 = vcmp.le.f32.partialorder %v13036_v3, 0.7853982  ;;  %v4121_v44 = vand.u32 3, %v4120_v41  ;;  %v3705_v35 = vand.u32 3, %v3704_v46  ;;  %vm3807_vm11 = vweird.f32 %v10539_v34  ;;  %v13045_v41 = vld [vmem:[#allocation34_spill] sm:$0xff] }
 0x683   : > { %v4215_v10 = vxor.u32 2147483648, %v4214_v4  ;;  %v4220_v60 = vsel %vm11201_vm8, 0, %v4218_v37  ;;  %vm3811_vm1 = vcmp.eq.s32.totalorder %v3809_v29, 0  ;;  %vm3814_vm12 = vcmp.eq.s32.totalorder %v3809_v29, 2 }
 0x684   : > { %v7390_v39 = vpop.eup %7389  ;;  %v4224_v17 = vadd.s32 3, %v4220_v60  ;;  %vm4123_vm6 = vcmp.eq.s32.totalorder %v4121_v44, 0  ;;  %vm4126_vm15 = vcmp.eq.s32.totalorder %v4121_v44, 2  ;;  %vm3707_vm4 = vcmp.eq.s32.totalorder %v3705_v35, 0  ;;  %v13049_v60 = vld [vmem:[#allocation25_spill] sm:$0xff] }
 0x685   : > { %v4216_v63 = vsel %vm4133_vm10, %v4215_v10, %v4214_v4  ;;  %6808 = vmatmul.mubr.msk.f32.gmra.mrb[14].mxu0 %vm1155_vm3, %v11194_v8  ;;  %v7392_v11 = vpop.eup %7391  ;;  %v3812_v28 = vxor.u32 2147483648, %v7390_v39  ;;  %vm3710_vm13 = vcmp.eq.s32.totalorder %v3705_v35, 2  ;;  %vm4122_vm0 = vcmp.lt.s32.totalorder %v4121_v44, 2  ;;  %v13039_v10 = vld [vmem:[#allocation29_spill] sm:$0xff] }
 0x686   : > { %v4219_v16 = vsel %vm11201_vm8, %v10785_v13, %v4216_v63  ;;  %5397 = vmatprep.mubr.f32.mxu0 %v12999_v53  ;;  %v7394_v51 = vpop.eup %7393  ;;  %v4127_v2 = vxor.u32 2147483648, %v7392_v11  ;;  %v4225_v32 = vand.u32 3, %v4224_v17  ;;  %vm3810_vm7 = vcmp.lt.s32.totalorder %v3809_v29, 2  ;;  %v13050_v29 = vld [vmem:[#allocation24_spill] sm:$0xff] }
 0x687   : > { %7399 = vcosq.f32 %v4219_v16  ;;  %v7396_v59 = vpop.eup %7395  ;;  %v4124_v22 = vxor.u32 2147483648, %v7394_v51  ;;  %vm3706_vm14 = vcmp.lt.s32.totalorder %v3705_v35, 2 }
 0x688   : > { %7401 = vsinq.f32 %v4219_v16  ;;  %v7398_v25 = vpop.eup %7397  ;;  %v3815_v24 = vxor.u32 2147483648, %v7396_v59  ;;  %v4128_v57 = vsel %vm4126_vm15, %v4127_v2, %v7394_v51  ;;  %v3813_v9 = vsel %vm3811_vm1, %v7396_v59, %v3812_v28  ;;  %v13048_v51 = vld [vmem:[#allocation18_spill] sm:$0xff] }
 0x689   : > { %v3708_v48 = vxor.u32 2147483648, %v7398_v25  ;;  %v4125_v7 = vsel %vm4123_vm6, %v7392_v11, %v4124_v22  ;;  %v3712_v47 = vsel %vm3710_vm13, %v3711_v18, %v7398_v25  ;;  %vm4230_vm2 = vcmp.eq.s32.totalorder %v4225_v32, 2  ;;  %v13047_v11 = vld [vmem:[#allocation20_spill] sm:$0xff] }
 0x68a   : > { %v3816_v49 = vsel %vm3814_vm12, %v3815_v24, %v7390_v39  ;;  %v4129_v55 = vsel %vm4122_vm0, %v4125_v7, %v4128_v57  ;;  %vm4227_vm10 = vcmp.eq.s32.totalorder %v4225_v32, 0  ;;  %vm4226_vm8 = vcmp.lt.s32.totalorder %v4225_v32, 2  ;;  %v13041_v39 = vld [vmem:[#allocation38_spill] sm:$0xff] }
 0x68b   : > { %v3709_v52 = vsel %vm3707_vm4, %v11134_v20, %v3708_v48  ;;  %v3817_v21 = vsel %vm3810_vm7, %v3813_v9, %v3816_v49  ;;  %v4130_v30 = vsel %vm4119_vm9, nan, %v4129_v55  ;;  %vm3703_vm6 = vweird.f32 %v10452_v40 }
 0x68c   : > { %v3713_v19 = vsel %vm3706_vm14, %v3709_v52, %v3712_v47  ;;  %v3818_v15 = vsel %vm3807_vm11, nan, %v3817_v21  ;;  %vm4223_vm15 = vweird.f32 %v10785_v13  ;;  %v11221_v42 = vadd.f32 %v4130_v30, %v13039_v10  ;;  %v13051_v10 = vld [vmem:[#allocation21_spill] sm:$0xff] }
 0x68d   : > { %v3714_v50 = vsel %vm3703_vm6, nan, %v3713_v19  ;;  %v11224_v54 = vadd.f32 %v3818_v15, %v13041_v39 }
 0x68e   : > { %13040 = vst [vmem:[#allocation35_spill] sm:$0xff] %v11221_v42  ;;  %v11230_v3 = vadd.f32 %v3714_v50, %v13045_v41 }
 0x68f   : > { %13042 = vst [vmem:[#allocation37_spill] sm:$0xff] %v11224_v54 }
 0x690   : > { %13046 = vst [vmem:[#allocation29_spill] sm:$0xff] %v11230_v3  ;;  %v6943_v13 = vpack.c.bf16 %v11221_v42, %v11230_v3 }
 0x691   : > { %v7400_v45 = vpop.eup %7399 }
 0x692   : > { %v7402_v38 = vpop.eup %7401  ;;  %v4231_v6 = vxor.u32 2147483648, %v7400_v45 }
 0x693   : > { %v4228_v1 = vxor.u32 2147483648, %v7402_v38 }
 0x694   : > { %v4232_v58 = vsel %vm4230_vm2, %v4231_v6, %v7402_v38 }
 0x695   : > { %v4229_v20 = vsel %vm4227_vm10, %v7400_v45, %v4228_v1 }
 0x696   : > { %v4233_v4 = vsel %vm4226_vm8, %v4229_v20, %v4232_v58 }
 0x697   : > { %v4234_v43 = vsel %vm4223_vm15, nan, %v4233_v4 }
 0x698   : > { %v11227_v34 = vadd.f32 %v4234_v43, %v13043_v33  ;;  %v13052_v33 = vld [vmem:[#allocation19_spill] sm:$0xff] }
 0x69a   : > { %13044 = vst [vmem:[#allocation30_spill] sm:$0xff] %v11227_v34  ;;  %v6940_v40 = vpack.c.bf16 %v11227_v34, %v11224_v54 }
 0x69c   : > { %6942 = vmatprep.subr.msk.bf16.mxu1 %vm8318_vm5, %v6940_v40  ;;  %v13053_v40 = vld [vmem:[#allocation27_spill] sm:$0xff] }
 0x69d   : > { %6945 = vmatpush1.bf16.msk.msra.mxu1 %vm8318_vm5, %v6943_v13 }
 0x6a0   : > { %6811 = vmatmul.mubr.msk.f32.vlgmr.msra.gmra.mrb[12].mxu1 %vm1155_vm3, %v11175_v14 }
 0x6a1   : > { %4426 = vmatprep.mubr.f32.mxu1 %v12999_v53 }
 0x6a4   : > { %6812 = vmatmul.mubr.msk.f32.gmra.mrb[14].mxu1 %vm1155_vm3, %v11194_v8 }
 0x6a5   : > { %5474 = vmatprep.mubr.f32.mxu1 %v12999_v53 }
 0x6ef   : > { %v4245_v61 = vpop.permute.xlu1 %4244  ;;  %v11246_v63 = vpop.permute.xlu0 %4248 }
 0x6f0   : > { %v4251_v16 = vmul.f32 %v4245_v61, %v13047_v11  ;;  %v4252_v25 = vmul.f32 %v4245_v61, %v13049_v60  ;;  %v4255_v47 = vmul.f32 %v11246_v63, %v13047_v11  ;;  %v4253_v39 = vmul.f32 %v4245_v61, %v13051_v10  ;;  %v13054_v11 = vld [vmem:[#allocation26_spill] sm:$0xff] }
 0x6f1   : > { %v11281_v13 = vmul.f32 %v4245_v61, %v13053_v40 }
 0x6f4   : > { %v4435_v37 = vpop.permute.xlu1 %4434  ;;  %v11252_v28 = vpop.permute.xlu0 %4458 }
 0x6f5   : > { %v4441_v46 = vmul.f32 %v4435_v37, %v13048_v51  ;;  %v4442_v14 = vmul.f32 %v4435_v37, %v13050_v29  ;;  %v11278_v41 = vmul.f32 %v4435_v37, %v13052_v33 }
 0x6f8   : > { %v11272_v1 = vpop.permute.xlu1 %4438 }
 0x6f9   : > { %v4445_v4 = vmul.f32 %v11272_v1, %v13048_v51 }
 0x754   : > { %v4345_v59 = vpop.f32.mrb[12].mxu0 }
 0x755   : > { %v4346_v44 = vadd.f32 %v4345_v59, %v4251_v16  ;;  %v4347_v22 = vpop.f32.mrb[13].mxu0  ;;  %v11284_v16 = vmul.f32 %v4435_v37, %v13054_v11 }
 0x756   : > { %v4348_v2 = vadd.f32 %v4347_v22, %v4252_v25 }
 0x757   : > { %v4449_v8 = vadd.f32 %v4441_v46, %v4346_v44 }
 0x758   : > { %v4450_v35 = vadd.f32 %v4442_v14, %v4348_v2  ;;  %v4351_v17 = vpop.f32.mrb[14].mxu0 }
 0x759   : > { %v11255_v24 = vadd.f32 %v11252_v28, %v4449_v8  ;;  %v11257_v48 = vpop.f32.mrb[15].mxu0  ;;  %v4352_v30 = vadd.f32 %v4351_v17, %v4255_v47 }
 0x75a   : > { %v11260_v18 = vadd.f32 %v11252_v28, %v4450_v35 }
 0x75b   : > { %v12837_v7 = vand.u32 2147483647, %v11255_v24  ;;  %v4476_v57 = vand.u32 2139095040, %v11255_v24  ;;  %v11286_v46 = vadd.f32 %v4445_v4, %v4352_v30 }
 0x75c   : > { %v12836_v9 = vand.u32 2147483647, %v11260_v18  ;;  %v4580_v32 = vand.u32 2139095040, %v11260_v18 }
 0x75d   : > { %v4477_v49 = vshrl.u32 %v4476_v57, 23  ;;  %v4480_v55 = vand.u32 8388607, %v12837_v7 }
 0x75e   : > { %v4581_v52 = vshrl.u32 %v4580_v32, 23  ;;  %v4584_v21 = vand.u32 8388607, %v12836_v9 }
 0x75f   : > { %v6813_v45 = vadd.s32 4294967169, %v4477_v49  ;;  %v4481_v58 = vor.u32 8388608, %v4480_v55  ;;  %v13055_v49 = vmov 1326507024  }
 0x760   : > { %v6817_v38 = vadd.s32 4294967169, %v4581_v52  ;;  %v4585_v20 = vor.u32 8388608, %v4584_v21 }
 0x761   : > { %v4483_v6 = vadd.s32 1, %v6813_v45  ;;  %v11288_v14 = vshll.u32 %v4481_v58, 8 }
 0x762   : > { %v4587_v19 = vadd.s32 1, %v6817_v38  ;;  %v11292_v2 = vshll.u32 %v4585_v20, 8 }
 0x763   : > { %vm4484_vm1 = vcmp.gt.s32.totalorder %v4483_v6, 0 }
 0x764   : > { %v4485_v15 = vsel %vm4484_vm1, %v4483_v6, 0  ;;  %vm4588_vm12 = vcmp.gt.s32.totalorder %v4587_v19, 0 }
 0x765   : > { %v4487_v50 = vand.u32 31, %v4485_v15  ;;  %v4589_v43 = vsel %vm4588_vm12, %v4587_v19, 0  ;;  %v4486_v59 = vshrl.u32 %v4485_v15, 5 }
 0x766   : > { %v4591_v22 = vand.u32 31, %v4589_v43 }
 0x767   : > { %v4488_v25 = vsub.s32 32, %v4487_v50  ;;  %v4490_v51 = vshll.u32 %v12897_v26, %v4487_v50  ;;  %v4493_v44 = vshll.u32 %v12899_v12, %v4487_v50  ;;  %v4496_v37 = vshll.u32 %v12900_v0, %v4487_v50 }
 0x768   : > { %v4499_v17 = vshll.u32 %v13004_v5, %v4487_v50  ;;  %v4502_v32 = vshll.u32 %v12901_v36, %v4487_v50  ;;  %vm4505_vm4 = vcmp.lt.s32.totalorder %v4486_v59, 1  ;;  %vm4508_vm13 = vcmp.lt.s32.totalorder %v4486_v59, 4 }
 0x769   : > { %v4491_v8 = vshrl.u32 %v12899_v12, %v4488_v25  ;;  %v4494_v61 = vshrl.u32 %v12900_v0, %v4488_v25  ;;  %v4497_v35 = vshrl.u32 %v13004_v5, %v4488_v25  ;;  %v4500_v57 = vshrl.u32 %v12901_v36, %v4488_v25 }
 0x76a   : > { %v4503_v52 = vshrl.u32 %v13055_v49, %v4488_v25  ;;  %v4592_v6 = vsub.s32 32, %v4591_v22  ;;  %v4489_v19 = vshrl.u32 %v12897_v26, %v4488_v25  ;;  %vm4506_vm0 = vcmp.lt.s32.totalorder %v4486_v59, 2 }
 0x76b   : > { %v4492_v47 = vor.u32 %v4491_v8, %v4490_v51  ;;  %v4495_v45 = vor.u32 %v4494_v61, %v4493_v44  ;;  %v4498_v55 = vor.u32 %v4497_v35, %v4496_v37  ;;  %v4501_v38 = vor.u32 %v4500_v57, %v4499_v17 }
 0x76c   : > { %v4504_v21 = vor.u32 %v4503_v52, %v4502_v32  ;;  %vm4507_vm7 = vcmp.lt.s32.totalorder %v4486_v59, 3  ;;  %v4595_v61 = vshrl.u32 %v12899_v12, %v4592_v6  ;;  %v4598_v37 = vshrl.u32 %v12900_v0, %v4592_v6 }
 0x76d   : > { %v4510_v30 = vsel %vm4508_vm13, %v4498_v55, 2102212464  ;;  %v4513_v58 = vsel %vm4505_vm4, %v4492_v47, %v4495_v45  ;;  %v4517_v15 = vsel %vm4505_vm4, %v4495_v45, %v4498_v55  ;;  %v4514_v20 = vsel %vm4508_vm13, %v4501_v38, 920167782 }
 0x76e   : > { %v4518_v4 = vsel %vm4508_vm13, %v4504_v21, 1326507024  ;;  %v4509_v50 = vsel %vm4505_vm4, %v4489_v19, %v4492_v47  ;;  %v4511_v9 = vsel %vm4507_vm7, %v4495_v45, %v4510_v30  ;;  %v4515_v7 = vsel %vm4507_vm7, %v4498_v55, %v4514_v20 }
 0x76f   : > { %v4519_v51 = vsel %vm4507_vm7, %v4501_v38, %v4518_v4  ;;  %v4516_v44 = vsel %vm4506_vm0, %v4513_v58, %v4515_v7  ;;  %v4590_v32 = vshrl.u32 %v4589_v43, 5  ;;  %v4594_v52 = vshll.u32 %v12897_v26, %v4591_v22 }
 0x770   : > { %v4520_v8 = vsel %vm4506_vm0, %v4517_v15, %v4519_v51  ;;  %v11312_v17 = vmul.u32.u64.low %v11288_v14, %v4516_v44  ;;  %v11313_v57 = vmul.u32.u64.high %v11288_v14, %v4516_v44, %v11312_v17  ;;  %v4600_v7 = vshll.u32 %v12900_v0, %v4591_v22 }
 0x771   : > { %v11308_v25 = vmul.u32.u64.low %v11288_v14, %v4520_v8  ;;  %v11309_v35 = vmul.u32.u64.high %v11288_v14, %v4520_v8, %v11308_v25  ;;  %v4601_v47 = vshrl.u32 %v13004_v5, %v4592_v6  ;;  %v4512_v55 = vsel %vm4506_vm0, %v4509_v50, %v4511_v9 }
 0x772   : > { %v4597_v38 = vshll.u32 %v12899_v12, %v4591_v22  ;;  %v4604_v21 = vshrl.u32 %v12901_v36, %v4592_v6  ;;  %v4607_v19 = vshrl.u32 %v13055_v49, %v4592_v6  ;;  %v4596_v15 = vor.u32 %v4595_v61, %v4594_v52 }
 0x773   : > { %v4422_v45 = vpop.f32.mrb[12].mxu1  ;;  %v4602_v20 = vor.u32 %v4601_v47, %v4600_v7  ;;  %v4603_v43 = vshll.u32 %v13004_v5, %v4591_v22  ;;  %vm4530_vm14 = vc.u32 %v11309_v35, %v11312_v17  ;;  %v4531_v4 = vadd.s32 1, %v11313_v57 }
 0x774   : > { %v4423_v30 = vadd.f32 %v4422_v45, %v4253_v39  ;;  %v4424_v58 = vpop.f32.mrb[13].mxu1  ;;  %v4599_v51 = vor.u32 %v4598_v37, %v4597_v38  ;;  %v4606_v9 = vshll.u32 %v12901_v36, %v4591_v22  ;;  %v4528_v44 = vmul.u32 %v11288_v14, %v4512_v55 }
 0x775   : > { %v4425_v50 = vadd.f32 %v4424_v58, %v11281_v13  ;;  %v4605_v39 = vor.u32 %v4604_v21, %v4603_v43  ;;  %v4532_v61 = vsel %vm4530_vm14, %v4531_v4, %v11313_v57  ;;  %v4593_v25 = vshrl.u32 %v12897_v26, %v4592_v6 }
 0x776   : > { %v4451_v59 = vadd.f32 %v11278_v41, %v4423_v30  ;;  %v4608_v52 = vor.u32 %v4607_v19, %v4606_v9  ;;  %vm4612_vm9 = vcmp.lt.s32.totalorder %v4590_v32, 4  ;;  %v4533_v7 = vadd.s32 %v4532_v61, %v4528_v44  ;;  %v11352_v9 = vpop.permute.xlu1 %4462 }
 0x777   : > { %v11331_v8 = vpop.f32.mrb[14].mxu1  ;;  %vm4609_vm2 = vcmp.lt.s32.totalorder %v4590_v32, 1  ;;  %vm4610_vm11 = vcmp.lt.s32.totalorder %v4590_v32, 2  ;;  %v4614_v22 = vsel %vm4612_vm9, %v4602_v20, 2102212464  ;;  %vm4611_vm10 = vcmp.lt.s32.totalorder %v4590_v32, 3 }
 0x778   : > { %v11336_v37 = vpop.f32.mrb[15].mxu1  ;;  %v11339_v41 = vadd.f32 %v11252_v28, %v4451_v59  ;;  %v4617_v13 = vsel %vm4609_vm2, %v4596_v15, %v4599_v51  ;;  %v4618_v14 = vsel %vm4612_vm9, %v4605_v39, 920167782  ;;  %v4452_v57 = vadd.f32 %v11284_v16, %v4425_v50 }
 0x779   : > { %v4534_v47 = vadd.s32 536870912, %v4533_v7  ;;  %v4613_v6 = vsel %vm4609_vm2, %v4593_v25, %v4596_v15  ;;  %v4619_v45 = vsel %vm4611_vm10, %v4602_v20, %v4618_v14  ;;  %v4615_v55 = vsel %vm4611_vm10, %v4599_v51, %v4614_v22 }
 0x77a   : > { %v4620_v38 = vsel %vm4610_vm11, %v4617_v13, %v4619_v45  ;;  %v4621_v21 = vsel %vm4609_vm2, %v4599_v51, %v4602_v20  ;;  %v4622_v19 = vsel %vm4612_vm9, %v4608_v52, 1326507024  ;;  %v4684_v15 = vand.u32 2139095040, %v11339_v41 }
 0x77b   : > { %v11345_v30 = vshrl.u32 %v4534_v47, 30  ;;  %v4623_v58 = vsel %vm4611_vm10, %v4605_v39, %v4622_v19  ;;  %v11348_v43 = vmul.u32.u64.low %v11292_v2, %v4620_v38  ;;  %v11349_v4 = vmul.u32.u64.high %v11292_v2, %v4620_v38, %v11348_v43 }
 0x77c   : > { %v4624_v16 = vsel %vm4610_vm11, %v4621_v21, %v4623_v58  ;;  %v4256_v59 = vmul.f32 %v11246_v63, %v13049_v60  ;;  %v11364_v44 = vadd.f32 %v11252_v28, %v4452_v57  ;;  %v4616_v39 = vsel %vm4610_vm11, %v4613_v6, %v4615_v55 }
 0x77d   : > { %v4536_v20 = vshll.u32 %v11345_v30, 30  ;;  %v11360_v51 = vmul.u32.u64.low %v11292_v2, %v4624_v16  ;;  %v11361_v50 = vmul.u32.u64.high %v11292_v2, %v4624_v16, %v11360_v51  ;;  %v4685_v61 = vshrl.u32 %v4684_v15, 23 }
 0x77e   : > { %v11369_v25 = vadd.f32 %v11352_v9, %v11286_v46  ;;  %v4635_v60 = vadd.s32 1, %v11349_v4  ;;  %v4354_v13 = vadd.f32 %v11257_v48, %v4256_v59  ;;  %v4632_v47 = vmul.u32 %v11292_v2, %v4616_v39 }
 0x77f   : > { %v11371_v52 = vsub.s32 %v4533_v7, %v4536_v20  ;;  %v6821_v22 = vadd.s32 4294967169, %v4685_v61  ;;  %vm4634_vm8 = vc.u32 %v11361_v50, %v11348_v43  ;;  %v4446_v28 = vmul.f32 %v11272_v1, %v13050_v29 }
 0x780   : > { %v4636_v46 = vsel %vm4634_vm8, %v4635_v60, %v11349_v4  ;;  %v4788_v7 = vand.u32 2139095040, %v11364_v44  ;;  %v4892_v57 = vand.u32 2139095040, %v11369_v25  ;;  %v12838_v2 = vand.u32 2147483647, %v11339_v41 }
 0x781   : > { %v4539_v14 = vsub.s32 0, %v11371_v52  ;;  %v4691_v32 = vadd.s32 1, %v6821_v22  ;;  %v4637_v48 = vadd.s32 %v4636_v46, %v4632_v47  ;;  %v4454_v45 = vadd.f32 %v4446_v28, %v4354_v13 }
 0x782   : > { %v12839_v21 = vand.u32 2147483647, %v11369_v25  ;;  %v4789_v29 = vshrl.u32 %v4788_v7, 23  ;;  %v4893_v58 = vshrl.u32 %v4892_v57, 23  ;;  %v11391_v15 = vmul.f32 %v11246_v63, %v13051_v10 }
 0x783   : > { %v6814_v6 = vmin.u32 %v4539_v14, %v11371_v52  ;;  %vm4692_vm6 = vcmp.gt.s32.totalorder %v4691_v32, 0  ;;  %v4638_v55 = vadd.s32 536870912, %v4637_v48  ;;  %v11395_v59 = vmul.f32 %v11272_v1, %v13052_v33 }
 0x784   : > { %v4693_v38 = vsel %vm4692_vm6, %v4691_v32, 0  ;;  %v4688_v39 = vand.u32 8388607, %v12838_v2  ;;  %v11401_v61 = vadd.f32 %v11352_v9, %v4454_v45  ;;  %v4896_v60 = vand.u32 8388607, %v12839_v21 }
 0x785   : > { %v4695_v19 = vand.u32 31, %v4693_v38  ;;  %v4541_v4 = vclz %v6814_v6  ;;  %v11387_v16 = vshrl.u32 %v4638_v55, 30  ;;  %v6825_v13 = vadd.s32 4294967169, %v4789_v29 }
 0x786   : > { %v6829_v14 = vadd.s32 4294967169, %v4893_v58  ;;  %v4689_v45 = vor.u32 8388608, %v4688_v39  ;;  %v4694_v55 = vshrl.u32 %v4693_v38, 5  ;;  %v4897_v54 = vor.u32 8388608, %v4896_v60 }
 0x787   : > { %v4696_v20 = vsub.s32 32, %v4695_v19  ;;  %v4640_v51 = vshll.u32 %v11387_v16, 30  ;;  %v6815_v33 = vadd.s32 4294967294, %v4541_v4  ;;  %v4698_v47 = vshll.u32 %v12897_v26, %v4695_v19 }
 0x788   : > { %v4701_v28 = vshll.u32 %v12899_v12, %v4695_v19  ;;  %v4704_v46 = vshll.u32 %v12900_v0, %v4695_v19  ;;  %v4707_v57 = vshll.u32 %v13004_v5, %v4695_v19  ;;  %v4710_v29 = vshll.u32 %v12901_v36, %v4695_v19 }
 0x789   : > { %v4699_v22 = vshrl.u32 %v12899_v12, %v4696_v20  ;;  %v4702_v10 = vshrl.u32 %v12900_v0, %v4696_v20  ;;  %v11410_v32 = vsub.s32 %v4637_v48, %v4640_v51  ;;  %v4705_v7 = vshrl.u32 %v13004_v5, %v4696_v20 }
 0x78a   : > { %v4708_v6 = vshrl.u32 %v12901_v36, %v4696_v20  ;;  %v4711_v58 = vshrl.u32 %v13055_v49, %v4696_v20  ;;  %v4899_v48 = vadd.s32 1, %v6829_v14  ;;  %v4996_v51 = vand.u32 2139095040, %v11401_v61 }
 0x78b   : > { %v4700_v4 = vor.u32 %v4699_v22, %v4698_v47  ;;  %v4703_v2 = vor.u32 %v4702_v10, %v4701_v28  ;;  %v4706_v21 = vor.u32 %v4705_v7, %v4704_v46  ;;  %vm6816_vm15 = vcmp.lt.s32.totalorder %v6815_v33, 0 }
 0x78c   : > { %v4709_v3 = vor.u32 %v4708_v6, %v4707_v57  ;;  %v4712_v34 = vor.u32 %v4711_v58, %v4710_v29  ;;  %v4643_v42 = vsub.s32 0, %v11410_v32  ;;  %v12845_v62 = vand.u32 2147483647, %v11364_v44 }
 0x78d   : > { %v4795_v39 = vadd.s32 1, %v6825_v13  ;;  %vm4713_vm1 = vcmp.lt.s32.totalorder %v4694_v55, 1  ;;  %vm4715_vm12 = vcmp.lt.s32.totalorder %v4694_v55, 3  ;;  %vm4716_vm4 = vcmp.lt.s32.totalorder %v4694_v55, 4 }
 0x78e   : > { %v4729_v38 = vshll.u32 %v4689_v45, 8  ;;  %v4721_v19 = vsel %vm4713_vm1, %v4700_v4, %v4703_v2  ;;  %v4722_v22 = vsel %vm4716_vm4, %v4709_v3, 920167782  ;;  %v4725_v10 = vsel %vm4713_vm1, %v4703_v2, %v4706_v21 }
 0x78f   : > { %v4726_v47 = vsel %vm4716_vm4, %v4712_v34, 1326507024  ;;  %v11422_v60 = vsel %vm6816_vm15, 0, %v6815_v33  ;;  %v4697_v14 = vshrl.u32 %v12897_v26, %v4696_v20  ;;  %v4718_v28 = vsel %vm4716_vm4, %v4706_v21, 2102212464 }
 0x790   : > { %v4723_v46 = vsel %vm4715_vm12, %v4706_v21, %v4722_v22  ;;  %v6818_v7 = vmin.u32 %v4643_v42, %v11410_v32  ;;  %vm4714_vm13 = vcmp.lt.s32.totalorder %v4694_v55, 2  ;;  %v4727_v13 = vsel %vm4715_vm12, %v4709_v3, %v4726_v47 }
 0x791   : > { %vm4796_vm0 = vcmp.gt.s32.totalorder %v4795_v39, 0  ;;  %v4724_v57 = vsel %vm4714_vm13, %v4721_v19, %v4723_v46  ;;  %v4728_v6 = vsel %vm4714_vm13, %v4725_v10, %v4727_v13  ;;  %v11432_v34 = vand.u32 8388607, %v12845_v62 }
 0x792   : > { %v4797_v33 = vsel %vm4796_vm0, %v4795_v39, 0  ;;  %v4717_v20 = vsel %vm4713_vm1, %v4697_v14, %v4700_v4  ;;  %v4719_v45 = vsel %vm4715_vm12, %v4703_v2, %v4718_v28  ;;  %v4545_v42 = vsub.s32 32, %v11422_v60 }
 0x793   : > { %v11436_v21 = vmul.u32.u64.low %v4729_v38, %v4728_v6  ;;  %v11437_v29 = vmul.u32.u64.high %v4729_v38, %v4728_v6, %v11436_v21  ;;  %v11442_v3 = vmul.f32 %v11246_v63, %v13053_v40  ;;  %vm4900_vm7 = vcmp.gt.s32.totalorder %v4899_v48, 0 }
 0x794   : > { %v11444_v58 = vshll.u32 %v4897_v54, 8  ;;  %v4645_v19 = vclz %v6818_v7  ;;  %v11446_v22 = vmul.u32.u64.low %v4729_v38, %v4724_v57  ;;  %v11447_v10 = vmul.u32.u64.high %v4729_v38, %v4724_v57, %v11446_v22 }
 0x795   : > { %v4799_v4 = vand.u32 31, %v4797_v33  ;;  %v11452_v2 = vadd.f32 %v11331_v8, %v11391_v15  ;;  %v4529_v39 = vadd.s32 %v11312_v17, %v11309_v35  ;;  %v4720_v47 = vsel %vm4714_vm13, %v4717_v20, %v4719_v45 }
 0x796   : > { %v4997_v63 = vshrl.u32 %v4996_v51, 23  ;;  %v4549_v40 = vsub.s32 4294967266, %v11422_v60  ;;  %v11460_v54 = vadd.s32 %v11348_v43, %v11361_v50  ;;  %v4793_v14 = vor.u32 8388608, %v11432_v34 }
 0x797   : > { %v4800_v28 = vsub.s32 32, %v4799_v4  ;;  %v4546_v46 = vshll.u32 %v11371_v52, %v11422_v60  ;;  %v4547_v8 = vshrl.u32 %v4529_v39, %v4545_v42  ;;  %vm4738_vm14 = vc.u32 %v11437_v29, %v11446_v22 }
 0x798   : > { %v11468_v35 = vsel %vm4900_vm7, %v4899_v48, 0  ;;  %v6819_v17 = vadd.s32 4294967294, %v4645_v19  ;;  %v4736_v15 = vmul.u32 %v4729_v38, %v4720_v47  ;;  %v4739_v55 = vadd.s32 1, %v11447_v10 }
 0x799   : > { %v4803_v43 = vshrl.u32 %v12899_v12, %v4800_v28  ;;  %v4798_v50 = vshrl.u32 %v4797_v33, 5  ;;  %v4802_v51 = vshll.u32 %v12897_v26, %v4799_v4  ;;  %v4805_v7 = vshll.u32 %v12899_v12, %v4799_v4 }
 0x79a   : > { %v4806_v52 = vshrl.u32 %v12900_v0, %v4800_v28  ;;  %v4550_v60 = vadd.s32 127, %v4549_v40  ;;  %v4740_v13 = vsel %vm4738_vm14, %v4739_v55, %v11447_v10  ;;  %v4808_v57 = vshll.u32 %v12900_v0, %v4799_v4 }
 0x79b   : > { %v4809_v48 = vshrl.u32 %v13004_v5, %v4800_v28  ;;  %v4741_v6 = vadd.s32 %v4740_v13, %v4736_v15  ;;  %v4804_v38 = vor.u32 %v4803_v43, %v4802_v51  ;;  %v4811_v20 = vshll.u32 %v13004_v5, %v4799_v4 }
 0x79c   : > { %v4807_v34 = vor.u32 %v4806_v52, %v4805_v7  ;;  %v4812_v33 = vshrl.u32 %v12901_v36, %v4800_v28  ;;  %v4814_v21 = vshll.u32 %v12901_v36, %v4799_v4  ;;  %v4815_v42 = vshrl.u32 %v13055_v49, %v4800_v28 }
 0x79d   : > { %v4810_v45 = vor.u32 %v4809_v48, %v4808_v57  ;;  %vm6820_vm9 = vcmp.lt.s32.totalorder %v6819_v17, 0  ;;  %v4742_v19 = vadd.s32 536870912, %v4741_v6  ;;  %v4801_v10 = vshrl.u32 %v12897_v26, %v4800_v28 }
 0x79e   : > { %vm4820_vm2 = vcmp.lt.s32.totalorder %v4798_v50, 4  ;;  %v4813_v39 = vor.u32 %v4812_v33, %v4811_v20  ;;  %v4816_v47 = vor.u32 %v4815_v42, %v4814_v21  ;;  %vm4817_vm11 = vcmp.lt.s32.totalorder %v4798_v50, 1 }
 0x79f   : > { %v4822_v40 = vsel %vm4820_vm2, %v4810_v45, 2102212464  ;;  %v11483_v15 = vshrl.u32 %v4742_v19, 30  ;;  %vm4819_vm10 = vcmp.lt.s32.totalorder %v4798_v50, 3  ;;  %v4821_v55 = vsel %vm4817_vm11, %v4801_v10, %v4804_v38 }
 0x7a0   : > { %v4825_v43 = vsel %vm4817_vm11, %v4804_v38, %v4807_v34  ;;  %v4823_v51 = vsel %vm4819_vm10, %v4807_v34, %v4822_v40  ;;  %v4826_v7 = vsel %vm4820_vm2, %v4813_v39, 920167782  ;;  %v4829_v52 = vsel %vm4817_vm11, %v4807_v34, %v4810_v45 }
 0x7a1   : > { %13056 = vst [vmem:[#allocation38_spill] sm:$0xff] %v11483_v15  ;;  %v4830_v4 = vsel %vm4820_vm2, %v4816_v47, 1326507024  ;;  %v4551_v13 = vshll.u32 %v4550_v60, 23  ;;  %v4744_v57 = vshll.u32 %v11483_v15, 30  ;;  %vm4818_vm8 = vcmp.lt.s32.totalorder %v4798_v50, 2 }
 0x7a2   : > { %v4827_v48 = vsel %vm4819_vm10, %v4810_v45, %v4826_v7  ;;  %v11486_v28 = vor.u32 %v4547_v8, %v4546_v46  ;;  %v4831_v33 = vsel %vm4819_vm10, %v4813_v39, %v4830_v4  ;;  %v4833_v21 = vshll.u32 %v4793_v14, 8 }
 0x7a3   : > { %v4828_v20 = vsel %vm4818_vm8, %v4825_v43, %v4827_v48  ;;  %v11489_v42 = vsel %vm6820_vm9, 0, %v6819_v17  ;;  %v11491_v19 = vsub.s32 %v4741_v6, %v4744_v57  ;;  %v4824_v38 = vsel %vm4818_vm8, %v4821_v55, %v4823_v51 }
 0x7a4   : > { %v4832_v10 = vsel %vm4818_vm8, %v4829_v52, %v4831_v33  ;;  %v4903_v60 = vand.u32 31, %v11468_v35  ;;  %v11497_v47 = vadd.s32 4294967169, %v4997_v63  ;;  %v4552_v50 = vor.u32 4788187, %v4551_v13 }
 0x7a5   : > { %v11493_v40 = vmul.u32.u64.low %v4833_v21, %v4832_v10  ;;  %v11494_v34 = vmul.u32.u64.high %v4833_v21, %v4832_v10, %v11493_v40  ;;  %v4747_v46 = vsub.s32 0, %v11491_v19  ;;  %v4555_v14 = vcvt.s32.f32 %v11486_v28 }
 0x7a6   : > { %v11500_v8 = vmul.u32.u64.low %v4833_v21, %v4828_v20  ;;  %v11501_v45 = vmul.u32.u64.high %v4833_v21, %v4828_v20, %v11500_v8  ;;  %v4653_v17 = vsub.s32 4294967266, %v11489_v42  ;;  %v4840_v6 = vmul.u32 %v4833_v21, %v4824_v38 }
 0x7a7   : > { %v4904_v39 = vsub.s32 32, %v4903_v60  ;;  %v6822_v55 = vmin.u32 %v4747_v46, %v11491_v19  ;;  %v4902_v43 = vshrl.u32 %v11468_v35, 5  ;;  %v4906_v63 = vshll.u32 %v12897_v26, %v4903_v60 }
 0x7a8   : > { %v4909_v51 = vshll.u32 %v12899_v12, %v4903_v60  ;;  %vm4842_vm6 = vc.u32 %v11494_v34, %v11500_v8  ;;  %v4912_v52 = vshll.u32 %v12900_v0, %v4903_v60  ;;  %v4915_v4 = vshll.u32 %v13004_v5, %v4903_v60 }
 0x7a9   : > { %v4907_v7 = vshrl.u32 %v12899_v12, %v4904_v39  ;;  %v4749_v13 = vclz %v6822_v55  ;;  %v4843_v57 = vadd.s32 1, %v11501_v45  ;;  %v4910_v48 = vshrl.u32 %v12900_v0, %v4904_v39 }
 0x7aa   : > { %v4913_v35 = vshrl.u32 %v13004_v5, %v4904_v39  ;;  %v4916_v20 = vshrl.u32 %v12901_v36, %v4904_v39  ;;  %v4918_v33 = vshll.u32 %v12901_v36, %v4903_v60  ;;  %v4919_v21 = vshrl.u32 %v13055_v49, %v4904_v39 }
 0x7ab   : > { %v4908_v28 = vor.u32 %v4907_v7, %v4906_v63  ;;  %v6823_v38 = vadd.s32 4294967294, %v4749_v13  ;;  %v4844_v10 = vsel %vm4842_vm6, %v4843_v57, %v11501_v45  ;;  %v4911_v40 = vor.u32 %v4910_v48, %v4909_v51 }
 0x7ac   : > { %v4914_v46 = vor.u32 %v4913_v35, %v4912_v52  ;;  %v4553_v62 = vand.u32 2147483647, %v4552_v50  ;;  %v4845_v55 = vadd.s32 %v4844_v10, %v4840_v6  ;;  %v4917_v27 = vor.u32 %v4916_v20, %v4915_v4 }
 0x7ad   : > { %v4920_v31 = vor.u32 %v4919_v21, %v4918_v33  ;;  %v4649_v23 = vsub.s32 32, %v11489_v42  ;;  %v4654_v53 = vadd.s32 127, %v4653_v17  ;;  %vm4921_vm15 = vcmp.lt.s32.totalorder %v4902_v43, 1 }
 0x7ae   : > { %vm4924_vm1 = vcmp.lt.s32.totalorder %v4902_v43, 4  ;;  %v4846_v63 = vadd.s32 536870912, %v4845_v55  ;;  %v4929_v15 = vsel %vm4921_vm15, %v4908_v28, %v4911_v40  ;;  %vm6824_vm12 = vcmp.lt.s32.totalorder %v6823_v38, 0 }
 0x7af   : > { %v4926_v7 = vsel %vm4924_vm1, %v4914_v46, 2102212464  ;;  %v4930_v60 = vsel %vm4924_vm1, %v4917_v27, 920167782  ;;  %v4905_v13 = vshrl.u32 %v12897_v26, %v4904_v39  ;;  %vm4922_vm4 = vcmp.lt.s32.totalorder %v4902_v43, 2 }
 0x7b0   : > { %vm4923_vm13 = vcmp.lt.s32.totalorder %v4902_v43, 3  ;;  %v11524_v45 = vshrl.u32 %v4846_v63, 30  ;;  %v4933_v6 = vsel %vm4921_vm15, %v4911_v40, %v4914_v46  ;;  %v4934_v51 = vsel %vm4924_vm1, %v4920_v31, 1326507024 }
 0x7b1   : > { %v4931_v50 = vsel %vm4923_vm13, %v4914_v46, %v4930_v60  ;;  %v4925_v52 = vsel %vm4921_vm15, %v4905_v13, %v4908_v28  ;;  %v4927_v4 = vsel %vm4923_vm13, %v4911_v40, %v4926_v7  ;;  %v4935_v57 = vsel %vm4923_vm13, %v4917_v27, %v4934_v51 }
 0x7b2   : > { %v4932_v17 = vsel %vm4922_vm4, %v4929_v15, %v4931_v50  ;;  %v4848_v48 = vshll.u32 %v11524_v45, 30  ;;  %v4936_v35 = vsel %vm4922_vm4, %v4933_v6, %v4935_v57  ;;  %v4556_v39 = vmul.f32 %v4555_v14, %v4553_v62 }
 0x7b3   : > { %v11530_v20 = vmul.u32.u64.low %v11444_v58, %v4932_v17  ;;  %v11531_v33 = vmul.u32.u64.high %v11444_v58, %v4932_v17, %v11530_v20  ;;  %v11535_v21 = vmul.u32.u64.low %v11444_v58, %v4936_v35  ;;  %v11536_v10 = vmul.u32.u64.high %v11444_v58, %v4936_v35, %v11535_v21 }
 0x7b4   : > { %v4993_v31 = vand.u32 2147483647, %v11401_v61  ;;  %v4651_v28 = vshrl.u32 %v11460_v54, %v4649_v23  ;;  %v4752_v27 = vsel %vm6824_vm12, 0, %v6823_v38  ;;  %v4928_v15 = vsel %vm4922_vm4, %v4925_v52, %v4927_v4 }
 0x7b5   : > { %v5003_v40 = vadd.s32 1, %v11497_v47  ;;  %v4455_v46 = vadd.f32 %v11395_v59, %v11452_v2  ;;  %v4559_v63 = vsub.s32 4, %v11345_v30  ;;  %v4655_v62 = vshll.u32 %v4654_v53, 23 }
 0x7b6   : > { %v4431_v14 = vadd.f32 %v11336_v37, %v11442_v3  ;;  %v4650_v7 = vshll.u32 %v11410_v32, %v11489_v42  ;;  %v11550_v60 = vsub.s32 %v4845_v55, %v4848_v48  ;;  %v4947_v23 = vadd.s32 1, %v11531_v33 }
 0x7b7   : > { %vm5004_vm0 = vcmp.gt.s32.totalorder %v5003_v40, 0  ;;  %v4757_v54 = vsub.s32 4294967266, %v4752_v27  ;;  %v4944_v47 = vmul.u32 %v11444_v58, %v4928_v15  ;;  %vm4946_vm7 = vc.u32 %v11536_v10, %v11530_v20 }
 0x7b8   : > { %v5005_v59 = vsel %vm5004_vm0, %v5003_v40, 0  ;;  %v4557_v2 = vxor.u32 2147483648, %v4556_v39  ;;  %v4652_v53 = vor.u32 %v4651_v28, %v4650_v7  ;;  %v4948_v43 = vsel %vm4946_vm7, %v4947_v23, %v11531_v33 }
 0x7b9   : > { %v5007_v37 = vand.u32 31, %v5005_v59  ;;  %vm4475_vm14 = vcmp.lt.s32.totalorder %v11255_v24, 0  ;;  %v4656_v32 = vor.u32 4788187, %v4655_v62  ;;  %v4448_v3 = vmul.f32 %v11272_v1, %v13054_v11 }
 0x7ba   : > { %v4949_v42 = vadd.s32 %v4948_v43, %v4944_v47  ;;  %v4753_v38 = vsub.s32 32, %v4752_v27  ;;  %v4851_v55 = vsub.s32 0, %v11550_v60  ;;  %v5000_v58 = vand.u32 8388607, %v4993_v31 }
 0x7bb   : > { %v5008_v13 = vsub.s32 32, %v5007_v37  ;;  %v11564_v50 = vsel %vm4475_vm14, %v4559_v63, %v11345_v30  ;;  %v4758_v6 = vadd.s32 127, %v4757_v54  ;;  %v11567_v51 = vadd.f32 %v11352_v9, %v4455_v46 }
 0x7bc   : > { %v4950_v52 = vadd.s32 536870912, %v4949_v42  ;;  %v11569_v4 = vsel %vm4475_vm14, %v4557_v2, %v4556_v39  ;;  %v4659_v17 = vcvt.s32.f32 %v4652_v53  ;;  %v4737_v1 = vadd.s32 %v11446_v22, %v11437_v29 }
 0x7bd   : > { %v11573_v11 = vadd.f32 %v4448_v3, %v4431_v14  ;;  %v4657_v57 = vand.u32 2147483647, %v4656_v32  ;;  %v4754_v48 = vshll.u32 %v11491_v19, %v4752_v27  ;;  %v5017_v30 = vshrl.u32 %v13004_v5, %v5008_v13 }
 0x7be   : > { %v11576_v35 = vshrl.u32 %v4950_v52, 30  ;;  %v4755_v33 = vshrl.u32 %v4737_v1, %v4753_v38  ;;  %v6826_v21 = vmin.u32 %v4851_v55, %v11550_v60  ;;  %v5011_v28 = vshrl.u32 %v12899_v12, %v5008_v13 }
 0x7bf   : > { %v5014_v39 = vshrl.u32 %v12900_v0, %v5008_v13  ;;  %v4759_v15 = vshll.u32 %v4758_v6, 23  ;;  %v5016_v29 = vshll.u32 %v12900_v0, %v5007_v37  ;;  %v5020_v22 = vshrl.u32 %v12901_v36, %v5008_v13 }
 0x7c0   : > { %v4952_v40 = vshll.u32 %v11576_v35, 30  ;;  %v5001_v46 = vor.u32 8388608, %v5000_v58  ;;  %v5006_v19 = vshrl.u32 %v5005_v59, 5  ;;  %v5010_v27 = vshll.u32 %v12897_v26, %v5007_v37 }
 0x7c1   : > { %v5013_v63 = vshll.u32 %v12899_v12, %v5007_v37  ;;  %v11587_v62 = vmul.f32 %v4659_v17, %v4657_v57  ;;  %v5018_v7 = vor.u32 %v5017_v30, %v5016_v29  ;;  %v5019_v23 = vshll.u32 %v13004_v5, %v5007_v37 }
 0x7c2   : > { %v11589_v14 = vsub.s32 %v4949_v42, %v4952_v40  ;;  %v11592_v54 = vor.u32 %v4755_v33, %v4754_v48  ;;  %v4853_v47 = vclz %v6826_v21  ;;  %v5012_v2 = vor.u32 %v5011_v28, %v5010_v27 }
 0x7c3   : > { %v5015_v53 = vor.u32 %v5014_v39, %v5013_v63  ;;  %v13057_v43 = vand.u32 2147483647, %v11255_v24  ;;  %v5021_v3 = vor.u32 %v5020_v22, %v5019_v23  ;;  %v5022_v42 = vshll.u32 %v12901_v36, %v5007_v37 }
 0x7c4   : > { %v4955_v32 = vsub.s32 0, %v11589_v14  ;;  %v5023_v38 = vshrl.u32 %v13055_v49, %v5008_v13  ;;  %v4760_v55 = vor.u32 4788187, %v4759_v15  ;;  %vm5028_vm2 = vcmp.lt.s32.totalorder %v5006_v19, 4 }
 0x7c5   : > { %vm11596_vm9 = vcmp.le.f32.partialorder %v13057_v43, 0.7853982  ;;  %v5041_v58 = vshll.u32 %v5001_v46, 8  ;;  %v5100_v6 = vand.u32 2139095040, %v11567_v51  ;;  %vm5025_vm11 = vcmp.lt.s32.totalorder %v5006_v19, 1 }
 0x7c6   : > { %v6830_v52 = vmin.u32 %v4955_v32, %v11589_v14  ;;  %v5024_v17 = vor.u32 %v5023_v38, %v5022_v42  ;;  %v5030_v1 = vsel %vm5028_vm2, %v5018_v7, 2102212464  ;;  %v6827_v57 = vadd.s32 4294967294, %v4853_v47 }
 0x7c7   : > { %v5009_v48 = vshrl.u32 %v12897_v26, %v5008_v13  ;;  %vm5026_vm10 = vcmp.lt.s32.totalorder %v5006_v19, 2  ;;  %v5033_v30 = vsel %vm5025_vm11, %v5012_v2, %v5015_v53  ;;  %vm5027_vm8 = vcmp.lt.s32.totalorder %v5006_v19, 3 }
 0x7c8   : > { %v4957_v33 = vclz %v6830_v52  ;;  %v5034_v37 = vsel %vm5028_vm2, %v5021_v3, 920167782  ;;  %v5037_v21 = vsel %vm5025_vm11, %v5015_v53, %v5018_v7  ;;  %v5031_v39 = vsel %vm5027_vm8, %v5015_v53, %v5030_v1 }
 0x7c9   : > { %v5029_v28 = vsel %vm5025_vm11, %v5009_v48, %v5012_v2  ;;  %v5035_v15 = vsel %vm5027_vm8, %v5018_v7, %v5034_v37  ;;  %v5038_v40 = vsel %vm5028_vm2, %v5024_v17, 1326507024  ;;  %v5101_v27 = vshrl.u32 %v5100_v6, 23 }
 0x7ca   : > { %v6831_v29 = vadd.s32 4294967294, %v4957_v33  ;;  %v5036_v22 = vsel %vm5026_vm10, %v5033_v30, %v5035_v15  ;;  %v5039_v46 = vsel %vm5027_vm8, %v5021_v3, %v5038_v40  ;;  %v12852_v47 = vand.u32 2147483647, %v11567_v51 }
 0x7cb   : > { %v5040_v63 = vsel %vm5026_vm10, %v5037_v21, %v5039_v46  ;;  %v11611_v13 = vmul.u32.u64.low %v5041_v58, %v5036_v22  ;;  %v11612_v23 = vmul.u32.u64.high %v5041_v58, %v5036_v22, %v11611_v13  ;;  %v6837_v7 = vadd.s32 4294967169, %v5101_v27 }
 0x7cc   : > { %vm6832_vm6 = vcmp.lt.s32.totalorder %v6831_v29, 0  ;;  %v11616_v43 = vmul.u32.u64.low %v5041_v58, %v5040_v63  ;;  %v11617_v2 = vmul.u32.u64.high %v5041_v58, %v5040_v63, %v11616_v43  ;;  %vm4579_vm15 = vcmp.lt.s32.totalorder %v11260_v18, 0 }
 0x7cd   : > { %vm6828_vm1 = vcmp.lt.s32.totalorder %v6827_v57, 0  ;;  %v5032_v32 = vsel %vm5026_vm10, %v5029_v28, %v5031_v39  ;;  %v11628_v3 = vsel %vm11596_vm9, %v11255_v24, %v11569_v4  ;;  %v4661_v42 = vxor.u32 2147483648, %v11587_v62 }
 0x7ce   : > { %v4960_v38 = vsel %vm6832_vm6, 0, %v6831_v29  ;;  %v5107_v6 = vadd.s32 1, %v6837_v7  ;;  %v4761_v52 = vand.u32 2147483647, %v4760_v55  ;;  %v4763_v17 = vcvt.s32.f32 %v11592_v54 }
 0x7cf   : > { %v11634_v1 = vadd.f32 %v11352_v9, %v11573_v11  ;;  %v5051_v19 = vadd.s32 1, %v11612_v23  ;;  %v11637_v48 = vsel %vm6828_vm1, 0, %v6827_v57  ;;  %v5048_v30 = vmul.u32 %v5041_v58, %v5032_v32 }
 0x7d0   : > { %vm5050_vm12 = vc.u32 %v11617_v2, %v11611_v13  ;;  %v5104_v4 = vand.u32 8388607, %v12852_v47  ;;  %v4961_v33 = vsub.s32 32, %v4960_v38  ;;  %v4965_v37 = vsub.s32 4294967266, %v4960_v38 }
 0x7d1   : > { %v5052_v55 = vsel %vm5050_vm12, %v5051_v19, %v11612_v23  ;;  %vm5108_vm4 = vcmp.gt.s32.totalorder %v5107_v6, 0  ;;  %7403 = vcosq.f32 %v11628_v3  ;;  %v11648_v9 = vsel %vm4579_vm15, %v4661_v42, %v11587_v62 }
 0x7d2   : > { %v5053_v11 = vadd.s32 %v5052_v55, %v5048_v30  ;;  %v5109_v54 = vsel %vm5108_vm4, %v5107_v6, 0  ;;  %v11650_v58 = vmul.f32 %v4763_v17, %v4761_v52  ;;  %v11654_v57 = vadd.s32 %v11500_v8, %v11494_v34 }
 0x7d3   : > { %v4945_v21 = vadd.s32 %v11530_v20, %v11536_v10  ;;  %v5111_v28 = vand.u32 31, %v5109_v54  ;;  %v4857_v39 = vsub.s32 32, %v11637_v48  ;;  %v12853_v62 = vand.u32 2147483647, %v11634_v1 }
 0x7d4   : > { %v5054_v40 = vadd.s32 536870912, %v5053_v11  ;;  %v4966_v22 = vadd.s32 127, %v4965_v37  ;;  %v5105_v46 = vor.u32 8388608, %v5104_v4  ;;  %v5110_v23 = vshrl.u32 %v5109_v54, 5 }
 0x7d5   : > { %v4963_v29 = vshrl.u32 %v4945_v21, %v4961_v33  ;;  %v5112_v27 = vsub.s32 32, %v5111_v28  ;;  %v5114_v34 = vshll.u32 %v12897_v26, %v5111_v28  ;;  %v5117_v8 = vshll.u32 %v12899_v12, %v5111_v28 }
 0x7d6   : > { %v11661_v63 = vshrl.u32 %v5054_v40, 30  ;;  %v5120_v43 = vshll.u32 %v12900_v0, %v5111_v28  ;;  %v5123_v42 = vshll.u32 %v13004_v5, %v5111_v28  ;;  %v5126_v30 = vshll.u32 %v12901_v36, %v5111_v28 }
 0x7d7   : > { %v5115_v20 = vshrl.u32 %v12899_v12, %v5112_v27  ;;  %v5118_v10 = vshrl.u32 %v12900_v0, %v5112_v27  ;;  %v5121_v7 = vshrl.u32 %v13004_v5, %v5112_v27  ;;  %v5124_v6 = vshrl.u32 %v12901_v36, %v5112_v27 }
 0x7d8   : > { %v5056_v32 = vshll.u32 %v11661_v63, 30  ;;  %v5127_v52 = vshrl.u32 %v13055_v49, %v5112_v27  ;;  %v5204_v4 = vand.u32 2139095040, %v11634_v1  ;;  %v4962_v33 = vshll.u32 %v11589_v14, %v4960_v38 }
 0x7d9   : > { %v5116_v17 = vor.u32 %v5115_v20, %v5114_v34  ;;  %v5119_v19 = vor.u32 %v5118_v10, %v5117_v8  ;;  %v5122_v55 = vor.u32 %v5121_v7, %v5120_v43  ;;  %v5125_v54 = vor.u32 %v5124_v6, %v5123_v42 }
 0x7da   : > { %v11676_v37 = vsub.s32 %v5053_v11, %v5056_v32  ;;  %v4967_v21 = vshll.u32 %v4966_v22, 23  ;;  %v5128_v40 = vor.u32 %v5127_v52, %v5126_v30  ;;  %vm5129_vm13 = vcmp.lt.s32.totalorder %v5110_v23, 1 }
 0x7db   : > { %v5145_v47 = vshll.u32 %v5105_v46, 8  ;;  %v11678_v53 = vpop.eup %7403  ;;  %v4964_v15 = vor.u32 %v4963_v29, %v4962_v33  ;;  %vm5132_vm0 = vcmp.lt.s32.totalorder %v5110_v23, 4  ;;  %v5137_v28 = vsel %vm5129_vm13, %v5116_v17, %v5119_v19 }
 0x7dc   : > { %v5059_v34 = vsub.s32 0, %v11676_v37  ;;  %vm5130_vm7 = vcmp.lt.s32.totalorder %v5110_v23, 2  ;;  %vm5131_vm14 = vcmp.lt.s32.totalorder %v5110_v23, 3  ;;  %v5138_v8 = vsel %vm5132_vm0, %v5125_v54, 920167782 }
 0x7dd   : > { %v5205_v14 = vshrl.u32 %v5204_v4, 23  ;;  %v5134_v11 = vsel %vm5132_vm0, %v5122_v55, 2102212464  ;;  %v5139_v20 = vsel %vm5131_vm14, %v5122_v55, %v5138_v8  ;;  %v5141_v22 = vsel %vm5129_vm13, %v5119_v19, %v5122_v55 }
 0x7de   : > { %v6834_v38 = vmin.u32 %v5059_v34, %v11676_v37  ;;  %v4968_v10 = vor.u32 4788187, %v4967_v21  ;;  %v5113_v46 = vshrl.u32 %v12897_v26, %v5112_v27  ;;  %v5140_v29 = vsel %vm5130_vm7, %v5137_v28, %v5139_v20 }
 0x7df   : > { %v5142_v43 = vsel %vm5132_vm0, %v5128_v40, 1326507024  ;;  %v11686_v42 = vmul.u32.u64.low %v5145_v47, %v5140_v29  ;;  %v11687_v6 = vmul.u32.u64.high %v5145_v47, %v5140_v29, %v11686_v42  ;;  %v5135_v30 = vsel %vm5131_vm14, %v5119_v19, %v5134_v11 }
 0x7e0   : > { %v5061_v7 = vclz %v6834_v38  ;;  %v5143_v32 = vsel %vm5131_vm14, %v5125_v54, %v5142_v43  ;;  %v5133_v52 = vsel %vm5129_vm13, %v5113_v46, %v5116_v17  ;;  %v6841_v33 = vadd.s32 4294967169, %v5205_v14 }
 0x7e1   : > { %v5144_v4 = vsel %vm5130_vm7, %v5141_v22, %v5143_v32  ;;  %v5208_v27 = vand.u32 8388607, %v12853_v62  ;;  %v4858_v54 = vshll.u32 %v11550_v60, %v11637_v48  ;;  %v4861_v40 = vsub.s32 4294967266, %v11637_v48 }
 0x7e2   : > { %v6835_v34 = vadd.s32 4294967294, %v5061_v7  ;;  %v11692_v55 = vmul.u32.u64.low %v5145_v47, %v5144_v4  ;;  %v11693_v21 = vmul.u32.u64.high %v5145_v47, %v5144_v4, %v11692_v55  ;;  %v5049_v28 = vadd.s32 %v11611_v13, %v11617_v2 }
 0x7e3   : > { %v5211_v17 = vadd.s32 1, %v6841_v33  ;;  %v4971_v19 = vcvt.s32.f32 %v4964_v15  ;;  %v5136_v8 = vsel %vm5130_vm7, %v5133_v52, %v5135_v30  ;;  %v5155_v14 = vadd.s32 1, %v11687_v6 }
 0x7e4   : > { %vm6836_vm2 = vcmp.lt.s32.totalorder %v6835_v34, 0  ;;  %v4969_v38 = vand.u32 2147483647, %v4968_v10  ;;  %v13060_v20 = vand.u32 2147483647, %v11260_v18  ;;  %v5209_v43 = vor.u32 8388608, %v5208_v27 }
 0x7e5   : > { %v5064_v11 = vsel %vm6836_vm2, 0, %v6835_v34  ;;  %vm5212_vm11 = vcmp.gt.s32.totalorder %v5211_v17, 0  ;;  %v4663_v13 = vsub.s32 4, %v11387_v16  ;;  %v5152_v2 = vmul.u32 %v5145_v47, %v5136_v8 }
 0x7e6   : > { %vm11706_vm10 = vcmp.le.f32.partialorder %v13060_v20, 0.7853982  ;;  %v5065_v46 = vsub.s32 32, %v5064_v11  ;;  %v5069_v29 = vsub.s32 4294967266, %v5064_v11  ;;  %vm5154_vm8 = vc.u32 %v11693_v21, %v11686_v42 }
 0x7e7   : > { %v5213_v15 = vsel %vm5212_vm11, %v5211_v17, 0  ;;  %v4665_v23 = vsel %vm11706_vm10, %v11260_v18, %v11648_v9  ;;  %v5066_v10 = vshll.u32 %v11676_v37, %v5064_v11  ;;  %v5156_v52 = vsel %vm5154_vm8, %v5155_v14, %v11687_v6 }
 0x7e8   : > { %v5067_v7 = vshrl.u32 %v5049_v28, %v5065_v46  ;;  %v5070_v32 = vadd.s32 127, %v5069_v29  ;;  %v11719_v30 = vadd.s32 127, %v4861_v40  ;;  %v11721_v4 = vmul.f32 %v4971_v19, %v4969_v38 }
 0x7e9   : > { %v5157_v47 = vadd.s32 %v5156_v52, %v5152_v2  ;;  %v5215_v33 = vand.u32 31, %v5213_v15  ;;  %v11723_v27 = vshll.u32 %v5209_v43, 8  ;;  %v11728_v9 = vsel %vm4579_vm15, %v4663_v13, %v11387_v16 }
 0x7ea   : > { %v5068_v34 = vor.u32 %v5067_v7, %v5066_v10  ;;  %v5071_v55 = vshll.u32 %v5070_v32, 23  ;;  %v5214_v28 = vshrl.u32 %v5213_v15, 5  ;;  %7405 = vcosq.f32 %v4665_v23 }
 0x7eb   : > { %v5158_v37 = vadd.s32 536870912, %v5157_v47  ;;  %v5216_v17 = vsub.s32 32, %v5215_v33  ;;  %vm4995_vm6 = vcmp.lt.s32.totalorder %v11401_v61, 0  ;;  %v5218_v19 = vshll.u32 %v12897_v26, %v5215_v33 }
 0x7ec   : > { %v5072_v6 = vor.u32 4788187, %v5071_v55  ;;  %v5075_v40 = vcvt.s32.f32 %v5068_v34  ;;  %v5221_v8 = vshll.u32 %v12899_v12, %v5215_v33  ;;  %v5224_v16 = vshll.u32 %v12900_v0, %v5215_v33 }
 0x7ed   : > { %v11733_v14 = vshrl.u32 %v5158_v37, 30  ;;  %v5219_v38 = vshrl.u32 %v12899_v12, %v5216_v17  ;;  %v5222_v11 = vshrl.u32 %v12900_v0, %v5216_v17  ;;  %v5225_v46 = vshrl.u32 %v13004_v5, %v5216_v17 }
 0x7ee   : > { %v5073_v20 = vand.u32 2147483647, %v5072_v6  ;;  %v5227_v29 = vshll.u32 %v13004_v5, %v5215_v33  ;;  %v5228_v43 = vshrl.u32 %v12901_v36, %v5216_v17  ;;  %v5230_v10 = vshll.u32 %v12901_v36, %v5215_v33 }
 0x7ef   : > { %v5160_v13 = vshll.u32 %v11733_v14, 30  ;;  %v5220_v2 = vor.u32 %v5219_v38, %v5218_v19  ;;  %v5223_v15 = vor.u32 %v5222_v11, %v5221_v8  ;;  %v5226_v32 = vor.u32 %v5225_v46, %v5224_v16 }
 0x7f0   : > { %v5076_v7 = vmul.f32 %v5075_v40, %v5073_v20  ;;  %v5229_v52 = vor.u32 %v5228_v43, %v5227_v29  ;;  %v5231_v34 = vshrl.u32 %v13055_v49, %v5216_v17  ;;  %v5217_v37 = vshrl.u32 %v12897_v26, %v5216_v17 }
 0x7f1   : > { %v11744_v55 = vsub.s32 %v5157_v47, %v5160_v13  ;;  %vm5233_vm15 = vcmp.lt.s32.totalorder %v5214_v28, 1  ;;  %7407 = vsinq.f32 %v4665_v23  ;;  %vm5235_vm1 = vcmp.lt.s32.totalorder %v5214_v28, 3 }
 0x7f2   : > { %v5077_v6 = vxor.u32 2147483648, %v5076_v7  ;;  %v5232_v62 = vor.u32 %v5231_v34, %v5230_v10  ;;  %vm5236_vm12 = vcmp.lt.s32.totalorder %v5214_v28, 4  ;;  %vm4891_vm4 = vcmp.lt.s32.totalorder %v11369_v25, 0 }
 0x7f3   : > { %v5163_v19 = vsub.s32 0, %v11744_v55  ;;  %v5238_v33 = vsel %vm5236_vm12, %v5226_v32, 2102212464  ;;  %v5241_v40 = vsel %vm5233_vm15, %v5220_v2, %v5223_v15  ;;  %v5242_v8 = vsel %vm5236_vm12, %v5229_v52, 920167782 }
 0x7f4   : > { %vm5234_vm13 = vcmp.lt.s32.totalorder %v5214_v28, 2  ;;  %v5237_v38 = vsel %vm5233_vm15, %v5217_v37, %v5220_v2  ;;  %v5243_v47 = vsel %vm5235_vm1, %v5226_v32, %v5242_v8  ;;  %v5245_v11 = vsel %vm5233_vm15, %v5223_v15, %v5226_v32  ;;  %v11750_v16 = vpop.eup %7405 }
 0x7f5   : > { %v5078_v23 = vsel %vm4995_vm6, %v5077_v6, %v5076_v7  ;;  %v6838_v17 = vmin.u32 %v5163_v19, %v11744_v55  ;;  %v5244_v20 = vsel %vm5234_vm13, %v5241_v40, %v5243_v47  ;;  %v5246_v46 = vsel %vm5236_vm12, %v5232_v62, 1326507024 }
 0x7f6   : > { %v13063_v29 = vand.u32 2147483647, %v11369_v25  ;;  %v5239_v13 = vsel %vm5235_vm1, %v5223_v15, %v5238_v33  ;;  %v5247_v2 = vsel %vm5235_vm1, %v5229_v52, %v5246_v46  ;;  %v4973_v7 = vxor.u32 2147483648, %v11721_v4 }
 0x7f7   : > { %v11765_v10 = vmul.u32.u64.low %v11723_v27, %v5244_v20  ;;  %v11766_v32 = vmul.u32.u64.high %v11723_v27, %v5244_v20, %v11765_v10  ;;  %v5165_v34 = vclz %v6838_v17  ;;  %v5248_v62 = vsel %vm5234_vm13, %v5245_v11, %v5247_v2 }
 0x7f8   : > { %vm11758_vm0 = vcmp.le.f32.partialorder %v13063_v29, 0.7853982  ;;  %v4666_v37 = vsel %vm11706_vm10, 0, %v11728_v9  ;;  %v11775_v6 = vmul.u32.u64.low %v11723_v27, %v5248_v62  ;;  %v11776_v19 = vmul.u32.u64.high %v11723_v27, %v5248_v62, %v11775_v6 }
 0x7f9   : > { %vm11780_vm7 = vcmp.le.f32.partialorder %v4993_v31, 0.7853982  ;;  %v5079_v52 = vsub.s32 4, %v11661_v63  ;;  %v4863_v33 = vshll.u32 %v11719_v30, 23  ;;  %v6839_v40 = vadd.s32 4294967294, %v5165_v34 }
 0x7fa   : > { %v5240_v8 = vsel %vm5234_vm13, %v5237_v38, %v5239_v13  ;;  %v5081_v22 = vsel %vm11780_vm7, %v11401_v61, %v5078_v23  ;;  %v4859_v9 = vshrl.u32 %v11654_v57, %v4857_v39  ;;  %v5259_v31 = vadd.s32 1, %v11766_v32 }
 0x7fb   : > { %v5080_v47 = vsel %vm4995_vm6, %v5079_v52, %v11661_v63  ;;  %7409 = vcosq.f32 %v5081_v22  ;;  %v7408_v11 = vpop.eup %7407  ;;  %vm6840_vm14 = vcmp.lt.s32.totalorder %v6839_v40, 0  ;;  %v4670_v30 = vadd.s32 3, %v4666_v37 }
 0x7fc   : > { %v5082_v28 = vsel %vm11780_vm7, 0, %v5080_v47  ;;  %7411 = vsinq.f32 %v5081_v22  ;;  %v4974_v38 = vsel %vm4891_vm4, %v4973_v7, %v11721_v4  ;;  %v5168_v23 = vsel %vm6840_vm14, 0, %v6839_v40 }
 0x7fd   : > { %v5256_v57 = vmul.u32 %v11723_v27, %v5240_v8  ;;  %vm5258_vm2 = vc.u32 %v11776_v19, %v11765_v10  ;;  %v4864_v39 = vor.u32 4788187, %v4863_v33  ;;  %v5169_v63 = vsub.s32 32, %v5168_v23 }
 0x7fe   : > { %v5173_v17 = vsub.s32 4294967266, %v5168_v23  ;;  %v5260_v20 = vsel %vm5258_vm2, %v5259_v31, %v11766_v32  ;;  %v4860_v46 = vor.u32 %v4859_v9, %v4858_v54  ;;  %v5153_v29 = vadd.s32 %v11686_v42, %v11693_v21 }
 0x7ff   : > { %v5261_v13 = vadd.s32 %v5260_v20, %v5256_v57  ;;  %v5086_v4 = vadd.s32 3, %v5082_v28  ;;  %7413 = vsinq.f32 %v11628_v3  ;;  %v4977_v27 = vsel %vm11758_vm0, %v11369_v25, %v4974_v38 }
 0x800   : > { %v5174_v2 = vadd.s32 127, %v5173_v17  ;;  %v4671_v7 = vand.u32 3, %v4670_v30  ;;  %v5171_v34 = vshrl.u32 %v5153_v29, %v5169_v63  ;;  %v4674_v32 = vxor.u32 2147483648, %v7408_v11 }
 0x801   : > { %v5262_v62 = vadd.s32 536870912, %v5261_v13  ;;  %v4677_v37 = vxor.u32 2147483648, %v11750_v16  ;;  %v4765_v60 = vxor.u32 2147483648, %v11650_v58  ;;  %v4865_v48 = vand.u32 2147483647, %v4864_v39 }
 0x802   : > { %v13068_v42 = vsub.s32 4, %v11576_v35  ;;  %v5175_v21 = vshll.u32 %v5174_v2, 23  ;;  %vm4683_vm11 = vcmp.lt.s32.totalorder %v11339_v41, 0  ;;  %v4867_v54 = vcvt.s32.f32 %v4860_v46 }
 0x803   : > { %v5170_v6 = vshll.u32 %v11744_v55, %v5168_v23  ;;  %v11826_v15 = vshrl.u32 %v5262_v62, 30  ;;  %v5087_v52 = vand.u32 3, %v5086_v4  ;;  %7415 = vsinq.f32 %v4977_v27 }
 0x804   : > { %v11822_v3 = vsel %vm4891_vm4, %v13068_v42, %v11576_v35  ;;  %v5176_v33 = vor.u32 4788187, %v5175_v21  ;;  %vm4673_vm10 = vcmp.eq.s32.totalorder %v4671_v7, 0  ;;  %vm4676_vm8 = vcmp.eq.s32.totalorder %v4671_v7, 2 }
 0x805   : > { %v7410_v40 = vpop.eup %7409  ;;  %v5172_v8 = vor.u32 %v5171_v34, %v5170_v6  ;;  %v5264_v22 = vshll.u32 %v11826_v15, 30  ;;  %v4675_v35 = vsel %vm4673_vm10, %v11750_v16, %v4674_v32  ;;  %v4678_v9 = vsel %vm4676_vm8, %v4677_v37, %v7408_v11 }
 0x806   : > { %v7412_v31 = vpop.eup %7411  ;;  %v4868_v47 = vmul.f32 %v4867_v54, %v4865_v48  ;;  %7417 = vcosq.f32 %v4977_v27  ;;  %vm4672_vm6 = vcmp.lt.s32.totalorder %v4671_v7, 2  ;;  %v5093_v30 = vxor.u32 2147483648, %v7410_v40 }
 0x807   : > { %v5177_v55 = vand.u32 2147483647, %v5176_v33  ;;  %v11830_v28 = vsub.s32 %v5261_v13, %v5264_v22  ;;  %v5090_v38 = vxor.u32 2147483648, %v7412_v31  ;;  %vm5092_vm15 = vcmp.eq.s32.totalorder %v5087_v52, 2 }
 0x808   : > { %v4679_v23 = vsel %vm4672_vm6, %v4675_v35, %v4678_v9  ;;  %vm5089_vm1 = vcmp.eq.s32.totalorder %v5087_v52, 0  ;;  %v5094_v57 = vsel %vm5092_vm15, %v5093_v30, %v7412_v31  ;;  %v13069_v39 = vsel %vm11596_vm9, 0, %v11564_v50 }
 0x809   : > { %v4566_v63 = vadd.s32 3, %v13069_v39  ;;  %v5179_v16 = vcvt.s32.f32 %v5172_v8  ;;  %v5267_v11 = vsub.s32 0, %v11830_v28  ;;  %vm5088_vm12 = vcmp.lt.s32.totalorder %v5087_v52, 2  ;;  %v7414_v20 = vpop.eup %7413 }
 0x80a   : > { %v5091_v17 = vsel %vm5089_vm1, %v7410_v40, %v5090_v38  ;;  %v4869_v46 = vxor.u32 2147483648, %v4868_v47  ;;  %vm4669_vm4 = vweird.f32 %v11260_v18  ;;  %vm5085_vm13 = vweird.f32 %v11401_v61 }
 0x80b   : > { %v5095_v29 = vsel %vm5088_vm12, %v5091_v17, %v5094_v57  ;;  %v5180_v13 = vmul.f32 %v5179_v16, %v5177_v55  ;;  %v6842_v4 = vmin.u32 %v5267_v11, %v11830_v28  ;;  %v4680_v27 = vsel %vm4669_vm4, nan, %v4679_v23 }
 0x80c   : > { %v5096_v59 = vsel %vm5085_vm13, nan, %v5095_v29  ;;  %v4766_v50 = vsel %vm4683_vm11, %v4765_v60, %v11650_v58  ;;  %v4567_v7 = vand.u32 3, %v4566_v63  ;;  %v4978_v34 = vsel %vm11758_vm0, 0, %v11822_v3 }
 0x80d   : > { %v6946_v2 = vpack.c.bf16 %v5096_v59, %v4680_v27  ;;  %v5269_v62 = vclz %v6842_v4  ;;  %v4570_v18 = vxor.u32 2147483648, %v7414_v20  ;;  %v4573_v61 = vxor.u32 2147483648, %v11678_v53  ;;  %v7416_v32 = vpop.eup %7415  ;;  %v7475_v27 = vld [vmem:[#allocation5] sm:$0xff]  ;;  %v7476_v59 = vld [vmem:[#allocation5 + $0x8] sm:$0x3] }
 0x80e   : > { %v13070_v37 = vand.u32 2147483647, %v11339_v41  ;;  %vm4787_vm7 = vcmp.lt.s32.totalorder %v11364_v44, 0  ;;  %v13073_v58 = vand.u32 2147483647, %v11567_v51  ;;  %vm5099_vm0 = vcmp.lt.s32.totalorder %v11567_v51, 0 }
 0x80f   : > { %6948 = vmatprep.subr.msk.bf16.mxu0 %vm8318_vm5, %v6946_v2  ;;  %v4870_v42 = vsel %vm4787_vm7, %v4869_v46, %v4868_v47  ;;  %v5181_v3 = vxor.u32 2147483648, %v5180_v13  ;;  %v6843_v21 = vadd.s32 4294967294, %v5269_v62  ;;  %v5257_v6 = vadd.s32 %v11765_v10, %v11776_v19  ;;  %v11893_v62 = vpop.permute.xlu1 %5313 }
 0x810   : > { %vm11849_vm9 = vcmp.le.f32.partialorder %v13070_v37, 0.7853982  ;;  %vm11856_vm14 = vcmp.le.f32.partialorder %v13073_v58, 0.7853982  ;;  %v7418_v54 = vpop.eup %7417  ;;  %vm4569_vm2 = vcmp.eq.s32.totalorder %v4567_v7, 0  ;;  %vm4572_vm10 = vcmp.eq.s32.totalorder %v4567_v7, 2 }
 0x811   : > { %v4769_v43 = vsel %vm11849_vm9, %v11339_v41, %v4766_v50  ;;  %v4982_v52 = vadd.s32 3, %v4978_v34  ;;  %vm6844_vm8 = vcmp.lt.s32.totalorder %v6843_v21, 0  ;;  %v13076_v33 = vand.u32 2147483647, %v11364_v44  ;;  %v13079_v50 = vld [vmem:[#allocation38_spill] sm:$0xff] }
 0x812   : > { %v4571_v8 = vsel %vm4569_vm2, %v11678_v53, %v4570_v18  ;;  %v4574_v22 = vsel %vm4572_vm10, %v4573_v61, %v7414_v20  ;;  %v5272_v35 = vsel %vm6844_vm8, 0, %v6843_v21  ;;  %v4986_v10 = vxor.u32 2147483648, %v7416_v32 }
 0x813   : > { %vm11872_vm6 = vcmp.le.f32.partialorder %v13076_v33, 0.7853982  ;;  %v4983_v31 = vand.u32 3, %v4982_v52  ;;  %v5182_v19 = vsel %vm5099_vm0, %v5181_v3, %v5180_v13  ;;  %v5273_v47 = vsub.s32 32, %v5272_v35 }
 0x814   : > { %v4873_v9 = vsel %vm11872_vm6, %v11364_v44, %v4870_v42  ;;  %v5277_v30 = vsub.s32 4294967266, %v5272_v35  ;;  %vm4568_vm15 = vcmp.lt.s32.totalorder %v4567_v7, 2  ;;  %v5274_v55 = vshll.u32 %v11830_v28, %v5272_v35 }
 0x815   : > { %v4575_v38 = vsel %vm4568_vm15, %v4571_v8, %v4574_v22  ;;  %vm4985_vm1 = vcmp.eq.s32.totalorder %v4983_v31, 0  ;;  %v4989_v23 = vxor.u32 2147483648, %v7418_v54  ;;  %v5275_v53 = vshrl.u32 %v5257_v6, %v5273_v47 }
 0x816   : > { %v5278_v57 = vadd.s32 127, %v5277_v30  ;;  %v4987_v39 = vsel %vm4985_vm1, %v7418_v54, %v4986_v10  ;;  %vm4988_vm12 = vcmp.eq.s32.totalorder %v4983_v31, 2  ;;  %vm4565_vm4 = vweird.f32 %v11255_v24 }
 0x817   : > { %vm4981_vm13 = vweird.f32 %v11369_v25  ;;  %vm4984_vm2 = vcmp.lt.s32.totalorder %v4983_v31, 2  ;;  %v4990_v63 = vsel %vm4988_vm12, %v4989_v23, %v7416_v32  ;;  %v5185_v16 = vsel %vm11856_vm14, %v11567_v51, %v5182_v19 }
 0x818   : > { %v5276_v11 = vor.u32 %v5275_v53, %v5274_v55  ;;  %v5279_v17 = vshll.u32 %v5278_v57, 23  ;;  %v4991_v28 = vsel %vm4984_vm2, %v4987_v39, %v4990_v63  ;;  %7419 = vcosq.f32 %v4769_v43 }
 0x819   : > { %v4576_v20 = vsel %vm4565_vm4, nan, %v4575_v38  ;;  %v4992_v46 = vsel %vm4981_vm13, nan, %v4991_v28  ;;  %v5183_v29 = vsub.s32 4, %v11733_v14  ;;  %7421 = vcosq.f32 %v4873_v9 }
 0x81a   : > { %v5280_v13 = vor.u32 4788187, %v5279_v17  ;;  %v6949_v4 = vpack.c.bf16 %v4992_v46, %v4576_v20  ;;  %v7636_v24 = vmov 67   ;;  %7423 = vcosq.f32 %v5185_v16 }
 0x81b   : > { %7269 = vset.pattern.permute.xlu1 %v7636_v24  ;;  %7270 = vset.pattern.permute.xlu0 %v7636_v24  ;;  %v4871_v25 = vsub.s32 4, %v11524_v45  ;;  %v4767_v2 = vsub.s32 4, %v13079_v50  ;;  %7425 = vsinq.f32 %v5185_v16  ;;  %v5283_v34 = vcvt.s32.f32 %v5276_v11 }
 0x81c   : > { %5306 = vperm.xlu1 %7269, %v7475_v27   ;;  %5310 = vperm.xlu0 %7270, %v7476_v59   ;;  %v5281_v7 = vand.u32 2147483647, %v5280_v13  ;;  %7427 = vsinq.f32 %v4873_v9  ;;  %v5184_v18 = vsel %vm5099_vm0, %v5183_v29, %v11733_v14  ;;  %v5287_v32 = vsub.s32 4, %v11826_v15  ;;  %v11908_v14 = vpop.permute.xlu0 %5315 }
 0x81d   : > { %6951 = vmatpush1.bf16.msk.msra.mxu0 %vm8318_vm5, %v6949_v4  ;;  %7429 = vsinq.f32 %v4769_v43  ;;  %v4872_v37 = vsel %vm4787_vm7, %v4871_v25, %v11524_v45  ;;  %v4768_v58 = vsel %vm4683_vm11, %v4767_v2, %v13079_v50  ;;  %v13080_v42 = vmov 0.0  }
 0x81e   : > { %v5284_v61 = vmul.f32 %v5283_v34, %v5281_v7  ;;  %v5186_v3 = vsel %vm11856_vm14, 0, %v5184_v18  ;;  %vm5203_vm0 = vcmp.lt.s32.totalorder %v11634_v1, 0  ;;  %v4874_v21 = vsel %vm11872_vm6, 0, %v4872_v37 }
 0x81f   : > { %v13081_v54 = vand.u32 2147483647, %v11634_v1  ;;  %v5288_v52 = vsel %vm5203_vm0, %v5287_v32, %v11826_v15  ;;  %v4770_v8 = vsel %vm11849_vm9, 0, %v4768_v58  ;;  %v5190_v22 = vadd.s32 3, %v5186_v3 }
 0x820   : > { %6847 = vmatmul.mubr.msk.f32.vlgmr.msra.gmra.mrb[16].mxu0 %vm1155_vm3, %v11893_v62  ;;  %6335 = vrot.lane.b32.xlu1 %v7475_v27, %s7637_s28  ;;  %v5285_v43 = vxor.u32 2147483648, %v5284_v61  ;;  %v4878_v9 = vadd.s32 3, %v4874_v21  ;;  %v4774_v31 = vadd.s32 3, %v4770_v8 }
 0x821   : > { %5403 = vmatprep.mubr.f32.mxu0 %v13080_v42  ;;  %vm11917_vm7 = vcmp.le.f32.partialorder %v13081_v54, 0.7853982  ;;  %v5191_v30 = vand.u32 3, %v5190_v22 }
 0x822   : > { %v5286_v45 = vsel %vm5203_vm0, %v5285_v43, %v5284_v61  ;;  %v7420_v33 = vpop.eup %7419  ;;  %v5290_v15 = vsel %vm11917_vm7, 0, %v5288_v52  ;;  %v4879_v55 = vand.u32 3, %v4878_v9  ;;  %v4775_v39 = vand.u32 3, %v4774_v31 }
 0x823   : > { %v5289_v60 = vsel %vm11917_vm7, %v11634_v1, %v5286_v45  ;;  %v7422_v40 = vpop.eup %7421  ;;  %v5294_v47 = vadd.s32 3, %v5290_v15  ;;  %v4781_v16 = vxor.u32 2147483648, %v7420_v33  ;;  %vm5193_vm11 = vcmp.eq.s32.totalorder %v5191_v30, 0 }
 0x824   : > { %6848 = vmatmul.mubr.msk.f32.gmra.mrb[18].mxu0 %vm1155_vm3, %v11908_v14  ;;  %7431 = vcosq.f32 %v5289_v60  ;;  %v7424_v35 = vpop.eup %7423  ;;  %v4885_v57 = vxor.u32 2147483648, %v7422_v40  ;;  %vm5196_vm9 = vcmp.eq.s32.totalorder %v5191_v30, 2  ;;  %vm4881_vm14 = vcmp.eq.s32.totalorder %v4879_v55, 0 }
 0x825   : > { %6415 = vmatprep.mubr.f32.mxu0 %v13080_v42  ;;  %7433 = vsinq.f32 %v5289_v60  ;;  %v7426_v48 = vpop.eup %7425  ;;  %v5197_v23 = vxor.u32 2147483648, %v7424_v35  ;;  %v5295_v11 = vand.u32 3, %v5294_v47  ;;  %vm4884_vm10 = vcmp.eq.s32.totalorder %v4879_v55, 2 }
 0x826   : > { %v7428_v10 = vpop.eup %7427  ;;  %v5194_v38 = vxor.u32 2147483648, %v7426_v48  ;;  %vm4777_vm8 = vcmp.eq.s32.totalorder %v4775_v39, 0  ;;  %vm4780_vm6 = vcmp.eq.s32.totalorder %v4775_v39, 2  ;;  %vm5192_vm15 = vcmp.lt.s32.totalorder %v5191_v30, 2 }
 0x827   : > { %v7430_v19 = vpop.eup %7429  ;;  %v4882_v53 = vxor.u32 2147483648, %v7428_v10  ;;  %v5198_v28 = vsel %vm5196_vm9, %v5197_v23, %v7426_v48  ;;  %v4886_v29 = vsel %vm4884_vm10, %v4885_v57, %v7428_v10  ;;  %vm4880_vm1 = vcmp.lt.s32.totalorder %v4879_v55, 2 }
 0x828   : > { %v4778_v63 = vxor.u32 2147483648, %v7430_v19  ;;  %v5195_v17 = vsel %vm5193_vm11, %v7424_v35, %v5194_v38  ;;  %v4782_v25 = vsel %vm4780_vm6, %v4781_v16, %v7430_v19  ;;  %vm5300_vm12 = vcmp.eq.s32.totalorder %v5295_v11, 2 }
 0x829   : > { %v4883_v46 = vsel %vm4881_vm14, %v7422_v40, %v4882_v53  ;;  %v5199_v59 = vsel %vm5192_vm15, %v5195_v17, %v5198_v28  ;;  %vm5297_vm4 = vcmp.eq.s32.totalorder %v5295_v11, 0  ;;  %vm4776_vm13 = vcmp.lt.s32.totalorder %v4775_v39, 2 }
 0x82a   : > { %v4779_v24 = vsel %vm4777_vm8, %v7420_v33, %v4778_v63  ;;  %v4887_v50 = vsel %vm4880_vm1, %v4883_v46, %v4886_v29  ;;  %vm5296_vm2 = vcmp.lt.s32.totalorder %v5295_v11, 2  ;;  %vm5189_vm0 = vweird.f32 %v11567_v51 }
 0x82b   : > { %v4783_v34 = vsel %vm4776_vm13, %v4779_v24, %v4782_v25  ;;  %vm4877_vm7 = vweird.f32 %v11364_v44  ;;  %vm5293_vm11 = vweird.f32 %v11634_v1  ;;  %v5200_v61 = vsel %vm5189_vm0, nan, %v5199_v59 }
 0x82c   : > { %v4888_v32 = vsel %vm4877_vm7, nan, %v4887_v50  ;;  %vm4773_vm9 = vweird.f32 %v11339_v41 }
 0x82d   : > { %v4784_v43 = vsel %vm4773_vm9, nan, %v4783_v34 }
 0x82e   : > { %v7432_v20 = vpop.eup %7431  ;;  %v6955_v3 = vpack.c.bf16 %v5200_v61, %v4784_v43 }
 0x82f   : > { %v7434_v13 = vpop.eup %7433  ;;  %v5301_v4 = vxor.u32 2147483648, %v7432_v20 }
 0x830   : > { %v5298_v27 = vxor.u32 2147483648, %v7434_v13 }
 0x831   : > { %v5302_v2 = vsel %vm5300_vm12, %v5301_v4, %v7434_v13 }
 0x832   : > { %v5299_v7 = vsel %vm5297_vm4, %v7432_v20, %v5298_v27 }
 0x833   : > { %v5303_v18 = vsel %vm5296_vm2, %v5299_v7, %v5302_v2 }
 0x834   : > { %v5304_v37 = vsel %vm5293_vm11, nan, %v5303_v18 }
 0x835   : > { %v6952_v58 = vpack.c.bf16 %v5304_v37, %v4888_v32 }
 0x837   : > { %6954 = vmatprep.subr.msk.bf16.mxu1 %vm8318_vm5, %v6952_v58 }
 0x838   : > { %6957 = vmatpush1.bf16.msk.msra.mxu1 %vm8318_vm5, %v6955_v3 }
 0x83b   : > { %6851 = vmatmul.mubr.msk.f32.vlgmr.msra.gmra.mrb[16].mxu1 %vm1155_vm3, %v11893_v62 }
 0x83c   : > { %5480 = vmatprep.mubr.f32.mxu1 %v13080_v42 }
 0x83f   : > { %6852 = vmatmul.mubr.msk.f32.gmra.mrb[18].mxu1 %vm1155_vm3, %v11908_v14 }
 0x840   : > { %6486 = vmatprep.mubr.f32.mxu1 %v13080_v42 }
 0x89b   : > { %v11946_v41 = vpop.permute.xlu1 %5306 }
 0x8f3   : > { %v5399_v44 = vpop.f32.mrb[16].mxu0 }
 0x8f4   : > { %v11949_v51 = vadd.f32 %v5399_v44, %v11946_v41  ;;  %v5401_v1 = vpop.f32.mrb[17].mxu0 }
 0x8f5   : > { %v11952_v45 = vadd.f32 %v5401_v1, %v11946_v41 }
 0x8f6   : > { %v5490_v21 = vand.u32 2139095040, %v11949_v51  ;;  %v5487_v52 = vand.u32 2147483647, %v11949_v51 }
 0x8f7   : > { %v5594_v62 = vand.u32 2139095040, %v11952_v45  ;;  %v11956_v54 = vpop.f32.mrb[18].mxu0  ;;  %v12859_v1 = vand.u32 2147483647, %v11952_v45 }
 0x8f8   : > { %v5491_v6 = vshrl.u32 %v5490_v21, 23  ;;  %v11958_v14 = vpop.f32.mrb[19].mxu0  ;;  %v5494_v22 = vand.u32 8388607, %v5487_v52 }
 0x8f9   : > { %v5595_v42 = vshrl.u32 %v5594_v62, 23 }
 0x8fa   : > { %v6853_v33 = vadd.s32 4294967169, %v5491_v6  ;;  %v5495_v15 = vor.u32 8388608, %v5494_v22 }
 0x8fb   : > { %v6857_v8 = vadd.s32 4294967169, %v5595_v42 }
 0x8fc   : > { %v5497_v60 = vadd.s32 1, %v6853_v33  ;;  %v5535_v24 = vshll.u32 %v5495_v15, 8 }
 0x8fd   : > { %v5601_v40 = vadd.s32 1, %v6857_v8 }
 0x8fe   : > { %vm5498_vm14 = vcmp.gt.s32.totalorder %v5497_v60, 0 }
 0x8ff   : > { %v5499_v35 = vsel %vm5498_vm14, %v5497_v60, 0  ;;  %vm5602_vm10 = vcmp.gt.s32.totalorder %v5601_v40, 0 }
 0x900   : > { %v5501_v9 = vand.u32 31, %v5499_v35  ;;  %v5500_v31 = vshrl.u32 %v5499_v35, 5  ;;  %v5603_v47 = vsel %vm5602_vm10, %v5601_v40, 0 }
 0x901   : > { %v5605_v28 = vand.u32 31, %v5603_v47  ;;  %v11987_v42 = vshrl.u32 %v5603_v47, 5 }
 0x902   : > { %v5502_v48 = vsub.s32 32, %v5501_v9  ;;  %v5504_v10 = vshll.u32 %v12897_v26, %v5501_v9  ;;  %v5507_v19 = vshll.u32 %v12899_v12, %v5501_v9  ;;  %v5510_v38 = vshll.u32 %v12900_v0, %v5501_v9 }
 0x903   : > { %v5513_v53 = vshll.u32 %v13004_v5, %v5501_v9  ;;  %v5516_v39 = vshll.u32 %v12901_v36, %v5501_v9  ;;  %vm5519_vm8 = vcmp.lt.s32.totalorder %v5500_v31, 1  ;;  %vm5522_vm6 = vcmp.lt.s32.totalorder %v5500_v31, 4 }
 0x904   : > { %v5505_v30 = vshrl.u32 %v12899_v12, %v5502_v48  ;;  %v5508_v55 = vshrl.u32 %v12900_v0, %v5502_v48  ;;  %v5511_v23 = vshrl.u32 %v13004_v5, %v5502_v48  ;;  %v5514_v57 = vshrl.u32 %v12901_v36, %v5502_v48 }
 0x905   : > { %v5517_v63 = vshrl.u32 %v13055_v49, %v5502_v48  ;;  %v5503_v25 = vshrl.u32 %v12897_v26, %v5502_v48  ;;  %vm5521_vm15 = vcmp.lt.s32.totalorder %v5500_v31, 3  ;;  %vm5520_vm1 = vcmp.lt.s32.totalorder %v5500_v31, 2 }
 0x906   : > { %v5506_v16 = vor.u32 %v5505_v30, %v5504_v10  ;;  %v5509_v11 = vor.u32 %v5508_v55, %v5507_v19  ;;  %v5512_v17 = vor.u32 %v5511_v23, %v5510_v38  ;;  %v5515_v20 = vor.u32 %v5514_v57, %v5513_v53 }
 0x907   : > { %v5518_v46 = vor.u32 %v5517_v63, %v5516_v39  ;;  %v11974_v7 = vsub.s32 32, %v5605_v28  ;;  %v5617_v60 = vshll.u32 %v13004_v5, %v5605_v28  ;;  %v5620_v35 = vshll.u32 %v12901_v36, %v5605_v28 }
 0x908   : > { %v5524_v29 = vsel %vm5522_vm6, %v5512_v17, 2102212464  ;;  %v5527_v13 = vsel %vm5519_vm8, %v5506_v16, %v5509_v11  ;;  %v5531_v4 = vsel %vm5519_vm8, %v5509_v11, %v5512_v17  ;;  %v5528_v27 = vsel %vm5522_vm6, %v5515_v20, 920167782 }
 0x909   : > { %v5532_v59 = vsel %vm5522_vm6, %v5518_v46, 1326507024  ;;  %v5529_v50 = vsel %vm5521_vm15, %v5512_v17, %v5528_v27  ;;  %v5523_v34 = vsel %vm5519_vm8, %v5503_v25, %v5506_v16  ;;  %v5525_v18 = vsel %vm5521_vm15, %v5509_v11, %v5524_v29 }
 0x90a   : > { %v5533_v2 = vsel %vm5521_vm15, %v5515_v20, %v5532_v59  ;;  %v5530_v61 = vsel %vm5520_vm1, %v5527_v13, %v5529_v50  ;;  %v5526_v44 = vsel %vm5520_vm1, %v5523_v34, %v5525_v18  ;;  %v5618_v21 = vshrl.u32 %v12901_v36, %v11974_v7  ;;  %v12034_v34 = vpop.permute.xlu0 %5310 }
 0x90b   : > { %v5534_v32 = vsel %vm5520_vm1, %v5531_v4, %v5533_v2  ;;  %v11979_v43 = vmul.u32.u64.low %v5535_v24, %v5530_v61  ;;  %v11980_v3 = vmul.u32.u64.high %v5535_v24, %v5530_v61, %v11979_v43  ;;  %v5621_v62 = vshrl.u32 %v13055_v49, %v11974_v7 }
 0x90c   : > { %v11976_v37 = vmul.u32.u64.low %v5535_v24, %v5534_v32  ;;  %v11977_v58 = vmul.u32.u64.high %v5535_v24, %v5534_v32, %v11976_v37  ;;  %v5612_v33 = vshrl.u32 %v12900_v0, %v11974_v7  ;;  %v5615_v8 = vshrl.u32 %v13004_v5, %v11974_v7 }
 0x90d   : > { %v5545_v40 = vadd.s32 1, %v11980_v3  ;;  %v5542_v15 = vmul.u32 %v5535_v24, %v5526_v44  ;;  %v5609_v48 = vshrl.u32 %v12899_v12, %v11974_v7  ;;  %v5611_v31 = vshll.u32 %v12899_v12, %v5605_v28 }
 0x90e   : > { %v5476_v6 = vpop.f32.mrb[16].mxu1  ;;  %vm5544_vm12 = vc.u32 %v11977_v58, %v11979_v43  ;;  %v5614_v10 = vshll.u32 %v12900_v0, %v5605_v28  ;;  %v5619_v30 = vor.u32 %v5618_v21, %v5617_v60  ;;  %v5622_v55 = vor.u32 %v5621_v62, %v5620_v35 }
 0x90f   : > { %v11997_v22 = vadd.f32 %v5476_v6, %v11946_v41  ;;  %v12000_v9 = vpop.f32.mrb[17].mxu1  ;;  %v5546_v19 = vsel %vm5544_vm12, %v5545_v40, %v11980_v3  ;;  %v5608_v23 = vshll.u32 %v12897_v26, %v5605_v28  ;;  %v5598_v39 = vand.u32 8388607, %v12859_v1 }
 0x910   : > { %v5547_v38 = vadd.s32 %v5546_v19, %v5542_v15  ;;  %v5613_v63 = vor.u32 %v5612_v33, %v5611_v31  ;;  %v5616_v16 = vor.u32 %v5615_v8, %v5614_v10  ;;  %vm5626_vm4 = vcmp.lt.s32.totalorder %v11987_v42, 4 }
 0x911   : > { %v5698_v47 = vand.u32 2139095040, %v11997_v22  ;;  %v5610_v20 = vor.u32 %v5609_v48, %v5608_v23  ;;  %v5632_v29 = vsel %vm5626_vm4, %v5619_v30, 920167782  ;;  %v5636_v28 = vsel %vm5626_vm4, %v5622_v55, 1326507024 }
 0x912   : > { %v12009_v53 = vpop.f32.mrb[18].mxu1  ;;  %v5548_v17 = vadd.s32 536870912, %v5547_v38  ;;  %vm5623_vm13 = vcmp.lt.s32.totalorder %v11987_v42, 1  ;;  %vm5625_vm2 = vcmp.lt.s32.totalorder %v11987_v42, 3  ;;  %v5599_v24 = vor.u32 8388608, %v5598_v39 }
 0x913   : > { %v5699_v57 = vshrl.u32 %v5698_v47, 23  ;;  %v12013_v11 = vpop.f32.mrb[19].mxu1  ;;  %v5635_v25 = vsel %vm5623_vm13, %v5613_v63, %v5616_v16  ;;  %v5637_v27 = vsel %vm5625_vm2, %v5619_v30, %v5636_v28  ;;  %v5631_v50 = vsel %vm5623_vm13, %v5610_v20, %v5613_v63 }
 0x914   : > { %v12020_v13 = vshrl.u32 %v5548_v17, 30  ;;  %v5633_v2 = vsel %vm5625_vm2, %v5616_v16, %v5632_v29  ;;  %vm5624_vm7 = vcmp.lt.s32.totalorder %v11987_v42, 2  ;;  %v12856_v37 = vand.u32 2147483647, %v11997_v22 }
 0x915   : > { %v6861_v46 = vadd.s32 4294967169, %v5699_v57  ;;  %v5638_v32 = vsel %vm5624_vm7, %v5635_v25, %v5637_v27  ;;  %v5634_v44 = vsel %vm5624_vm7, %v5631_v50, %v5633_v2  ;;  %v12041_v21 = vshll.u32 %v5599_v24, 8 }
 0x916   : > { %v5550_v59 = vshll.u32 %v12020_v13, 30  ;;  %v5607_v6 = vshrl.u32 %v12897_v26, %v11974_v7  ;;  %v12047_v33 = vadd.f32 %v11956_v54, %v12034_v34  ;;  %v5543_v8 = vadd.s32 %v11979_v43, %v11977_v58 }
 0x917   : > { %v5705_v4 = vadd.s32 1, %v6861_v46  ;;  %v12053_v40 = vmul.u32.u64.low %v12041_v21, %v5638_v32  ;;  %v12054_v35 = vmul.u32.u64.high %v12041_v21, %v5638_v32, %v12053_v40  ;;  %v5628_v48 = vsel %vm5626_vm4, %v5616_v16, 2102212464 }
 0x918   : > { %v5551_v18 = vsub.s32 %v5547_v38, %v5550_v59  ;;  %v12059_v31 = vmul.u32.u64.low %v12041_v21, %v5634_v44  ;;  %v12060_v10 = vmul.u32.u64.high %v12041_v21, %v5634_v44, %v12059_v31  ;;  %v5702_v54 = vand.u32 8388607, %v12856_v37 }
 0x919   : > { %vm5706_vm0 = vcmp.gt.s32.totalorder %v5705_v4, 0  ;;  %v5627_v24 = vsel %vm5623_vm13, %v5607_v6, %v5610_v20  ;;  %v5629_v25 = vsel %vm5625_vm2, %v5613_v63, %v5628_v48  ;;  %vm5489_vm15 = vcmp.lt.s32.totalorder %v11949_v51, 0 }
 0x91a   : > { %v5707_v61 = vsel %vm5706_vm0, %v5705_v4, 0  ;;  %v5553_v62 = vsub.s32 0, %v5551_v18  ;;  %v5703_v27 = vor.u32 8388608, %v5702_v54  ;;  %vm5648_vm6 = vc.u32 %v12054_v35, %v12059_v31 }
 0x91b   : > { %v5709_v3 = vand.u32 31, %v5707_v61  ;;  %v12071_v47 = vshrl.u32 %v5707_v61, 5  ;;  %v12096_v61 = vadd.f32 %v12000_v9, %v11946_v41  ;;  %vm5488_vm1 = vcmp.le.f32.partialorder %v5487_v52, 0.7853982 }
 0x91c   : > { %v6854_v15 = vmin.u32 %v5553_v62, %v5551_v18 }
 0x91d   : > { %v12050_v60 = vsub.s32 32, %v5709_v3  ;;  %v5712_v30 = vshll.u32 %v12897_v26, %v5709_v3  ;;  %v5715_v55 = vshll.u32 %v12899_v12, %v5709_v3  ;;  %v5718_v38 = vshll.u32 %v12900_v0, %v5709_v3 }
 0x91e   : > { %v5555_v19 = vclz %v6854_v15  ;;  %v5721_v23 = vshll.u32 %v13004_v5, %v5709_v3  ;;  %v5724_v39 = vshll.u32 %v12901_v36, %v5709_v3  ;;  %vm5730_vm9 = vcmp.lt.s32.totalorder %v12071_v47, 4 }
 0x91f   : > { %v5713_v7 = vshrl.u32 %v12899_v12, %v12050_v60  ;;  %v5716_v58 = vshrl.u32 %v12900_v0, %v12050_v60  ;;  %v5719_v43 = vshrl.u32 %v13004_v5, %v12050_v60  ;;  %v5722_v57 = vshrl.u32 %v12901_v36, %v12050_v60 }
 0x920   : > { %v6855_v16 = vadd.s32 4294967294, %v5555_v19  ;;  %v5725_v29 = vshrl.u32 %v13055_v49, %v12050_v60  ;;  %vm5727_vm14 = vcmp.lt.s32.totalorder %v12071_v47, 1  ;;  %vm5729_vm10 = vcmp.lt.s32.totalorder %v12071_v47, 3 }
 0x921   : > { %v12080_v17 = vor.u32 %v5713_v7, %v5712_v30  ;;  %v12082_v46 = vor.u32 %v5716_v58, %v5715_v55  ;;  %v5720_v28 = vor.u32 %v5719_v43, %v5718_v38  ;;  %v5723_v4 = vor.u32 %v5722_v57, %v5721_v23 }
 0x922   : > { %vm6856_vm11 = vcmp.lt.s32.totalorder %v6855_v16, 0  ;;  %v5726_v59 = vor.u32 %v5725_v29, %v5724_v39  ;;  %v5649_v15 = vadd.s32 1, %v12060_v10  ;;  %vm5728_vm8 = vcmp.lt.s32.totalorder %v12071_v47, 2 }
 0x923   : > { %v5558_v50 = vsel %vm6856_vm11, 0, %v6855_v16  ;;  %v5736_v2 = vsel %vm5730_vm9, %v5723_v4, 920167782  ;;  %v5735_v63 = vsel %vm5727_vm14, %v12080_v17, %v12082_v46  ;;  %v5739_v62 = vsel %vm5727_vm14, %v12082_v46, %v5720_v28 }
 0x924   : > { %v5559_v32 = vsub.s32 32, %v5558_v50  ;;  %v5563_v20 = vsub.s32 4294967266, %v5558_v50  ;;  %v5560_v3 = vshll.u32 %v5551_v18, %v5558_v50  ;;  %v5737_v44 = vsel %vm5729_vm10, %v5720_v28, %v5736_v2 }
 0x925   : > { %v5740_v41 = vsel %vm5730_vm9, %v5726_v59, 1326507024  ;;  %v5738_v54 = vsel %vm5728_vm8, %v5735_v63, %v5737_v44  ;;  %v5630_v7 = vsel %vm5624_vm7, %v5627_v24, %v5629_v25  ;;  %v5743_v58 = vshll.u32 %v5703_v27, 8 }
 0x926   : > { %v5561_v9 = vshrl.u32 %v5543_v8, %v5559_v32  ;;  %v5564_v6 = vadd.s32 127, %v5563_v20  ;;  %v5741_v40 = vsel %vm5729_vm10, %v5723_v4, %v5740_v41  ;;  %v5802_v43 = vand.u32 2139095040, %v12096_v61 }
 0x927   : > { %v5742_v8 = vsel %vm5728_vm8, %v5739_v62, %v5741_v40  ;;  %v5906_v19 = vand.u32 2139095040, %v12047_v33  ;;  %v5573_v55 = vsub.s32 4, %v12020_v13  ;;  %v5650_v38 = vsel %vm5648_vm6, %v5649_v15, %v12060_v10 }
 0x928   : > { %v5562_v18 = vor.u32 %v5561_v9, %v5560_v3  ;;  %v5565_v48 = vshll.u32 %v5564_v6, 23  ;;  %v12126_v23 = vmul.u32.u64.low %v5743_v58, %v5738_v54  ;;  %v12127_v57 = vmul.u32.u64.high %v5743_v58, %v5738_v54, %v12126_v23 }
 0x929   : > { %v5646_v42 = vmul.u32 %v12041_v21, %v5630_v7  ;;  %v5803_v39 = vshrl.u32 %v5802_v43, 23  ;;  %v12131_v4 = vmul.u32.u64.low %v5743_v58, %v5742_v8  ;;  %v12132_v24 = vmul.u32.u64.high %v5743_v58, %v5742_v8, %v12131_v4 }
 0x92a   : > { %v5566_v30 = vor.u32 4788187, %v5565_v48  ;;  %v5569_v29 = vcvt.s32.f32 %v5562_v18  ;;  %v5907_v59 = vshrl.u32 %v5906_v19, 23  ;;  %v5574_v10 = vsel %vm5489_vm15, %v5573_v55, %v12020_v13 }
 0x92b   : > { %v5651_v25 = vadd.s32 %v5650_v38, %v5646_v42  ;;  %v6865_v27 = vadd.s32 4294967169, %v5803_v39  ;;  %v5732_v2 = vsel %vm5730_vm9, %v5720_v28, 2102212464  ;;  %v5711_v20 = vshrl.u32 %v12897_v26, %v12050_v60 }
 0x92c   : > { %v5567_v16 = vand.u32 2147483647, %v5566_v30  ;;  %v5576_v63 = vsel %vm5488_vm1, 0, %v5574_v10  ;;  %v6869_v44 = vadd.s32 4294967169, %v5907_v59  ;;  %v5733_v28 = vsel %vm5729_vm10, %v12082_v46, %v5732_v2 }
 0x92d   : > { %v5809_v21 = vadd.s32 1, %v6865_v27  ;;  %v5652_v3 = vadd.s32 536870912, %v5651_v25  ;;  %v5731_v13 = vsel %vm5727_vm14, %v5711_v20, %v12080_v17  ;;  %v5753_v60 = vadd.s32 1, %v12127_v57 }
 0x92e   : > { %v5570_v50 = vmul.f32 %v5569_v29, %v5567_v16  ;;  %v5580_v9 = vadd.s32 3, %v5576_v63  ;;  %vm5752_vm4 = vc.u32 %v12132_v24, %v12126_v23  ;;  %v5734_v6 = vsel %vm5728_vm8, %v5731_v13, %v5733_v28 }
 0x92f   : > { %vm5810_vm12 = vcmp.gt.s32.totalorder %v5809_v21, 0  ;;  %v12158_v40 = vshrl.u32 %v5652_v3, 30  ;;  %v5913_v15 = vadd.s32 1, %v6869_v44  ;;  %v5754_v46 = vsel %vm5752_vm4, %v5753_v60, %v12127_v57 }
 0x930   : > { %v5571_v32 = vxor.u32 2147483648, %v5570_v50  ;;  %v5811_v52 = vsel %vm5810_vm12, %v5809_v21, 0  ;;  %v5581_v18 = vand.u32 3, %v5580_v9  ;;  %v5750_v48 = vmul.u32 %v5743_v58, %v5734_v6 }
 0x931   : > { %v5813_v17 = vand.u32 31, %v5811_v52  ;;  %v5654_v54 = vshll.u32 %v12158_v40, 30  ;;  %v12855_v7 = vand.u32 2147483647, %v12096_v61  ;;  %vm5914_vm13 = vcmp.gt.s32.totalorder %v5913_v15, 0 }
 0x932   : > { %v5572_v62 = vsel %vm5489_vm15, %v5571_v32, %v5570_v50  ;;  %v12165_v43 = vadd.s32 %v5754_v46, %v5750_v48  ;;  %vm5582_vm2 = vcmp.lt.s32.totalorder %v5581_v18, 2  ;;  %vm5583_vm0 = vcmp.eq.s32.totalorder %v5581_v18, 0 }
 0x933   : > { %v5575_v41 = vsel %vm5488_vm1, %v11949_v51, %v5572_v62  ;;  %v12163_v8 = vsub.s32 32, %v5813_v17  ;;  %vm5586_vm7 = vcmp.eq.s32.totalorder %v5581_v18, 2  ;;  %v12858_v47 = vand.u32 2147483647, %v12047_v33 }
 0x934   : > { %7435 = vcosq.f32 %v5575_v41  ;;  %v12168_v19 = vsub.s32 %v5651_v25, %v5654_v54  ;;  %v5806_v30 = vand.u32 8388607, %v12855_v7  ;;  %v5915_v55 = vsel %vm5914_vm13, %v5913_v15, 0 }
 0x935   : > { %7437 = vsinq.f32 %v5575_v41  ;;  %v5826_v58 = vshrl.u32 %v12901_v36, %v12163_v8  ;;  %v5756_v57 = vadd.s32 536870912, %v12165_v43  ;;  %v5817_v42 = vshrl.u32 %v12899_v12, %v12163_v8 }
 0x936   : > { %v5820_v39 = vshrl.u32 %v12900_v0, %v12163_v8  ;;  %v5823_v16 = vshrl.u32 %v13004_v5, %v12163_v8  ;;  %v12181_v25 = vshrl.u32 %v5811_v52, 5  ;;  %v5825_v27 = vshll.u32 %v13004_v5, %v5813_v17 }
 0x937   : > { %v5829_v59 = vshrl.u32 %v13055_v49, %v12163_v8  ;;  %v5816_v10 = vshll.u32 %v12897_v26, %v5813_v17  ;;  %v5819_v2 = vshll.u32 %v12899_v12, %v5813_v17  ;;  %v5822_v21 = vshll.u32 %v12900_v0, %v5813_v17 }
 0x938   : > { %v5657_v20 = vsub.s32 0, %v12168_v19  ;;  %v5827_v63 = vor.u32 %v5826_v58, %v5825_v27  ;;  %v5828_v3 = vshll.u32 %v12901_v36, %v5813_v17  ;;  %vm5579_vm11 = vweird.f32 %v11949_v51 }
 0x939   : > { %v5818_v62 = vor.u32 %v5817_v42, %v5816_v10  ;;  %v5821_v13 = vor.u32 %v5820_v39, %v5819_v2  ;;  %v5824_v28 = vor.u32 %v5823_v16, %v5822_v21  ;;  %v5917_v60 = vand.u32 31, %v5915_v55 }
 0x93a   : > { %v5830_v41 = vor.u32 %v5829_v59, %v5828_v3  ;;  %v12197_v6 = vshrl.u32 %v5756_v57, 30  ;;  %vm5834_vm9 = vcmp.lt.s32.totalorder %v12181_v25, 4  ;;  %v6858_v15 = vmin.u32 %v5657_v20, %v12168_v19 }
 0x93b   : > { %vm5831_vm14 = vcmp.lt.s32.totalorder %v12181_v25, 1  ;;  %vm5833_vm10 = vcmp.lt.s32.totalorder %v12181_v25, 3  ;;  %v5840_v17 = vsel %vm5834_vm9, %v5827_v63, 920167782  ;;  %v5807_v51 = vor.u32 8388608, %v5806_v30 }
 0x93c   : > { %v5839_v46 = vsel %vm5831_vm14, %v5818_v62, %v5821_v13  ;;  %v5841_v18 = vsel %vm5833_vm10, %v5824_v28, %v5840_v17  ;;  %v5910_v48 = vand.u32 8388607, %v12858_v47  ;;  %v5843_v54 = vsel %vm5831_vm14, %v5821_v13, %v5824_v28 }
 0x93d   : > { %v5844_v58 = vsel %vm5834_vm9, %v5830_v41, 1326507024  ;;  %v5758_v57 = vshll.u32 %v12197_v6, 30  ;;  %vm5832_vm8 = vcmp.lt.s32.totalorder %v12181_v25, 2  ;;  %v5659_v42 = vclz %v6858_v15 }
 0x93e   : > { %v7436_v38 = vpop.eup %7435  ;;  %v5845_v30 = vsel %vm5833_vm10, %v5827_v63, %v5844_v58  ;;  %v5842_v39 = vsel %vm5832_vm8, %v5839_v46, %v5841_v18  ;;  %v12223_v16 = vadd.f32 %v11958_v14, %v12034_v34  ;;  %v5911_v27 = vor.u32 8388608, %v5910_v48 }
 0x93f   : > { %v7438_v29 = vpop.eup %7437  ;;  %v5587_v4 = vxor.u32 2147483648, %v7436_v38  ;;  %v5920_v59 = vshll.u32 %v12897_v26, %v5917_v60  ;;  %v5923_v10 = vshll.u32 %v12899_v12, %v5917_v60  ;;  %v6859_v3 = vadd.s32 4294967294, %v5659_v42 }
 0x940   : > { %v5584_v50 = vxor.u32 2147483648, %v7438_v29  ;;  %v5926_v41 = vshll.u32 %v12900_v0, %v5917_v60  ;;  %v5916_v15 = vshrl.u32 %v5915_v55, 5  ;;  %v5929_v17 = vshll.u32 %v13004_v5, %v5917_v60 }
 0x941   : > { %v5588_v32 = vsel %vm5586_vm7, %v5587_v4, %v7438_v29  ;;  %v5846_v29 = vsel %vm5832_vm8, %v5843_v54, %v5845_v30  ;;  %v12227_v4 = vshll.u32 %v5807_v51, 8  ;;  %v5815_v51 = vshrl.u32 %v12897_v26, %v12163_v8 }
 0x942   : > { %v5585_v44 = vsel %vm5583_vm0, %v7436_v38, %v5584_v50  ;;  %v5918_v38 = vsub.s32 32, %v5917_v60  ;;  %v5836_v54 = vsel %vm5834_vm9, %v5824_v28, 2102212464  ;;  %vm6860_vm6 = vcmp.lt.s32.totalorder %v6859_v3, 0 }
 0x943   : > { %v5589_v52 = vsel %vm5582_vm2, %v5585_v44, %v5588_v32  ;;  %v12235_v32 = vsub.s32 %v12165_v43, %v5758_v57  ;;  %v12238_v14 = vmul.u32.u64.low %v12227_v4, %v5842_v39  ;;  %v12239_v20 = vmul.u32.u64.high %v12227_v4, %v5842_v39, %v12238_v14 }
 0x944   : > { %v12195_v9 = vsel %vm5579_vm11, nan, %v5589_v52  ;;  %v5921_v50 = vshrl.u32 %v12899_v12, %v5918_v38  ;;  %v5924_v2 = vshrl.u32 %v12900_v0, %v5918_v38  ;;  %v5927_v21 = vshrl.u32 %v13004_v5, %v5918_v38 }
 0x945   : > { %v5930_v63 = vshrl.u32 %v12901_v36, %v5918_v38  ;;  %v12244_v44 = vmul.u32.u64.low %v12227_v4, %v5846_v29  ;;  %v12245_v52 = vmul.u32.u64.high %v12227_v4, %v5846_v29, %v12244_v44  ;;  %v6010_v43 = vand.u32 2139095040, %v12223_v16 }
 0x946   : > { %v5922_v46 = vor.u32 %v5921_v50, %v5920_v59  ;;  %v5925_v18 = vor.u32 %v5924_v2, %v5923_v10  ;;  %v5928_v48 = vor.u32 %v5927_v21, %v5926_v41  ;;  %v5932_v57 = vshll.u32 %v12901_v36, %v5917_v60 }
 0x947   : > { %v5931_v58 = vor.u32 %v5930_v63, %v5929_v17  ;;  %v5933_v30 = vshrl.u32 %v13055_v49, %v5918_v38  ;;  %v5761_v55 = vsub.s32 0, %v12235_v32  ;;  %v12259_v42 = vadd.f32 %v12009_v53, %v12034_v34 }
 0x948   : > { %v5951_v39 = vshll.u32 %v5911_v27, 8  ;;  %v5835_v8 = vsel %vm5831_vm14, %v5815_v51, %v5818_v62  ;;  %vm5935_vm15 = vcmp.lt.s32.totalorder %v5916_v15, 1  ;;  %vm5938_vm1 = vcmp.lt.s32.totalorder %v5916_v15, 4 }
 0x949   : > { %v5934_v29 = vor.u32 %v5933_v30, %v5932_v57  ;;  %v5837_v28 = vsel %vm5833_vm10, %v5821_v13, %v5836_v54  ;;  %v5919_v60 = vshrl.u32 %v12897_v26, %v5918_v38  ;;  %v5940_v59 = vsel %vm5938_vm1, %v5928_v48, 2102212464 }
 0x94a   : > { %v5943_v50 = vsel %vm5935_vm15, %v5922_v46, %v5925_v18  ;;  %v5857_v10 = vadd.s32 1, %v12239_v20  ;;  %vm5937_vm12 = vcmp.lt.s32.totalorder %v5916_v15, 3  ;;  %v5944_v2 = vsel %vm5938_vm1, %v5931_v58, 920167782 }
 0x94b   : > { %v5947_v53 = vsel %vm5935_vm15, %v5925_v18, %v5928_v48  ;;  %vm5856_vm4 = vc.u32 %v12245_v52, %v12238_v14  ;;  %vm5936_vm13 = vcmp.lt.s32.totalorder %v5916_v15, 2  ;;  %v5945_v62 = vsel %vm5937_vm12, %v5928_v48, %v5944_v2 }
 0x94c   : > { %v5948_v27 = vsel %vm5938_vm1, %v5934_v29, 1326507024  ;;  %v5939_v21 = vsel %vm5935_vm15, %v5919_v60, %v5922_v46  ;;  %v5941_v63 = vsel %vm5937_vm12, %v5925_v18, %v5940_v59  ;;  %v5946_v44 = vsel %vm5936_vm13, %v5943_v50, %v5945_v62 }
 0x94d   : > { %v5949_v41 = vsel %vm5937_vm12, %v5931_v58, %v5948_v27  ;;  %v5838_v13 = vsel %vm5832_vm8, %v5835_v8, %v5837_v28  ;;  %v12271_v17 = vmul.u32.u64.low %v5951_v39, %v5946_v44  ;;  %v12272_v51 = vmul.u32.u64.high %v5951_v39, %v5946_v44, %v12271_v17 }
 0x94e   : > { %v5950_v38 = vsel %vm5936_vm13, %v5947_v53, %v5949_v41  ;;  %v5662_v30 = vsel %vm6860_vm6, 0, %v6859_v3  ;;  %v5858_v15 = vsel %vm5856_vm4, %v5857_v10, %v12239_v20  ;;  %v5942_v48 = vsel %vm5936_vm13, %v5939_v21, %v5941_v63 }
 0x94f   : > { %v12275_v54 = vmul.u32.u64.low %v5951_v39, %v5950_v38  ;;  %v12276_v57 = vmul.u32.u64.high %v5951_v39, %v5950_v38, %v12275_v54  ;;  %v6114_v46 = vand.u32 2139095040, %v12259_v42  ;;  %v5854_v18 = vmul.u32 %v12227_v4, %v5838_v13 }
 0x950   : > { %v6862_v25 = vmin.u32 %v5761_v55, %v12235_v32  ;;  %v5961_v58 = vadd.s32 1, %v12272_v51  ;;  %v6011_v29 = vshrl.u32 %v6010_v43, 23  ;;  %v5667_v28 = vsub.s32 4294967266, %v5662_v30 }
 0x951   : > { %v6115_v8 = vshrl.u32 %v6114_v46, 23  ;;  %v5859_v60 = vadd.s32 %v5858_v15, %v5854_v18  ;;  %v5958_v59 = vmul.u32 %v5951_v39, %v5942_v48  ;;  %vm5960_vm2 = vc.u32 %v12276_v57, %v12271_v17 }
 0x952   : > { %v5962_v3 = vsel %vm5960_vm2, %v5961_v58, %v12272_v51  ;;  %v5763_v10 = vclz %v6862_v25  ;;  %v6873_v53 = vadd.s32 4294967169, %v6011_v29  ;;  %v5663_v4 = vsub.s32 32, %v5662_v30 }
 0x953   : > { %v6877_v20 = vadd.s32 4294967169, %v6115_v8  ;;  %v5963_v50 = vadd.s32 %v5962_v3, %v5958_v59  ;;  %v5668_v62 = vadd.s32 127, %v5667_v28  ;;  %v5860_v55 = vadd.s32 536870912, %v5859_v60 }
 0x954   : > { %v12854_v21 = vand.u32 2147483647, %v12259_v42  ;;  %v5647_v43 = vadd.s32 %v12059_v31, %v12054_v35  ;;  %v12857_v44 = vand.u32 2147483647, %v12223_v16  ;;  %v6863_v41 = vadd.s32 4294967294, %v5763_v10 }
 0x955   : > { %v6121_v2 = vadd.s32 1, %v6877_v20  ;;  %v5964_v27 = vadd.s32 536870912, %v5963_v50  ;;  %v6017_v38 = vadd.s32 1, %v6873_v53  ;;  %v5669_v54 = vshll.u32 %v5668_v62, 23 }
 0x956   : > { %v5665_v51 = vshrl.u32 %v5647_v43, %v5663_v4  ;;  %v12293_v15 = vshrl.u32 %v5860_v55, 30  ;;  %v6118_v46 = vand.u32 8388607, %v12854_v21  ;;  %v5664_v35 = vshll.u32 %v12168_v19, %v5662_v30 }
 0x957   : > { %vm6122_vm0 = vcmp.gt.s32.totalorder %v6121_v2, 0  ;;  %v12290_v39 = vshrl.u32 %v5964_v27, 30  ;;  %v12303_v25 = vand.u32 8388607, %v12857_v44  ;;  %vm6864_vm7 = vcmp.lt.s32.totalorder %v6863_v41, 0 }
 0x958   : > { %v6123_v63 = vsel %vm6122_vm0, %v6121_v2, 0  ;;  %vm6018_vm11 = vcmp.gt.s32.totalorder %v6017_v38, 0  ;;  %v12307_v29 = vor.u32 %v5665_v51, %v5664_v35  ;;  %v12309_v28 = vor.u32 4788187, %v5669_v54 }
 0x959   : > { %v6125_v13 = vand.u32 31, %v6123_v63  ;;  %v5966_v48 = vshll.u32 %v12290_v39, 30  ;;  %v5862_v59 = vshll.u32 %v12293_v15, 30  ;;  %v6119_v30 = vor.u32 8388608, %v6118_v46 }
 0x95a   : > { %v6124_v2 = vshrl.u32 %v6123_v63, 5  ;;  %v6019_v4 = vsel %vm6018_vm11, %v6017_v38, 0 }
 0x95b   : > { %v6126_v18 = vsub.s32 32, %v6125_v13  ;;  %v12299_v31 = vsub.s32 %v5963_v50, %v5966_v48  ;;  %v6128_v3 = vshll.u32 %v12897_v26, %v6125_v13  ;;  %v6131_v20 = vshll.u32 %v12899_v12, %v6125_v13 }
 0x95c   : > { %v6134_v53 = vshll.u32 %v12900_v0, %v6125_v13  ;;  %v6137_v27 = vshll.u32 %v13004_v5, %v6125_v13  ;;  %v6140_v48 = vshll.u32 %v12901_v36, %v6125_v13  ;;  %v12322_v35 = vsub.s32 %v5859_v60, %v5862_v59 }
 0x95d   : > { %v6129_v58 = vshrl.u32 %v12899_v12, %v6126_v18  ;;  %v6132_v8 = vshrl.u32 %v12900_v0, %v6126_v18  ;;  %v5969_v19 = vsub.s32 0, %v12299_v31  ;;  %v6135_v50 = vshrl.u32 %v13004_v5, %v6126_v18 }
 0x95e   : > { %v6138_v43 = vshrl.u32 %v12901_v36, %v6126_v18  ;;  %v6141_v46 = vshrl.u32 %v13055_v49, %v6126_v18  ;;  %v6021_v63 = vand.u32 31, %v6019_v4  ;;  %vm6143_vm9 = vcmp.lt.s32.totalorder %v6124_v2, 1 }
 0x95f   : > { %v6870_v10 = vmin.u32 %v5969_v19, %v12299_v31  ;;  %v6130_v62 = vor.u32 %v6129_v58, %v6128_v3  ;;  %v6133_v55 = vor.u32 %v6132_v8, %v6131_v20  ;;  %v6136_v54 = vor.u32 %v6135_v50, %v6134_v53 }
 0x960   : > { %v6139_v21 = vor.u32 %v6138_v43, %v6137_v27  ;;  %v6159_v19 = vshll.u32 %v6119_v30, 8  ;;  %v6142_v37 = vor.u32 %v6141_v46, %v6140_v48  ;;  %vm6146_vm14 = vcmp.lt.s32.totalorder %v6124_v2, 4 }
 0x961   : > { %v5971_v51 = vclz %v6870_v10  ;;  %v6127_v38 = vshrl.u32 %v12897_v26, %v6126_v18  ;;  %vm6145_vm10 = vcmp.lt.s32.totalorder %v6124_v2, 3  ;;  %v6151_v58 = vsel %vm6143_vm9, %v6130_v62, %v6133_v55 }
 0x962   : > { %v6152_v8 = vsel %vm6146_vm14, %v6139_v21, 920167782  ;;  %vm6144_vm6 = vcmp.lt.s32.totalorder %v6124_v2, 2  ;;  %v6148_v13 = vsel %vm6146_vm14, %v6136_v54, 2102212464  ;;  %v6155_v30 = vsel %vm6143_vm9, %v6133_v55, %v6136_v54 }
 0x963   : > { %v6871_v7 = vadd.s32 4294967294, %v5971_v51  ;;  %v6153_v3 = vsel %vm6145_vm10, %v6136_v54, %v6152_v8  ;;  %v6156_v20 = vsel %vm6146_vm14, %v6142_v37, 1326507024  ;;  %v12332_v50 = vsel %vm6864_vm7, 0, %v6863_v41 }
 0x964   : > { %v6154_v59 = vsel %vm6144_vm6, %v6151_v58, %v6153_v3  ;;  %v5865_v18 = vsub.s32 0, %v12322_v35  ;;  %v6147_v10 = vsel %vm6143_vm9, %v6127_v38, %v6130_v62  ;;  %v6022_v53 = vsub.s32 32, %v6021_v63 }
 0x965   : > { %vm6872_vm8 = vcmp.lt.s32.totalorder %v6871_v7, 0  ;;  %v6149_v27 = vsel %vm6145_vm10, %v6133_v55, %v6148_v13  ;;  %v6157_v43 = vsel %vm6145_vm10, %v6139_v21, %v6156_v20  ;;  %v5671_v48 = vand.u32 2147483647, %v12309_v28 }
 0x966   : > { %v12327_v60 = vsel %vm6872_vm8, 0, %v6871_v7  ;;  %v12338_v51 = vmul.u32.u64.low %v6159_v19, %v6154_v59  ;;  %v12339_v7 = vmul.u32.u64.high %v6159_v19, %v6154_v59, %v12338_v51  ;;  %v5673_v37 = vcvt.s32.f32 %v12307_v29 }
 0x967   : > { %v5979_v41 = vsub.s32 4294967266, %v12327_v60  ;;  %v6158_v54 = vsel %vm6144_vm6, %v6155_v30, %v6157_v43  ;;  %v6015_v62 = vor.u32 8388608, %v12303_v25  ;;  %v12352_v21 = vadd.f32 %v12013_v11, %v12034_v34 }
 0x968   : > { %v12346_v46 = vmul.u32.u64.low %v6159_v19, %v6158_v54  ;;  %v12347_v58 = vmul.u32.u64.high %v6159_v19, %v6158_v54, %v12346_v46  ;;  %v6866_v55 = vmin.u32 %v5865_v18, %v12322_v35  ;;  %v5959_v38 = vadd.s32 %v12271_v17, %v12276_v57 }
 0x969   : > { %v6150_v8 = vsel %vm6144_vm6, %v6147_v10, %v6149_v27  ;;  %v6020_v13 = vshrl.u32 %v6019_v4, 5  ;;  %v6169_v3 = vadd.s32 1, %v12339_v7  ;;  %v6024_v59 = vshll.u32 %v12897_v26, %v6021_v63 }
 0x96a   : > { %v6025_v30 = vshrl.u32 %v12899_v12, %v6022_v53  ;;  %v6028_v25 = vshrl.u32 %v12900_v0, %v6022_v53  ;;  %v5980_v20 = vadd.s32 127, %v5979_v41  ;;  %v6027_v11 = vshll.u32 %v12899_v12, %v6021_v63 }
 0x96b   : > { %v6030_v34 = vshll.u32 %v12900_v0, %v6021_v63  ;;  %v6031_v18 = vshrl.u32 %v13004_v5, %v6022_v53  ;;  %v5975_v17 = vsub.s32 32, %v12327_v60  ;;  %v6166_v57 = vmul.u32 %v6159_v19, %v6150_v8 }
 0x96c   : > { %vm6168_vm15 = vc.u32 %v12347_v58, %v12338_v51  ;;  %v6026_v2 = vor.u32 %v6025_v30, %v6024_v59  ;;  %v6029_v10 = vor.u32 %v6028_v25, %v6027_v11  ;;  %v6033_v43 = vshll.u32 %v13004_v5, %v6021_v63 }
 0x96d   : > { %v6170_v4 = vsel %vm6168_vm15, %v6169_v3, %v12339_v7  ;;  %v6032_v27 = vor.u32 %v6031_v18, %v6030_v34  ;;  %v6034_v54 = vshrl.u32 %v12901_v36, %v6022_v53  ;;  %v6036_v46 = vshll.u32 %v12901_v36, %v6021_v63 }
 0x96e   : > { %v6171_v41 = vadd.s32 %v6170_v4, %v6166_v57  ;;  %v6037_v44 = vshrl.u32 %v13055_v49, %v6022_v53  ;;  %v5867_v47 = vclz %v6866_v55  ;;  %v5976_v19 = vshll.u32 %v12299_v31, %v12327_v60 }
 0x96f   : > { %v5981_v8 = vshll.u32 %v5980_v20, 23  ;;  %v6055_v1 = vshll.u32 %v6015_v62, 8  ;;  %v6035_v30 = vor.u32 %v6034_v54, %v6033_v43  ;;  %vm6039_vm1 = vcmp.lt.s32.totalorder %v6020_v13, 1 }
 0x970   : > { %v6172_v59 = vadd.s32 536870912, %v6171_v41  ;;  %v6038_v7 = vor.u32 %v6037_v44, %v6036_v46  ;;  %v5977_v3 = vshrl.u32 %v5959_v38, %v5975_v17  ;;  %v6023_v25 = vshrl.u32 %v12897_v26, %v6022_v53 }
 0x971   : > { %vm6042_vm12 = vcmp.lt.s32.totalorder %v6020_v13, 4  ;;  %v6047_v11 = vsel %vm6039_vm1, %v6026_v2, %v6029_v10  ;;  %vm6041_vm4 = vcmp.lt.s32.totalorder %v6020_v13, 3  ;;  %vm6040_vm13 = vcmp.lt.s32.totalorder %v6020_v13, 2 }
 0x972   : > { %v12376_v34 = vshrl.u32 %v6172_v59, 30  ;;  %v6044_v63 = vsel %vm6042_vm12, %v6032_v27, 2102212464  ;;  %v6048_v18 = vsel %vm6042_vm12, %v6035_v30, 920167782  ;;  %v6051_v57 = vsel %vm6039_vm1, %v6029_v10, %v6032_v27 }
 0x973   : > { %v6049_v55 = vsel %vm6041_vm4, %v6032_v27, %v6048_v18  ;;  %v6052_v31 = vsel %vm6042_vm12, %v6038_v7, 1326507024  ;;  %v5982_v60 = vor.u32 4788187, %v5981_v8  ;;  %v6043_v20 = vsel %vm6039_vm1, %v6023_v25, %v6026_v2 }
 0x974   : > { %v6174_v62 = vshll.u32 %v12376_v34, 30  ;;  %v6050_v44 = vsel %vm6040_vm13, %v6047_v11, %v6049_v55  ;;  %v6045_v38 = vsel %vm6041_vm4, %v6029_v10, %v6044_v63  ;;  %v6053_v17 = vsel %vm6041_vm4, %v6035_v30, %v6052_v31 }
 0x975   : > { %v12380_v53 = vmul.u32.u64.low %v6055_v1, %v6050_v44  ;;  %v12381_v4 = vmul.u32.u64.high %v6055_v1, %v6050_v44, %v12380_v53  ;;  %v5771_v43 = vsub.s32 4294967266, %v12332_v50  ;;  %v5978_v54 = vor.u32 %v5977_v3, %v5976_v19 }
 0x976   : > { %v12385_v46 = vsub.s32 %v6171_v41, %v6174_v62  ;;  %v6054_v27 = vsel %vm6040_vm13, %v6051_v57, %v6053_v17  ;;  %v5674_v2 = vmul.f32 %v5673_v37, %v5671_v48  ;;  %v6867_v10 = vadd.s32 4294967294, %v5867_v47 }
 0x977   : > { %v12392_v8 = vmul.u32.u64.low %v6055_v1, %v6054_v27  ;;  %v12393_v59 = vmul.u32.u64.high %v6055_v1, %v6054_v27, %v12392_v8  ;;  %v5983_v30 = vand.u32 2147483647, %v5982_v60  ;;  %v6046_v25 = vsel %vm6040_vm13, %v6043_v20, %v6045_v38 }
 0x978   : > { %v6177_v7 = vsub.s32 0, %v12385_v46  ;;  %v5767_v19 = vsub.s32 32, %v12332_v50  ;;  %v6065_v41 = vadd.s32 1, %v12381_v4  ;;  %v6218_v3 = vand.u32 2139095040, %v12352_v21 }
 0x979   : > { %v5751_v28 = vadd.s32 %v12126_v23, %v12132_v24  ;;  %v5772_v29 = vadd.s32 127, %v5771_v43  ;;  %v5677_v48 = vsub.s32 4, %v12158_v40  ;;  %v5985_v37 = vcvt.s32.f32 %v5978_v54 }
 0x97a   : > { %v5675_v11 = vxor.u32 2147483648, %v5674_v2  ;;  %v6062_v47 = vmul.u32 %v6055_v1, %v6046_v25  ;;  %vm6064_vm2 = vc.u32 %v12393_v59, %v12380_v53  ;;  %v6219_v13 = vshrl.u32 %v6218_v3, 23 }
 0x97b   : > { %vm6868_vm0 = vcmp.lt.s32.totalorder %v6867_v10, 0  ;;  %v5986_v63 = vmul.f32 %v5985_v37, %v5983_v30  ;;  %v6878_v18 = vmin.u32 %v6177_v7, %v12385_v46  ;;  %v6066_v55 = vsel %vm6064_vm2, %v6065_v41, %v12381_v4 }
 0x97c   : > { %v5769_v57 = vshrl.u32 %v5751_v28, %v5767_v19  ;;  %vm5593_vm7 = vcmp.lt.s32.totalorder %v11952_v45, 0  ;;  %v6067_v23 = vadd.s32 %v6066_v55, %v6062_v47  ;;  %v6881_v24 = vadd.s32 4294967169, %v6219_v13 }
 0x97d   : > { %v5768_v31 = vshll.u32 %v12235_v32, %v12332_v50  ;;  %v13084_v1 = vand.u32 2147483647, %v11952_v45  ;;  %v12417_v62 = vsel %vm5593_vm7, %v5677_v48, %v12158_v40  ;;  %v5676_v20 = vsel %vm5593_vm7, %v5675_v11, %v5674_v2 }
 0x97e   : > { %v12419_v44 = vsel %vm6868_vm0, 0, %v6867_v10  ;;  %v6068_v38 = vadd.s32 536870912, %v6067_v23  ;;  %v6225_v17 = vadd.s32 1, %v6881_v24  ;;  %v5773_v4 = vshll.u32 %v5772_v29, 23 }
 0x97f   : > { %vm12412_vm11 = vcmp.le.f32.partialorder %v13084_v1, 0.7853982  ;;  %v5987_v43 = vxor.u32 2147483648, %v5986_v63  ;;  %v6179_v54 = vclz %v6878_v18  ;;  %v6215_v27 = vand.u32 2147483647, %v12352_v21 }
 0x980   : > { %v12422_v32 = vor.u32 %v5769_v57, %v5768_v31  ;;  %vm5905_vm9 = vcmp.lt.s32.totalorder %v12047_v33, 0  ;;  %v12425_v50 = vshrl.u32 %v6068_v38, 30  ;;  %vm6226_vm14 = vcmp.gt.s32.totalorder %v6225_v17, 0 }
 0x981   : > { %v5679_v40 = vsel %vm12412_vm11, %v11952_v45, %v5676_v20  ;;  %v5875_v2 = vsub.s32 4294967266, %v12419_v44  ;;  %v13087_v8 = vand.u32 2147483647, %v12047_v33  ;;  %v6227_v30 = vsel %vm6226_vm14, %v6225_v17, 0 }
 0x982   : > { %v5680_v7 = vsel %vm12412_vm11, 0, %v12417_v62  ;;  %v5989_v25 = vsub.s32 4, %v12290_v39  ;;  %v6070_v19 = vshll.u32 %v12425_v50, 30  ;;  %v6229_v41 = vand.u32 31, %v6227_v30 }
 0x983   : > { %vm12433_vm10 = vcmp.le.f32.partialorder %v13087_v8, 0.7853982  ;;  %v12442_v3 = vor.u32 4788187, %v5773_v4  ;;  %v5988_v28 = vsel %vm5905_vm9, %v5987_v43, %v5986_v63  ;;  %v6879_v29 = vadd.s32 4294967294, %v6179_v54 }
 0x984   : > { %v6222_v48 = vand.u32 8388607, %v6215_v27  ;;  %v5777_v37 = vcvt.s32.f32 %v12422_v32  ;;  %7439 = vcosq.f32 %v5679_v40  ;;  %v12449_v11 = vsub.s32 %v6067_v23, %v6070_v19 }
 0x985   : > { %v6230_v47 = vsub.s32 32, %v6229_v41  ;;  %7441 = vsinq.f32 %v5679_v40  ;;  %v12453_v13 = vadd.s32 %v12238_v14, %v12245_v52  ;;  %v5871_v18 = vsub.s32 32, %v12419_v44 }
 0x986   : > { %v12456_v55 = vadd.s32 127, %v5875_v2  ;;  %v12461_v63 = vsel %vm5905_vm9, %v5989_v25, %v12290_v39  ;;  %v5991_v57 = vsel %vm12433_vm10, %v12047_v33, %v5988_v28  ;;  %v6073_v23 = vsub.s32 0, %v12449_v11 }
 0x987   : > { %v6233_v24 = vshrl.u32 %v12899_v12, %v6230_v47  ;;  %vm6880_vm8 = vcmp.lt.s32.totalorder %v6879_v29, 0  ;;  %v6223_v14 = vor.u32 8388608, %v6222_v48  ;;  %v6232_v52 = vshll.u32 %v12897_v26, %v6229_v41 }
 0x988   : > { %v6236_v31 = vshrl.u32 %v12900_v0, %v6230_v47  ;;  %v6874_v1 = vmin.u32 %v6073_v23, %v12449_v11  ;;  %v6235_v20 = vshll.u32 %v12899_v12, %v6229_v41  ;;  %v6238_v39 = vshll.u32 %v12900_v0, %v6229_v41 }
 0x989   : > { %v6239_v38 = vshrl.u32 %v13004_v5, %v6230_v47  ;;  %v6228_v17 = vshrl.u32 %v6227_v30, 5  ;;  %v6234_v4 = vor.u32 %v6233_v24, %v6232_v52  ;;  %v6241_v43 = vshll.u32 %v13004_v5, %v6229_v41 }
 0x98a   : > { %v6242_v54 = vshrl.u32 %v12901_v36, %v6230_v47  ;;  %v6075_v40 = vclz %v6874_v1  ;;  %v6237_v2 = vor.u32 %v6236_v31, %v6235_v20  ;;  %v6245_v25 = vshrl.u32 %v13055_v49, %v6230_v47 }
 0x98b   : > { %v6240_v8 = vor.u32 %v6239_v38, %v6238_v39  ;;  %v5877_v19 = vshll.u32 %v12456_v55, 23  ;;  %7443 = vcosq.f32 %v5991_v57  ;;  %v6244_v12 = vshll.u32 %v12901_v36, %v6229_v41 }
 0x98c   : > { %v6243_v28 = vor.u32 %v6242_v54, %v6241_v43  ;;  %v12480_v0 = vsel %vm6880_vm8, 0, %v6879_v29  ;;  %v6063_v30 = vadd.s32 %v12380_v53, %v12393_v59  ;;  %v6875_v5 = vadd.s32 4294967294, %v6075_v40 }
 0x98d   : > { %v6263_v48 = vshll.u32 %v6223_v14, 8  ;;  %v6246_v23 = vor.u32 %v6245_v25, %v6244_v12  ;;  %vm6247_vm6 = vcmp.lt.s32.totalorder %v6228_v17, 1  ;;  %vm6249_vm15 = vcmp.lt.s32.totalorder %v6228_v17, 3 }
 0x98e   : > { %vm6250_vm1 = vcmp.lt.s32.totalorder %v6228_v17, 4  ;;  %v12484_v24 = vpop.eup %7439  ;;  %vm6876_vm12 = vcmp.lt.s32.totalorder %v6875_v5, 0  ;;  %v6255_v55 = vsel %vm6247_vm6, %v6234_v4, %v6237_v2  ;;  %v6187_v29 = vsub.s32 4294967266, %v12480_v0 }
 0x98f   : > { %v6252_v49 = vsel %vm6250_vm1, %v6240_v8, 2102212464  ;;  %v6256_v36 = vsel %vm6250_vm1, %v6243_v28, 920167782  ;;  %v12489_v41 = vpop.eup %7441  ;;  %v6078_v53 = vsel %vm6876_vm12, 0, %v6875_v5  ;;  %v6231_v59 = vshrl.u32 %v12897_v26, %v6230_v47 }
 0x990   : > { %v6257_v14 = vsel %vm6249_vm15, %v6240_v8, %v6256_v36  ;;  %v6079_v52 = vsub.s32 32, %v6078_v53  ;;  %v6083_v31 = vsub.s32 4294967266, %v6078_v53  ;;  %vm6248_vm4 = vcmp.lt.s32.totalorder %v6228_v17, 2 }
 0x991   : > { %v6259_v1 = vsel %vm6247_vm6, %v6237_v2, %v6240_v8  ;;  %v6251_v20 = vsel %vm6247_vm6, %v6231_v59, %v6234_v4  ;;  %v6253_v39 = vsel %vm6249_vm15, %v6237_v2, %v6252_v49  ;;  %v6258_v38 = vsel %vm6248_vm4, %v6255_v55, %v6257_v14 }
 0x992   : > { %v6260_v43 = vsel %vm6250_vm1, %v6246_v23, 1326507024  ;;  %v6080_v54 = vshll.u32 %v12449_v11, %v6078_v53  ;;  %v6081_v40 = vshrl.u32 %v6063_v30, %v6079_v52  ;;  %v6084_v25 = vadd.s32 127, %v6083_v31 }
 0x993   : > { %v6261_v26 = vsel %vm6249_vm15, %v6243_v28, %v6260_v43  ;;  %v6188_v47 = vadd.s32 127, %v6187_v29  ;;  %v12502_v5 = vmul.u32.u64.low %v6263_v48, %v6258_v38  ;;  %v12503_v36 = vmul.u32.u64.high %v6263_v48, %v6258_v38, %v12502_v5 }
 0x994   : > { %v6262_v12 = vsel %vm6248_vm4, %v6259_v1, %v6261_v26  ;;  %v6082_v4 = vor.u32 %v6081_v40, %v6080_v54  ;;  %v6085_v8 = vshll.u32 %v6084_v25, 23  ;;  %v5873_v11 = vshrl.u32 %v12453_v13, %v5871_v18 }
 0x995   : > { %v12506_v2 = vmul.u32.u64.low %v6263_v48, %v6262_v12  ;;  %v12507_v49 = vmul.u32.u64.high %v6263_v48, %v6262_v12, %v12506_v2  ;;  %v12509_v55 = vpop.eup %7443  ;;  %7445 = vsinq.f32 %v5991_v57  ;;  %v6183_v28 = vsub.s32 32, %v12480_v0 }
 0x996   : > { %v6254_v30 = vsel %vm6248_vm4, %v6251_v20, %v6253_v39  ;;  %v5775_v23 = vand.u32 2147483647, %v12442_v3  ;;  %v5872_v29 = vshll.u32 %v12322_v35, %v12419_v44  ;;  %v5992_v53 = vsel %vm12433_vm10, 0, %v12461_v63 }
 0x997   : > { %v13090_v59 = vand.u32 2147483647, %v12223_v16  ;;  %v6086_v13 = vor.u32 4788187, %v6085_v8  ;;  %v5878_v18 = vor.u32 4788187, %v5877_v19  ;;  %v6167_v57 = vadd.s32 %v12338_v51, %v12347_v58 }
 0x998   : > { %v6189_v17 = vshll.u32 %v6188_v47, 23  ;;  %v6273_v3 = vadd.s32 1, %v12503_v36  ;;  %v6089_v35 = vcvt.s32.f32 %v6082_v4  ;;  %v6270_v44 = vmul.u32 %v6263_v48, %v6254_v30 }
 0x999   : > { %vm12524_vm13 = vcmp.le.f32.partialorder %v13090_v59, 0.7853982  ;;  %v6087_v52 = vand.u32 2147483647, %v6086_v13  ;;  %vm6272_vm2 = vc.u32 %v12507_v49, %v12502_v5  ;;  %v5684_v10 = vadd.s32 3, %v5680_v7 }
 0x99a   : > { %v5874_v63 = vor.u32 %v5873_v11, %v5872_v29  ;;  %v6185_v31 = vshrl.u32 %v6167_v57, %v6183_v28  ;;  %v6274_v19 = vsel %vm6272_vm2, %v6273_v3, %v12503_v36  ;;  %v5778_v51 = vmul.f32 %v5777_v37, %v5775_v23 }
 0x99b   : > { %v6090_v58 = vmul.f32 %v6089_v35, %v6087_v52  ;;  %v6093_v1 = vsub.s32 4, %v12425_v50  ;;  %v6275_v20 = vadd.s32 %v6274_v19, %v6270_v44  ;;  %v5879_v48 = vand.u32 2147483647, %v5878_v18 }
 0x99c   : > { %v5996_v39 = vadd.s32 3, %v5992_v53  ;;  %v6184_v38 = vshll.u32 %v12385_v46, %v12480_v0  ;;  %v6190_v60 = vor.u32 4788187, %v6189_v17  ;;  %vm5697_vm0 = vcmp.lt.s32.totalorder %v11997_v22, 0  ;;  %v7477_v17 = vld [vmem:[#allocation5] sm:$0xff] }
 0x99d   : > { %vm6009_vm7 = vcmp.lt.s32.totalorder %v12223_v16, 0  ;;  %v6091_v62 = vxor.u32 2147483648, %v6090_v58  ;;  %v6276_v7 = vadd.s32 536870912, %v6275_v20  ;;  %v13093_v43 = vand.u32 2147483647, %v11997_v22 }
 0x99e   : > { %v5685_v37 = vand.u32 3, %v5684_v10  ;;  %v5881_v54 = vcvt.s32.f32 %v5874_v63  ;;  %v6186_v40 = vor.u32 %v6185_v31, %v6184_v38  ;;  %v5779_v25 = vxor.u32 2147483648, %v5778_v51 }
 0x99f   : > { %vm12547_vm11 = vcmp.le.f32.partialorder %v13093_v43, 0.7853982  ;;  %vm5801_vm9 = vcmp.lt.s32.totalorder %v12096_v61, 0  ;;  %v6092_v46 = vsel %vm6009_vm7, %v6091_v62, %v6090_v58  ;;  %v6094_v0 = vsel %vm6009_vm7, %v6093_v1, %v12425_v50  ;;  %v7446_v47 = vpop.eup %7445 }
 0x9a0   : > { %v12553_v26 = vshrl.u32 %v6276_v7, 30  ;;  %v5882_v12 = vmul.f32 %v5881_v54, %v5879_v48  ;;  %v5997_v36 = vand.u32 3, %v5996_v39  ;;  %v6191_v4 = vand.u32 2147483647, %v6190_v60 }
 0x9a1   : > { %v6095_v8 = vsel %vm12524_vm13, %v12223_v16, %v6092_v46  ;;  %v5688_v11 = vxor.u32 2147483648, %v12489_v41  ;;  %v5691_v28 = vxor.u32 2147483648, %v12484_v24  ;;  %v6193_v30 = vcvt.s32.f32 %v6186_v40 }
 0x9a2   : > { %7447 = vcosq.f32 %v6095_v8  ;;  %v6278_v2 = vshll.u32 %v12553_v26, 30  ;;  %v6096_v50 = vsel %vm12524_vm13, 0, %v6094_v0  ;;  %v6000_v29 = vxor.u32 2147483648, %v7446_v47 }
 0x9a3   : > { %7449 = vsinq.f32 %v6095_v8  ;;  %v6003_v53 = vxor.u32 2147483648, %v12509_v55  ;;  %v7638_v59 = vmov 52   ;;  %v5780_v13 = vsel %vm5697_vm0, %v5779_v25, %v5778_v51 }
 0x9a4   : > { %v12563_v23 = vsub.s32 %v6275_v20, %v6278_v2  ;;  %7271 = vset.pattern.permute.xlu1 %v7638_v59  ;;  %v5883_v18 = vxor.u32 2147483648, %v5882_v12  ;;  %v6194_v57 = vmul.f32 %v6193_v30, %v6191_v4  ;;  %vm5687_vm14 = vcmp.eq.s32.totalorder %v5685_v37, 0 }
 0x9a5   : > { %6328 = vperm.xlu1 %7271, %v7477_v17   ;;  %v7639_v3 = vmov 53   ;;  %v6100_v14 = vadd.s32 3, %v6096_v50  ;;  %vm5690_vm10 = vcmp.eq.s32.totalorder %v5685_v37, 2  ;;  %v5689_v35 = vsel %vm5687_vm14, %v12484_v24, %v5688_v11  ;;  %v13102_v11 = vld [vmem:[#allocation33_spill] sm:$0xff] }
 0x9a6   : > { %7272 = vset.pattern.permute.xlu0 %v7639_v3  ;;  %v6281_v52 = vsub.s32 0, %v12563_v23  ;;  %v5692_v44 = vsel %vm5690_vm10, %v5691_v28, %v12489_v41  ;;  %vm5999_vm8 = vcmp.eq.s32.totalorder %v5997_v36, 0  ;;  %vm6002_vm6 = vcmp.eq.s32.totalorder %v5997_v36, 2 }
 0x9a7   : > { %6494 = vperm.xlu0 %7272, %v7477_v17   ;;  %v12574_v10 = vsel %vm12547_vm11, %v11997_v22, %v5780_v13  ;;  %v6001_v31 = vsel %vm5999_vm8, %v12509_v55, %v6000_v29  ;;  %v6004_v19 = vsel %vm6002_vm6, %v6003_v53, %v7446_v47  ;;  %v5884_v51 = vsel %vm5801_vm9, %v5883_v18, %v5882_v12  ;;  %v13104_v13 = vld [vmem:[#allocation28_spill] sm:$0xff] }
 0x9a8   : > { %v6882_v63 = vmin.u32 %v6281_v52, %v12563_v23  ;;  %v6195_v58 = vxor.u32 2147483648, %v6194_v57  ;;  %vm5686_vm15 = vcmp.lt.s32.totalorder %v5685_v37, 2  ;;  %v7640_v24 = vmov 68  }
 0x9a9   : > { %7273 = vset.pattern.permute.xlu1 %v7640_v24  ;;  %v6101_v41 = vand.u32 3, %v6100_v14  ;;  %v5693_v20 = vsel %vm5686_vm15, %v5689_v35, %v5692_v44  ;;  %vm5998_vm1 = vcmp.lt.s32.totalorder %v5997_v36, 2  ;;  %7451 = vcosq.f32 %v12574_v10 }
 0x9aa   : > { %v6283_v1 = vclz %v6882_v63  ;;  %6506 = vperm.xlu1 %7273, %v7477_v17   ;;  %v13096_v48 = vand.u32 2147483647, %v12096_v61  ;;  %v13099_v39 = vand.u32 2147483647, %v12259_v42  ;;  %v6005_v60 = vsel %vm5998_vm1, %v6001_v31, %v6004_v19 }
 0x9ab   : > { %7274 = vset.pattern.permute.xlu0 %v7640_v24  ;;  %vm6113_vm13 = vcmp.lt.s32.totalorder %v12259_v42, 0  ;;  %vm5683_vm2 = vweird.f32 %v11952_v45  ;;  %vm5995_vm7 = vweird.f32 %v12047_v33  ;;  %vm6106_vm10 = vcmp.eq.s32.totalorder %v6101_v41, 2 }
 0x9ac   : > { %vm12583_vm12 = vcmp.le.f32.partialorder %v13096_v48, 0.7853982  ;;  %vm12589_vm4 = vcmp.le.f32.partialorder %v13099_v39, 0.7853982  ;;  %v7448_v62 = vpop.eup %7447  ;;  %v6883_v43 = vadd.s32 4294967294, %v6283_v1  ;;  %v6196_v54 = vsel %vm6113_vm13, %v6195_v58, %v6194_v57  ;;  %v12629_v58 = vpop.permute.xlu1 %6335 }
 0x9ad   : > { %v5887_v7 = vsel %vm12583_vm12, %v12096_v61, %v5884_v51  ;;  %v7450_v37 = vpop.eup %7449  ;;  %v5694_v40 = vsel %vm5683_vm2, nan, %v5693_v20  ;;  %v6107_v25 = vxor.u32 2147483648, %v7448_v62  ;;  %v6006_v0 = vsel %vm5995_vm7, nan, %v6005_v60 }
 0x9ae   : > { %vm6884_vm14 = vcmp.lt.s32.totalorder %v6883_v43, 0  ;;  %v6104_v46 = vxor.u32 2147483648, %v7450_v37  ;;  %vm6102_vm8 = vcmp.lt.s32.totalorder %v6101_v41, 2  ;;  %vm6103_vm6 = vcmp.eq.s32.totalorder %v6101_v41, 0 }
 0x9af   : > { %v6286_v47 = vsel %vm6884_vm14, 0, %v6883_v43  ;;  %v6108_v12 = vsel %vm6106_vm10, %v6107_v25, %v7450_v37  ;;  %v6271_v36 = vadd.s32 %v12502_v5, %v12507_v49  ;;  %v6199_v2 = vsel %vm12589_vm4, %v12259_v42, %v6196_v54  ;;  %v13103_v5 = vld [vmem:[#allocation31_spill] sm:$0xff] }
 0x9b0   : > { %v6287_v45 = vsub.s32 32, %v6286_v47  ;;  %v6291_v4 = vsub.s32 4294967266, %v6286_v47  ;;  %v6105_v8 = vsel %vm6103_vm6, %v7448_v62, %v6104_v46  ;;  %vm6099_vm15 = vweird.f32 %v12223_v16  ;;  %v13105_v16 = vld [vmem:[#allocation36_spill] sm:$0xff] }
 0x9b1   : > { %v6109_v33 = vsel %vm6102_vm8, %v6105_v8, %v6108_v12  ;;  %v6323_v28 = vadd.f32 %v6006_v0, %v13102_v11  ;;  %v6288_v30 = vshll.u32 %v12563_v23, %v6286_v47  ;;  %v5781_v59 = vsub.s32 4, %v12197_v6 }
 0x9b2   : > { %v6289_v50 = vshrl.u32 %v6271_v36, %v6287_v45  ;;  %v6292_v29 = vadd.s32 127, %v6291_v4  ;;  %v6110_v53 = vsel %vm6099_vm15, nan, %v6109_v33  ;;  %7453 = vcosq.f32 %v5887_v7 }
 0x9b3   : > { %v6320_v49 = vadd.f32 %v5694_v40, %v13103_v5  ;;  %v6324_v18 = vadd.f32 %v6110_v53, %v13104_v13  ;;  %v6197_v57 = vsub.s32 4, %v12376_v34  ;;  %v6319_v14 = vadd.f32 %v12195_v9, %v13105_v16  ;;  %v12615_v52 = vpop.eup %7451 }
 0x9b4   : > { %v6290_v17 = vor.u32 %v6289_v50, %v6288_v30  ;;  %v6293_v3 = vshll.u32 %v6292_v29, 23  ;;  %v5885_v23 = vsub.s32 4, %v12293_v15  ;;  %7455 = vcosq.f32 %v6199_v2 }
 0x9b5   : > { %v6958_v35 = vpack.c.bf16 %v6324_v18, %v6320_v49  ;;  %7457 = vsinq.f32 %v6199_v2  ;;  %v6961_v63 = vpack.c.bf16 %v6323_v28, %v6319_v14  ;;  %v5782_v31 = vsel %vm5697_vm0, %v5781_v59, %v12197_v6 }
 0x9b6   : > { %v6294_v44 = vor.u32 4788187, %v6293_v3  ;;  %7459 = vsinq.f32 %v5887_v7  ;;  %v6198_v9 = vsel %vm6113_vm13, %v6197_v57, %v12376_v34  ;;  %v6297_v51 = vcvt.s32.f32 %v6290_v17 }
 0x9b7   : > { %6960 = vmatprep.subr.msk.bf16.mxu0 %vm8318_vm5, %v6958_v35  ;;  %7461 = vsinq.f32 %v12574_v10  ;;  %v5886_v6 = vsel %vm5801_vm9, %v5885_v23, %v12293_v15  ;;  %v5784_v24 = vsel %vm12547_vm11, 0, %v5782_v31  ;;  %v6301_v10 = vsub.s32 4, %v12553_v26  ;;  %v13108_v35 = vld [vmem:[#allocation35_spill] sm:$0xff] }
 0x9b8   : > { %v6295_v19 = vand.u32 2147483647, %v6294_v44  ;;  %6963 = vmatpush1.bf16.msk.msra.mxu0 %vm8318_vm5, %v6961_v63  ;;  %v6200_v34 = vsel %vm12589_vm4, 0, %v6198_v9  ;;  %v5888_v1 = vsel %vm12583_vm12, 0, %v5886_v6  ;;  %v5788_v39 = vadd.s32 3, %v5784_v24  ;;  %v13109_v63 = vld [vmem:[#allocation37_spill] sm:$0xff] }
 0x9b9   : > { %vm6217_vm0 = vcmp.lt.s32.totalorder %v12352_v21, 0  ;;  %v6204_v15 = vadd.s32 3, %v6200_v34  ;;  %vm12646_vm11 = vcmp.le.f32.partialorder %v6215_v27, 0.7853982  ;;  %v5892_v7 = vadd.s32 3, %v5888_v1  ;;  %v13112_v24 = vld [vmem:[#allocation13_spill] sm:$0xff] }
 0x9ba   : > { %v6298_v41 = vmul.f32 %v6297_v51, %v6295_v19  ;;  %v6302_v60 = vsel %vm6217_vm0, %v6301_v10, %v12553_v26  ;;  %v5789_v40 = vand.u32 3, %v5788_v39  ;;  %v5795_v4 = vxor.u32 2147483648, %v12615_v52  ;;  %v13113_v10 = vld [vmem:[#allocation17_spill] sm:$0xff]  ;;  %v13114_v1 = vld [vmem:[#allocation12_spill] sm:$0xff] }
 0x9bb   : > { %6887 = vmatmul.mubr.msk.f32.vlgmr.msra.gmra.mrb[20].mxu0 %vm1155_vm3, %v12629_v58  ;;  %v6304_v54 = vsel %vm12646_vm11, 0, %v6302_v60  ;;  %v6205_v25 = vand.u32 3, %v6204_v15  ;;  %v5893_v46 = vand.u32 3, %v5892_v7  ;;  %vm6203_vm6 = vweird.f32 %v12259_v42  ;;  %v13110_v42 = vld [vmem:[#allocation30_spill] sm:$0xff]  ;;  %v13115_v39 = vld [vmem:[#allocation16_spill] sm:$0xff] }
 0x9bc   : > { %v6299_v20 = vxor.u32 2147483648, %v6298_v41  ;;  %v7454_v48 = vpop.eup %7453  ;;  %v6308_v26 = vadd.s32 3, %v6304_v54  ;;  %vm5791_vm9 = vcmp.eq.s32.totalorder %v5789_v40, 0  ;;  %vm5794_vm2 = vcmp.eq.s32.totalorder %v5789_v40, 2 }
 0x9bd   : > { %v5899_v36 = vxor.u32 2147483648, %v7454_v48  ;;  %vm6207_vm1 = vcmp.eq.s32.totalorder %v6205_v25, 0  ;;  %vm6210_vm12 = vcmp.eq.s32.totalorder %v6205_v25, 2  ;;  %vm5895_vm4 = vcmp.eq.s32.totalorder %v5893_v46, 0 }
 0x9be   : > { %v6300_v38 = vsel %vm6217_vm0, %v6299_v20, %v6298_v41  ;;  %v7456_v62 = vpop.eup %7455  ;;  %vm5898_vm13 = vcmp.eq.s32.totalorder %v5893_v46, 2  ;;  %v6309_v33 = vand.u32 3, %v6308_v26  ;;  %vm6206_vm7 = vcmp.lt.s32.totalorder %v6205_v25, 2  ;;  %v13117_v25 = vld [vmem:[#allocation23_spill] sm:$0xff] }
 0x9bf   : > { %v6303_v55 = vsel %vm12646_vm11, %v12352_v21, %v6300_v38  ;;  %v7458_v43 = vpop.eup %7457  ;;  %v6211_v47 = vxor.u32 2147483648, %v7456_v62  ;;  %vm5894_vm14 = vcmp.lt.s32.totalorder %v5893_v46, 2  ;;  %vm5790_vm10 = vcmp.lt.s32.totalorder %v5789_v40, 2 }
 0x9c0   : > { %7463 = vcosq.f32 %v6303_v55  ;;  %v7460_v37 = vpop.eup %7459  ;;  %v6208_v0 = vxor.u32 2147483648, %v7458_v43  ;;  %vm6314_vm8 = vcmp.eq.s32.totalorder %v6309_v33, 2  ;;  %vm5891_vm15 = vweird.f32 %v12096_v61  ;;  %v13111_v61 = vld [vmem:[#allocation29_spill] sm:$0xff] }
 0x9c1   : > { %7465 = vsinq.f32 %v6303_v55  ;;  %v7462_v27 = vpop.eup %7461  ;;  %v5896_v12 = vxor.u32 2147483648, %v7460_v37  ;;  %v6212_v2 = vsel %vm6210_vm12, %v6211_v47, %v7458_v43  ;;  %v5900_v28 = vsel %vm5898_vm13, %v5899_v36, %v7460_v37 }
 0x9c2   : > { %v5792_v45 = vxor.u32 2147483648, %v7462_v27  ;;  %v6209_v8 = vsel %vm6207_vm1, %v7456_v62, %v6208_v0  ;;  %v5796_v50 = vsel %vm5794_vm2, %v5795_v4, %v7462_v27  ;;  %vm6311_vm0 = vcmp.eq.s32.totalorder %v6309_v33, 0  ;;  %v13116_v27 = vld [vmem:[#allocation15_spill] sm:$0xff]  ;;  %v13118_v0 = vld [vmem:[#allocation14_spill] sm:$0xff] }
 0x9c3   : > { %v5897_v11 = vsel %vm5895_vm4, %v7454_v48, %v5896_v12  ;;  %v6213_v53 = vsel %vm6206_vm7, %v6209_v8, %v6212_v2  ;;  %vm5787_vm11 = vweird.f32 %v11997_v22  ;;  %vm6307_vm1 = vweird.f32 %v12352_v21  ;;  %v13119_v12 = vld [vmem:[#allocation22_spill] sm:$0xff] }
 0x9c4   : > { %v5793_v30 = vsel %vm5791_vm9, %v12615_v52, %v5792_v45  ;;  %v5901_v5 = vsel %vm5894_vm14, %v5897_v11, %v5900_v28  ;;  %v6214_v17 = vsel %vm6203_vm6, nan, %v6213_v53  ;;  %vm6310_vm9 = vcmp.lt.s32.totalorder %v6309_v33, 2  ;;  %v13120_v11 = vld [vmem:[#allocation11_spill] sm:$0xff] }
 0x9c5   : > { %v5797_v13 = vsel %vm5790_vm10, %v5793_v30, %v5796_v50  ;;  %v5902_v3 = vsel %vm5891_vm15, nan, %v5901_v5  ;;  %v6325_v44 = vadd.f32 %v6214_v17, %v13108_v35  ;;  %v7641_v37 = vmov 1966171168  }
 0x9c6   : > { %v5798_v14 = vsel %vm5787_vm11, nan, %v5797_v13  ;;  %v6322_v31 = vadd.f32 %v5902_v3, %v13109_v63  ;;  %v6520_v54 = vunpack.c.l.s4 %v7641_v37  ;;  %v13121_v13 = vlaneseq }
 0x9c7   : > { %v6321_v19 = vadd.f32 %v5798_v14, %v13111_v61 }
 0x9c8   : > { %v6521_v45 = vunpack.c.0.s8 %v6520_v54 }
 0x9c9   : > { %v6967_v6 = vpack.c.bf16 %v6325_v44, %v6321_v19 }
 0x9ca   : > { %v7464_v29 = vpop.eup %7463  ;;  %v6524_v28 = vsub.s32 %v6521_v45, %v13120_v11 }
 0x9cb   : > { %v7466_v59 = vpop.eup %7465  ;;  %v6315_v49 = vxor.u32 2147483648, %v7464_v29 }
 0x9cc   : > { %v6312_v18 = vxor.u32 2147483648, %v7466_v59 }
 0x9cd   : > { %v6316_v57 = vsel %vm6314_vm8, %v6315_v49, %v7466_v59 }
 0x9ce   : > { %v6313_v16 = vsel %vm6311_vm0, %v7464_v29, %v6312_v18 }
 0x9cf   : > { %v6317_v52 = vsel %vm6310_vm9, %v6313_v16, %v6316_v57 }
 0x9d0   : > { %v6318_v23 = vsel %vm6307_vm1, nan, %v6317_v52 }
 0x9d1   : > { %v6326_v9 = vadd.f32 %v6318_v23, %v13110_v42 }
 0x9d3   : > { %v6964_v51 = vpack.c.bf16 %v6326_v9, %v6322_v31 }
 0x9d5   : > { %6966 = vmatprep.subr.msk.bf16.mxu1 %vm8318_vm5, %v6964_v51 }
 0x9d6   : > { %6969 = vmatpush1.bf16.msk.msra.mxu1 %vm8318_vm5, %v6967_v6  ;;  %vm6544_vm5 = vcmp.lt.s32.totalorder %v13121_v13, 512 }
 0x9d9   : > { %6890 = vmatmul.mubr.msk.f32.vlgmr.msra.gmra.mrb[20].mxu1 %vm1155_vm3, %v12629_v58 }
 0xa24   : > { %v6329_v22 = vpop.permute.xlu1 %6328 }
 0xa25   : > { %v6331_v41 = vmul.f32 %v6329_v22, %v13112_v24  ;;  %v6332_v34 = vmul.f32 %v6329_v22, %v13113_v10  ;;  %v6333_v40 = vmul.f32 %v6329_v22, %v13116_v27  ;;  %v6334_v46 = vmul.f32 %v6329_v22, %v13117_v25 }
 0xa26   : > { %v6495_v21 = vpop.permute.xlu0 %6494 }
 0xa27   : > { %v6497_v20 = vmul.f32 %v6495_v21, %v13114_v1  ;;  %v6498_v15 = vmul.f32 %v6495_v21, %v13115_v39  ;;  %v6499_v47 = vmul.f32 %v6495_v21, %v13118_v0  ;;  %v6500_v36 = vmul.f32 %v6495_v21, %v13119_v12 }
 0xa29   : > { %v6507_v62 = vpop.permute.xlu1 %6506 }
 0xa8e   : > { %v6417_v48 = vpop.f32.mrb[20].mxu0 }
 0xa8f   : > { %v6418_v32 = vadd.f32 %v6417_v48, %v6331_v41  ;;  %v6419_v38 = vpop.f32.mrb[21].mxu0 }
 0xa90   : > { %v6420_v60 = vadd.f32 %v6419_v38, %v6332_v34 }
 0xa91   : > { %v6501_v56 = vadd.f32 %v6497_v20, %v6418_v32 }
 0xa92   : > { %v6502_v7 = vadd.f32 %v6498_v15, %v6420_v60 }
 0xa93   : > { %v6509_v55 = vadd.f32 %v6507_v62, %v6501_v56 }
 0xa94   : > { %v6510_v43 = vadd.f32 %v6507_v62, %v6502_v7 }
 0xa96   : > { %v6517_v58 = vcombine.low %v6509_v55, %v6510_v43 }
 0xa98   : > { %v6525_v59 = vrot.slane %v6517_v58, %v6524_v28 }
 0xaac   : > { %v6488_v26 = vpop.f32.mrb[20].mxu1 }
 0xaad   : > { %v6489_v4 = vadd.f32 %v6488_v26, %v6333_v40  ;;  %v6490_v8 = vpop.f32.mrb[21].mxu1 }
 0xaae   : > { %v6491_v2 = vadd.f32 %v6490_v8, %v6334_v46 }
 0xaaf   : > { %v6503_v33 = vadd.f32 %v6499_v47, %v6489_v4 }
 0xab0   : > { %v6504_v30 = vadd.f32 %v6500_v36, %v6491_v2 }
 0xab1   : > { %v6511_v50 = vadd.f32 %v6507_v62, %v6503_v33 }
 0xab2   : > { %v6512_v29 = vadd.f32 %v6507_v62, %v6504_v30 }
 0xab4   : > { %v6518_v53 = vcombine.low %v6511_v50, %v6512_v29 }
 0xab6   : > { %v6532_v5 = vrot.slane %v6518_v53, %v6524_v28 }
 0xab8   : > { %v6533_v49 = vcombine.low %v6525_v59, %v6532_v5 }
 0xaba   : > { %v6540_v18 = vrot.slane %v6533_v49, %v6524_v28 }
 0xabc   : > { %6546 = vst.msk [vmem:[%s174_s4] sm:$0xf] %vm6544_vm5, %v6540_v18 }
 0xabd   : > { %7549 = shalt.err (!%p7546_p7)
}
 0xabe   : > { %s7550_s20 = scalar_lea.hbm %s12687_s18, 64  ;;  %s7554_s17 = scalar_lea.hbm %s12733_s2, 128 }
 0xabf   : > { %p7551_p9 = scmp.ne.s32.totalorder %s12687_s18, %s7550_s20  ;;  %p7555_p0 = scmp.lt.u32.totalorder %s12687_s18, %s12733_s2 }
 0xac0   : > { %p7556_p1 = scmp.lt.u32.totalorder %s7554_s17, %s7550_s20  ;;  %p7558_p4 = scmp.lt.u32.totalorder %s7550_s20, %s12687_s18 }
 0xac1   : > { %p7552_p2 = pnand %p7551_p9, %p7749_p12 }
 0xac2   : > { %p7557_p11 = por %p7556_p1, %p7555_p0 }
 0xac3   : > { %p7553_p5 = pneg %p7552_p2 }
 0xac4   : > { %p7559_p6 = por %p7558_p4, %p7557_p11 }
 0xac6   : > { %p7560_p8 = pnand %p7559_p6, %p7553_p5 }
 0xac8   : > { %7563 = shalt.err (!%p7560_p8)
}
 0xac9   : > { %7168 = dma.vmem_to_hbm [thread:$0]  (%p7749_p12), %s12689_s5, 64, %s12687_s18, %s6548_s24  }
 0xaca PF: > { %s6574_s23 = sand.u32 1, %s7594_s9   ;;  %p13122_p10 = scmp.ne.s32.totalorder %s12861_s16, 0 }
 0xacb   : > { %p13123_p13 = scmp.ge.s32.totalorder %s7606_s12, 2  ;;  %s6575_s28 = scalar_lea.sflag [#allocation4], %s6574_s23 }
 0xacd   : > { %p7179_p3 = pnand %p13123_p13, %p13122_p10 }
 0xacf   : > { %7589 = dma.done.wait (!%p7179_p3), %s6575_s28, 64  }
 0xad0   : > { %7591 = vsyncadd (!%p7179_p3), %s6575_s28, 4294967232  ;;  %p16_p7 = scmp.ge.s32.totalorder %s7714_s21, 4   ;;  %s13124_s9 = smov %s7598_s10 }
 0xad1   : > { %s13125_s10 = smov %s7602_s11  ;;  %s13126_s11 = smov %s7745_s8 }
 0xad2   : > { %s13127_s12 = smov %s7714_s21  ;;  %18 = sbr.rel (!%p16_p7) target bundleno = 6 (0x6), region = 77 }
 0xad9   :  { %6580 = vsyncpa [#allocation3], 1 }
 0xada   :  { %6582 = vsyncpa [#allocation3 + $0x1], 1 }
 0xadb   :  { %6583 = vsyncpa [#allocation6], 1 }
 0xadc   :  { %6584 = vsyncpa [#allocation4], 1 }
 0xadd   :  { %6586 = vsyncpa [#allocation4 + $0x1], 1 }

</bundles_post_ra>
